<compile_context>
chip_gen: v6e
topology: v6e:2x2x1
jax: 0.10.0
libtpu: 0.0.40
codegen_flags: <defaults>
</compile_context>

<pallas_src>
import functools

import jax
import jax.numpy as jnp
from jax.experimental import pallas as pl
from jax.experimental.pallas import tpu as pltpu

LN_EPS = 1e-5              # torch.nn.LayerNorm default eps
_INV_SQRT2 = 0.7071067811865476
_LANE = 128

_N_ATTN_PARAMS = 7         # ln_w, ln_b, wq, wk, wv, wo, b_out
_N_FFN_PARAMS = 6          # ln_w, ln_b, w1, b1, w2, b2
_N_STREAM_PARAMS = 2 * _N_ATTN_PARAMS + _N_FFN_PARAMS   # 20


def _round_up(x, m):
    return ((x + m - 1) // m) * m


# ----------------------------------------------------------------------------
# Fused per-layer kernel: one grid step = `bb` batch elements, both streams.
# Token blocks are lane-dense 2-D slabs (bb*N, D_pad).
# ----------------------------------------------------------------------------
def _layer_kernel(*refs, heads, dim_head, bb, scale, compute_dtype, d_real):
    n = len(refs)
    xa_ref, xb_ref = refs[0], refs[1]
    oa_ref, ob_ref = refs[n - 2], refs[n - 1]
    params = refs[2:n - 2]
    half = len(params) // 2
    pA, pB = params[:half], params[half:]

    m_rows, d_pad = xa_ref.shape
    n_tok = m_rows // bb
    cd = compute_dtype
    approx = jnp.dtype(cd) != jnp.dtype(jnp.float32)
    inv_d = 1.0 / float(d_real)

    # Lane mask for LayerNorm statistics when D is zero-padded to 128 lanes.
    if d_real != d_pad:
        lane = jax.lax.broadcasted_iota(jnp.int32, (1, d_pad), 1)
        ln_mask = lane < d_real
    else:
        ln_mask = None

    def layernorm(x, w_ref, b_ref):
        # x: (M, Dp) f32.  Biased variance over the real D lanes only (torch
        # nn.LayerNorm semantics).  Padded lanes are zero on input and stay
        # zero on output (w, b are zero-padded).
        mu = jnp.sum(x, axis=-1, keepdims=True) * inv_d
        xc = x - mu
        if ln_mask is not None:
            xc = jnp.where(ln_mask, xc, 0.0)
        var = jnp.sum(xc * xc, axis=-1, keepdims=True) * inv_d
        return xc * jax.lax.rsqrt(var + LN_EPS) * w_ref[...] + b_ref[...]

    def project_heads(xn_c, w_ref):
        # Per-head Q/K/V projection via leading-dim weight indexing (K = D_pad
        # per push); no lane slicing of the activation.
        cols = [jnp.dot(xn_c, w_ref[h], preferred_element_type=jnp.float32)
                for h in range(heads)]
        t = jnp.stack(cols, axis=0)                       # (heads, M, dh) f32
        return t.reshape(heads * bb, n_tok, dim_head)     # fused (head, batch)

    def mha(qh, kh, vh):
        # One batched QK^T and one batched PV contraction over the fused
        # (head, batch) group axis -- no per-head dot loop, no lane concat.
        # TODO(synk): flash-tile the kv axis with online softmax for large N.
        qh_c, kh_c, vh_c = (t.astype(cd) for t in (qh, kh, vh))
        s = jnp.einsum("gnd,gmd->gnm", qh_c, kh_c,
                       preferred_element_type=jnp.float32) * scale
        s = s - jnp.max(s, axis=-1, keepdims=True)
        p = jnp.exp(s)
        p = p * pl.reciprocal(jnp.sum(p, axis=-1, keepdims=True), approx=approx)
        o = jnp.einsum("gnm,gmd->gnd", p.astype(cd), vh_c,
                       preferred_element_type=jnp.float32)
        return o.reshape(heads, bb * n_tok, dim_head)      # (heads, M, dh) f32

    def attn_block(xq, xkv, p, is_self):
        # Residual(PreNorm(Attention / MS_Attention)): the single PreNorm LN is
        # applied to both streams; residual is on the query stream.
        ln_w, ln_b, wq, wk, wv, wo, bo = p
        qn = layernorm(xq, ln_w, ln_b).astype(cd)
        kn = qn if is_self else layernorm(xkv, ln_w, ln_b).astype(cd)
        qh = project_heads(qn, wq)
        kh = project_heads(kn, wk)
        vh = project_heads(kn, wv)
        oh = mha(qh, kh, vh).astype(cd)                    # (heads, M, dh)
        # Output projection: one batched contraction against per-head (dh, Dp)
        # weight slabs + cheap sum over the tiny head axis (replaces the
        # per-head accumulate loop).
        # TODO(synk): at production dim_head (128-lane aligned) merge heads
        # into one K=heads*dim_head matmul instead of summing per-head slabs.
        y_h = jnp.einsum("hmd,hdk->hmk", oh, wo[...],
                         preferred_element_type=jnp.float32)
        y = jnp.sum(y_h, axis=0) + bo[...]
        return y + xq                                      # Residual

    def ffn_block(x, p):
        # Residual(PreNorm(FeedForward)) with exact-erf GELU (nn.GELU default).
        ln_w, ln_b, w1, b1, w2, b2 = p
        xn = layernorm(x, ln_w, ln_b).astype(cd)
        h = jnp.dot(xn, w1[...], preferred_element_type=jnp.float32) + b1[...]
        h = 0.5 * h * (1.0 + jax.lax.erf(h * _INV_SQRT2))  # f32 elementwise
        y = jnp.dot(h.astype(cd), w2[...],
                    preferred_element_type=jnp.float32) + b2[...]
        return y + x                                       # Residual

    xa = xa_ref[...].astype(jnp.float32)                   # (M, Dp)
    xb = xb_ref[...].astype(jnp.float32)

    sa_A, ca_A, ff_A = pA[:7], pA[7:14], pA[14:]
    sa_B, ca_B, ff_B = pB[:7], pB[7:14], pB[14:]

    xa = attn_block(xa, xa, sa_A, is_self=True)      # self-attn A
    xb = attn_block(xb, xb, sa_B, is_self=True)      # self-attn B
    xa_c = attn_block(xa, xb, ca_A, is_self=False)   # cross-attn A (kv = x_B)
    xb = attn_block(xb, xa, ca_B, is_self=False)     # cross-attn B (kv = post-self x_A)
    xa = ffn_block(xa_c, ff_A)                       # FFN A
    xb = ffn_block(xb, ff_B)                         # FFN B

    oa_ref[...] = xa.astype(oa_ref.dtype)
    ob_ref[...] = xb.astype(ob_ref.dtype)


# ----------------------------------------------------------------------------
# Per-layer pallas_call wrapper
# ----------------------------------------------------------------------------
def _dual_layer(x_A, x_B, pA, pB, *, heads, dim_head, bb, n_tok, scale,
                compute_dtype, d_real, single_buffer_weights):
    rows, d_pad = x_A.shape                 # rows = B * N (flattened, padded)
    block_rows = bb * n_tok
    num_steps = rows // block_rows
    tok_spec = pl.BlockSpec((block_rows, d_pad), lambda i: (i, 0))
    all_params = list(pA) + list(pB)

    def param_spec(p):
        idx = lambda i, nd=p.ndim: (0,) * nd
        if single_buffer_weights:
            # Weight blocks never change across the grid: single-buffer them
            # (halves weight VMEM vs. default double buffering).
            return pl.BlockSpec(p.shape, idx, pipeline_mode=pl.Buffered(1))
        return pl.BlockSpec(p.shape, idx)

    param_specs = [param_spec(p) for p in all_params]

    # Explicit VMEM budget from the actual resident footprint (2 token streams
    # x in+out x double buffer + weight copies), clamped to v7x's 64 MiB.
    tok_bytes = block_rows * d_pad * x_A.dtype.itemsize
    param_bytes = sum(int(p.size) * p.dtype.itemsize for p in all_params)
    w_copies = 1 if single_buffer_weights else 2
    need = 2 * 2 * 2 * tok_bytes + w_copies * param_bytes
    vmem_limit = int(min(64 << 20, max(32 << 20, need + (16 << 20))))

    kern = functools.partial(_layer_kernel, heads=heads, dim_head=dim_head,
                             bb=bb, scale=scale, compute_dtype=compute_dtype,
                             d_real=d_real)
    return pl.pallas_call(
        kern,
        out_shape=(jax.ShapeDtypeStruct(x_A.shape, x_A.dtype),
                   jax.ShapeDtypeStruct(x_B.shape, x_B.dtype)),
        grid_spec=pltpu.PrefetchScalarGridSpec(
            num_scalar_prefetch=0,
            grid=(num_steps,),
            in_specs=[tok_spec, tok_spec] + param_specs,
            out_specs=[tok_spec, tok_spec],
        ),
        # In-place residual-stream writeback (no fresh HBM buffers per layer).
        input_output_aliases={0: 0, 1: 1},
        compiler_params=pltpu.CompilerParams(
            dimension_semantics=("parallel",),       # megacore / v7x 2 TCs
            vmem_limit_bytes=vmem_limit),
    )(x_A, x_B, *all_params)


# ----------------------------------------------------------------------------
# Host-side parameter preparation: split packed weights, per-head layouts,
# zero-pad D / mlp_dim to 128 lanes, cast matmul weights to the compute dtype.
# Done once, outside the jitted forward.
# ----------------------------------------------------------------------------
def _pad_to(a, shape):
    pads = [(0, t - s) for s, t in zip(a.shape, shape)]
    return jnp.pad(a, pads)


def _prep_stream(p, heads, dim_head, cd, d_pad, mlp_pad):
    inner = heads * dim_head
    sa, ca, ff = p["sa"], p["ca"], p["ff"]
    dim = sa["w_qkv"].shape[0]

    def heads_in(w):   # (dim, inner) -> (heads, d_pad, dim_head)
        w = w.reshape(dim, heads, dim_head).transpose(1, 0, 2)
        return _pad_to(w, (heads, d_pad, dim_head)).astype(cd)

    def heads_out(w):  # (inner, dim) -> (heads, dim_head, d_pad)
        w = w.reshape(heads, dim_head, dim)
        return _pad_to(w, (heads, dim_head, d_pad)).astype(cd)

    def vec(b, width):  # (1, k) -> zero-padded (1, width) f32
        return _pad_to(b.astype(jnp.float32), (1, width))

    qkv = sa["w_qkv"]
    out = [vec(sa["ln_w"], d_pad), vec(sa["ln_b"], d_pad),
           heads_in(qkv[:, :inner]),
           heads_in(qkv[:, inner:2 * inner]),
           heads_in(qkv[:, 2 * inner:]),
           heads_out(sa["w_out"]), vec(sa["b_out"], d_pad)]
    kv = ca["w_kv"]
    out += [vec(ca["ln_w"], d_pad), vec(ca["ln_b"], d_pad),
            heads_in(ca["w_q"]),
            heads_in(kv[:, :inner]),
            heads_in(kv[:, inner:]),
            heads_out(ca["w_out"]), vec(ca["b_out"], d_pad)]
    out += [vec(ff["ln_w"], d_pad), vec(ff["ln_b"], d_pad),
            _pad_to(ff["w1"], (d_pad, mlp_pad)).astype(cd), vec(ff["b1"], mlp_pad),
            _pad_to(ff["w2"], (mlp_pad, d_pad)).astype(cd), vec(ff["b2"], d_pad)]
    assert len(out) == _N_STREAM_PARAMS
    return out


def prepare_layers(layers, heads, dim_head, compute_dtype, lane_multiple=_LANE):
    dim = layers[0]["A"]["sa"]["w_qkv"].shape[0]
    mlp = layers[0]["A"]["ff"]["w1"].shape[1]
    d_pad = _round_up(dim, lane_multiple)
    mlp_pad = _round_up(mlp, lane_multiple)
    return [tuple(_prep_stream(layer[s], heads, dim_head, compute_dtype,
                               d_pad, mlp_pad)
                  for s in ("A", "B"))
            for layer in layers]


# ----------------------------------------------------------------------------
# Dual_decoder forward
# ----------------------------------------------------------------------------
def dual_decoder(x_A, x_B, prepped_layers, *, heads, dim_head,
                 compute_dtype=jnp.bfloat16, batch_block=None,
                 single_buffer_weights=True):
    B, N, D = x_A.shape
    scale = float(D) ** -0.5    # NOTE: dim ** -0.5 (matches the reference module)
    d_pad = prepped_layers[0][0][0].shape[-1]
    if batch_block is None:
        # Fold half the batch per grid step: amortizes per-step overhead while
        # keeping >= 2 grid steps so both v7x TensorCores stay busy.
        batch_block = B // 2 if (B >= 2 and B % 2 == 0) else B
    assert B % batch_block == 0

    def to_slab(x):             # (B, N, D) -> lane-dense (B*N, D_pad)
        if d_pad != D:
            x = jnp.pad(x, ((0, 0), (0, 0), (0, d_pad - D)))
        return x.reshape(B * N, d_pad)

    xa, xb = to_slab(x_A), to_slab(x_B)
    for pA, pB in prepped_layers:
        xa, xb = _dual_layer(xa, xb, pA, pB, heads=heads, dim_head=dim_head,
                             bb=batch_block, n_tok=N, scale=scale,
                             compute_dtype=compute_dtype, d_real=D,
                             single_buffer_weights=single_buffer_weights)
    xa = xa.reshape(B, N, d_pad)[..., :D]
    xb = xb.reshape(B, N, d_pad)[..., :D]
    return xa, xb


# ----------------------------------------------------------------------------
# Deterministic parameter construction (packed, torch-like layout)
# ----------------------------------------------------------------------------
def init_params(key, dim, depth, heads, dim_head, mlp_dim):
    inner = heads * dim_head

    def lin(k, fi, fo):
        return jax.random.normal(k, (fi, fo), jnp.float32) * 0.05

    layers = []
    for _ in range(depth):
        layer = {}
        for name in ("A", "B"):
            keys = jax.random.split(key, 10)
            key = keys[0]
            sa = dict(ln_w=jnp.ones((1, dim), jnp.float32),
                      ln_b=jnp.zeros((1, dim), jnp.float32),
                      w_qkv=lin(keys[1], dim, 3 * inner),
                      w_out=lin(keys[2], inner, dim),
                      b_out=jax.random.normal(keys[3], (1, dim), jnp.float32) * 0.01)
            ca = dict(ln_w=jnp.ones((1, dim), jnp.float32),
                      ln_b=jnp.zeros((1, dim), jnp.float32),
                      w_q=lin(keys[4], dim, inner),
                      w_kv=lin(keys[5], dim, 2 * inner),
                      w_out=lin(keys[6], inner, dim),
                      b_out=jnp.zeros((1, dim), jnp.float32))
            ff = dict(ln_w=jnp.ones((1, dim), jnp.float32),
                      ln_b=jnp.zeros((1, dim), jnp.float32),
                      w1=lin(keys[7], dim, mlp_dim),
                      b1=jax.random.normal(keys[8], (1, mlp_dim), jnp.float32) * 0.01,
                      w2=lin(keys[9], mlp_dim, dim),
                      b2=jnp.zeros((1, dim), jnp.float32))
            layer[name] = dict(sa=sa, ca=ca, ff=ff)
        layers.append(layer)
    return layers


# ----------------------------------------------------------------------------
# Pure-JAX reference (for correctness check)
# ----------------------------------------------------------------------------
def _ref_ln(x, w, b):
    mu = jnp.mean(x, axis=-1, keepdims=True)
    var = jnp.mean((x - mu) ** 2, axis=-1, keepdims=True)
    return (x - mu) * jax.lax.rsqrt(var + LN_EPS) * w[0] + b[0]


def _ref_mha(q, k, v, heads, dim_head, scale):
    B, N, _ = q.shape
    sp = lambda t: t.reshape(B, N, heads, dim_head).transpose(0, 2, 1, 3)
    q, k, v = sp(q), sp(k), sp(v)
    dots = jnp.einsum("bhid,bhjd->bhij", q, k) * scale
    a = jax.nn.softmax(dots, axis=-1)
    o = jnp.einsum("bhij,bhjd->bhid", a, v)
    return o.transpose(0, 2, 1, 3).reshape(B, N, heads * dim_head)


def _ref_self(x, p, heads, dim_head, scale):
    xn = _ref_ln(x, p["ln_w"], p["ln_b"])
    qkv = xn @ p["w_qkv"]
    inner = heads * dim_head
    q, k, v = qkv[..., :inner], qkv[..., inner:2 * inner], qkv[..., 2 * inner:]
    a = _ref_mha(q, k, v, heads, dim_head, scale)
    return a @ p["w_out"] + p["b_out"][0] + x


def _ref_cross(xa, xb, p, heads, dim_head, scale):
    xan = _ref_ln(xa, p["ln_w"], p["ln_b"])
    xbn = _ref_ln(xb, p["ln_w"], p["ln_b"])
    inner = heads * dim_head
    q = xan @ p["w_q"]
    kv = xbn @ p["w_kv"]
    k, v = kv[..., :inner], kv[..., inner:]
    a = _ref_mha(q, k, v, heads, dim_head, scale)
    return a @ p["w_out"] + p["b_out"][0] + xa


def _ref_ffn(x, p):
    xn = _ref_ln(x, p["ln_w"], p["ln_b"])
    h = xn @ p["w1"] + p["b1"][0]
    h = 0.5 * h * (1.0 + jax.lax.erf(h * _INV_SQRT2))
    return h @ p["w2"] + p["b2"][0] + x


def reference(x_A, x_B, layers, heads, dim_head):
    scale = float(x_A.shape[-1]) ** -0.5
    for layer in layers:
        pA, pB = layer["A"], layer["B"]
        x_A = _ref_self(x_A, pA["sa"], heads, dim_head, scale)
        x_B = _ref_self(x_B, pB["sa"], heads, dim_head, scale)
        x__A = _ref_cross(x_A, x_B, pA["ca"], heads, dim_head, scale)
        x_B = _ref_cross(x_B, x_A, pB["ca"], heads, dim_head, scale)
        x_A = _ref_ffn(x__A, pA["ff"])
        x_B = _ref_ffn(x_B, pB["ff"])
    return x_A, x_B


# ----------------------------------------------------------------------------
if __name__ == "__main__":
    B, N, D = 4, 8, 32
    heads, dim_head, mlp_dim, depth = 2, 8, 64, 2          # dropout = 0.0 (eval)

    key = jax.random.PRNGKey(0)
    k1, k2, k3 = jax.random.split(key, 3)
    x_A = jax.random.normal(k1, (B, N, D), jnp.float32)
    x_B = jax.random.normal(k2, (B, N, D), jnp.float32)
    layers = init_params(k3, D, depth, heads, dim_head, mlp_dim)

    ref_A, ref_B = reference(x_A, x_B, layers, heads, dim_head)

    def run_checks(single_buffer_weights):
        # 1) Strict check: f32 compute path (exact softmax reciprocal).
        prep_f32 = prepare_layers(layers, heads, dim_head, jnp.float32)
        fwd_f32 = jax.jit(functools.partial(
            dual_decoder, heads=heads, dim_head=dim_head,
            compute_dtype=jnp.float32,
            single_buffer_weights=single_buffer_weights))
        o32_A, o32_B = fwd_f32(x_A, x_B, prep_f32)
        jax.block_until_ready((o32_A, o32_B))
        assert o32_A.shape == (B, N, D) and o32_B.shape == (B, N, D)
        assert jnp.allclose(o32_A, ref_A, rtol=1e-3, atol=1e-3)
        assert jnp.allclose(o32_B, ref_B, rtol=1e-3, atol=1e-3)

        # 2) Optimized path: bf16 MXU operands + approx reciprocal.
        prep_bf16 = prepare_layers(layers, heads, dim_head, jnp.bfloat16)
        fwd_bf16 = jax.jit(functools.partial(
            dual_decoder, heads=heads, dim_head=dim_head,
            compute_dtype=jnp.bfloat16,
            single_buffer_weights=single_buffer_weights))
        out_A, out_B = fwd_bf16(x_A, x_B, prep_bf16)
        jax.block_until_ready((out_A, out_B))
        assert out_A.shape == (B, N, D) and out_B.shape == (B, N, D)
        assert jnp.allclose(out_A, ref_A, rtol=5e-2, atol=5e-2)
        assert jnp.allclose(out_B, ref_B, rtol=5e-2, atol=5e-2)

    try:
        run_checks(single_buffer_weights=True)
    except Exception:
        # pl.Buffered(1) single-buffered weight blocks are version-dependent on
        # the main pallas_call pipeline; fall back to default double buffering.
        run_checks(single_buffer_weights=False)

    print("KERNEL_OK")
</pallas_src>

<mosaic_0001>
module attributes {stable_mosaic.version = 11 : i64} {
  func.func @_layer_kernel(%arg0: i32, %arg1: memref<16x128xf32, #tpu.memory_space<vmem>>, %arg2: memref<16x128xf32, #tpu.memory_space<vmem>>, %arg3: memref<1x128xf32, #tpu.memory_space<vmem>>, %arg4: memref<1x128xf32, #tpu.memory_space<vmem>>, %arg5: memref<2x128x8xf32, #tpu.memory_space<vmem>>, %arg6: memref<2x128x8xf32, #tpu.memory_space<vmem>>, %arg7: memref<2x128x8xf32, #tpu.memory_space<vmem>>, %arg8: memref<2x8x128xf32, #tpu.memory_space<vmem>>, %arg9: memref<1x128xf32, #tpu.memory_space<vmem>>, %arg10: memref<1x128xf32, #tpu.memory_space<vmem>>, %arg11: memref<1x128xf32, #tpu.memory_space<vmem>>, %arg12: memref<2x128x8xf32, #tpu.memory_space<vmem>>, %arg13: memref<2x128x8xf32, #tpu.memory_space<vmem>>, %arg14: memref<2x128x8xf32, #tpu.memory_space<vmem>>, %arg15: memref<2x8x128xf32, #tpu.memory_space<vmem>>, %arg16: memref<1x128xf32, #tpu.memory_space<vmem>>, %arg17: memref<1x128xf32, #tpu.memory_space<vmem>>, %arg18: memref<1x128xf32, #tpu.memory_space<vmem>>, %arg19: memref<128x128xf32, #tpu.memory_space<vmem>>, %arg20: memref<1x128xf32, #tpu.memory_space<vmem>>, %arg21: memref<128x128xf32, #tpu.memory_space<vmem>>, %arg22: memref<1x128xf32, #tpu.memory_space<vmem>>, %arg23: memref<1x128xf32, #tpu.memory_space<vmem>>, %arg24: memref<1x128xf32, #tpu.memory_space<vmem>>, %arg25: memref<2x128x8xf32, #tpu.memory_space<vmem>>, %arg26: memref<2x128x8xf32, #tpu.memory_space<vmem>>, %arg27: memref<2x128x8xf32, #tpu.memory_space<vmem>>, %arg28: memref<2x8x128xf32, #tpu.memory_space<vmem>>, %arg29: memref<1x128xf32, #tpu.memory_space<vmem>>, %arg30: memref<1x128xf32, #tpu.memory_space<vmem>>, %arg31: memref<1x128xf32, #tpu.memory_space<vmem>>, %arg32: memref<2x128x8xf32, #tpu.memory_space<vmem>>, %arg33: memref<2x128x8xf32, #tpu.memory_space<vmem>>, %arg34: memref<2x128x8xf32, #tpu.memory_space<vmem>>, %arg35: memref<2x8x128xf32, #tpu.memory_space<vmem>>, %arg36: memref<1x128xf32, #tpu.memory_space<vmem>>, %arg37: memref<1x128xf32, #tpu.memory_space<vmem>>, %arg38: memref<1x128xf32, #tpu.memory_space<vmem>>, %arg39: memref<128x128xf32, #tpu.memory_space<vmem>>, %arg40: memref<1x128xf32, #tpu.memory_space<vmem>>, %arg41: memref<128x128xf32, #tpu.memory_space<vmem>>, %arg42: memref<1x128xf32, #tpu.memory_space<vmem>>, %arg43: memref<16x128xf32, #tpu.memory_space<vmem>>, %arg44: memref<16x128xf32, #tpu.memory_space<vmem>>) attributes {dimension_semantics = [#tpu.dimension_semantics<parallel>], iteration_bounds = array<i64: 2>, scalar_prefetch = 0 : i64, scratch_operands = 0 : i64, tpu.core_type = #tpu.core_type<tc>, window_params = [{transform_indices = @transform_0, window_bounds = array<i64: 16, 128>}, {transform_indices = @transform_1, window_bounds = array<i64: 16, 128>}, {pipeline_mode = #tpu.pipeline_mode<synchronous>, transform_indices = @transform_2, window_bounds = array<i64: 1, 128>}, {pipeline_mode = #tpu.pipeline_mode<synchronous>, transform_indices = @transform_3, window_bounds = array<i64: 1, 128>}, {pipeline_mode = #tpu.pipeline_mode<synchronous>, transform_indices = @transform_4, window_bounds = array<i64: 2, 128, 8>}, {pipeline_mode = #tpu.pipeline_mode<synchronous>, transform_indices = @transform_5, window_bounds = array<i64: 2, 128, 8>}, {pipeline_mode = #tpu.pipeline_mode<synchronous>, transform_indices = @transform_6, window_bounds = array<i64: 2, 128, 8>}, {pipeline_mode = #tpu.pipeline_mode<synchronous>, transform_indices = @transform_7, window_bounds = array<i64: 2, 8, 128>}, {pipeline_mode = #tpu.pipeline_mode<synchronous>, transform_indices = @transform_8, window_bounds = array<i64: 1, 128>}, {pipeline_mode = #tpu.pipeline_mode<synchronous>, transform_indices = @transform_9, window_bounds = array<i64: 1, 128>}, {pipeline_mode = #tpu.pipeline_mode<synchronous>, transform_indices = @transform_10, window_bounds = array<i64: 1, 128>}, {pipeline_mode = #tpu.pipeline_mode<synchronous>, transform_indices = @transform_11, window_bounds = array<i64: 2, 128, 8>}, {pipeline_mode = #tpu.pipeline_mode<synchronous>, transform_indices = @transform_12, window_bounds = array<i64: 2, 128, 8>}, {pipeline_mode = #tpu.pipeline_mode<synchronous>, transform_indices = @transform_13, window_bounds = array<i64: 2, 128, 8>}, {pipeline_mode = #tpu.pipeline_mode<synchronous>, transform_indices = @transform_14, window_bounds = array<i64: 2, 8, 128>}, {pipeline_mode = #tpu.pipeline_mode<synchronous>, transform_indices = @transform_15, window_bounds = array<i64: 1, 128>}, {pipeline_mode = #tpu.pipeline_mode<synchronous>, transform_indices = @transform_16, window_bounds = array<i64: 1, 128>}, {pipeline_mode = #tpu.pipeline_mode<synchronous>, transform_indices = @transform_17, window_bounds = array<i64: 1, 128>}, {pipeline_mode = #tpu.pipeline_mode<synchronous>, transform_indices = @transform_18, window_bounds = array<i64: 128, 128>}, {pipeline_mode = #tpu.pipeline_mode<synchronous>, transform_indices = @transform_19, window_bounds = array<i64: 1, 128>}, {pipeline_mode = #tpu.pipeline_mode<synchronous>, transform_indices = @transform_20, window_bounds = array<i64: 128, 128>}, {pipeline_mode = #tpu.pipeline_mode<synchronous>, transform_indices = @transform_21, window_bounds = array<i64: 1, 128>}, {pipeline_mode = #tpu.pipeline_mode<synchronous>, transform_indices = @transform_22, window_bounds = array<i64: 1, 128>}, {pipeline_mode = #tpu.pipeline_mode<synchronous>, transform_indices = @transform_23, window_bounds = array<i64: 1, 128>}, {pipeline_mode = #tpu.pipeline_mode<synchronous>, transform_indices = @transform_24, window_bounds = array<i64: 2, 128, 8>}, {pipeline_mode = #tpu.pipeline_mode<synchronous>, transform_indices = @transform_25, window_bounds = array<i64: 2, 128, 8>}, {pipeline_mode = #tpu.pipeline_mode<synchronous>, transform_indices = @transform_26, window_bounds = array<i64: 2, 128, 8>}, {pipeline_mode = #tpu.pipeline_mode<synchronous>, transform_indices = @transform_27, window_bounds = array<i64: 2, 8, 128>}, {pipeline_mode = #tpu.pipeline_mode<synchronous>, transform_indices = @transform_28, window_bounds = array<i64: 1, 128>}, {pipeline_mode = #tpu.pipeline_mode<synchronous>, transform_indices = @transform_29, window_bounds = array<i64: 1, 128>}, {pipeline_mode = #tpu.pipeline_mode<synchronous>, transform_indices = @transform_30, window_bounds = array<i64: 1, 128>}, {pipeline_mode = #tpu.pipeline_mode<synchronous>, transform_indices = @transform_31, window_bounds = array<i64: 2, 128, 8>}, {pipeline_mode = #tpu.pipeline_mode<synchronous>, transform_indices = @transform_32, window_bounds = array<i64: 2, 128, 8>}, {pipeline_mode = #tpu.pipeline_mode<synchronous>, transform_indices = @transform_33, window_bounds = array<i64: 2, 128, 8>}, {pipeline_mode = #tpu.pipeline_mode<synchronous>, transform_indices = @transform_34, window_bounds = array<i64: 2, 8, 128>}, {pipeline_mode = #tpu.pipeline_mode<synchronous>, transform_indices = @transform_35, window_bounds = array<i64: 1, 128>}, {pipeline_mode = #tpu.pipeline_mode<synchronous>, transform_indices = @transform_36, window_bounds = array<i64: 1, 128>}, {pipeline_mode = #tpu.pipeline_mode<synchronous>, transform_indices = @transform_37, window_bounds = array<i64: 1, 128>}, {pipeline_mode = #tpu.pipeline_mode<synchronous>, transform_indices = @transform_38, window_bounds = array<i64: 128, 128>}, {pipeline_mode = #tpu.pipeline_mode<synchronous>, transform_indices = @transform_39, window_bounds = array<i64: 1, 128>}, {pipeline_mode = #tpu.pipeline_mode<synchronous>, transform_indices = @transform_40, window_bounds = array<i64: 128, 128>}, {pipeline_mode = #tpu.pipeline_mode<synchronous>, transform_indices = @transform_41, window_bounds = array<i64: 1, 128>}, {transform_indices = @transform_42, window_bounds = array<i64: 16, 128>}, {transform_indices = @transform_43, window_bounds = array<i64: 16, 128>}]} {
    %0 = tpu.iota {dimensions = array<i32: 1>} : vector<1x128xi32>
    %c32_i32 = arith.constant 32 : i32
    %1 = vector.broadcast %c32_i32 : i32 to vector<1x128xi32>
    %2 = arith.cmpi slt, %0, %1 : vector<1x128xi32>
    %c0 = arith.constant 0 : index
    %c0_0 = arith.constant 0 : index
    %3 = vector.load %arg1[%c0, %c0_0] : memref<16x128xf32, #tpu.memory_space<vmem>>, vector<16x128xf32>
    %c0_1 = arith.constant 0 : index
    %c0_2 = arith.constant 0 : index
    %4 = vector.load %arg2[%c0_1, %c0_2] : memref<16x128xf32, #tpu.memory_space<vmem>>, vector<16x128xf32>
    %cst = arith.constant dense<0.000000e+00> : vector<16xf32>
    %5 = vector.multi_reduction <add>, %3, %cst [1] : vector<16x128xf32> to vector<16xf32>
    %6 = vector.shape_cast %5 : vector<16xf32> to vector<16x1xf32>
    %cst_3 = arith.constant 3.125000e-02 : f32
    %7 = vector.broadcast %cst_3 : f32 to vector<16x1xf32>
    %8 = arith.mulf %6, %7 : vector<16x1xf32>
    %9 = vector.broadcast %8 : vector<16x1xf32> to vector<16x128xf32>
    %10 = arith.subf %3, %9 : vector<16x128xf32>
    %cst_4 = arith.constant 0.000000e+00 : f32
    %11 = vector.shape_cast %2 : vector<1x128xi1> to vector<1x128xi1>
    %12 = vector.broadcast %11 : vector<1x128xi1> to vector<16x128xi1>
    %13 = vector.broadcast %cst_4 : f32 to vector<16x128xf32>
    %14 = arith.select %12, %10, %13 : vector<16x128xi1>, vector<16x128xf32>
    %15 = arith.mulf %14, %14 : vector<16x128xf32>
    %cst_5 = arith.constant dense<0.000000e+00> : vector<16xf32>
    %16 = vector.multi_reduction <add>, %15, %cst_5 [1] : vector<16x128xf32> to vector<16xf32>
    %17 = vector.shape_cast %16 : vector<16xf32> to vector<16x1xf32>
    %cst_6 = arith.constant 3.125000e-02 : f32
    %18 = vector.broadcast %cst_6 : f32 to vector<16x1xf32>
    %19 = arith.mulf %17, %18 : vector<16x1xf32>
    %cst_7 = arith.constant 9.99999974E-6 : f32
    %20 = vector.broadcast %cst_7 : f32 to vector<16x1xf32>
    %21 = arith.addf %19, %20 : vector<16x1xf32>
    %22 = math.rsqrt %21 : vector<16x1xf32>
    %23 = vector.broadcast %22 : vector<16x1xf32> to vector<16x128xf32>
    %24 = arith.mulf %14, %23 : vector<16x128xf32>
    %c0_8 = arith.constant 0 : index
    %c0_9 = arith.constant 0 : index
    %25 = vector.load %arg3[%c0_8, %c0_9] : memref<1x128xf32, #tpu.memory_space<vmem>>, vector<1x128xf32>
    %26 = vector.broadcast %25 : vector<1x128xf32> to vector<16x128xf32>
    %27 = arith.mulf %24, %26 : vector<16x128xf32>
    %c0_10 = arith.constant 0 : index
    %c0_11 = arith.constant 0 : index
    %28 = vector.load %arg4[%c0_10, %c0_11] : memref<1x128xf32, #tpu.memory_space<vmem>>, vector<1x128xf32>
    %29 = vector.broadcast %28 : vector<1x128xf32> to vector<16x128xf32>
    %30 = arith.addf %27, %29 : vector<16x128xf32>
    %c0_12 = arith.constant 0 : index
    %c0_13 = arith.constant 0 : index
    %c0_14 = arith.constant 0 : index
    %31 = vector.load %arg5[%c0_12, %c0_13, %c0_14] : memref<2x128x8xf32, #tpu.memory_space<vmem>>, vector<1x128x8xf32>
    %32 = vector.shape_cast %31 : vector<1x128x8xf32> to vector<128x8xf32>
    %cst_15 = arith.constant dense<0.000000e+00> : vector<16x8xf32>
    %33 = tpu.matmul %30, %32, %cst_15 {dimension_numbers = #tpu.dot_dimension_numbers<[1], [0], [0], [1], [0, 0, 1, 1], [], []>} : vector<16x128xf32>, vector<128x8xf32>, vector<16x8xf32> -> vector<16x8xf32>
    %c1 = arith.constant 1 : index
    %c0_16 = arith.constant 0 : index
    %c0_17 = arith.constant 0 : index
    %34 = vector.load %arg5[%c1, %c0_16, %c0_17] : memref<2x128x8xf32, #tpu.memory_space<vmem>>, vector<1x128x8xf32>
    %35 = vector.shape_cast %34 : vector<1x128x8xf32> to vector<128x8xf32>
    %cst_18 = arith.constant dense<0.000000e+00> : vector<16x8xf32>
    %36 = tpu.matmul %30, %35, %cst_18 {dimension_numbers = #tpu.dot_dimension_numbers<[1], [0], [0], [1], [0, 0, 1, 1], [], []>} : vector<16x128xf32>, vector<128x8xf32>, vector<16x8xf32> -> vector<16x8xf32>
    %37 = vector.shape_cast %33 : vector<16x8xf32> to vector<1x16x8xf32>
    %38 = vector.shape_cast %36 : vector<16x8xf32> to vector<1x16x8xf32>
    %39 = tpu.concatenate %37, %38 in 0 : vector<1x16x8xf32>, vector<1x16x8xf32> -> vector<2x16x8xf32>
    %40 = vector.shape_cast %39 : vector<2x16x8xf32> to vector<4x8x8xf32>
    %c0_19 = arith.constant 0 : index
    %c0_20 = arith.constant 0 : index
    %c0_21 = arith.constant 0 : index
    %41 = vector.load %arg6[%c0_19, %c0_20, %c0_21] : memref<2x128x8xf32, #tpu.memory_space<vmem>>, vector<1x128x8xf32>
    %42 = vector.shape_cast %41 : vector<1x128x8xf32> to vector<128x8xf32>
    %cst_22 = arith.constant dense<0.000000e+00> : vector<16x8xf32>
    %43 = tpu.matmul %30, %42, %cst_22 {dimension_numbers = #tpu.dot_dimension_numbers<[1], [0], [0], [1], [0, 0, 1, 1], [], []>} : vector<16x128xf32>, vector<128x8xf32>, vector<16x8xf32> -> vector<16x8xf32>
    %c1_23 = arith.constant 1 : index
    %c0_24 = arith.constant 0 : index
    %c0_25 = arith.constant 0 : index
    %44 = vector.load %arg6[%c1_23, %c0_24, %c0_25] : memref<2x128x8xf32, #tpu.memory_space<vmem>>, vector<1x128x8xf32>
    %45 = vector.shape_cast %44 : vector<1x128x8xf32> to vector<128x8xf32>
    %cst_26 = arith.constant dense<0.000000e+00> : vector<16x8xf32>
    %46 = tpu.matmul %30, %45, %cst_26 {dimension_numbers = #tpu.dot_dimension_numbers<[1], [0], [0], [1], [0, 0, 1, 1], [], []>} : vector<16x128xf32>, vector<128x8xf32>, vector<16x8xf32> -> vector<16x8xf32>
    %47 = vector.shape_cast %43 : vector<16x8xf32> to vector<1x16x8xf32>
    %48 = vector.shape_cast %46 : vector<16x8xf32> to vector<1x16x8xf32>
    %49 = tpu.concatenate %47, %48 in 0 : vector<1x16x8xf32>, vector<1x16x8xf32> -> vector<2x16x8xf32>
    %50 = vector.shape_cast %49 : vector<2x16x8xf32> to vector<4x8x8xf32>
    %c0_27 = arith.constant 0 : index
    %c0_28 = arith.constant 0 : index
    %c0_29 = arith.constant 0 : index
    %51 = vector.load %arg7[%c0_27, %c0_28, %c0_29] : memref<2x128x8xf32, #tpu.memory_space<vmem>>, vector<1x128x8xf32>
    %52 = vector.shape_cast %51 : vector<1x128x8xf32> to vector<128x8xf32>
    %cst_30 = arith.constant dense<0.000000e+00> : vector<16x8xf32>
    %53 = tpu.matmul %30, %52, %cst_30 {dimension_numbers = #tpu.dot_dimension_numbers<[1], [0], [0], [1], [0, 0, 1, 1], [], []>} : vector<16x128xf32>, vector<128x8xf32>, vector<16x8xf32> -> vector<16x8xf32>
    %c1_31 = arith.constant 1 : index
    %c0_32 = arith.constant 0 : index
    %c0_33 = arith.constant 0 : index
    %54 = vector.load %arg7[%c1_31, %c0_32, %c0_33] : memref<2x128x8xf32, #tpu.memory_space<vmem>>, vector<1x128x8xf32>
    %55 = vector.shape_cast %54 : vector<1x128x8xf32> to vector<128x8xf32>
    %cst_34 = arith.constant dense<0.000000e+00> : vector<16x8xf32>
    %56 = tpu.matmul %30, %55, %cst_34 {dimension_numbers = #tpu.dot_dimension_numbers<[1], [0], [0], [1], [0, 0, 1, 1], [], []>} : vector<16x128xf32>, vector<128x8xf32>, vector<16x8xf32> -> vector<16x8xf32>
    %57 = vector.shape_cast %53 : vector<16x8xf32> to vector<1x16x8xf32>
    %58 = vector.shape_cast %56 : vector<16x8xf32> to vector<1x16x8xf32>
    %59 = tpu.concatenate %57, %58 in 0 : vector<1x16x8xf32>, vector<1x16x8xf32> -> vector<2x16x8xf32>
    %60 = vector.shape_cast %59 : vector<2x16x8xf32> to vector<4x8x8xf32>
    "tpu.trace_start"() <{level = 10 : i32, message = "gnd,gmd->gnm"}> : () -> ()
    %cst_35 = arith.constant dense<0.000000e+00> : vector<4x8x8xf32>
    %61 = tpu.matmul %40, %50, %cst_35 {dimension_numbers = #tpu.dot_dimension_numbers<[2], [2], [1], [1], [0, 0, 0, 1, 1, 1], [0], [0]>} : vector<4x8x8xf32>, vector<4x8x8xf32>, vector<4x8x8xf32> -> vector<4x8x8xf32>
    "tpu.trace_stop"() : () -> ()
    %cst_36 = arith.constant 0.176776692 : f32
    %62 = vector.broadcast %cst_36 : f32 to vector<4x8x8xf32>
    %63 = arith.mulf %61, %62 : vector<4x8x8xf32>
    %cst_37 = arith.constant dense<0xFF800000> : vector<4x8xf32>
    %64 = vector.multi_reduction <maximumf>, %63, %cst_37 [2] : vector<4x8x8xf32> to vector<4x8xf32>
    %65 = vector.shape_cast %64 : vector<4x8xf32> to vector<4x8x1xf32>
    %66 = vector.broadcast %65 : vector<4x8x1xf32> to vector<4x8x8xf32>
    %67 = arith.subf %63, %66 : vector<4x8x8xf32>
    %68 = math.exp %67 : vector<4x8x8xf32>
    %cst_38 = arith.constant dense<0.000000e+00> : vector<4x8xf32>
    %69 = vector.multi_reduction <add>, %68, %cst_38 [2] : vector<4x8x8xf32> to vector<4x8xf32>
    %70 = vector.shape_cast %69 : vector<4x8xf32> to vector<4x8x1xf32>
    %71 = tpu.reciprocal %70 : vector<4x8x1xf32> -> vector<4x8x1xf32>
    %72 = vector.broadcast %71 : vector<4x8x1xf32> to vector<4x8x8xf32>
    %73 = arith.mulf %68, %72 : vector<4x8x8xf32>
    "tpu.trace_start"() <{level = 10 : i32, message = "gnm,gmd->gnd"}> : () -> ()
    %cst_39 = arith.constant dense<0.000000e+00> : vector<4x8x8xf32>
    %74 = tpu.matmul %73, %60, %cst_39 {dimension_numbers = #tpu.dot_dimension_numbers<[2], [1], [1], [2], [0, 0, 0, 1, 1, 2], [0], [0]>} : vector<4x8x8xf32>, vector<4x8x8xf32>, vector<4x8x8xf32> -> vector<4x8x8xf32>
    "tpu.trace_stop"() : () -> ()
    %75 = vector.shape_cast %74 : vector<4x8x8xf32> to vector<2x16x8xf32>
    %c0_40 = arith.constant 0 : index
    %c0_41 = arith.constant 0 : index
    %c0_42 = arith.constant 0 : index
    %76 = vector.load %arg8[%c0_40, %c0_41, %c0_42] : memref<2x8x128xf32, #tpu.memory_space<vmem>>, vector<2x8x128xf32>
    "tpu.trace_start"() <{level = 10 : i32, message = "hmd,hdk->hmk"}> : () -> ()
    %cst_43 = arith.constant dense<0.000000e+00> : vector<2x16x128xf32>
    %77 = tpu.matmul %75, %76, %cst_43 {dimension_numbers = #tpu.dot_dimension_numbers<[2], [1], [1], [2], [0, 0, 0, 1, 1, 2], [0], [0]>} : vector<2x16x8xf32>, vector<2x8x128xf32>, vector<2x16x128xf32> -> vector<2x16x128xf32>
    "tpu.trace_stop"() : () -> ()
    %cst_44 = arith.constant dense<0.000000e+00> : vector<16x128xf32>
    %78 = vector.multi_reduction <add>, %77, %cst_44 [0] : vector<2x16x128xf32> to vector<16x128xf32>
    %c0_45 = arith.constant 0 : index
    %c0_46 = arith.constant 0 : index
    %79 = vector.load %arg9[%c0_45, %c0_46] : memref<1x128xf32, #tpu.memory_space<vmem>>, vector<1x128xf32>
    %80 = vector.broadcast %79 : vector<1x128xf32> to vector<16x128xf32>
    %81 = arith.addf %78, %80 : vector<16x128xf32>
    %82 = arith.addf %81, %3 : vector<16x128xf32>
    %cst_47 = arith.constant dense<0.000000e+00> : vector<16xf32>
    %83 = vector.multi_reduction <add>, %4, %cst_47 [1] : vector<16x128xf32> to vector<16xf32>
    %84 = vector.shape_cast %83 : vector<16xf32> to vector<16x1xf32>
    %cst_48 = arith.constant 3.125000e-02 : f32
    %85 = vector.broadcast %cst_48 : f32 to vector<16x1xf32>
    %86 = arith.mulf %84, %85 : vector<16x1xf32>
    %87 = vector.broadcast %86 : vector<16x1xf32> to vector<16x128xf32>
    %88 = arith.subf %4, %87 : vector<16x128xf32>
    %cst_49 = arith.constant 0.000000e+00 : f32
    %89 = vector.shape_cast %2 : vector<1x128xi1> to vector<1x128xi1>
    %90 = vector.broadcast %89 : vector<1x128xi1> to vector<16x128xi1>
    %91 = vector.broadcast %cst_49 : f32 to vector<16x128xf32>
    %92 = arith.select %90, %88, %91 : vector<16x128xi1>, vector<16x128xf32>
    %93 = arith.mulf %92, %92 : vector<16x128xf32>
    %cst_50 = arith.constant dense<0.000000e+00> : vector<16xf32>
    %94 = vector.multi_reduction <add>, %93, %cst_50 [1] : vector<16x128xf32> to vector<16xf32>
    %95 = vector.shape_cast %94 : vector<16xf32> to vector<16x1xf32>
    %cst_51 = arith.constant 3.125000e-02 : f32
    %96 = vector.broadcast %cst_51 : f32 to vector<16x1xf32>
    %97 = arith.mulf %95, %96 : vector<16x1xf32>
    %cst_52 = arith.constant 9.99999974E-6 : f32
    %98 = vector.broadcast %cst_52 : f32 to vector<16x1xf32>
    %99 = arith.addf %97, %98 : vector<16x1xf32>
    %100 = math.rsqrt %99 : vector<16x1xf32>
    %101 = vector.broadcast %100 : vector<16x1xf32> to vector<16x128xf32>
    %102 = arith.mulf %92, %101 : vector<16x128xf32>
    %c0_53 = arith.constant 0 : index
    %c0_54 = arith.constant 0 : index
    %103 = vector.load %arg23[%c0_53, %c0_54] : memref<1x128xf32, #tpu.memory_space<vmem>>, vector<1x128xf32>
    %104 = vector.broadcast %103 : vector<1x128xf32> to vector<16x128xf32>
    %105 = arith.mulf %102, %104 : vector<16x128xf32>
    %c0_55 = arith.constant 0 : index
    %c0_56 = arith.constant 0 : index
    %106 = vector.load %arg24[%c0_55, %c0_56] : memref<1x128xf32, #tpu.memory_space<vmem>>, vector<1x128xf32>
    %107 = vector.broadcast %106 : vector<1x128xf32> to vector<16x128xf32>
    %108 = arith.addf %105, %107 : vector<16x128xf32>
    %c0_57 = arith.constant 0 : index
    %c0_58 = arith.constant 0 : index
    %c0_59 = arith.constant 0 : index
    %109 = vector.load %arg25[%c0_57, %c0_58, %c0_59] : memref<2x128x8xf32, #tpu.memory_space<vmem>>, vector<1x128x8xf32>
    %110 = vector.shape_cast %109 : vector<1x128x8xf32> to vector<128x8xf32>
    %cst_60 = arith.constant dense<0.000000e+00> : vector<16x8xf32>
    %111 = tpu.matmul %108, %110, %cst_60 {dimension_numbers = #tpu.dot_dimension_numbers<[1], [0], [0], [1], [0, 0, 1, 1], [], []>} : vector<16x128xf32>, vector<128x8xf32>, vector<16x8xf32> -> vector<16x8xf32>
    %c1_61 = arith.constant 1 : index
    %c0_62 = arith.constant 0 : index
    %c0_63 = arith.constant 0 : index
    %112 = vector.load %arg25[%c1_61, %c0_62, %c0_63] : memref<2x128x8xf32, #tpu.memory_space<vmem>>, vector<1x128x8xf32>
    %113 = vector.shape_cast %112 : vector<1x128x8xf32> to vector<128x8xf32>
    %cst_64 = arith.constant dense<0.000000e+00> : vector<16x8xf32>
    %114 = tpu.matmul %108, %113, %cst_64 {dimension_numbers = #tpu.dot_dimension_numbers<[1], [0], [0], [1], [0, 0, 1, 1], [], []>} : vector<16x128xf32>, vector<128x8xf32>, vector<16x8xf32> -> vector<16x8xf32>
    %115 = vector.shape_cast %111 : vector<16x8xf32> to vector<1x16x8xf32>
    %116 = vector.shape_cast %114 : vector<16x8xf32> to vector<1x16x8xf32>
    %117 = tpu.concatenate %115, %116 in 0 : vector<1x16x8xf32>, vector<1x16x8xf32> -> vector<2x16x8xf32>
    %118 = vector.shape_cast %117 : vector<2x16x8xf32> to vector<4x8x8xf32>
    %c0_65 = arith.constant 0 : index
    %c0_66 = arith.constant 0 : index
    %c0_67 = arith.constant 0 : index
    %119 = vector.load %arg26[%c0_65, %c0_66, %c0_67] : memref<2x128x8xf32, #tpu.memory_space<vmem>>, vector<1x128x8xf32>
    %120 = vector.shape_cast %119 : vector<1x128x8xf32> to vector<128x8xf32>
    %cst_68 = arith.constant dense<0.000000e+00> : vector<16x8xf32>
    %121 = tpu.matmul %108, %120, %cst_68 {dimension_numbers = #tpu.dot_dimension_numbers<[1], [0], [0], [1], [0, 0, 1, 1], [], []>} : vector<16x128xf32>, vector<128x8xf32>, vector<16x8xf32> -> vector<16x8xf32>
    %c1_69 = arith.constant 1 : index
    %c0_70 = arith.constant 0 : index
    %c0_71 = arith.constant 0 : index
    %122 = vector.load %arg26[%c1_69, %c0_70, %c0_71] : memref<2x128x8xf32, #tpu.memory_space<vmem>>, vector<1x128x8xf32>
    %123 = vector.shape_cast %122 : vector<1x128x8xf32> to vector<128x8xf32>
    %cst_72 = arith.constant dense<0.000000e+00> : vector<16x8xf32>
    %124 = tpu.matmul %108, %123, %cst_72 {dimension_numbers = #tpu.dot_dimension_numbers<[1], [0], [0], [1], [0, 0, 1, 1], [], []>} : vector<16x128xf32>, vector<128x8xf32>, vector<16x8xf32> -> vector<16x8xf32>
    %125 = vector.shape_cast %121 : vector<16x8xf32> to vector<1x16x8xf32>
    %126 = vector.shape_cast %124 : vector<16x8xf32> to vector<1x16x8xf32>
    %127 = tpu.concatenate %125, %126 in 0 : vector<1x16x8xf32>, vector<1x16x8xf32> -> vector<2x16x8xf32>
    %128 = vector.shape_cast %127 : vector<2x16x8xf32> to vector<4x8x8xf32>
    %c0_73 = arith.constant 0 : index
    %c0_74 = arith.constant 0 : index
    %c0_75 = arith.constant 0 : index
    %129 = vector.load %arg27[%c0_73, %c0_74, %c0_75] : memref<2x128x8xf32, #tpu.memory_space<vmem>>, vector<1x128x8xf32>
    %130 = vector.shape_cast %129 : vector<1x128x8xf32> to vector<128x8xf32>
    %cst_76 = arith.constant dense<0.000000e+00> : vector<16x8xf32>
    %131 = tpu.matmul %108, %130, %cst_76 {dimension_numbers = #tpu.dot_dimension_numbers<[1], [0], [0], [1], [0, 0, 1, 1], [], []>} : vector<16x128xf32>, vector<128x8xf32>, vector<16x8xf32> -> vector<16x8xf32>
    %c1_77 = arith.constant 1 : index
    %c0_78 = arith.constant 0 : index
    %c0_79 = arith.constant 0 : index
    %132 = vector.load %arg27[%c1_77, %c0_78, %c0_79] : memref<2x128x8xf32, #tpu.memory_space<vmem>>, vector<1x128x8xf32>
    %133 = vector.shape_cast %132 : vector<1x128x8xf32> to vector<128x8xf32>
    %cst_80 = arith.constant dense<0.000000e+00> : vector<16x8xf32>
    %134 = tpu.matmul %108, %133, %cst_80 {dimension_numbers = #tpu.dot_dimension_numbers<[1], [0], [0], [1], [0, 0, 1, 1], [], []>} : vector<16x128xf32>, vector<128x8xf32>, vector<16x8xf32> -> vector<16x8xf32>
    %135 = vector.shape_cast %131 : vector<16x8xf32> to vector<1x16x8xf32>
    %136 = vector.shape_cast %134 : vector<16x8xf32> to vector<1x16x8xf32>
    %137 = tpu.concatenate %135, %136 in 0 : vector<1x16x8xf32>, vector<1x16x8xf32> -> vector<2x16x8xf32>
    %138 = vector.shape_cast %137 : vector<2x16x8xf32> to vector<4x8x8xf32>
    "tpu.trace_start"() <{level = 10 : i32, message = "gnd,gmd->gnm"}> : () -> ()
    %cst_81 = arith.constant dense<0.000000e+00> : vector<4x8x8xf32>
    %139 = tpu.matmul %118, %128, %cst_81 {dimension_numbers = #tpu.dot_dimension_numbers<[2], [2], [1], [1], [0, 0, 0, 1, 1, 1], [0], [0]>} : vector<4x8x8xf32>, vector<4x8x8xf32>, vector<4x8x8xf32> -> vector<4x8x8xf32>
    "tpu.trace_stop"() : () -> ()
    %cst_82 = arith.constant 0.176776692 : f32
    %140 = vector.broadcast %cst_82 : f32 to vector<4x8x8xf32>
    %141 = arith.mulf %139, %140 : vector<4x8x8xf32>
    %cst_83 = arith.constant dense<0xFF800000> : vector<4x8xf32>
    %142 = vector.multi_reduction <maximumf>, %141, %cst_83 [2] : vector<4x8x8xf32> to vector<4x8xf32>
    %143 = vector.shape_cast %142 : vector<4x8xf32> to vector<4x8x1xf32>
    %144 = vector.broadcast %143 : vector<4x8x1xf32> to vector<4x8x8xf32>
    %145 = arith.subf %141, %144 : vector<4x8x8xf32>
    %146 = math.exp %145 : vector<4x8x8xf32>
    %cst_84 = arith.constant dense<0.000000e+00> : vector<4x8xf32>
    %147 = vector.multi_reduction <add>, %146, %cst_84 [2] : vector<4x8x8xf32> to vector<4x8xf32>
    %148 = vector.shape_cast %147 : vector<4x8xf32> to vector<4x8x1xf32>
    %149 = tpu.reciprocal %148 : vector<4x8x1xf32> -> vector<4x8x1xf32>
    %150 = vector.broadcast %149 : vector<4x8x1xf32> to vector<4x8x8xf32>
    %151 = arith.mulf %146, %150 : vector<4x8x8xf32>
    "tpu.trace_start"() <{level = 10 : i32, message = "gnm,gmd->gnd"}> : () -> ()
    %cst_85 = arith.constant dense<0.000000e+00> : vector<4x8x8xf32>
    %152 = tpu.matmul %151, %138, %cst_85 {dimension_numbers = #tpu.dot_dimension_numbers<[2], [1], [1], [2], [0, 0, 0, 1, 1, 2], [0], [0]>} : vector<4x8x8xf32>, vector<4x8x8xf32>, vector<4x8x8xf32> -> vector<4x8x8xf32>
    "tpu.trace_stop"() : () -> ()
    %153 = vector.shape_cast %152 : vector<4x8x8xf32> to vector<2x16x8xf32>
    %c0_86 = arith.constant 0 : index
    %c0_87 = arith.constant 0 : index
    %c0_88 = arith.constant 0 : index
    %154 = vector.load %arg28[%c0_86, %c0_87, %c0_88] : memref<2x8x128xf32, #tpu.memory_space<vmem>>, vector<2x8x128xf32>
    "tpu.trace_start"() <{level = 10 : i32, message = "hmd,hdk->hmk"}> : () -> ()
    %cst_89 = arith.constant dense<0.000000e+00> : vector<2x16x128xf32>
    %155 = tpu.matmul %153, %154, %cst_89 {dimension_numbers = #tpu.dot_dimension_numbers<[2], [1], [1], [2], [0, 0, 0, 1, 1, 2], [0], [0]>} : vector<2x16x8xf32>, vector<2x8x128xf32>, vector<2x16x128xf32> -> vector<2x16x128xf32>
    "tpu.trace_stop"() : () -> ()
    %cst_90 = arith.constant dense<0.000000e+00> : vector<16x128xf32>
    %156 = vector.multi_reduction <add>, %155, %cst_90 [0] : vector<2x16x128xf32> to vector<16x128xf32>
    %c0_91 = arith.constant 0 : index
    %c0_92 = arith.constant 0 : index
    %157 = vector.load %arg29[%c0_91, %c0_92] : memref<1x128xf32, #tpu.memory_space<vmem>>, vector<1x128xf32>
    %158 = vector.broadcast %157 : vector<1x128xf32> to vector<16x128xf32>
    %159 = arith.addf %156, %158 : vector<16x128xf32>
    %160 = arith.addf %159, %4 : vector<16x128xf32>
    %cst_93 = arith.constant dense<0.000000e+00> : vector<16xf32>
    %161 = vector.multi_reduction <add>, %82, %cst_93 [1] : vector<16x128xf32> to vector<16xf32>
    %162 = vector.shape_cast %161 : vector<16xf32> to vector<16x1xf32>
    %cst_94 = arith.constant 3.125000e-02 : f32
    %163 = vector.broadcast %cst_94 : f32 to vector<16x1xf32>
    %164 = arith.mulf %162, %163 : vector<16x1xf32>
    %165 = vector.broadcast %164 : vector<16x1xf32> to vector<16x128xf32>
    %166 = arith.subf %82, %165 : vector<16x128xf32>
    %cst_95 = arith.constant 0.000000e+00 : f32
    %167 = vector.shape_cast %2 : vector<1x128xi1> to vector<1x128xi1>
    %168 = vector.broadcast %167 : vector<1x128xi1> to vector<16x128xi1>
    %169 = vector.broadcast %cst_95 : f32 to vector<16x128xf32>
    %170 = arith.select %168, %166, %169 : vector<16x128xi1>, vector<16x128xf32>
    %171 = arith.mulf %170, %170 : vector<16x128xf32>
    %cst_96 = arith.constant dense<0.000000e+00> : vector<16xf32>
    %172 = vector.multi_reduction <add>, %171, %cst_96 [1] : vector<16x128xf32> to vector<16xf32>
    %173 = vector.shape_cast %172 : vector<16xf32> to vector<16x1xf32>
    %cst_97 = arith.constant 3.125000e-02 : f32
    %174 = vector.broadcast %cst_97 : f32 to vector<16x1xf32>
    %175 = arith.mulf %173, %174 : vector<16x1xf32>
    %cst_98 = arith.constant 9.99999974E-6 : f32
    %176 = vector.broadcast %cst_98 : f32 to vector<16x1xf32>
    %177 = arith.addf %175, %176 : vector<16x1xf32>
    %178 = math.rsqrt %177 : vector<16x1xf32>
    %179 = vector.broadcast %178 : vector<16x1xf32> to vector<16x128xf32>
    %180 = arith.mulf %170, %179 : vector<16x128xf32>
    %c0_99 = arith.constant 0 : index
    %c0_100 = arith.constant 0 : index
    %181 = vector.load %arg10[%c0_99, %c0_100] : memref<1x128xf32, #tpu.memory_space<vmem>>, vector<1x128xf32>
    %182 = vector.broadcast %181 : vector<1x128xf32> to vector<16x128xf32>
    %183 = arith.mulf %180, %182 : vector<16x128xf32>
    %c0_101 = arith.constant 0 : index
    %c0_102 = arith.constant 0 : index
    %184 = vector.load %arg11[%c0_101, %c0_102] : memref<1x128xf32, #tpu.memory_space<vmem>>, vector<1x128xf32>
    %185 = vector.broadcast %184 : vector<1x128xf32> to vector<16x128xf32>
    %186 = arith.addf %183, %185 : vector<16x128xf32>
    %cst_103 = arith.constant dense<0.000000e+00> : vector<16xf32>
    %187 = vector.multi_reduction <add>, %160, %cst_103 [1] : vector<16x128xf32> to vector<16xf32>
    %188 = vector.shape_cast %187 : vector<16xf32> to vector<16x1xf32>
    %cst_104 = arith.constant 3.125000e-02 : f32
    %189 = vector.broadcast %cst_104 : f32 to vector<16x1xf32>
    %190 = arith.mulf %188, %189 : vector<16x1xf32>
    %191 = vector.broadcast %190 : vector<16x1xf32> to vector<16x128xf32>
    %192 = arith.subf %160, %191 : vector<16x128xf32>
    %cst_105 = arith.constant 0.000000e+00 : f32
    %193 = vector.shape_cast %2 : vector<1x128xi1> to vector<1x128xi1>
    %194 = vector.broadcast %193 : vector<1x128xi1> to vector<16x128xi1>
    %195 = vector.broadcast %cst_105 : f32 to vector<16x128xf32>
    %196 = arith.select %194, %192, %195 : vector<16x128xi1>, vector<16x128xf32>
    %197 = arith.mulf %196, %196 : vector<16x128xf32>
    %cst_106 = arith.constant dense<0.000000e+00> : vector<16xf32>
    %198 = vector.multi_reduction <add>, %197, %cst_106 [1] : vector<16x128xf32> to vector<16xf32>
    %199 = vector.shape_cast %198 : vector<16xf32> to vector<16x1xf32>
    %cst_107 = arith.constant 3.125000e-02 : f32
    %200 = vector.broadcast %cst_107 : f32 to vector<16x1xf32>
    %201 = arith.mulf %199, %200 : vector<16x1xf32>
    %cst_108 = arith.constant 9.99999974E-6 : f32
    %202 = vector.broadcast %cst_108 : f32 to vector<16x1xf32>
    %203 = arith.addf %201, %202 : vector<16x1xf32>
    %204 = math.rsqrt %203 : vector<16x1xf32>
    %205 = vector.broadcast %204 : vector<16x1xf32> to vector<16x128xf32>
    %206 = arith.mulf %196, %205 : vector<16x128xf32>
    %c0_109 = arith.constant 0 : index
    %c0_110 = arith.constant 0 : index
    %207 = vector.load %arg10[%c0_109, %c0_110] : memref<1x128xf32, #tpu.memory_space<vmem>>, vector<1x128xf32>
    %208 = vector.broadcast %207 : vector<1x128xf32> to vector<16x128xf32>
    %209 = arith.mulf %206, %208 : vector<16x128xf32>
    %c0_111 = arith.constant 0 : index
    %c0_112 = arith.constant 0 : index
    %210 = vector.load %arg11[%c0_111, %c0_112] : memref<1x128xf32, #tpu.memory_space<vmem>>, vector<1x128xf32>
    %211 = vector.broadcast %210 : vector<1x128xf32> to vector<16x128xf32>
    %212 = arith.addf %209, %211 : vector<16x128xf32>
    %c0_113 = arith.constant 0 : index
    %c0_114 = arith.constant 0 : index
    %c0_115 = arith.constant 0 : index
    %213 = vector.load %arg12[%c0_113, %c0_114, %c0_115] : memref<2x128x8xf32, #tpu.memory_space<vmem>>, vector<1x128x8xf32>
    %214 = vector.shape_cast %213 : vector<1x128x8xf32> to vector<128x8xf32>
    %cst_116 = arith.constant dense<0.000000e+00> : vector<16x8xf32>
    %215 = tpu.matmul %186, %214, %cst_116 {dimension_numbers = #tpu.dot_dimension_numbers<[1], [0], [0], [1], [0, 0, 1, 1], [], []>} : vector<16x128xf32>, vector<128x8xf32>, vector<16x8xf32> -> vector<16x8xf32>
    %c1_117 = arith.constant 1 : index
    %c0_118 = arith.constant 0 : index
    %c0_119 = arith.constant 0 : index
    %216 = vector.load %arg12[%c1_117, %c0_118, %c0_119] : memref<2x128x8xf32, #tpu.memory_space<vmem>>, vector<1x128x8xf32>
    %217 = vector.shape_cast %216 : vector<1x128x8xf32> to vector<128x8xf32>
    %cst_120 = arith.constant dense<0.000000e+00> : vector<16x8xf32>
    %218 = tpu.matmul %186, %217, %cst_120 {dimension_numbers = #tpu.dot_dimension_numbers<[1], [0], [0], [1], [0, 0, 1, 1], [], []>} : vector<16x128xf32>, vector<128x8xf32>, vector<16x8xf32> -> vector<16x8xf32>
    %219 = vector.shape_cast %215 : vector<16x8xf32> to vector<1x16x8xf32>
    %220 = vector.shape_cast %218 : vector<16x8xf32> to vector<1x16x8xf32>
    %221 = tpu.concatenate %219, %220 in 0 : vector<1x16x8xf32>, vector<1x16x8xf32> -> vector<2x16x8xf32>
    %222 = vector.shape_cast %221 : vector<2x16x8xf32> to vector<4x8x8xf32>
    %c0_121 = arith.constant 0 : index
    %c0_122 = arith.constant 0 : index
    %c0_123 = arith.constant 0 : index
    %223 = vector.load %arg13[%c0_121, %c0_122, %c0_123] : memref<2x128x8xf32, #tpu.memory_space<vmem>>, vector<1x128x8xf32>
    %224 = vector.shape_cast %223 : vector<1x128x8xf32> to vector<128x8xf32>
    %cst_124 = arith.constant dense<0.000000e+00> : vector<16x8xf32>
    %225 = tpu.matmul %212, %224, %cst_124 {dimension_numbers = #tpu.dot_dimension_numbers<[1], [0], [0], [1], [0, 0, 1, 1], [], []>} : vector<16x128xf32>, vector<128x8xf32>, vector<16x8xf32> -> vector<16x8xf32>
    %c1_125 = arith.constant 1 : index
    %c0_126 = arith.constant 0 : index
    %c0_127 = arith.constant 0 : index
    %226 = vector.load %arg13[%c1_125, %c0_126, %c0_127] : memref<2x128x8xf32, #tpu.memory_space<vmem>>, vector<1x128x8xf32>
    %227 = vector.shape_cast %226 : vector<1x128x8xf32> to vector<128x8xf32>
    %cst_128 = arith.constant dense<0.000000e+00> : vector<16x8xf32>
    %228 = tpu.matmul %212, %227, %cst_128 {dimension_numbers = #tpu.dot_dimension_numbers<[1], [0], [0], [1], [0, 0, 1, 1], [], []>} : vector<16x128xf32>, vector<128x8xf32>, vector<16x8xf32> -> vector<16x8xf32>
    %229 = vector.shape_cast %225 : vector<16x8xf32> to vector<1x16x8xf32>
    %230 = vector.shape_cast %228 : vector<16x8xf32> to vector<1x16x8xf32>
    %231 = tpu.concatenate %229, %230 in 0 : vector<1x16x8xf32>, vector<1x16x8xf32> -> vector<2x16x8xf32>
    %232 = vector.shape_cast %231 : vector<2x16x8xf32> to vector<4x8x8xf32>
    %c0_129 = arith.constant 0 : index
    %c0_130 = arith.constant 0 : index
    %c0_131 = arith.constant 0 : index
    %233 = vector.load %arg14[%c0_129, %c0_130, %c0_131] : memref<2x128x8xf32, #tpu.memory_space<vmem>>, vector<1x128x8xf32>
    %234 = vector.shape_cast %233 : vector<1x128x8xf32> to vector<128x8xf32>
    %cst_132 = arith.constant dense<0.000000e+00> : vector<16x8xf32>
    %235 = tpu.matmul %212, %234, %cst_132 {dimension_numbers = #tpu.dot_dimension_numbers<[1], [0], [0], [1], [0, 0, 1, 1], [], []>} : vector<16x128xf32>, vector<128x8xf32>, vector<16x8xf32> -> vector<16x8xf32>
    %c1_133 = arith.constant 1 : index
    %c0_134 = arith.constant 0 : index
    %c0_135 = arith.constant 0 : index
    %236 = vector.load %arg14[%c1_133, %c0_134, %c0_135] : memref<2x128x8xf32, #tpu.memory_space<vmem>>, vector<1x128x8xf32>
    %237 = vector.shape_cast %236 : vector<1x128x8xf32> to vector<128x8xf32>
    %cst_136 = arith.constant dense<0.000000e+00> : vector<16x8xf32>
    %238 = tpu.matmul %212, %237, %cst_136 {dimension_numbers = #tpu.dot_dimension_numbers<[1], [0], [0], [1], [0, 0, 1, 1], [], []>} : vector<16x128xf32>, vector<128x8xf32>, vector<16x8xf32> -> vector<16x8xf32>
    %239 = vector.shape_cast %235 : vector<16x8xf32> to vector<1x16x8xf32>
    %240 = vector.shape_cast %238 : vector<16x8xf32> to vector<1x16x8xf32>
    %241 = tpu.concatenate %239, %240 in 0 : vector<1x16x8xf32>, vector<1x16x8xf32> -> vector<2x16x8xf32>
    %242 = vector.shape_cast %241 : vector<2x16x8xf32> to vector<4x8x8xf32>
    "tpu.trace_start"() <{level = 10 : i32, message = "gnd,gmd->gnm"}> : () -> ()
    %cst_137 = arith.constant dense<0.000000e+00> : vector<4x8x8xf32>
    %243 = tpu.matmul %222, %232, %cst_137 {dimension_numbers = #tpu.dot_dimension_numbers<[2], [2], [1], [1], [0, 0, 0, 1, 1, 1], [0], [0]>} : vector<4x8x8xf32>, vector<4x8x8xf32>, vector<4x8x8xf32> -> vector<4x8x8xf32>
    "tpu.trace_stop"() : () -> ()
    %cst_138 = arith.constant 0.176776692 : f32
    %244 = vector.broadcast %cst_138 : f32 to vector<4x8x8xf32>
    %245 = arith.mulf %243, %244 : vector<4x8x8xf32>
    %cst_139 = arith.constant dense<0xFF800000> : vector<4x8xf32>
    %246 = vector.multi_reduction <maximumf>, %245, %cst_139 [2] : vector<4x8x8xf32> to vector<4x8xf32>
    %247 = vector.shape_cast %246 : vector<4x8xf32> to vector<4x8x1xf32>
    %248 = vector.broadcast %247 : vector<4x8x1xf32> to vector<4x8x8xf32>
    %249 = arith.subf %245, %248 : vector<4x8x8xf32>
    %250 = math.exp %249 : vector<4x8x8xf32>
    %cst_140 = arith.constant dense<0.000000e+00> : vector<4x8xf32>
    %251 = vector.multi_reduction <add>, %250, %cst_140 [2] : vector<4x8x8xf32> to vector<4x8xf32>
    %252 = vector.shape_cast %251 : vector<4x8xf32> to vector<4x8x1xf32>
    %253 = tpu.reciprocal %252 : vector<4x8x1xf32> -> vector<4x8x1xf32>
    %254 = vector.broadcast %253 : vector<4x8x1xf32> to vector<4x8x8xf32>
    %255 = arith.mulf %250, %254 : vector<4x8x8xf32>
    "tpu.trace_start"() <{level = 10 : i32, message = "gnm,gmd->gnd"}> : () -> ()
    %cst_141 = arith.constant dense<0.000000e+00> : vector<4x8x8xf32>
    %256 = tpu.matmul %255, %242, %cst_141 {dimension_numbers = #tpu.dot_dimension_numbers<[2], [1], [1], [2], [0, 0, 0, 1, 1, 2], [0], [0]>} : vector<4x8x8xf32>, vector<4x8x8xf32>, vector<4x8x8xf32> -> vector<4x8x8xf32>
    "tpu.trace_stop"() : () -> ()
    %257 = vector.shape_cast %256 : vector<4x8x8xf32> to vector<2x16x8xf32>
    %c0_142 = arith.constant 0 : index
    %c0_143 = arith.constant 0 : index
    %c0_144 = arith.constant 0 : index
    %258 = vector.load %arg15[%c0_142, %c0_143, %c0_144] : memref<2x8x128xf32, #tpu.memory_space<vmem>>, vector<2x8x128xf32>
    "tpu.trace_start"() <{level = 10 : i32, message = "hmd,hdk->hmk"}> : () -> ()
    %cst_145 = arith.constant dense<0.000000e+00> : vector<2x16x128xf32>
    %259 = tpu.matmul %257, %258, %cst_145 {dimension_numbers = #tpu.dot_dimension_numbers<[2], [1], [1], [2], [0, 0, 0, 1, 1, 2], [0], [0]>} : vector<2x16x8xf32>, vector<2x8x128xf32>, vector<2x16x128xf32> -> vector<2x16x128xf32>
    "tpu.trace_stop"() : () -> ()
    %cst_146 = arith.constant dense<0.000000e+00> : vector<16x128xf32>
    %260 = vector.multi_reduction <add>, %259, %cst_146 [0] : vector<2x16x128xf32> to vector<16x128xf32>
    %c0_147 = arith.constant 0 : index
    %c0_148 = arith.constant 0 : index
    %261 = vector.load %arg16[%c0_147, %c0_148] : memref<1x128xf32, #tpu.memory_space<vmem>>, vector<1x128xf32>
    %262 = vector.broadcast %261 : vector<1x128xf32> to vector<16x128xf32>
    %263 = arith.addf %260, %262 : vector<16x128xf32>
    %264 = arith.addf %263, %82 : vector<16x128xf32>
    %cst_149 = arith.constant dense<0.000000e+00> : vector<16xf32>
    %265 = vector.multi_reduction <add>, %160, %cst_149 [1] : vector<16x128xf32> to vector<16xf32>
    %266 = vector.shape_cast %265 : vector<16xf32> to vector<16x1xf32>
    %cst_150 = arith.constant 3.125000e-02 : f32
    %267 = vector.broadcast %cst_150 : f32 to vector<16x1xf32>
    %268 = arith.mulf %266, %267 : vector<16x1xf32>
    %269 = vector.broadcast %268 : vector<16x1xf32> to vector<16x128xf32>
    %270 = arith.subf %160, %269 : vector<16x128xf32>
    %cst_151 = arith.constant 0.000000e+00 : f32
    %271 = vector.shape_cast %2 : vector<1x128xi1> to vector<1x128xi1>
    %272 = vector.broadcast %271 : vector<1x128xi1> to vector<16x128xi1>
    %273 = vector.broadcast %cst_151 : f32 to vector<16x128xf32>
    %274 = arith.select %272, %270, %273 : vector<16x128xi1>, vector<16x128xf32>
    %275 = arith.mulf %274, %274 : vector<16x128xf32>
    %cst_152 = arith.constant dense<0.000000e+00> : vector<16xf32>
    %276 = vector.multi_reduction <add>, %275, %cst_152 [1] : vector<16x128xf32> to vector<16xf32>
    %277 = vector.shape_cast %276 : vector<16xf32> to vector<16x1xf32>
    %cst_153 = arith.constant 3.125000e-02 : f32
    %278 = vector.broadcast %cst_153 : f32 to vector<16x1xf32>
    %279 = arith.mulf %277, %278 : vector<16x1xf32>
    %cst_154 = arith.constant 9.99999974E-6 : f32
    %280 = vector.broadcast %cst_154 : f32 to vector<16x1xf32>
    %281 = arith.addf %279, %280 : vector<16x1xf32>
    %282 = math.rsqrt %281 : vector<16x1xf32>
    %283 = vector.broadcast %282 : vector<16x1xf32> to vector<16x128xf32>
    %284 = arith.mulf %274, %283 : vector<16x128xf32>
    %c0_155 = arith.constant 0 : index
    %c0_156 = arith.constant 0 : index
    %285 = vector.load %arg30[%c0_155, %c0_156] : memref<1x128xf32, #tpu.memory_space<vmem>>, vector<1x128xf32>
    %286 = vector.broadcast %285 : vector<1x128xf32> to vector<16x128xf32>
    %287 = arith.mulf %284, %286 : vector<16x128xf32>
    %c0_157 = arith.constant 0 : index
    %c0_158 = arith.constant 0 : index
    %288 = vector.load %arg31[%c0_157, %c0_158] : memref<1x128xf32, #tpu.memory_space<vmem>>, vector<1x128xf32>
    %289 = vector.broadcast %288 : vector<1x128xf32> to vector<16x128xf32>
    %290 = arith.addf %287, %289 : vector<16x128xf32>
    %cst_159 = arith.constant dense<0.000000e+00> : vector<16xf32>
    %291 = vector.multi_reduction <add>, %82, %cst_159 [1] : vector<16x128xf32> to vector<16xf32>
    %292 = vector.shape_cast %291 : vector<16xf32> to vector<16x1xf32>
    %cst_160 = arith.constant 3.125000e-02 : f32
    %293 = vector.broadcast %cst_160 : f32 to vector<16x1xf32>
    %294 = arith.mulf %292, %293 : vector<16x1xf32>
    %295 = vector.broadcast %294 : vector<16x1xf32> to vector<16x128xf32>
    %296 = arith.subf %82, %295 : vector<16x128xf32>
    %cst_161 = arith.constant 0.000000e+00 : f32
    %297 = vector.shape_cast %2 : vector<1x128xi1> to vector<1x128xi1>
    %298 = vector.broadcast %297 : vector<1x128xi1> to vector<16x128xi1>
    %299 = vector.broadcast %cst_161 : f32 to vector<16x128xf32>
    %300 = arith.select %298, %296, %299 : vector<16x128xi1>, vector<16x128xf32>
    %301 = arith.mulf %300, %300 : vector<16x128xf32>
    %cst_162 = arith.constant dense<0.000000e+00> : vector<16xf32>
    %302 = vector.multi_reduction <add>, %301, %cst_162 [1] : vector<16x128xf32> to vector<16xf32>
    %303 = vector.shape_cast %302 : vector<16xf32> to vector<16x1xf32>
    %cst_163 = arith.constant 3.125000e-02 : f32
    %304 = vector.broadcast %cst_163 : f32 to vector<16x1xf32>
    %305 = arith.mulf %303, %304 : vector<16x1xf32>
    %cst_164 = arith.constant 9.99999974E-6 : f32
    %306 = vector.broadcast %cst_164 : f32 to vector<16x1xf32>
    %307 = arith.addf %305, %306 : vector<16x1xf32>
    %308 = math.rsqrt %307 : vector<16x1xf32>
    %309 = vector.broadcast %308 : vector<16x1xf32> to vector<16x128xf32>
    %310 = arith.mulf %300, %309 : vector<16x128xf32>
    %c0_165 = arith.constant 0 : index
    %c0_166 = arith.constant 0 : index
    %311 = vector.load %arg30[%c0_165, %c0_166] : memref<1x128xf32, #tpu.memory_space<vmem>>, vector<1x128xf32>
    %312 = vector.broadcast %311 : vector<1x128xf32> to vector<16x128xf32>
    %313 = arith.mulf %310, %312 : vector<16x128xf32>
    %c0_167 = arith.constant 0 : index
    %c0_168 = arith.constant 0 : index
    %314 = vector.load %arg31[%c0_167, %c0_168] : memref<1x128xf32, #tpu.memory_space<vmem>>, vector<1x128xf32>
    %315 = vector.broadcast %314 : vector<1x128xf32> to vector<16x128xf32>
    %316 = arith.addf %313, %315 : vector<16x128xf32>
    %c0_169 = arith.constant 0 : index
    %c0_170 = arith.constant 0 : index
    %c0_171 = arith.constant 0 : index
    %317 = vector.load %arg32[%c0_169, %c0_170, %c0_171] : memref<2x128x8xf32, #tpu.memory_space<vmem>>, vector<1x128x8xf32>
    %318 = vector.shape_cast %317 : vector<1x128x8xf32> to vector<128x8xf32>
    %cst_172 = arith.constant dense<0.000000e+00> : vector<16x8xf32>
    %319 = tpu.matmul %290, %318, %cst_172 {dimension_numbers = #tpu.dot_dimension_numbers<[1], [0], [0], [1], [0, 0, 1, 1], [], []>} : vector<16x128xf32>, vector<128x8xf32>, vector<16x8xf32> -> vector<16x8xf32>
    %c1_173 = arith.constant 1 : index
    %c0_174 = arith.constant 0 : index
    %c0_175 = arith.constant 0 : index
    %320 = vector.load %arg32[%c1_173, %c0_174, %c0_175] : memref<2x128x8xf32, #tpu.memory_space<vmem>>, vector<1x128x8xf32>
    %321 = vector.shape_cast %320 : vector<1x128x8xf32> to vector<128x8xf32>
    %cst_176 = arith.constant dense<0.000000e+00> : vector<16x8xf32>
    %322 = tpu.matmul %290, %321, %cst_176 {dimension_numbers = #tpu.dot_dimension_numbers<[1], [0], [0], [1], [0, 0, 1, 1], [], []>} : vector<16x128xf32>, vector<128x8xf32>, vector<16x8xf32> -> vector<16x8xf32>
    %323 = vector.shape_cast %319 : vector<16x8xf32> to vector<1x16x8xf32>
    %324 = vector.shape_cast %322 : vector<16x8xf32> to vector<1x16x8xf32>
    %325 = tpu.concatenate %323, %324 in 0 : vector<1x16x8xf32>, vector<1x16x8xf32> -> vector<2x16x8xf32>
    %326 = vector.shape_cast %325 : vector<2x16x8xf32> to vector<4x8x8xf32>
    %c0_177 = arith.constant 0 : index
    %c0_178 = arith.constant 0 : index
    %c0_179 = arith.constant 0 : index
    %327 = vector.load %arg33[%c0_177, %c0_178, %c0_179] : memref<2x128x8xf32, #tpu.memory_space<vmem>>, vector<1x128x8xf32>
    %328 = vector.shape_cast %327 : vector<1x128x8xf32> to vector<128x8xf32>
    %cst_180 = arith.constant dense<0.000000e+00> : vector<16x8xf32>
    %329 = tpu.matmul %316, %328, %cst_180 {dimension_numbers = #tpu.dot_dimension_numbers<[1], [0], [0], [1], [0, 0, 1, 1], [], []>} : vector<16x128xf32>, vector<128x8xf32>, vector<16x8xf32> -> vector<16x8xf32>
    %c1_181 = arith.constant 1 : index
    %c0_182 = arith.constant 0 : index
    %c0_183 = arith.constant 0 : index
    %330 = vector.load %arg33[%c1_181, %c0_182, %c0_183] : memref<2x128x8xf32, #tpu.memory_space<vmem>>, vector<1x128x8xf32>
    %331 = vector.shape_cast %330 : vector<1x128x8xf32> to vector<128x8xf32>
    %cst_184 = arith.constant dense<0.000000e+00> : vector<16x8xf32>
    %332 = tpu.matmul %316, %331, %cst_184 {dimension_numbers = #tpu.dot_dimension_numbers<[1], [0], [0], [1], [0, 0, 1, 1], [], []>} : vector<16x128xf32>, vector<128x8xf32>, vector<16x8xf32> -> vector<16x8xf32>
    %333 = vector.shape_cast %329 : vector<16x8xf32> to vector<1x16x8xf32>
    %334 = vector.shape_cast %332 : vector<16x8xf32> to vector<1x16x8xf32>
    %335 = tpu.concatenate %333, %334 in 0 : vector<1x16x8xf32>, vector<1x16x8xf32> -> vector<2x16x8xf32>
    %336 = vector.shape_cast %335 : vector<2x16x8xf32> to vector<4x8x8xf32>
    %c0_185 = arith.constant 0 : index
    %c0_186 = arith.constant 0 : index
    %c0_187 = arith.constant 0 : index
    %337 = vector.load %arg34[%c0_185, %c0_186, %c0_187] : memref<2x128x8xf32, #tpu.memory_space<vmem>>, vector<1x128x8xf32>
    %338 = vector.shape_cast %337 : vector<1x128x8xf32> to vector<128x8xf32>
    %cst_188 = arith.constant dense<0.000000e+00> : vector<16x8xf32>
    %339 = tpu.matmul %316, %338, %cst_188 {dimension_numbers = #tpu.dot_dimension_numbers<[1], [0], [0], [1], [0, 0, 1, 1], [], []>} : vector<16x128xf32>, vector<128x8xf32>, vector<16x8xf32> -> vector<16x8xf32>
    %c1_189 = arith.constant 1 : index
    %c0_190 = arith.constant 0 : index
    %c0_191 = arith.constant 0 : index
    %340 = vector.load %arg34[%c1_189, %c0_190, %c0_191] : memref<2x128x8xf32, #tpu.memory_space<vmem>>, vector<1x128x8xf32>
    %341 = vector.shape_cast %340 : vector<1x128x8xf32> to vector<128x8xf32>
    %cst_192 = arith.constant dense<0.000000e+00> : vector<16x8xf32>
    %342 = tpu.matmul %316, %341, %cst_192 {dimension_numbers = #tpu.dot_dimension_numbers<[1], [0], [0], [1], [0, 0, 1, 1], [], []>} : vector<16x128xf32>, vector<128x8xf32>, vector<16x8xf32> -> vector<16x8xf32>
    %343 = vector.shape_cast %339 : vector<16x8xf32> to vector<1x16x8xf32>
    %344 = vector.shape_cast %342 : vector<16x8xf32> to vector<1x16x8xf32>
    %345 = tpu.concatenate %343, %344 in 0 : vector<1x16x8xf32>, vector<1x16x8xf32> -> vector<2x16x8xf32>
    %346 = vector.shape_cast %345 : vector<2x16x8xf32> to vector<4x8x8xf32>
    "tpu.trace_start"() <{level = 10 : i32, message = "gnd,gmd->gnm"}> : () -> ()
    %cst_193 = arith.constant dense<0.000000e+00> : vector<4x8x8xf32>
    %347 = tpu.matmul %326, %336, %cst_193 {dimension_numbers = #tpu.dot_dimension_numbers<[2], [2], [1], [1], [0, 0, 0, 1, 1, 1], [0], [0]>} : vector<4x8x8xf32>, vector<4x8x8xf32>, vector<4x8x8xf32> -> vector<4x8x8xf32>
    "tpu.trace_stop"() : () -> ()
    %cst_194 = arith.constant 0.176776692 : f32
    %348 = vector.broadcast %cst_194 : f32 to vector<4x8x8xf32>
    %349 = arith.mulf %347, %348 : vector<4x8x8xf32>
    %cst_195 = arith.constant dense<0xFF800000> : vector<4x8xf32>
    %350 = vector.multi_reduction <maximumf>, %349, %cst_195 [2] : vector<4x8x8xf32> to vector<4x8xf32>
    %351 = vector.shape_cast %350 : vector<4x8xf32> to vector<4x8x1xf32>
    %352 = vector.broadcast %351 : vector<4x8x1xf32> to vector<4x8x8xf32>
    %353 = arith.subf %349, %352 : vector<4x8x8xf32>
    %354 = math.exp %353 : vector<4x8x8xf32>
    %cst_196 = arith.constant dense<0.000000e+00> : vector<4x8xf32>
    %355 = vector.multi_reduction <add>, %354, %cst_196 [2] : vector<4x8x8xf32> to vector<4x8xf32>
    %356 = vector.shape_cast %355 : vector<4x8xf32> to vector<4x8x1xf32>
    %357 = tpu.reciprocal %356 : vector<4x8x1xf32> -> vector<4x8x1xf32>
    %358 = vector.broadcast %357 : vector<4x8x1xf32> to vector<4x8x8xf32>
    %359 = arith.mulf %354, %358 : vector<4x8x8xf32>
    "tpu.trace_start"() <{level = 10 : i32, message = "gnm,gmd->gnd"}> : () -> ()
    %cst_197 = arith.constant dense<0.000000e+00> : vector<4x8x8xf32>
    %360 = tpu.matmul %359, %346, %cst_197 {dimension_numbers = #tpu.dot_dimension_numbers<[2], [1], [1], [2], [0, 0, 0, 1, 1, 2], [0], [0]>} : vector<4x8x8xf32>, vector<4x8x8xf32>, vector<4x8x8xf32> -> vector<4x8x8xf32>
    "tpu.trace_stop"() : () -> ()
    %361 = vector.shape_cast %360 : vector<4x8x8xf32> to vector<2x16x8xf32>
    %c0_198 = arith.constant 0 : index
    %c0_199 = arith.constant 0 : index
    %c0_200 = arith.constant 0 : index
    %362 = vector.load %arg35[%c0_198, %c0_199, %c0_200] : memref<2x8x128xf32, #tpu.memory_space<vmem>>, vector<2x8x128xf32>
    "tpu.trace_start"() <{level = 10 : i32, message = "hmd,hdk->hmk"}> : () -> ()
    %cst_201 = arith.constant dense<0.000000e+00> : vector<2x16x128xf32>
    %363 = tpu.matmul %361, %362, %cst_201 {dimension_numbers = #tpu.dot_dimension_numbers<[2], [1], [1], [2], [0, 0, 0, 1, 1, 2], [0], [0]>} : vector<2x16x8xf32>, vector<2x8x128xf32>, vector<2x16x128xf32> -> vector<2x16x128xf32>
    "tpu.trace_stop"() : () -> ()
    %cst_202 = arith.constant dense<0.000000e+00> : vector<16x128xf32>
    %364 = vector.multi_reduction <add>, %363, %cst_202 [0] : vector<2x16x128xf32> to vector<16x128xf32>
    %c0_203 = arith.constant 0 : index
    %c0_204 = arith.constant 0 : index
    %365 = vector.load %arg36[%c0_203, %c0_204] : memref<1x128xf32, #tpu.memory_space<vmem>>, vector<1x128xf32>
    %366 = vector.broadcast %365 : vector<1x128xf32> to vector<16x128xf32>
    %367 = arith.addf %364, %366 : vector<16x128xf32>
    %368 = arith.addf %367, %160 : vector<16x128xf32>
    %cst_205 = arith.constant dense<0.000000e+00> : vector<16xf32>
    %369 = vector.multi_reduction <add>, %264, %cst_205 [1] : vector<16x128xf32> to vector<16xf32>
    %370 = vector.shape_cast %369 : vector<16xf32> to vector<16x1xf32>
    %cst_206 = arith.constant 3.125000e-02 : f32
    %371 = vector.broadcast %cst_206 : f32 to vector<16x1xf32>
    %372 = arith.mulf %370, %371 : vector<16x1xf32>
    %373 = vector.broadcast %372 : vector<16x1xf32> to vector<16x128xf32>
    %374 = arith.subf %264, %373 : vector<16x128xf32>
    %cst_207 = arith.constant 0.000000e+00 : f32
    %375 = vector.shape_cast %2 : vector<1x128xi1> to vector<1x128xi1>
    %376 = vector.broadcast %375 : vector<1x128xi1> to vector<16x128xi1>
    %377 = vector.broadcast %cst_207 : f32 to vector<16x128xf32>
    %378 = arith.select %376, %374, %377 : vector<16x128xi1>, vector<16x128xf32>
    %379 = arith.mulf %378, %378 : vector<16x128xf32>
    %cst_208 = arith.constant dense<0.000000e+00> : vector<16xf32>
    %380 = vector.multi_reduction <add>, %379, %cst_208 [1] : vector<16x128xf32> to vector<16xf32>
    %381 = vector.shape_cast %380 : vector<16xf32> to vector<16x1xf32>
    %cst_209 = arith.constant 3.125000e-02 : f32
    %382 = vector.broadcast %cst_209 : f32 to vector<16x1xf32>
    %383 = arith.mulf %381, %382 : vector<16x1xf32>
    %cst_210 = arith.constant 9.99999974E-6 : f32
    %384 = vector.broadcast %cst_210 : f32 to vector<16x1xf32>
    %385 = arith.addf %383, %384 : vector<16x1xf32>
    %386 = math.rsqrt %385 : vector<16x1xf32>
    %387 = vector.broadcast %386 : vector<16x1xf32> to vector<16x128xf32>
    %388 = arith.mulf %378, %387 : vector<16x128xf32>
    %c0_211 = arith.constant 0 : index
    %c0_212 = arith.constant 0 : index
    %389 = vector.load %arg17[%c0_211, %c0_212] : memref<1x128xf32, #tpu.memory_space<vmem>>, vector<1x128xf32>
    %390 = vector.broadcast %389 : vector<1x128xf32> to vector<16x128xf32>
    %391 = arith.mulf %388, %390 : vector<16x128xf32>
    %c0_213 = arith.constant 0 : index
    %c0_214 = arith.constant 0 : index
    %392 = vector.load %arg18[%c0_213, %c0_214] : memref<1x128xf32, #tpu.memory_space<vmem>>, vector<1x128xf32>
    %393 = vector.broadcast %392 : vector<1x128xf32> to vector<16x128xf32>
    %394 = arith.addf %391, %393 : vector<16x128xf32>
    %c0_215 = arith.constant 0 : index
    %c0_216 = arith.constant 0 : index
    %395 = vector.load %arg19[%c0_215, %c0_216] : memref<128x128xf32, #tpu.memory_space<vmem>>, vector<128x128xf32>
    %cst_217 = arith.constant dense<0.000000e+00> : vector<16x128xf32>
    %396 = tpu.matmul %394, %395, %cst_217 {dimension_numbers = #tpu.dot_dimension_numbers<[1], [0], [0], [1], [0, 0, 1, 1], [], []>} : vector<16x128xf32>, vector<128x128xf32>, vector<16x128xf32> -> vector<16x128xf32>
    %c0_218 = arith.constant 0 : index
    %c0_219 = arith.constant 0 : index
    %397 = vector.load %arg20[%c0_218, %c0_219] : memref<1x128xf32, #tpu.memory_space<vmem>>, vector<1x128xf32>
    %398 = vector.broadcast %397 : vector<1x128xf32> to vector<16x128xf32>
    %399 = arith.addf %396, %398 : vector<16x128xf32>
    %cst_220 = arith.constant 5.000000e-01 : f32
    %400 = vector.broadcast %cst_220 : f32 to vector<16x128xf32>
    %401 = arith.mulf %400, %399 : vector<16x128xf32>
    %cst_221 = arith.constant 0.707106769 : f32
    %402 = vector.broadcast %cst_221 : f32 to vector<16x128xf32>
    %403 = arith.mulf %399, %402 : vector<16x128xf32>
    %404 = math.erf %403 : vector<16x128xf32>
    %cst_222 = arith.constant 1.000000e+00 : f32
    %405 = vector.broadcast %cst_222 : f32 to vector<16x128xf32>
    %406 = arith.addf %405, %404 : vector<16x128xf32>
    %407 = arith.mulf %401, %406 : vector<16x128xf32>
    %c0_223 = arith.constant 0 : index
    %c0_224 = arith.constant 0 : index
    %408 = vector.load %arg21[%c0_223, %c0_224] : memref<128x128xf32, #tpu.memory_space<vmem>>, vector<128x128xf32>
    %cst_225 = arith.constant dense<0.000000e+00> : vector<16x128xf32>
    %409 = tpu.matmul %407, %408, %cst_225 {dimension_numbers = #tpu.dot_dimension_numbers<[1], [0], [0], [1], [0, 0, 1, 1], [], []>} : vector<16x128xf32>, vector<128x128xf32>, vector<16x128xf32> -> vector<16x128xf32>
    %c0_226 = arith.constant 0 : index
    %c0_227 = arith.constant 0 : index
    %410 = vector.load %arg22[%c0_226, %c0_227] : memref<1x128xf32, #tpu.memory_space<vmem>>, vector<1x128xf32>
    %411 = vector.broadcast %410 : vector<1x128xf32> to vector<16x128xf32>
    %412 = arith.addf %409, %411 : vector<16x128xf32>
    %413 = arith.addf %412, %264 : vector<16x128xf32>
    %cst_228 = arith.constant dense<0.000000e+00> : vector<16xf32>
    %414 = vector.multi_reduction <add>, %368, %cst_228 [1] : vector<16x128xf32> to vector<16xf32>
    %415 = vector.shape_cast %414 : vector<16xf32> to vector<16x1xf32>
    %cst_229 = arith.constant 3.125000e-02 : f32
    %416 = vector.broadcast %cst_229 : f32 to vector<16x1xf32>
    %417 = arith.mulf %415, %416 : vector<16x1xf32>
    %418 = vector.broadcast %417 : vector<16x1xf32> to vector<16x128xf32>
    %419 = arith.subf %368, %418 : vector<16x128xf32>
    %cst_230 = arith.constant 0.000000e+00 : f32
    %420 = vector.shape_cast %2 : vector<1x128xi1> to vector<1x128xi1>
    %421 = vector.broadcast %420 : vector<1x128xi1> to vector<16x128xi1>
    %422 = vector.broadcast %cst_230 : f32 to vector<16x128xf32>
    %423 = arith.select %421, %419, %422 : vector<16x128xi1>, vector<16x128xf32>
    %424 = arith.mulf %423, %423 : vector<16x128xf32>
    %cst_231 = arith.constant dense<0.000000e+00> : vector<16xf32>
    %425 = vector.multi_reduction <add>, %424, %cst_231 [1] : vector<16x128xf32> to vector<16xf32>
    %426 = vector.shape_cast %425 : vector<16xf32> to vector<16x1xf32>
    %cst_232 = arith.constant 3.125000e-02 : f32
    %427 = vector.broadcast %cst_232 : f32 to vector<16x1xf32>
    %428 = arith.mulf %426, %427 : vector<16x1xf32>
    %cst_233 = arith.constant 9.99999974E-6 : f32
    %429 = vector.broadcast %cst_233 : f32 to vector<16x1xf32>
    %430 = arith.addf %428, %429 : vector<16x1xf32>
    %431 = math.rsqrt %430 : vector<16x1xf32>
    %432 = vector.broadcast %431 : vector<16x1xf32> to vector<16x128xf32>
    %433 = arith.mulf %423, %432 : vector<16x128xf32>
    %c0_234 = arith.constant 0 : index
    %c0_235 = arith.constant 0 : index
    %434 = vector.load %arg37[%c0_234, %c0_235] : memref<1x128xf32, #tpu.memory_space<vmem>>, vector<1x128xf32>
    %435 = vector.broadcast %434 : vector<1x128xf32> to vector<16x128xf32>
    %436 = arith.mulf %433, %435 : vector<16x128xf32>
    %c0_236 = arith.constant 0 : index
    %c0_237 = arith.constant 0 : index
    %437 = vector.load %arg38[%c0_236, %c0_237] : memref<1x128xf32, #tpu.memory_space<vmem>>, vector<1x128xf32>
    %438 = vector.broadcast %437 : vector<1x128xf32> to vector<16x128xf32>
    %439 = arith.addf %436, %438 : vector<16x128xf32>
    %c0_238 = arith.constant 0 : index
    %c0_239 = arith.constant 0 : index
    %440 = vector.load %arg39[%c0_238, %c0_239] : memref<128x128xf32, #tpu.memory_space<vmem>>, vector<128x128xf32>
    %cst_240 = arith.constant dense<0.000000e+00> : vector<16x128xf32>
    %441 = tpu.matmul %439, %440, %cst_240 {dimension_numbers = #tpu.dot_dimension_numbers<[1], [0], [0], [1], [0, 0, 1, 1], [], []>} : vector<16x128xf32>, vector<128x128xf32>, vector<16x128xf32> -> vector<16x128xf32>
    %c0_241 = arith.constant 0 : index
    %c0_242 = arith.constant 0 : index
    %442 = vector.load %arg40[%c0_241, %c0_242] : memref<1x128xf32, #tpu.memory_space<vmem>>, vector<1x128xf32>
    %443 = vector.broadcast %442 : vector<1x128xf32> to vector<16x128xf32>
    %444 = arith.addf %441, %443 : vector<16x128xf32>
    %cst_243 = arith.constant 5.000000e-01 : f32
    %445 = vector.broadcast %cst_243 : f32 to vector<16x128xf32>
    %446 = arith.mulf %445, %444 : vector<16x128xf32>
    %cst_244 = arith.constant 0.707106769 : f32
    %447 = vector.broadcast %cst_244 : f32 to vector<16x128xf32>
    %448 = arith.mulf %444, %447 : vector<16x128xf32>
    %449 = math.erf %448 : vector<16x128xf32>
    %cst_245 = arith.constant 1.000000e+00 : f32
    %450 = vector.broadcast %cst_245 : f32 to vector<16x128xf32>
    %451 = arith.addf %450, %449 : vector<16x128xf32>
    %452 = arith.mulf %446, %451 : vector<16x128xf32>
    %c0_246 = arith.constant 0 : index
    %c0_247 = arith.constant 0 : index
    %453 = vector.load %arg41[%c0_246, %c0_247] : memref<128x128xf32, #tpu.memory_space<vmem>>, vector<128x128xf32>
    %cst_248 = arith.constant dense<0.000000e+00> : vector<16x128xf32>
    %454 = tpu.matmul %452, %453, %cst_248 {dimension_numbers = #tpu.dot_dimension_numbers<[1], [0], [0], [1], [0, 0, 1, 1], [], []>} : vector<16x128xf32>, vector<128x128xf32>, vector<16x128xf32> -> vector<16x128xf32>
    %c0_249 = arith.constant 0 : index
    %c0_250 = arith.constant 0 : index
    %455 = vector.load %arg42[%c0_249, %c0_250] : memref<1x128xf32, #tpu.memory_space<vmem>>, vector<1x128xf32>
    %456 = vector.broadcast %455 : vector<1x128xf32> to vector<16x128xf32>
    %457 = arith.addf %454, %456 : vector<16x128xf32>
    %458 = arith.addf %457, %368 : vector<16x128xf32>
    %c0_251 = arith.constant 0 : index
    %c0_252 = arith.constant 0 : index
    %459 = vector.load %arg43[%c0_251, %c0_252] : memref<16x128xf32, #tpu.memory_space<vmem>>, vector<16x128xf32>
    tpu.vector_store %arg43[%c0_251, %c0_252], %413 {strides = array<i32>} : memref<16x128xf32, #tpu.memory_space<vmem>>, vector<16x128xf32>,
    %c0_253 = arith.constant 0 : index
    %c0_254 = arith.constant 0 : index
    %460 = vector.load %arg44[%c0_253, %c0_254] : memref<16x128xf32, #tpu.memory_space<vmem>>, vector<16x128xf32>
    tpu.vector_store %arg44[%c0_253, %c0_254], %458 {strides = array<i32>} : memref<16x128xf32, #tpu.memory_space<vmem>>, vector<16x128xf32>,
    return
  }
  func.func @transform_0(%arg0: i32) -> (i32, i32) {
    %c0_i32 = arith.constant 0 : i32
    %c0_i32_0 = arith.constant 0 : i32
    return %arg0, %c0_i32 : i32, i32
  }
  func.func @transform_1(%arg0: i32) -> (i32, i32) {
    %c0_i32 = arith.constant 0 : i32
    %c0_i32_0 = arith.constant 0 : i32
    return %arg0, %c0_i32 : i32, i32
  }
  func.func @transform_2(%arg0: i32) -> (i32, i32) {
    %c0_i32 = arith.constant 0 : i32
    %c0_i32_0 = arith.constant 0 : i32
    %c0_i32_1 = arith.constant 0 : i32
    return %c0_i32, %c0_i32_0 : i32, i32
  }
  func.func @transform_3(%arg0: i32) -> (i32, i32) {
    %c0_i32 = arith.constant 0 : i32
    %c0_i32_0 = arith.constant 0 : i32
    %c0_i32_1 = arith.constant 0 : i32
    return %c0_i32, %c0_i32_0 : i32, i32
  }
  func.func @transform_4(%arg0: i32) -> (i32, i32, i32) {
    %c0_i32 = arith.constant 0 : i32
    %c0_i32_0 = arith.constant 0 : i32
    %c0_i32_1 = arith.constant 0 : i32
    %c0_i32_2 = arith.constant 0 : i32
    return %c0_i32, %c0_i32_0, %c0_i32_1 : i32, i32, i32
  }
  func.func @transform_5(%arg0: i32) -> (i32, i32, i32) {
    %c0_i32 = arith.constant 0 : i32
    %c0_i32_0 = arith.constant 0 : i32
    %c0_i32_1 = arith.constant 0 : i32
    %c0_i32_2 = arith.constant 0 : i32
    return %c0_i32, %c0_i32_0, %c0_i32_1 : i32, i32, i32
  }
  func.func @transform_6(%arg0: i32) -> (i32, i32, i32) {
    %c0_i32 = arith.constant 0 : i32
    %c0_i32_0 = arith.constant 0 : i32
    %c0_i32_1 = arith.constant 0 : i32
    %c0_i32_2 = arith.constant 0 : i32
    return %c0_i32, %c0_i32_0, %c0_i32_1 : i32, i32, i32
  }
  func.func @transform_7(%arg0: i32) -> (i32, i32, i32) {
    %c0_i32 = arith.constant 0 : i32
    %c0_i32_0 = arith.constant 0 : i32
    %c0_i32_1 = arith.constant 0 : i32
    %c0_i32_2 = arith.constant 0 : i32
    return %c0_i32, %c0_i32_0, %c0_i32_1 : i32, i32, i32
  }
  func.func @transform_8(%arg0: i32) -> (i32, i32) {
    %c0_i32 = arith.constant 0 : i32
    %c0_i32_0 = arith.constant 0 : i32
    %c0_i32_1 = arith.constant 0 : i32
    return %c0_i32, %c0_i32_0 : i32, i32
  }
  func.func @transform_9(%arg0: i32) -> (i32, i32) {
    %c0_i32 = arith.constant 0 : i32
    %c0_i32_0 = arith.constant 0 : i32
    %c0_i32_1 = arith.constant 0 : i32
    return %c0_i32, %c0_i32_0 : i32, i32
  }
  func.func @transform_10(%arg0: i32) -> (i32, i32) {
    %c0_i32 = arith.constant 0 : i32
    %c0_i32_0 = arith.constant 0 : i32
    %c0_i32_1 = arith.constant 0 : i32
    return %c0_i32, %c0_i32_0 : i32, i32
  }
  func.func @transform_11(%arg0: i32) -> (i32, i32, i32) {
    %c0_i32 = arith.constant 0 : i32
    %c0_i32_0 = arith.constant 0 : i32
    %c0_i32_1 = arith.constant 0 : i32
    %c0_i32_2 = arith.constant 0 : i32
    return %c0_i32, %c0_i32_0, %c0_i32_1 : i32, i32, i32
  }
  func.func @transform_12(%arg0: i32) -> (i32, i32, i32) {
    %c0_i32 = arith.constant 0 : i32
    %c0_i32_0 = arith.constant 0 : i32
    %c0_i32_1 = arith.constant 0 : i32
    %c0_i32_2 = arith.constant 0 : i32
    return %c0_i32, %c0_i32_0, %c0_i32_1 : i32, i32, i32
  }
  func.func @transform_13(%arg0: i32) -> (i32, i32, i32) {
    %c0_i32 = arith.constant 0 : i32
    %c0_i32_0 = arith.constant 0 : i32
    %c0_i32_1 = arith.constant 0 : i32
    %c0_i32_2 = arith.constant 0 : i32
    return %c0_i32, %c0_i32_0, %c0_i32_1 : i32, i32, i32
  }
  func.func @transform_14(%arg0: i32) -> (i32, i32, i32) {
    %c0_i32 = arith.constant 0 : i32
    %c0_i32_0 = arith.constant 0 : i32
    %c0_i32_1 = arith.constant 0 : i32
    %c0_i32_2 = arith.constant 0 : i32
    return %c0_i32, %c0_i32_0, %c0_i32_1 : i32, i32, i32
  }
  func.func @transform_15(%arg0: i32) -> (i32, i32) {
    %c0_i32 = arith.constant 0 : i32
    %c0_i32_0 = arith.constant 0 : i32
    %c0_i32_1 = arith.constant 0 : i32
    return %c0_i32, %c0_i32_0 : i32, i32
  }
  func.func @transform_16(%arg0: i32) -> (i32, i32) {
    %c0_i32 = arith.constant 0 : i32
    %c0_i32_0 = arith.constant 0 : i32
    %c0_i32_1 = arith.constant 0 : i32
    return %c0_i32, %c0_i32_0 : i32, i32
  }
  func.func @transform_17(%arg0: i32) -> (i32, i32) {
    %c0_i32 = arith.constant 0 : i32
    %c0_i32_0 = arith.constant 0 : i32
    %c0_i32_1 = arith.constant 0 : i32
    return %c0_i32, %c0_i32_0 : i32, i32
  }
  func.func @transform_18(%arg0: i32) -> (i32, i32) {
    %c0_i32 = arith.constant 0 : i32
    %c0_i32_0 = arith.constant 0 : i32
    %c0_i32_1 = arith.constant 0 : i32
    return %c0_i32, %c0_i32_0 : i32, i32
  }
  func.func @transform_19(%arg0: i32) -> (i32, i32) {
    %c0_i32 = arith.constant 0 : i32
    %c0_i32_0 = arith.constant 0 : i32
    %c0_i32_1 = arith.constant 0 : i32
    return %c0_i32, %c0_i32_0 : i32, i32
  }
  func.func @transform_20(%arg0: i32) -> (i32, i32) {
    %c0_i32 = arith.constant 0 : i32
    %c0_i32_0 = arith.constant 0 : i32
    %c0_i32_1 = arith.constant 0 : i32
    return %c0_i32, %c0_i32_0 : i32, i32
  }
  func.func @transform_21(%arg0: i32) -> (i32, i32) {
    %c0_i32 = arith.constant 0 : i32
    %c0_i32_0 = arith.constant 0 : i32
    %c0_i32_1 = arith.constant 0 : i32
    return %c0_i32, %c0_i32_0 : i32, i32
  }
  func.func @transform_22(%arg0: i32) -> (i32, i32) {
    %c0_i32 = arith.constant 0 : i32
    %c0_i32_0 = arith.constant 0 : i32
    %c0_i32_1 = arith.constant 0 : i32
    return %c0_i32, %c0_i32_0 : i32, i32
  }
  func.func @transform_23(%arg0: i32) -> (i32, i32) {
    %c0_i32 = arith.constant 0 : i32
    %c0_i32_0 = arith.constant 0 : i32
    %c0_i32_1 = arith.constant 0 : i32
    return %c0_i32, %c0_i32_0 : i32, i32
  }
  func.func @transform_24(%arg0: i32) -> (i32, i32, i32) {
    %c0_i32 = arith.constant 0 : i32
    %c0_i32_0 = arith.constant 0 : i32
    %c0_i32_1 = arith.constant 0 : i32
    %c0_i32_2 = arith.constant 0 : i32
    return %c0_i32, %c0_i32_0, %c0_i32_1 : i32, i32, i32
  }
  func.func @transform_25(%arg0: i32) -> (i32, i32, i32) {
    %c0_i32 = arith.constant 0 : i32
    %c0_i32_0 = arith.constant 0 : i32
    %c0_i32_1 = arith.constant 0 : i32
    %c0_i32_2 = arith.constant 0 : i32
    return %c0_i32, %c0_i32_0, %c0_i32_1 : i32, i32, i32
  }
  func.func @transform_26(%arg0: i32) -> (i32, i32, i32) {
    %c0_i32 = arith.constant 0 : i32
    %c0_i32_0 = arith.constant 0 : i32
    %c0_i32_1 = arith.constant 0 : i32
    %c0_i32_2 = arith.constant 0 : i32
    return %c0_i32, %c0_i32_0, %c0_i32_1 : i32, i32, i32
  }
  func.func @transform_27(%arg0: i32) -> (i32, i32, i32) {
    %c0_i32 = arith.constant 0 : i32
    %c0_i32_0 = arith.constant 0 : i32
    %c0_i32_1 = arith.constant 0 : i32
    %c0_i32_2 = arith.constant 0 : i32
    return %c0_i32, %c0_i32_0, %c0_i32_1 : i32, i32, i32
  }
  func.func @transform_28(%arg0: i32) -> (i32, i32) {
    %c0_i32 = arith.constant 0 : i32
    %c0_i32_0 = arith.constant 0 : i32
    %c0_i32_1 = arith.constant 0 : i32
    return %c0_i32, %c0_i32_0 : i32, i32
  }
  func.func @transform_29(%arg0: i32) -> (i32, i32) {
    %c0_i32 = arith.constant 0 : i32
    %c0_i32_0 = arith.constant 0 : i32
    %c0_i32_1 = arith.constant 0 : i32
    return %c0_i32, %c0_i32_0 : i32, i32
  }
  func.func @transform_30(%arg0: i32) -> (i32, i32) {
    %c0_i32 = arith.constant 0 : i32
    %c0_i32_0 = arith.constant 0 : i32
    %c0_i32_1 = arith.constant 0 : i32
    return %c0_i32, %c0_i32_0 : i32, i32
  }
  func.func @transform_31(%arg0: i32) -> (i32, i32, i32) {
    %c0_i32 = arith.constant 0 : i32
    %c0_i32_0 = arith.constant 0 : i32
    %c0_i32_1 = arith.constant 0 : i32
    %c0_i32_2 = arith.constant 0 : i32
    return %c0_i32, %c0_i32_0, %c0_i32_1 : i32, i32, i32
  }
  func.func @transform_32(%arg0: i32) -> (i32, i32, i32) {
    %c0_i32 = arith.constant 0 : i32
    %c0_i32_0 = arith.constant 0 : i32
    %c0_i32_1 = arith.constant 0 : i32
    %c0_i32_2 = arith.constant 0 : i32
    return %c0_i32, %c0_i32_0, %c0_i32_1 : i32, i32, i32
  }
  func.func @transform_33(%arg0: i32) -> (i32, i32, i32) {
    %c0_i32 = arith.constant 0 : i32
    %c0_i32_0 = arith.constant 0 : i32
    %c0_i32_1 = arith.constant 0 : i32
    %c0_i32_2 = arith.constant 0 : i32
    return %c0_i32, %c0_i32_0, %c0_i32_1 : i32, i32, i32
  }
  func.func @transform_34(%arg0: i32) -> (i32, i32, i32) {
    %c0_i32 = arith.constant 0 : i32
    %c0_i32_0 = arith.constant 0 : i32
    %c0_i32_1 = arith.constant 0 : i32
    %c0_i32_2 = arith.constant 0 : i32
    return %c0_i32, %c0_i32_0, %c0_i32_1 : i32, i32, i32
  }
  func.func @transform_35(%arg0: i32) -> (i32, i32) {
    %c0_i32 = arith.constant 0 : i32
    %c0_i32_0 = arith.constant 0 : i32
    %c0_i32_1 = arith.constant 0 : i32
    return %c0_i32, %c0_i32_0 : i32, i32
  }
  func.func @transform_36(%arg0: i32) -> (i32, i32) {
    %c0_i32 = arith.constant 0 : i32
    %c0_i32_0 = arith.constant 0 : i32
    %c0_i32_1 = arith.constant 0 : i32
    return %c0_i32, %c0_i32_0 : i32, i32
  }
  func.func @transform_37(%arg0: i32) -> (i32, i32) {
    %c0_i32 = arith.constant 0 : i32
    %c0_i32_0 = arith.constant 0 : i32
    %c0_i32_1 = arith.constant 0 : i32
    return %c0_i32, %c0_i32_0 : i32, i32
  }
  func.func @transform_38(%arg0: i32) -> (i32, i32) {
    %c0_i32 = arith.constant 0 : i32
    %c0_i32_0 = arith.constant 0 : i32
    %c0_i32_1 = arith.constant 0 : i32
    return %c0_i32, %c0_i32_0 : i32, i32
  }
  func.func @transform_39(%arg0: i32) -> (i32, i32) {
    %c0_i32 = arith.constant 0 : i32
    %c0_i32_0 = arith.constant 0 : i32
    %c0_i32_1 = arith.constant 0 : i32
    return %c0_i32, %c0_i32_0 : i32, i32
  }
  func.func @transform_40(%arg0: i32) -> (i32, i32) {
    %c0_i32 = arith.constant 0 : i32
    %c0_i32_0 = arith.constant 0 : i32
    %c0_i32_1 = arith.constant 0 : i32
    return %c0_i32, %c0_i32_0 : i32, i32
  }
  func.func @transform_41(%arg0: i32) -> (i32, i32) {
    %c0_i32 = arith.constant 0 : i32
    %c0_i32_0 = arith.constant 0 : i32
    %c0_i32_1 = arith.constant 0 : i32
    return %c0_i32, %c0_i32_0 : i32, i32
  }
  func.func @transform_42(%arg0: i32) -> (i32, i32) {
    %c0_i32 = arith.constant 0 : i32
    %c0_i32_0 = arith.constant 0 : i32
    return %arg0, %c0_i32 : i32, i32
  }
  func.func @transform_43(%arg0: i32) -> (i32, i32) {
    %c0_i32 = arith.constant 0 : i32
    %c0_i32_0 = arith.constant 0 : i32
    return %arg0, %c0_i32 : i32, i32
  }
}

module attributes {stable_mosaic.version = 11 : i64} {
  func.func @_layer_kernel(%arg0: i32, %arg1: memref<16x128xf32, #tpu.memory_space<vmem>>, %arg2: memref<16x128xf32, #tpu.memory_space<vmem>>, %arg3: memref<1x128xf32, #tpu.memory_space<vmem>>, %arg4: memref<1x128xf32, #tpu.memory_space<vmem>>, %arg5: memref<2x128x8xf32, #tpu.memory_space<vmem>>, %arg6: memref<2x128x8xf32, #tpu.memory_space<vmem>>, %arg7: memref<2x128x8xf32, #tpu.memory_space<vmem>>, %arg8: memref<2x8x128xf32, #tpu.memory_space<vmem>>, %arg9: memref<1x128xf32, #tpu.memory_space<vmem>>, %arg10: memref<1x128xf32, #tpu.memory_space<vmem>>, %arg11: memref<1x128xf32, #tpu.memory_space<vmem>>, %arg12: memref<2x128x8xf32, #tpu.memory_space<vmem>>, %arg13: memref<2x128x8xf32, #tpu.memory_space<vmem>>, %arg14: memref<2x128x8xf32, #tpu.memory_space<vmem>>, %arg15: memref<2x8x128xf32, #tpu.memory_space<vmem>>, %arg16: memref<1x128xf32, #tpu.memory_space<vmem>>, %arg17: memref<1x128xf32, #tpu.memory_space<vmem>>, %arg18: memref<1x128xf32, #tpu.memory_space<vmem>>, %arg19: memref<128x128xf32, #tpu.memory_space<vmem>>, %arg20: memref<1x128xf32, #tpu.memory_space<vmem>>, %arg21: memref<128x128xf32, #tpu.memory_space<vmem>>, %arg22: memref<1x128xf32, #tpu.memory_space<vmem>>, %arg23: memref<1x128xf32, #tpu.memory_space<vmem>>, %arg24: memref<1x128xf32, #tpu.memory_space<vmem>>, %arg25: memref<2x128x8xf32, #tpu.memory_space<vmem>>, %arg26: memref<2x128x8xf32, #tpu.memory_space<vmem>>, %arg27: memref<2x128x8xf32, #tpu.memory_space<vmem>>, %arg28: memref<2x8x128xf32, #tpu.memory_space<vmem>>, %arg29: memref<1x128xf32, #tpu.memory_space<vmem>>, %arg30: memref<1x128xf32, #tpu.memory_space<vmem>>, %arg31: memref<1x128xf32, #tpu.memory_space<vmem>>, %arg32: memref<2x128x8xf32, #tpu.memory_space<vmem>>, %arg33: memref<2x128x8xf32, #tpu.memory_space<vmem>>, %arg34: memref<2x128x8xf32, #tpu.memory_space<vmem>>, %arg35: memref<2x8x128xf32, #tpu.memory_space<vmem>>, %arg36: memref<1x128xf32, #tpu.memory_space<vmem>>, %arg37: memref<1x128xf32, #tpu.memory_space<vmem>>, %arg38: memref<1x128xf32, #tpu.memory_space<vmem>>, %arg39: memref<128x128xf32, #tpu.memory_space<vmem>>, %arg40: memref<1x128xf32, #tpu.memory_space<vmem>>, %arg41: memref<128x128xf32, #tpu.memory_space<vmem>>, %arg42: memref<1x128xf32, #tpu.memory_space<vmem>>, %arg43: memref<16x128xf32, #tpu.memory_space<vmem>>, %arg44: memref<16x128xf32, #tpu.memory_space<vmem>>) attributes {dimension_semantics = [#tpu.dimension_semantics<parallel>], iteration_bounds = array<i64: 2>, scalar_prefetch = 0 : i64, scratch_operands = 0 : i64, tpu.core_type = #tpu.core_type<tc>, window_params = [{transform_indices = @transform_0, window_bounds = array<i64: 16, 128>}, {transform_indices = @transform_1, window_bounds = array<i64: 16, 128>}, {pipeline_mode = #tpu.pipeline_mode<synchronous>, transform_indices = @transform_2, window_bounds = array<i64: 1, 128>}, {pipeline_mode = #tpu.pipeline_mode<synchronous>, transform_indices = @transform_3, window_bounds = array<i64: 1, 128>}, {pipeline_mode = #tpu.pipeline_mode<synchronous>, transform_indices = @transform_4, window_bounds = array<i64: 2, 128, 8>}, {pipeline_mode = #tpu.pipeline_mode<synchronous>, transform_indices = @transform_5, window_bounds = array<i64: 2, 128, 8>}, {pipeline_mode = #tpu.pipeline_mode<synchronous>, transform_indices = @transform_6, window_bounds = array<i64: 2, 128, 8>}, {pipeline_mode = #tpu.pipeline_mode<synchronous>, transform_indices = @transform_7, window_bounds = array<i64: 2, 8, 128>}, {pipeline_mode = #tpu.pipeline_mode<synchronous>, transform_indices = @transform_8, window_bounds = array<i64: 1, 128>}, {pipeline_mode = #tpu.pipeline_mode<synchronous>, transform_indices = @transform_9, window_bounds = array<i64: 1, 128>}, {pipeline_mode = #tpu.pipeline_mode<synchronous>, transform_indices = @transform_10, window_bounds = array<i64: 1, 128>}, {pipeline_mode = #tpu.pipeline_mode<synchronous>, transform_indices = @transform_11, window_bounds = array<i64: 2, 128, 8>}, {pipeline_mode = #tpu.pipeline_mode<synchronous>, transform_indices = @transform_12, window_bounds = array<i64: 2, 128, 8>}, {pipeline_mode = #tpu.pipeline_mode<synchronous>, transform_indices = @transform_13, window_bounds = array<i64: 2, 128, 8>}, {pipeline_mode = #tpu.pipeline_mode<synchronous>, transform_indices = @transform_14, window_bounds = array<i64: 2, 8, 128>}, {pipeline_mode = #tpu.pipeline_mode<synchronous>, transform_indices = @transform_15, window_bounds = array<i64: 1, 128>}, {pipeline_mode = #tpu.pipeline_mode<synchronous>, transform_indices = @transform_16, window_bounds = array<i64: 1, 128>}, {pipeline_mode = #tpu.pipeline_mode<synchronous>, transform_indices = @transform_17, window_bounds = array<i64: 1, 128>}, {pipeline_mode = #tpu.pipeline_mode<synchronous>, transform_indices = @transform_18, window_bounds = array<i64: 128, 128>}, {pipeline_mode = #tpu.pipeline_mode<synchronous>, transform_indices = @transform_19, window_bounds = array<i64: 1, 128>}, {pipeline_mode = #tpu.pipeline_mode<synchronous>, transform_indices = @transform_20, window_bounds = array<i64: 128, 128>}, {pipeline_mode = #tpu.pipeline_mode<synchronous>, transform_indices = @transform_21, window_bounds = array<i64: 1, 128>}, {pipeline_mode = #tpu.pipeline_mode<synchronous>, transform_indices = @transform_22, window_bounds = array<i64: 1, 128>}, {pipeline_mode = #tpu.pipeline_mode<synchronous>, transform_indices = @transform_23, window_bounds = array<i64: 1, 128>}, {pipeline_mode = #tpu.pipeline_mode<synchronous>, transform_indices = @transform_24, window_bounds = array<i64: 2, 128, 8>}, {pipeline_mode = #tpu.pipeline_mode<synchronous>, transform_indices = @transform_25, window_bounds = array<i64: 2, 128, 8>}, {pipeline_mode = #tpu.pipeline_mode<synchronous>, transform_indices = @transform_26, window_bounds = array<i64: 2, 128, 8>}, {pipeline_mode = #tpu.pipeline_mode<synchronous>, transform_indices = @transform_27, window_bounds = array<i64: 2, 8, 128>}, {pipeline_mode = #tpu.pipeline_mode<synchronous>, transform_indices = @transform_28, window_bounds = array<i64: 1, 128>}, {pipeline_mode = #tpu.pipeline_mode<synchronous>, transform_indices = @transform_29, window_bounds = array<i64: 1, 128>}, {pipeline_mode = #tpu.pipeline_mode<synchronous>, transform_indices = @transform_30, window_bounds = array<i64: 1, 128>}, {pipeline_mode = #tpu.pipeline_mode<synchronous>, transform_indices = @transform_31, window_bounds = array<i64: 2, 128, 8>}, {pipeline_mode = #tpu.pipeline_mode<synchronous>, transform_indices = @transform_32, window_bounds = array<i64: 2, 128, 8>}, {pipeline_mode = #tpu.pipeline_mode<synchronous>, transform_indices = @transform_33, window_bounds = array<i64: 2, 128, 8>}, {pipeline_mode = #tpu.pipeline_mode<synchronous>, transform_indices = @transform_34, window_bounds = array<i64: 2, 8, 128>}, {pipeline_mode = #tpu.pipeline_mode<synchronous>, transform_indices = @transform_35, window_bounds = array<i64: 1, 128>}, {pipeline_mode = #tpu.pipeline_mode<synchronous>, transform_indices = @transform_36, window_bounds = array<i64: 1, 128>}, {pipeline_mode = #tpu.pipeline_mode<synchronous>, transform_indices = @transform_37, window_bounds = array<i64: 1, 128>}, {pipeline_mode = #tpu.pipeline_mode<synchronous>, transform_indices = @transform_38, window_bounds = array<i64: 128, 128>}, {pipeline_mode = #tpu.pipeline_mode<synchronous>, transform_indices = @transform_39, window_bounds = array<i64: 1, 128>}, {pipeline_mode = #tpu.pipeline_mode<synchronous>, transform_indices = @transform_40, window_bounds = array<i64: 128, 128>}, {pipeline_mode = #tpu.pipeline_mode<synchronous>, transform_indices = @transform_41, window_bounds = array<i64: 1, 128>}, {transform_indices = @transform_42, window_bounds = array<i64: 16, 128>}, {transform_indices = @transform_43, window_bounds = array<i64: 16, 128>}]} {
    %0 = tpu.iota {dimensions = array<i32: 1>} : vector<1x128xi32>
    %c32_i32 = arith.constant 32 : i32
    %1 = vector.broadcast %c32_i32 : i32 to vector<1x128xi32>
    %2 = arith.cmpi slt, %0, %1 : vector<1x128xi32>
    %c0 = arith.constant 0 : index
    %c0_0 = arith.constant 0 : index
    %3 = vector.load %arg1[%c0, %c0_0] : memref<16x128xf32, #tpu.memory_space<vmem>>, vector<16x128xf32>
    %c0_1 = arith.constant 0 : index
    %c0_2 = arith.constant 0 : index
    %4 = vector.load %arg2[%c0_1, %c0_2] : memref<16x128xf32, #tpu.memory_space<vmem>>, vector<16x128xf32>
    %cst = arith.constant dense<0.000000e+00> : vector<16xf32>
    %5 = vector.multi_reduction <add>, %3, %cst [1] : vector<16x128xf32> to vector<16xf32>
    %6 = vector.shape_cast %5 : vector<16xf32> to vector<16x1xf32>
    %cst_3 = arith.constant 3.125000e-02 : f32
    %7 = vector.broadcast %cst_3 : f32 to vector<16x1xf32>
    %8 = arith.mulf %6, %7 : vector<16x1xf32>
    %9 = vector.broadcast %8 : vector<16x1xf32> to vector<16x128xf32>
    %10 = arith.subf %3, %9 : vector<16x128xf32>
    %cst_4 = arith.constant 0.000000e+00 : f32
    %11 = vector.shape_cast %2 : vector<1x128xi1> to vector<1x128xi1>
    %12 = vector.broadcast %11 : vector<1x128xi1> to vector<16x128xi1>
    %13 = vector.broadcast %cst_4 : f32 to vector<16x128xf32>
    %14 = arith.select %12, %10, %13 : vector<16x128xi1>, vector<16x128xf32>
    %15 = arith.mulf %14, %14 : vector<16x128xf32>
    %cst_5 = arith.constant dense<0.000000e+00> : vector<16xf32>
    %16 = vector.multi_reduction <add>, %15, %cst_5 [1] : vector<16x128xf32> to vector<16xf32>
    %17 = vector.shape_cast %16 : vector<16xf32> to vector<16x1xf32>
    %cst_6 = arith.constant 3.125000e-02 : f32
    %18 = vector.broadcast %cst_6 : f32 to vector<16x1xf32>
    %19 = arith.mulf %17, %18 : vector<16x1xf32>
    %cst_7 = arith.constant 9.99999974E-6 : f32
    %20 = vector.broadcast %cst_7 : f32 to vector<16x1xf32>
    %21 = arith.addf %19, %20 : vector<16x1xf32>
    %22 = math.rsqrt %21 : vector<16x1xf32>
    %23 = vector.broadcast %22 : vector<16x1xf32> to vector<16x128xf32>
    %24 = arith.mulf %14, %23 : vector<16x128xf32>
    %c0_8 = arith.constant 0 : index
    %c0_9 = arith.constant 0 : index
    %25 = vector.load %arg3[%c0_8, %c0_9] : memref<1x128xf32, #tpu.memory_space<vmem>>, vector<1x128xf32>
    %26 = vector.broadcast %25 : vector<1x128xf32> to vector<16x128xf32>
    %27 = arith.mulf %24, %26 : vector<16x128xf32>
    %c0_10 = arith.constant 0 : index
    %c0_11 = arith.constant 0 : index
    %28 = vector.load %arg4[%c0_10, %c0_11] : memref<1x128xf32, #tpu.memory_space<vmem>>, vector<1x128xf32>
    %29 = vector.broadcast %28 : vector<1x128xf32> to vector<16x128xf32>
    %30 = arith.addf %27, %29 : vector<16x128xf32>
    %c0_12 = arith.constant 0 : index
    %c0_13 = arith.constant 0 : index
    %c0_14 = arith.constant 0 : index
    %31 = vector.load %arg5[%c0_12, %c0_13, %c0_14] : memref<2x128x8xf32, #tpu.memory_space<vmem>>, vector<1x128x8xf32>
    %32 = vector.shape_cast %31 : vector<1x128x8xf32> to vector<128x8xf32>
    %cst_15 = arith.constant dense<0.000000e+00> : vector<16x8xf32>
    %33 = tpu.matmul %30, %32, %cst_15 {dimension_numbers = #tpu.dot_dimension_numbers<[1], [0], [0], [1], [0, 0, 1, 1], [], []>} : vector<16x128xf32>, vector<128x8xf32>, vector<16x8xf32> -> vector<16x8xf32>
    %c1 = arith.constant 1 : index
    %c0_16 = arith.constant 0 : index
    %c0_17 = arith.constant 0 : index
    %34 = vector.load %arg5[%c1, %c0_16, %c0_17] : memref<2x128x8xf32, #tpu.memory_space<vmem>>, vector<1x128x8xf32>
    %35 = vector.shape_cast %34 : vector<1x128x8xf32> to vector<128x8xf32>
    %cst_18 = arith.constant dense<0.000000e+00> : vector<16x8xf32>
    %36 = tpu.matmul %30, %35, %cst_18 {dimension_numbers = #tpu.dot_dimension_numbers<[1], [0], [0], [1], [0, 0, 1, 1], [], []>} : vector<16x128xf32>, vector<128x8xf32>, vector<16x8xf32> -> vector<16x8xf32>
    %37 = vector.shape_cast %33 : vector<16x8xf32> to vector<1x16x8xf32>
    %38 = vector.shape_cast %36 : vector<16x8xf32> to vector<1x16x8xf32>
    %39 = tpu.concatenate %37, %38 in 0 : vector<1x16x8xf32>, vector<1x16x8xf32> -> vector<2x16x8xf32>
    %40 = vector.shape_cast %39 : vector<2x16x8xf32> to vector<4x8x8xf32>
    %c0_19 = arith.constant 0 : index
    %c0_20 = arith.constant 0 : index
    %c0_21 = arith.constant 0 : index
    %41 = vector.load %arg6[%c0_19, %c0_20, %c0_21] : memref<2x128x8xf32, #tpu.memory_space<vmem>>, vector<1x128x8xf32>
    %42 = vector.shape_cast %41 : vector<1x128x8xf32> to vector<128x8xf32>
    %cst_22 = arith.constant dense<0.000000e+00> : vector<16x8xf32>
    %43 = tpu.matmul %30, %42, %cst_22 {dimension_numbers = #tpu.dot_dimension_numbers<[1], [0], [0], [1], [0, 0, 1, 1], [], []>} : vector<16x128xf32>, vector<128x8xf32>, vector<16x8xf32> -> vector<16x8xf32>
    %c1_23 = arith.constant 1 : index
    %c0_24 = arith.constant 0 : index
    %c0_25 = arith.constant 0 : index
    %44 = vector.load %arg6[%c1_23, %c0_24, %c0_25] : memref<2x128x8xf32, #tpu.memory_space<vmem>>, vector<1x128x8xf32>
    %45 = vector.shape_cast %44 : vector<1x128x8xf32> to vector<128x8xf32>
    %cst_26 = arith.constant dense<0.000000e+00> : vector<16x8xf32>
    %46 = tpu.matmul %30, %45, %cst_26 {dimension_numbers = #tpu.dot_dimension_numbers<[1], [0], [0], [1], [0, 0, 1, 1], [], []>} : vector<16x128xf32>, vector<128x8xf32>, vector<16x8xf32> -> vector<16x8xf32>
    %47 = vector.shape_cast %43 : vector<16x8xf32> to vector<1x16x8xf32>
    %48 = vector.shape_cast %46 : vector<16x8xf32> to vector<1x16x8xf32>
    %49 = tpu.concatenate %47, %48 in 0 : vector<1x16x8xf32>, vector<1x16x8xf32> -> vector<2x16x8xf32>
    %50 = vector.shape_cast %49 : vector<2x16x8xf32> to vector<4x8x8xf32>
    %c0_27 = arith.constant 0 : index
    %c0_28 = arith.constant 0 : index
    %c0_29 = arith.constant 0 : index
    %51 = vector.load %arg7[%c0_27, %c0_28, %c0_29] : memref<2x128x8xf32, #tpu.memory_space<vmem>>, vector<1x128x8xf32>
    %52 = vector.shape_cast %51 : vector<1x128x8xf32> to vector<128x8xf32>
    %cst_30 = arith.constant dense<0.000000e+00> : vector<16x8xf32>
    %53 = tpu.matmul %30, %52, %cst_30 {dimension_numbers = #tpu.dot_dimension_numbers<[1], [0], [0], [1], [0, 0, 1, 1], [], []>} : vector<16x128xf32>, vector<128x8xf32>, vector<16x8xf32> -> vector<16x8xf32>
    %c1_31 = arith.constant 1 : index
    %c0_32 = arith.constant 0 : index
    %c0_33 = arith.constant 0 : index
    %54 = vector.load %arg7[%c1_31, %c0_32, %c0_33] : memref<2x128x8xf32, #tpu.memory_space<vmem>>, vector<1x128x8xf32>
    %55 = vector.shape_cast %54 : vector<1x128x8xf32> to vector<128x8xf32>
    %cst_34 = arith.constant dense<0.000000e+00> : vector<16x8xf32>
    %56 = tpu.matmul %30, %55, %cst_34 {dimension_numbers = #tpu.dot_dimension_numbers<[1], [0], [0], [1], [0, 0, 1, 1], [], []>} : vector<16x128xf32>, vector<128x8xf32>, vector<16x8xf32> -> vector<16x8xf32>
    %57 = vector.shape_cast %53 : vector<16x8xf32> to vector<1x16x8xf32>
    %58 = vector.shape_cast %56 : vector<16x8xf32> to vector<1x16x8xf32>
    %59 = tpu.concatenate %57, %58 in 0 : vector<1x16x8xf32>, vector<1x16x8xf32> -> vector<2x16x8xf32>
    %60 = vector.shape_cast %59 : vector<2x16x8xf32> to vector<4x8x8xf32>
    "tpu.trace_start"() <{level = 10 : i32, message = "gnd,gmd->gnm"}> : () -> ()
    %cst_35 = arith.constant dense<0.000000e+00> : vector<4x8x8xf32>
    %61 = tpu.matmul %40, %50, %cst_35 {dimension_numbers = #tpu.dot_dimension_numbers<[2], [2], [1], [1], [0, 0, 0, 1, 1, 1], [0], [0]>} : vector<4x8x8xf32>, vector<4x8x8xf32>, vector<4x8x8xf32> -> vector<4x8x8xf32>
    "tpu.trace_stop"() : () -> ()
    %cst_36 = arith.constant 0.176776692 : f32
    %62 = vector.broadcast %cst_36 : f32 to vector<4x8x8xf32>
    %63 = arith.mulf %61, %62 : vector<4x8x8xf32>
    %cst_37 = arith.constant dense<0xFF800000> : vector<4x8xf32>
    %64 = vector.multi_reduction <maximumf>, %63, %cst_37 [2] : vector<4x8x8xf32> to vector<4x8xf32>
    %65 = vector.shape_cast %64 : vector<4x8xf32> to vector<4x8x1xf32>
    %66 = vector.broadcast %65 : vector<4x8x1xf32> to vector<4x8x8xf32>
    %67 = arith.subf %63, %66 : vector<4x8x8xf32>
    %68 = math.exp %67 : vector<4x8x8xf32>
    %cst_38 = arith.constant dense<0.000000e+00> : vector<4x8xf32>
    %69 = vector.multi_reduction <add>, %68, %cst_38 [2] : vector<4x8x8xf32> to vector<4x8xf32>
    %70 = vector.shape_cast %69 : vector<4x8xf32> to vector<4x8x1xf32>
    %71 = tpu.reciprocal %70 : vector<4x8x1xf32> -> vector<4x8x1xf32>
    %72 = vector.broadcast %71 : vector<4x8x1xf32> to vector<4x8x8xf32>
    %73 = arith.mulf %68, %72 : vector<4x8x8xf32>
    "tpu.trace_start"() <{level = 10 : i32, message = "gnm,gmd->gnd"}> : () -> ()
    %cst_39 = arith.constant dense<0.000000e+00> : vector<4x8x8xf32>
    %74 = tpu.matmul %73, %60, %cst_39 {dimension_numbers = #tpu.dot_dimension_numbers<[2], [1], [1], [2], [0, 0, 0, 1, 1, 2], [0], [0]>} : vector<4x8x8xf32>, vector<4x8x8xf32>, vector<4x8x8xf32> -> vector<4x8x8xf32>
    "tpu.trace_stop"() : () -> ()
    %75 = vector.shape_cast %74 : vector<4x8x8xf32> to vector<2x16x8xf32>
    %c0_40 = arith.constant 0 : index
    %c0_41 = arith.constant 0 : index
    %c0_42 = arith.constant 0 : index
    %76 = vector.load %arg8[%c0_40, %c0_41, %c0_42] : memref<2x8x128xf32, #tpu.memory_space<vmem>>, vector<2x8x128xf32>
    "tpu.trace_start"() <{level = 10 : i32, message = "hmd,hdk->hmk"}> : () -> ()
    %cst_43 = arith.constant dense<0.000000e+00> : vector<2x16x128xf32>
    %77 = tpu.matmul %75, %76, %cst_43 {dimension_numbers = #tpu.dot_dimension_numbers<[2], [1], [1], [2], [0, 0, 0, 1, 1, 2], [0], [0]>} : vector<2x16x8xf32>, vector<2x8x128xf32>, vector<2x16x128xf32> -> vector<2x16x128xf32>
    "tpu.trace_stop"() : () -> ()
    %cst_44 = arith.constant dense<0.000000e+00> : vector<16x128xf32>
    %78 = vector.multi_reduction <add>, %77, %cst_44 [0] : vector<2x16x128xf32> to vector<16x128xf32>
    %c0_45 = arith.constant 0 : index
    %c0_46 = arith.constant 0 : index
    %79 = vector.load %arg9[%c0_45, %c0_46] : memref<1x128xf32, #tpu.memory_space<vmem>>, vector<1x128xf32>
    %80 = vector.broadcast %79 : vector<1x128xf32> to vector<16x128xf32>
    %81 = arith.addf %78, %80 : vector<16x128xf32>
    %82 = arith.addf %81, %3 : vector<16x128xf32>
    %cst_47 = arith.constant dense<0.000000e+00> : vector<16xf32>
    %83 = vector.multi_reduction <add>, %4, %cst_47 [1] : vector<16x128xf32> to vector<16xf32>
    %84 = vector.shape_cast %83 : vector<16xf32> to vector<16x1xf32>
    %cst_48 = arith.constant 3.125000e-02 : f32
    %85 = vector.broadcast %cst_48 : f32 to vector<16x1xf32>
    %86 = arith.mulf %84, %85 : vector<16x1xf32>
    %87 = vector.broadcast %86 : vector<16x1xf32> to vector<16x128xf32>
    %88 = arith.subf %4, %87 : vector<16x128xf32>
    %cst_49 = arith.constant 0.000000e+00 : f32
    %89 = vector.shape_cast %2 : vector<1x128xi1> to vector<1x128xi1>
    %90 = vector.broadcast %89 : vector<1x128xi1> to vector<16x128xi1>
    %91 = vector.broadcast %cst_49 : f32 to vector<16x128xf32>
    %92 = arith.select %90, %88, %91 : vector<16x128xi1>, vector<16x128xf32>
    %93 = arith.mulf %92, %92 : vector<16x128xf32>
    %cst_50 = arith.constant dense<0.000000e+00> : vector<16xf32>
    %94 = vector.multi_reduction <add>, %93, %cst_50 [1] : vector<16x128xf32> to vector<16xf32>
    %95 = vector.shape_cast %94 : vector<16xf32> to vector<16x1xf32>
    %cst_51 = arith.constant 3.125000e-02 : f32
    %96 = vector.broadcast %cst_51 : f32 to vector<16x1xf32>
    %97 = arith.mulf %95, %96 : vector<16x1xf32>
    %cst_52 = arith.constant 9.99999974E-6 : f32
    %98 = vector.broadcast %cst_52 : f32 to vector<16x1xf32>
    %99 = arith.addf %97, %98 : vector<16x1xf32>
    %100 = math.rsqrt %99 : vector<16x1xf32>
    %101 = vector.broadcast %100 : vector<16x1xf32> to vector<16x128xf32>
    %102 = arith.mulf %92, %101 : vector<16x128xf32>
    %c0_53 = arith.constant 0 : index
    %c0_54 = arith.constant 0 : index
    %103 = vector.load %arg23[%c0_53, %c0_54] : memref<1x128xf32, #tpu.memory_space<vmem>>, vector<1x128xf32>
    %104 = vector.broadcast %103 : vector<1x128xf32> to vector<16x128xf32>
    %105 = arith.mulf %102, %104 : vector<16x128xf32>
    %c0_55 = arith.constant 0 : index
    %c0_56 = arith.constant 0 : index
    %106 = vector.load %arg24[%c0_55, %c0_56] : memref<1x128xf32, #tpu.memory_space<vmem>>, vector<1x128xf32>
    %107 = vector.broadcast %106 : vector<1x128xf32> to vector<16x128xf32>
    %108 = arith.addf %105, %107 : vector<16x128xf32>
    %c0_57 = arith.constant 0 : index
    %c0_58 = arith.constant 0 : index
    %c0_59 = arith.constant 0 : index
    %109 = vector.load %arg25[%c0_57, %c0_58, %c0_59] : memref<2x128x8xf32, #tpu.memory_space<vmem>>, vector<1x128x8xf32>
    %110 = vector.shape_cast %109 : vector<1x128x8xf32> to vector<128x8xf32>
    %cst_60 = arith.constant dense<0.000000e+00> : vector<16x8xf32>
    %111 = tpu.matmul %108, %110, %cst_60 {dimension_numbers = #tpu.dot_dimension_numbers<[1], [0], [0], [1], [0, 0, 1, 1], [], []>} : vector<16x128xf32>, vector<128x8xf32>, vector<16x8xf32> -> vector<16x8xf32>
    %c1_61 = arith.constant 1 : index
    %c0_62 = arith.constant 0 : index
    %c0_63 = arith.constant 0 : index
    %112 = vector.load %arg25[%c1_61, %c0_62, %c0_63] : memref<2x128x8xf32, #tpu.memory_space<vmem>>, vector<1x128x8xf32>
    %113 = vector.shape_cast %112 : vector<1x128x8xf32> to vector<128x8xf32>
    %cst_64 = arith.constant dense<0.000000e+00> : vector<16x8xf32>
    %114 = tpu.matmul %108, %113, %cst_64 {dimension_numbers = #tpu.dot_dimension_numbers<[1], [0], [0], [1], [0, 0, 1, 1], [], []>} : vector<16x128xf32>, vector<128x8xf32>, vector<16x8xf32> -> vector<16x8xf32>
    %115 = vector.shape_cast %111 : vector<16x8xf32> to vector<1x16x8xf32>
    %116 = vector.shape_cast %114 : vector<16x8xf32> to vector<1x16x8xf32>
    %117 = tpu.concatenate %115, %116 in 0 : vector<1x16x8xf32>, vector<1x16x8xf32> -> vector<2x16x8xf32>
    %118 = vector.shape_cast %117 : vector<2x16x8xf32> to vector<4x8x8xf32>
    %c0_65 = arith.constant 0 : index
    %c0_66 = arith.constant 0 : index
    %c0_67 = arith.constant 0 : index
    %119 = vector.load %arg26[%c0_65, %c0_66, %c0_67] : memref<2x128x8xf32, #tpu.memory_space<vmem>>, vector<1x128x8xf32>
    %120 = vector.shape_cast %119 : vector<1x128x8xf32> to vector<128x8xf32>
    %cst_68 = arith.constant dense<0.000000e+00> : vector<16x8xf32>
    %121 = tpu.matmul %108, %120, %cst_68 {dimension_numbers = #tpu.dot_dimension_numbers<[1], [0], [0], [1], [0, 0, 1, 1], [], []>} : vector<16x128xf32>, vector<128x8xf32>, vector<16x8xf32> -> vector<16x8xf32>
    %c1_69 = arith.constant 1 : index
    %c0_70 = arith.constant 0 : index
    %c0_71 = arith.constant 0 : index
    %122 = vector.load %arg26[%c1_69, %c0_70, %c0_71] : memref<2x128x8xf32, #tpu.memory_space<vmem>>, vector<1x128x8xf32>
    %123 = vector.shape_cast %122 : vector<1x128x8xf32> to vector<128x8xf32>
    %cst_72 = arith.constant dense<0.000000e+00> : vector<16x8xf32>
    %124 = tpu.matmul %108, %123, %cst_72 {dimension_numbers = #tpu.dot_dimension_numbers<[1], [0], [0], [1], [0, 0, 1, 1], [], []>} : vector<16x128xf32>, vector<128x8xf32>, vector<16x8xf32> -> vector<16x8xf32>
    %125 = vector.shape_cast %121 : vector<16x8xf32> to vector<1x16x8xf32>
    %126 = vector.shape_cast %124 : vector<16x8xf32> to vector<1x16x8xf32>
    %127 = tpu.concatenate %125, %126 in 0 : vector<1x16x8xf32>, vector<1x16x8xf32> -> vector<2x16x8xf32>
    %128 = vector.shape_cast %127 : vector<2x16x8xf32> to vector<4x8x8xf32>
    %c0_73 = arith.constant 0 : index
    %c0_74 = arith.constant 0 : index
    %c0_75 = arith.constant 0 : index
    %129 = vector.load %arg27[%c0_73, %c0_74, %c0_75] : memref<2x128x8xf32, #tpu.memory_space<vmem>>, vector<1x128x8xf32>
    %130 = vector.shape_cast %129 : vector<1x128x8xf32> to vector<128x8xf32>
    %cst_76 = arith.constant dense<0.000000e+00> : vector<16x8xf32>
    %131 = tpu.matmul %108, %130, %cst_76 {dimension_numbers = #tpu.dot_dimension_numbers<[1], [0], [0], [1], [0, 0, 1, 1], [], []>} : vector<16x128xf32>, vector<128x8xf32>, vector<16x8xf32> -> vector<16x8xf32>
    %c1_77 = arith.constant 1 : index
    %c0_78 = arith.constant 0 : index
    %c0_79 = arith.constant 0 : index
    %132 = vector.load %arg27[%c1_77, %c0_78, %c0_79] : memref<2x128x8xf32, #tpu.memory_space<vmem>>, vector<1x128x8xf32>
    %133 = vector.shape_cast %132 : vector<1x128x8xf32> to vector<128x8xf32>
    %cst_80 = arith.constant dense<0.000000e+00> : vector<16x8xf32>
    %134 = tpu.matmul %108, %133, %cst_80 {dimension_numbers = #tpu.dot_dimension_numbers<[1], [0], [0], [1], [0, 0, 1, 1], [], []>} : vector<16x128xf32>, vector<128x8xf32>, vector<16x8xf32> -> vector<16x8xf32>
    %135 = vector.shape_cast %131 : vector<16x8xf32> to vector<1x16x8xf32>
    %136 = vector.shape_cast %134 : vector<16x8xf32> to vector<1x16x8xf32>
    %137 = tpu.concatenate %135, %136 in 0 : vector<1x16x8xf32>, vector<1x16x8xf32> -> vector<2x16x8xf32>
    %138 = vector.shape_cast %137 : vector<2x16x8xf32> to vector<4x8x8xf32>
    "tpu.trace_start"() <{level = 10 : i32, message = "gnd,gmd->gnm"}> : () -> ()
    %cst_81 = arith.constant dense<0.000000e+00> : vector<4x8x8xf32>
    %139 = tpu.matmul %118, %128, %cst_81 {dimension_numbers = #tpu.dot_dimension_numbers<[2], [2], [1], [1], [0, 0, 0, 1, 1, 1], [0], [0]>} : vector<4x8x8xf32>, vector<4x8x8xf32>, vector<4x8x8xf32> -> vector<4x8x8xf32>
    "tpu.trace_stop"() : () -> ()
    %cst_82 = arith.constant 0.176776692 : f32
    %140 = vector.broadcast %cst_82 : f32 to vector<4x8x8xf32>
    %141 = arith.mulf %139, %140 : vector<4x8x8xf32>
    %cst_83 = arith.constant dense<0xFF800000> : vector<4x8xf32>
    %142 = vector.multi_reduction <maximumf>, %141, %cst_83 [2] : vector<4x8x8xf32> to vector<4x8xf32>
    %143 = vector.shape_cast %142 : vector<4x8xf32> to vector<4x8x1xf32>
    %144 = vector.broadcast %143 : vector<4x8x1xf32> to vector<4x8x8xf32>
    %145 = arith.subf %141, %144 : vector<4x8x8xf32>
    %146 = math.exp %145 : vector<4x8x8xf32>
    %cst_84 = arith.constant dense<0.000000e+00> : vector<4x8xf32>
    %147 = vector.multi_reduction <add>, %146, %cst_84 [2] : vector<4x8x8xf32> to vector<4x8xf32>
    %148 = vector.shape_cast %147 : vector<4x8xf32> to vector<4x8x1xf32>
    %149 = tpu.reciprocal %148 : vector<4x8x1xf32> -> vector<4x8x1xf32>
    %150 = vector.broadcast %149 : vector<4x8x1xf32> to vector<4x8x8xf32>
    %151 = arith.mulf %146, %150 : vector<4x8x8xf32>
    "tpu.trace_start"() <{level = 10 : i32, message = "gnm,gmd->gnd"}> : () -> ()
    %cst_85 = arith.constant dense<0.000000e+00> : vector<4x8x8xf32>
    %152 = tpu.matmul %151, %138, %cst_85 {dimension_numbers = #tpu.dot_dimension_numbers<[2], [1], [1], [2], [0, 0, 0, 1, 1, 2], [0], [0]>} : vector<4x8x8xf32>, vector<4x8x8xf32>, vector<4x8x8xf32> -> vector<4x8x8xf32>
    "tpu.trace_stop"() : () -> ()
    %153 = vector.shape_cast %152 : vector<4x8x8xf32> to vector<2x16x8xf32>
    %c0_86 = arith.constant 0 : index
    %c0_87 = arith.constant 0 : index
    %c0_88 = arith.constant 0 : index
    %154 = vector.load %arg28[%c0_86, %c0_87, %c0_88] : memref<2x8x128xf32, #tpu.memory_space<vmem>>, vector<2x8x128xf32>
    "tpu.trace_start"() <{level = 10 : i32, message = "hmd,hdk->hmk"}> : () -> ()
    %cst_89 = arith.constant dense<0.000000e+00> : vector<2x16x128xf32>
    %155 = tpu.matmul %153, %154, %cst_89 {dimension_numbers = #tpu.dot_dimension_numbers<[2], [1], [1], [2], [0, 0, 0, 1, 1, 2], [0], [0]>} : vector<2x16x8xf32>, vector<2x8x128xf32>, vector<2x16x128xf32> -> vector<2x16x128xf32>
    "tpu.trace_stop"() : () -> ()
    %cst_90 = arith.constant dense<0.000000e+00> : vector<16x128xf32>
    %156 = vector.multi_reduction <add>, %155, %cst_90 [0] : vector<2x16x128xf32> to vector<16x128xf32>
    %c0_91 = arith.constant 0 : index
    %c0_92 = arith.constant 0 : index
    %157 = vector.load %arg29[%c0_91, %c0_92] : memref<1x128xf32, #tpu.memory_space<vmem>>, vector<1x128xf32>
    %158 = vector.broadcast %157 : vector<1x128xf32> to vector<16x128xf32>
    %159 = arith.addf %156, %158 : vector<16x128xf32>
    %160 = arith.addf %159, %4 : vector<16x128xf32>
    %cst_93 = arith.constant dense<0.000000e+00> : vector<16xf32>
    %161 = vector.multi_reduction <add>, %82, %cst_93 [1] : vector<16x128xf32> to vector<16xf32>
    %162 = vector.shape_cast %161 : vector<16xf32> to vector<16x1xf32>
    %cst_94 = arith.constant 3.125000e-02 : f32
    %163 = vector.broadcast %cst_94 : f32 to vector<16x1xf32>
    %164 = arith.mulf %162, %163 : vector<16x1xf32>
    %165 = vector.broadcast %164 : vector<16x1xf32> to vector<16x128xf32>
    %166 = arith.subf %82, %165 : vector<16x128xf32>
    %cst_95 = arith.constant 0.000000e+00 : f32
    %167 = vector.shape_cast %2 : vector<1x128xi1> to vector<1x128xi1>
    %168 = vector.broadcast %167 : vector<1x128xi1> to vector<16x128xi1>
    %169 = vector.broadcast %cst_95 : f32 to vector<16x128xf32>
    %170 = arith.select %168, %166, %169 : vector<16x128xi1>, vector<16x128xf32>
    %171 = arith.mulf %170, %170 : vector<16x128xf32>
    %cst_96 = arith.constant dense<0.000000e+00> : vector<16xf32>
    %172 = vector.multi_reduction <add>, %171, %cst_96 [1] : vector<16x128xf32> to vector<16xf32>
    %173 = vector.shape_cast %172 : vector<16xf32> to vector<16x1xf32>
    %cst_97 = arith.constant 3.125000e-02 : f32
    %174 = vector.broadcast %cst_97 : f32 to vector<16x1xf32>
    %175 = arith.mulf %173, %174 : vector<16x1xf32>
    %cst_98 = arith.constant 9.99999974E-6 : f32
    %176 = vector.broadcast %cst_98 : f32 to vector<16x1xf32>
    %177 = arith.addf %175, %176 : vector<16x1xf32>
    %178 = math.rsqrt %177 : vector<16x1xf32>
    %179 = vector.broadcast %178 : vector<16x1xf32> to vector<16x128xf32>
    %180 = arith.mulf %170, %179 : vector<16x128xf32>
    %c0_99 = arith.constant 0 : index
    %c0_100 = arith.constant 0 : index
    %181 = vector.load %arg10[%c0_99, %c0_100] : memref<1x128xf32, #tpu.memory_space<vmem>>, vector<1x128xf32>
    %182 = vector.broadcast %181 : vector<1x128xf32> to vector<16x128xf32>
    %183 = arith.mulf %180, %182 : vector<16x128xf32>
    %c0_101 = arith.constant 0 : index
    %c0_102 = arith.constant 0 : index
    %184 = vector.load %arg11[%c0_101, %c0_102] : memref<1x128xf32, #tpu.memory_space<vmem>>, vector<1x128xf32>
    %185 = vector.broadcast %184 : vector<1x128xf32> to vector<16x128xf32>
    %186 = arith.addf %183, %185 : vector<16x128xf32>
    %cst_103 = arith.constant dense<0.000000e+00> : vector<16xf32>
    %187 = vector.multi_reduction <add>, %160, %cst_103 [1] : vector<16x128xf32> to vector<16xf32>
    %188 = vector.shape_cast %187 : vector<16xf32> to vector<16x1xf32>
    %cst_104 = arith.constant 3.125000e-02 : f32
    %189 = vector.broadcast %cst_104 : f32 to vector<16x1xf32>
    %190 = arith.mulf %188, %189 : vector<16x1xf32>
    %191 = vector.broadcast %190 : vector<16x1xf32> to vector<16x128xf32>
    %192 = arith.subf %160, %191 : vector<16x128xf32>
    %cst_105 = arith.constant 0.000000e+00 : f32
    %193 = vector.shape_cast %2 : vector<1x128xi1> to vector<1x128xi1>
    %194 = vector.broadcast %193 : vector<1x128xi1> to vector<16x128xi1>
    %195 = vector.broadcast %cst_105 : f32 to vector<16x128xf32>
    %196 = arith.select %194, %192, %195 : vector<16x128xi1>, vector<16x128xf32>
    %197 = arith.mulf %196, %196 : vector<16x128xf32>
    %cst_106 = arith.constant dense<0.000000e+00> : vector<16xf32>
    %198 = vector.multi_reduction <add>, %197, %cst_106 [1] : vector<16x128xf32> to vector<16xf32>
    %199 = vector.shape_cast %198 : vector<16xf32> to vector<16x1xf32>
    %cst_107 = arith.constant 3.125000e-02 : f32
    %200 = vector.broadcast %cst_107 : f32 to vector<16x1xf32>
    %201 = arith.mulf %199, %200 : vector<16x1xf32>
    %cst_108 = arith.constant 9.99999974E-6 : f32
    %202 = vector.broadcast %cst_108 : f32 to vector<16x1xf32>
    %203 = arith.addf %201, %202 : vector<16x1xf32>
    %204 = math.rsqrt %203 : vector<16x1xf32>
    %205 = vector.broadcast %204 : vector<16x1xf32> to vector<16x128xf32>
    %206 = arith.mulf %196, %205 : vector<16x128xf32>
    %c0_109 = arith.constant 0 : index
    %c0_110 = arith.constant 0 : index
    %207 = vector.load %arg10[%c0_109, %c0_110] : memref<1x128xf32, #tpu.memory_space<vmem>>, vector<1x128xf32>
    %208 = vector.broadcast %207 : vector<1x128xf32> to vector<16x128xf32>
    %209 = arith.mulf %206, %208 : vector<16x128xf32>
    %c0_111 = arith.constant 0 : index
    %c0_112 = arith.constant 0 : index
    %210 = vector.load %arg11[%c0_111, %c0_112] : memref<1x128xf32, #tpu.memory_space<vmem>>, vector<1x128xf32>
    %211 = vector.broadcast %210 : vector<1x128xf32> to vector<16x128xf32>
    %212 = arith.addf %209, %211 : vector<16x128xf32>
    %c0_113 = arith.constant 0 : index
    %c0_114 = arith.constant 0 : index
    %c0_115 = arith.constant 0 : index
    %213 = vector.load %arg12[%c0_113, %c0_114, %c0_115] : memref<2x128x8xf32, #tpu.memory_space<vmem>>, vector<1x128x8xf32>
    %214 = vector.shape_cast %213 : vector<1x128x8xf32> to vector<128x8xf32>
    %cst_116 = arith.constant dense<0.000000e+00> : vector<16x8xf32>
    %215 = tpu.matmul %186, %214, %cst_116 {dimension_numbers = #tpu.dot_dimension_numbers<[1], [0], [0], [1], [0, 0, 1, 1], [], []>} : vector<16x128xf32>, vector<128x8xf32>, vector<16x8xf32> -> vector<16x8xf32>
    %c1_117 = arith.constant 1 : index
    %c0_118 = arith.constant 0 : index
    %c0_119 = arith.constant 0 : index
    %216 = vector.load %arg12[%c1_117, %c0_118, %c0_119] : memref<2x128x8xf32, #tpu.memory_space<vmem>>, vector<1x128x8xf32>
    %217 = vector.shape_cast %216 : vector<1x128x8xf32> to vector<128x8xf32>
    %cst_120 = arith.constant dense<0.000000e+00> : vector<16x8xf32>
    %218 = tpu.matmul %186, %217, %cst_120 {dimension_numbers = #tpu.dot_dimension_numbers<[1], [0], [0], [1], [0, 0, 1, 1], [], []>} : vector<16x128xf32>, vector<128x8xf32>, vector<16x8xf32> -> vector<16x8xf32>
    %219 = vector.shape_cast %215 : vector<16x8xf32> to vector<1x16x8xf32>
    %220 = vector.shape_cast %218 : vector<16x8xf32> to vector<1x16x8xf32>
    %221 = tpu.concatenate %219, %220 in 0 : vector<1x16x8xf32>, vector<1x16x8xf32> -> vector<2x16x8xf32>
    %222 = vector.shape_cast %221 : vector<2x16x8xf32> to vector<4x8x8xf32>
    %c0_121 = arith.constant 0 : index
    %c0_122 = arith.constant 0 : index
    %c0_123 = arith.constant 0 : index
    %223 = vector.load %arg13[%c0_121, %c0_122, %c0_123] : memref<2x128x8xf32, #tpu.memory_space<vmem>>, vector<1x128x8xf32>
    %224 = vector.shape_cast %223 : vector<1x128x8xf32> to vector<128x8xf32>
    %cst_124 = arith.constant dense<0.000000e+00> : vector<16x8xf32>
    %225 = tpu.matmul %212, %224, %cst_124 {dimension_numbers = #tpu.dot_dimension_numbers<[1], [0], [0], [1], [0, 0, 1, 1], [], []>} : vector<16x128xf32>, vector<128x8xf32>, vector<16x8xf32> -> vector<16x8xf32>
    %c1_125 = arith.constant 1 : index
    %c0_126 = arith.constant 0 : index
    %c0_127 = arith.constant 0 : index
    %226 = vector.load %arg13[%c1_125, %c0_126, %c0_127] : memref<2x128x8xf32, #tpu.memory_space<vmem>>, vector<1x128x8xf32>
    %227 = vector.shape_cast %226 : vector<1x128x8xf32> to vector<128x8xf32>
    %cst_128 = arith.constant dense<0.000000e+00> : vector<16x8xf32>
    %228 = tpu.matmul %212, %227, %cst_128 {dimension_numbers = #tpu.dot_dimension_numbers<[1], [0], [0], [1], [0, 0, 1, 1], [], []>} : vector<16x128xf32>, vector<128x8xf32>, vector<16x8xf32> -> vector<16x8xf32>
    %229 = vector.shape_cast %225 : vector<16x8xf32> to vector<1x16x8xf32>
    %230 = vector.shape_cast %228 : vector<16x8xf32> to vector<1x16x8xf32>
    %231 = tpu.concatenate %229, %230 in 0 : vector<1x16x8xf32>, vector<1x16x8xf32> -> vector<2x16x8xf32>
    %232 = vector.shape_cast %231 : vector<2x16x8xf32> to vector<4x8x8xf32>
    %c0_129 = arith.constant 0 : index
    %c0_130 = arith.constant 0 : index
    %c0_131 = arith.constant 0 : index
    %233 = vector.load %arg14[%c0_129, %c0_130, %c0_131] : memref<2x128x8xf32, #tpu.memory_space<vmem>>, vector<1x128x8xf32>
    %234 = vector.shape_cast %233 : vector<1x128x8xf32> to vector<128x8xf32>
    %cst_132 = arith.constant dense<0.000000e+00> : vector<16x8xf32>
    %235 = tpu.matmul %212, %234, %cst_132 {dimension_numbers = #tpu.dot_dimension_numbers<[1], [0], [0], [1], [0, 0, 1, 1], [], []>} : vector<16x128xf32>, vector<128x8xf32>, vector<16x8xf32> -> vector<16x8xf32>
    %c1_133 = arith.constant 1 : index
    %c0_134 = arith.constant 0 : index
    %c0_135 = arith.constant 0 : index
    %236 = vector.load %arg14[%c1_133, %c0_134, %c0_135] : memref<2x128x8xf32, #tpu.memory_space<vmem>>, vector<1x128x8xf32>
    %237 = vector.shape_cast %236 : vector<1x128x8xf32> to vector<128x8xf32>
    %cst_136 = arith.constant dense<0.000000e+00> : vector<16x8xf32>
    %238 = tpu.matmul %212, %237, %cst_136 {dimension_numbers = #tpu.dot_dimension_numbers<[1], [0], [0], [1], [0, 0, 1, 1], [], []>} : vector<16x128xf32>, vector<128x8xf32>, vector<16x8xf32> -> vector<16x8xf32>
    %239 = vector.shape_cast %235 : vector<16x8xf32> to vector<1x16x8xf32>
    %240 = vector.shape_cast %238 : vector<16x8xf32> to vector<1x16x8xf32>
    %241 = tpu.concatenate %239, %240 in 0 : vector<1x16x8xf32>, vector<1x16x8xf32> -> vector<2x16x8xf32>
    %242 = vector.shape_cast %241 : vector<2x16x8xf32> to vector<4x8x8xf32>
    "tpu.trace_start"() <{level = 10 : i32, message = "gnd,gmd->gnm"}> : () -> ()
    %cst_137 = arith.constant dense<0.000000e+00> : vector<4x8x8xf32>
    %243 = tpu.matmul %222, %232, %cst_137 {dimension_numbers = #tpu.dot_dimension_numbers<[2], [2], [1], [1], [0, 0, 0, 1, 1, 1], [0], [0]>} : vector<4x8x8xf32>, vector<4x8x8xf32>, vector<4x8x8xf32> -> vector<4x8x8xf32>
    "tpu.trace_stop"() : () -> ()
    %cst_138 = arith.constant 0.176776692 : f32
    %244 = vector.broadcast %cst_138 : f32 to vector<4x8x8xf32>
    %245 = arith.mulf %243, %244 : vector<4x8x8xf32>
    %cst_139 = arith.constant dense<0xFF800000> : vector<4x8xf32>
    %246 = vector.multi_reduction <maximumf>, %245, %cst_139 [2] : vector<4x8x8xf32> to vector<4x8xf32>
    %247 = vector.shape_cast %246 : vector<4x8xf32> to vector<4x8x1xf32>
    %248 = vector.broadcast %247 : vector<4x8x1xf32> to vector<4x8x8xf32>
    %249 = arith.subf %245, %248 : vector<4x8x8xf32>
    %250 = math.exp %249 : vector<4x8x8xf32>
    %cst_140 = arith.constant dense<0.000000e+00> : vector<4x8xf32>
    %251 = vector.multi_reduction <add>, %250, %cst_140 [2] : vector<4x8x8xf32> to vector<4x8xf32>
    %252 = vector.shape_cast %251 : vector<4x8xf32> to vector<4x8x1xf32>
    %253 = tpu.reciprocal %252 : vector<4x8x1xf32> -> vector<4x8x1xf32>
    %254 = vector.broadcast %253 : vector<4x8x1xf32> to vector<4x8x8xf32>
    %255 = arith.mulf %250, %254 : vector<4x8x8xf32>
    "tpu.trace_start"() <{level = 10 : i32, message = "gnm,gmd->gnd"}> : () -> ()
    %cst_141 = arith.constant dense<0.000000e+00> : vector<4x8x8xf32>
    %256 = tpu.matmul %255, %242, %cst_141 {dimension_numbers = #tpu.dot_dimension_numbers<[2], [1], [1], [2], [0, 0, 0, 1, 1, 2], [0], [0]>} : vector<4x8x8xf32>, vector<4x8x8xf32>, vector<4x8x8xf32> -> vector<4x8x8xf32>
    "tpu.trace_stop"() : () -> ()
    %257 = vector.shape_cast %256 : vector<4x8x8xf32> to vector<2x16x8xf32>
    %c0_142 = arith.constant 0 : index
    %c0_143 = arith.constant 0 : index
    %c0_144 = arith.constant 0 : index
    %258 = vector.load %arg15[%c0_142, %c0_143, %c0_144] : memref<2x8x128xf32, #tpu.memory_space<vmem>>, vector<2x8x128xf32>
    "tpu.trace_start"() <{level = 10 : i32, message = "hmd,hdk->hmk"}> : () -> ()
    %cst_145 = arith.constant dense<0.000000e+00> : vector<2x16x128xf32>
    %259 = tpu.matmul %257, %258, %cst_145 {dimension_numbers = #tpu.dot_dimension_numbers<[2], [1], [1], [2], [0, 0, 0, 1, 1, 2], [0], [0]>} : vector<2x16x8xf32>, vector<2x8x128xf32>, vector<2x16x128xf32> -> vector<2x16x128xf32>
    "tpu.trace_stop"() : () -> ()
    %cst_146 = arith.constant dense<0.000000e+00> : vector<16x128xf32>
    %260 = vector.multi_reduction <add>, %259, %cst_146 [0] : vector<2x16x128xf32> to vector<16x128xf32>
    %c0_147 = arith.constant 0 : index
    %c0_148 = arith.constant 0 : index
    %261 = vector.load %arg16[%c0_147, %c0_148] : memref<1x128xf32, #tpu.memory_space<vmem>>, vector<1x128xf32>
    %262 = vector.broadcast %261 : vector<1x128xf32> to vector<16x128xf32>
    %263 = arith.addf %260, %262 : vector<16x128xf32>
    %264 = arith.addf %263, %82 : vector<16x128xf32>
    %cst_149 = arith.constant dense<0.000000e+00> : vector<16xf32>
    %265 = vector.multi_reduction <add>, %160, %cst_149 [1] : vector<16x128xf32> to vector<16xf32>
    %266 = vector.shape_cast %265 : vector<16xf32> to vector<16x1xf32>
    %cst_150 = arith.constant 3.125000e-02 : f32
    %267 = vector.broadcast %cst_150 : f32 to vector<16x1xf32>
    %268 = arith.mulf %266, %267 : vector<16x1xf32>
    %269 = vector.broadcast %268 : vector<16x1xf32> to vector<16x128xf32>
    %270 = arith.subf %160, %269 : vector<16x128xf32>
    %cst_151 = arith.constant 0.000000e+00 : f32
    %271 = vector.shape_cast %2 : vector<1x128xi1> to vector<1x128xi1>
    %272 = vector.broadcast %271 : vector<1x128xi1> to vector<16x128xi1>
    %273 = vector.broadcast %cst_151 : f32 to vector<16x128xf32>
    %274 = arith.select %272, %270, %273 : vector<16x128xi1>, vector<16x128xf32>
    %275 = arith.mulf %274, %274 : vector<16x128xf32>
    %cst_152 = arith.constant dense<0.000000e+00> : vector<16xf32>
    %276 = vector.multi_reduction <add>, %275, %cst_152 [1] : vector<16x128xf32> to vector<16xf32>
    %277 = vector.shape_cast %276 : vector<16xf32> to vector<16x1xf32>
    %cst_153 = arith.constant 3.125000e-02 : f32
    %278 = vector.broadcast %cst_153 : f32 to vector<16x1xf32>
    %279 = arith.mulf %277, %278 : vector<16x1xf32>
    %cst_154 = arith.constant 9.99999974E-6 : f32
    %280 = vector.broadcast %cst_154 : f32 to vector<16x1xf32>
    %281 = arith.addf %279, %280 : vector<16x1xf32>
    %282 = math.rsqrt %281 : vector<16x1xf32>
    %283 = vector.broadcast %282 : vector<16x1xf32> to vector<16x128xf32>
    %284 = arith.mulf %274, %283 : vector<16x128xf32>
    %c0_155 = arith.constant 0 : index
    %c0_156 = arith.constant 0 : index
    %285 = vector.load %arg30[%c0_155, %c0_156] : memref<1x128xf32, #tpu.memory_space<vmem>>, vector<1x128xf32>
    %286 = vector.broadcast %285 : vector<1x128xf32> to vector<16x128xf32>
    %287 = arith.mulf %284, %286 : vector<16x128xf32>
    %c0_157 = arith.constant 0 : index
    %c0_158 = arith.constant 0 : index
    %288 = vector.load %arg31[%c0_157, %c0_158] : memref<1x128xf32, #tpu.memory_space<vmem>>, vector<1x128xf32>
    %289 = vector.broadcast %288 : vector<1x128xf32> to vector<16x128xf32>
    %290 = arith.addf %287, %289 : vector<16x128xf32>
    %cst_159 = arith.constant dense<0.000000e+00> : vector<16xf32>
    %291 = vector.multi_reduction <add>, %82, %cst_159 [1] : vector<16x128xf32> to vector<16xf32>
    %292 = vector.shape_cast %291 : vector<16xf32> to vector<16x1xf32>
    %cst_160 = arith.constant 3.125000e-02 : f32
    %293 = vector.broadcast %cst_160 : f32 to vector<16x1xf32>
    %294 = arith.mulf %292, %293 : vector<16x1xf32>
    %295 = vector.broadcast %294 : vector<16x1xf32> to vector<16x128xf32>
    %296 = arith.subf %82, %295 : vector<16x128xf32>
    %cst_161 = arith.constant 0.000000e+00 : f32
    %297 = vector.shape_cast %2 : vector<1x128xi1> to vector<1x128xi1>
    %298 = vector.broadcast %297 : vector<1x128xi1> to vector<16x128xi1>
    %299 = vector.broadcast %cst_161 : f32 to vector<16x128xf32>
    %300 = arith.select %298, %296, %299 : vector<16x128xi1>, vector<16x128xf32>
    %301 = arith.mulf %300, %300 : vector<16x128xf32>
    %cst_162 = arith.constant dense<0.000000e+00> : vector<16xf32>
    %302 = vector.multi_reduction <add>, %301, %cst_162 [1] : vector<16x128xf32> to vector<16xf32>
    %303 = vector.shape_cast %302 : vector<16xf32> to vector<16x1xf32>
    %cst_163 = arith.constant 3.125000e-02 : f32
    %304 = vector.broadcast %cst_163 : f32 to vector<16x1xf32>
    %305 = arith.mulf %303, %304 : vector<16x1xf32>
    %cst_164 = arith.constant 9.99999974E-6 : f32
    %306 = vector.broadcast %cst_164 : f32 to vector<16x1xf32>
    %307 = arith.addf %305, %306 : vector<16x1xf32>
    %308 = math.rsqrt %307 : vector<16x1xf32>
    %309 = vector.broadcast %308 : vector<16x1xf32> to vector<16x128xf32>
    %310 = arith.mulf %300, %309 : vector<16x128xf32>
    %c0_165 = arith.constant 0 : index
    %c0_166 = arith.constant 0 : index
    %311 = vector.load %arg30[%c0_165, %c0_166] : memref<1x128xf32, #tpu.memory_space<vmem>>, vector<1x128xf32>
    %312 = vector.broadcast %311 : vector<1x128xf32> to vector<16x128xf32>
    %313 = arith.mulf %310, %312 : vector<16x128xf32>
    %c0_167 = arith.constant 0 : index
    %c0_168 = arith.constant 0 : index
    %314 = vector.load %arg31[%c0_167, %c0_168] : memref<1x128xf32, #tpu.memory_space<vmem>>, vector<1x128xf32>
    %315 = vector.broadcast %314 : vector<1x128xf32> to vector<16x128xf32>
    %316 = arith.addf %313, %315 : vector<16x128xf32>
    %c0_169 = arith.constant 0 : index
    %c0_170 = arith.constant 0 : index
    %c0_171 = arith.constant 0 : index
    %317 = vector.load %arg32[%c0_169, %c0_170, %c0_171] : memref<2x128x8xf32, #tpu.memory_space<vmem>>, vector<1x128x8xf32>
    %318 = vector.shape_cast %317 : vector<1x128x8xf32> to vector<128x8xf32>
    %cst_172 = arith.constant dense<0.000000e+00> : vector<16x8xf32>
    %319 = tpu.matmul %290, %318, %cst_172 {dimension_numbers = #tpu.dot_dimension_numbers<[1], [0], [0], [1], [0, 0, 1, 1], [], []>} : vector<16x128xf32>, vector<128x8xf32>, vector<16x8xf32> -> vector<16x8xf32>
    %c1_173 = arith.constant 1 : index
    %c0_174 = arith.constant 0 : index
    %c0_175 = arith.constant 0 : index
    %320 = vector.load %arg32[%c1_173, %c0_174, %c0_175] : memref<2x128x8xf32, #tpu.memory_space<vmem>>, vector<1x128x8xf32>
    %321 = vector.shape_cast %320 : vector<1x128x8xf32> to vector<128x8xf32>
    %cst_176 = arith.constant dense<0.000000e+00> : vector<16x8xf32>
    %322 = tpu.matmul %290, %321, %cst_176 {dimension_numbers = #tpu.dot_dimension_numbers<[1], [0], [0], [1], [0, 0, 1, 1], [], []>} : vector<16x128xf32>, vector<128x8xf32>, vector<16x8xf32> -> vector<16x8xf32>
    %323 = vector.shape_cast %319 : vector<16x8xf32> to vector<1x16x8xf32>
    %324 = vector.shape_cast %322 : vector<16x8xf32> to vector<1x16x8xf32>
    %325 = tpu.concatenate %323, %324 in 0 : vector<1x16x8xf32>, vector<1x16x8xf32> -> vector<2x16x8xf32>
    %326 = vector.shape_cast %325 : vector<2x16x8xf32> to vector<4x8x8xf32>
    %c0_177 = arith.constant 0 : index
    %c0_178 = arith.constant 0 : index
    %c0_179 = arith.constant 0 : index
    %327 = vector.load %arg33[%c0_177, %c0_178, %c0_179] : memref<2x128x8xf32, #tpu.memory_space<vmem>>, vector<1x128x8xf32>
    %328 = vector.shape_cast %327 : vector<1x128x8xf32> to vector<128x8xf32>
    %cst_180 = arith.constant dense<0.000000e+00> : vector<16x8xf32>
    %329 = tpu.matmul %316, %328, %cst_180 {dimension_numbers = #tpu.dot_dimension_numbers<[1], [0], [0], [1], [0, 0, 1, 1], [], []>} : vector<16x128xf32>, vector<128x8xf32>, vector<16x8xf32> -> vector<16x8xf32>
    %c1_181 = arith.constant 1 : index
    %c0_182 = arith.constant 0 : index
    %c0_183 = arith.constant 0 : index
    %330 = vector.load %arg33[%c1_181, %c0_182, %c0_183] : memref<2x128x8xf32, #tpu.memory_space<vmem>>, vector<1x128x8xf32>
    %331 = vector.shape_cast %330 : vector<1x128x8xf32> to vector<128x8xf32>
    %cst_184 = arith.constant dense<0.000000e+00> : vector<16x8xf32>
    %332 = tpu.matmul %316, %331, %cst_184 {dimension_numbers = #tpu.dot_dimension_numbers<[1], [0], [0], [1], [0, 0, 1, 1], [], []>} : vector<16x128xf32>, vector<128x8xf32>, vector<16x8xf32> -> vector<16x8xf32>
    %333 = vector.shape_cast %329 : vector<16x8xf32> to vector<1x16x8xf32>
    %334 = vector.shape_cast %332 : vector<16x8xf32> to vector<1x16x8xf32>
    %335 = tpu.concatenate %333, %334 in 0 : vector<1x16x8xf32>, vector<1x16x8xf32> -> vector<2x16x8xf32>
    %336 = vector.shape_cast %335 : vector<2x16x8xf32> to vector<4x8x8xf32>
    %c0_185 = arith.constant 0 : index
    %c0_186 = arith.constant 0 : index
    %c0_187 = arith.constant 0 : index
    %337 = vector.load %arg34[%c0_185, %c0_186, %c0_187] : memref<2x128x8xf32, #tpu.memory_space<vmem>>, vector<1x128x8xf32>
    %338 = vector.shape_cast %337 : vector<1x128x8xf32> to vector<128x8xf32>
    %cst_188 = arith.constant dense<0.000000e+00> : vector<16x8xf32>
    %339 = tpu.matmul %316, %338, %cst_188 {dimension_numbers = #tpu.dot_dimension_numbers<[1], [0], [0], [1], [0, 0, 1, 1], [], []>} : vector<16x128xf32>, vector<128x8xf32>, vector<16x8xf32> -> vector<16x8xf32>
    %c1_189 = arith.constant 1 : index
    %c0_190 = arith.constant 0 : index
    %c0_191 = arith.constant 0 : index
    %340 = vector.load %arg34[%c1_189, %c0_190, %c0_191] : memref<2x128x8xf32, #tpu.memory_space<vmem>>, vector<1x128x8xf32>
    %341 = vector.shape_cast %340 : vector<1x128x8xf32> to vector<128x8xf32>
    %cst_192 = arith.constant dense<0.000000e+00> : vector<16x8xf32>
    %342 = tpu.matmul %316, %341, %cst_192 {dimension_numbers = #tpu.dot_dimension_numbers<[1], [0], [0], [1], [0, 0, 1, 1], [], []>} : vector<16x128xf32>, vector<128x8xf32>, vector<16x8xf32> -> vector<16x8xf32>
    %343 = vector.shape_cast %339 : vector<16x8xf32> to vector<1x16x8xf32>
    %344 = vector.shape_cast %342 : vector<16x8xf32> to vector<1x16x8xf32>
    %345 = tpu.concatenate %343, %344 in 0 : vector<1x16x8xf32>, vector<1x16x8xf32> -> vector<2x16x8xf32>
    %346 = vector.shape_cast %345 : vector<2x16x8xf32> to vector<4x8x8xf32>
    "tpu.trace_start"() <{level = 10 : i32, message = "gnd,gmd->gnm"}> : () -> ()
    %cst_193 = arith.constant dense<0.000000e+00> : vector<4x8x8xf32>
    %347 = tpu.matmul %326, %336, %cst_193 {dimension_numbers = #tpu.dot_dimension_numbers<[2], [2], [1], [1], [0, 0, 0, 1, 1, 1], [0], [0]>} : vector<4x8x8xf32>, vector<4x8x8xf32>, vector<4x8x8xf32> -> vector<4x8x8xf32>
    "tpu.trace_stop"() : () -> ()
    %cst_194 = arith.constant 0.176776692 : f32
    %348 = vector.broadcast %cst_194 : f32 to vector<4x8x8xf32>
    %349 = arith.mulf %347, %348 : vector<4x8x8xf32>
    %cst_195 = arith.constant dense<0xFF800000> : vector<4x8xf32>
    %350 = vector.multi_reduction <maximumf>, %349, %cst_195 [2] : vector<4x8x8xf32> to vector<4x8xf32>
    %351 = vector.shape_cast %350 : vector<4x8xf32> to vector<4x8x1xf32>
    %352 = vector.broadcast %351 : vector<4x8x1xf32> to vector<4x8x8xf32>
    %353 = arith.subf %349, %352 : vector<4x8x8xf32>
    %354 = math.exp %353 : vector<4x8x8xf32>
    %cst_196 = arith.constant dense<0.000000e+00> : vector<4x8xf32>
    %355 = vector.multi_reduction <add>, %354, %cst_196 [2] : vector<4x8x8xf32> to vector<4x8xf32>
    %356 = vector.shape_cast %355 : vector<4x8xf32> to vector<4x8x1xf32>
    %357 = tpu.reciprocal %356 : vector<4x8x1xf32> -> vector<4x8x1xf32>
    %358 = vector.broadcast %357 : vector<4x8x1xf32> to vector<4x8x8xf32>
    %359 = arith.mulf %354, %358 : vector<4x8x8xf32>
    "tpu.trace_start"() <{level = 10 : i32, message = "gnm,gmd->gnd"}> : () -> ()
    %cst_197 = arith.constant dense<0.000000e+00> : vector<4x8x8xf32>
    %360 = tpu.matmul %359, %346, %cst_197 {dimension_numbers = #tpu.dot_dimension_numbers<[2], [1], [1], [2], [0, 0, 0, 1, 1, 2], [0], [0]>} : vector<4x8x8xf32>, vector<4x8x8xf32>, vector<4x8x8xf32> -> vector<4x8x8xf32>
    "tpu.trace_stop"() : () -> ()
    %361 = vector.shape_cast %360 : vector<4x8x8xf32> to vector<2x16x8xf32>
    %c0_198 = arith.constant 0 : index
    %c0_199 = arith.constant 0 : index
    %c0_200 = arith.constant 0 : index
    %362 = vector.load %arg35[%c0_198, %c0_199, %c0_200] : memref<2x8x128xf32, #tpu.memory_space<vmem>>, vector<2x8x128xf32>
    "tpu.trace_start"() <{level = 10 : i32, message = "hmd,hdk->hmk"}> : () -> ()
    %cst_201 = arith.constant dense<0.000000e+00> : vector<2x16x128xf32>
    %363 = tpu.matmul %361, %362, %cst_201 {dimension_numbers = #tpu.dot_dimension_numbers<[2], [1], [1], [2], [0, 0, 0, 1, 1, 2], [0], [0]>} : vector<2x16x8xf32>, vector<2x8x128xf32>, vector<2x16x128xf32> -> vector<2x16x128xf32>
    "tpu.trace_stop"() : () -> ()
    %cst_202 = arith.constant dense<0.000000e+00> : vector<16x128xf32>
    %364 = vector.multi_reduction <add>, %363, %cst_202 [0] : vector<2x16x128xf32> to vector<16x128xf32>
    %c0_203 = arith.constant 0 : index
    %c0_204 = arith.constant 0 : index
    %365 = vector.load %arg36[%c0_203, %c0_204] : memref<1x128xf32, #tpu.memory_space<vmem>>, vector<1x128xf32>
    %366 = vector.broadcast %365 : vector<1x128xf32> to vector<16x128xf32>
    %367 = arith.addf %364, %366 : vector<16x128xf32>
    %368 = arith.addf %367, %160 : vector<16x128xf32>
    %cst_205 = arith.constant dense<0.000000e+00> : vector<16xf32>
    %369 = vector.multi_reduction <add>, %264, %cst_205 [1] : vector<16x128xf32> to vector<16xf32>
    %370 = vector.shape_cast %369 : vector<16xf32> to vector<16x1xf32>
    %cst_206 = arith.constant 3.125000e-02 : f32
    %371 = vector.broadcast %cst_206 : f32 to vector<16x1xf32>
    %372 = arith.mulf %370, %371 : vector<16x1xf32>
    %373 = vector.broadcast %372 : vector<16x1xf32> to vector<16x128xf32>
    %374 = arith.subf %264, %373 : vector<16x128xf32>
    %cst_207 = arith.constant 0.000000e+00 : f32
    %375 = vector.shape_cast %2 : vector<1x128xi1> to vector<1x128xi1>
    %376 = vector.broadcast %375 : vector<1x128xi1> to vector<16x128xi1>
    %377 = vector.broadcast %cst_207 : f32 to vector<16x128xf32>
    %378 = arith.select %376, %374, %377 : vector<16x128xi1>, vector<16x128xf32>
    %379 = arith.mulf %378, %378 : vector<16x128xf32>
    %cst_208 = arith.constant dense<0.000000e+00> : vector<16xf32>
    %380 = vector.multi_reduction <add>, %379, %cst_208 [1] : vector<16x128xf32> to vector<16xf32>
    %381 = vector.shape_cast %380 : vector<16xf32> to vector<16x1xf32>
    %cst_209 = arith.constant 3.125000e-02 : f32
    %382 = vector.broadcast %cst_209 : f32 to vector<16x1xf32>
    %383 = arith.mulf %381, %382 : vector<16x1xf32>
    %cst_210 = arith.constant 9.99999974E-6 : f32
    %384 = vector.broadcast %cst_210 : f32 to vector<16x1xf32>
    %385 = arith.addf %383, %384 : vector<16x1xf32>
    %386 = math.rsqrt %385 : vector<16x1xf32>
    %387 = vector.broadcast %386 : vector<16x1xf32> to vector<16x128xf32>
    %388 = arith.mulf %378, %387 : vector<16x128xf32>
    %c0_211 = arith.constant 0 : index
    %c0_212 = arith.constant 0 : index
    %389 = vector.load %arg17[%c0_211, %c0_212] : memref<1x128xf32, #tpu.memory_space<vmem>>, vector<1x128xf32>
    %390 = vector.broadcast %389 : vector<1x128xf32> to vector<16x128xf32>
    %391 = arith.mulf %388, %390 : vector<16x128xf32>
    %c0_213 = arith.constant 0 : index
    %c0_214 = arith.constant 0 : index
    %392 = vector.load %arg18[%c0_213, %c0_214] : memref<1x128xf32, #tpu.memory_space<vmem>>, vector<1x128xf32>
    %393 = vector.broadcast %392 : vector<1x128xf32> to vector<16x128xf32>
    %394 = arith.addf %391, %393 : vector<16x128xf32>
    %c0_215 = arith.constant 0 : index
    %c0_216 = arith.constant 0 : index
    %395 = vector.load %arg19[%c0_215, %c0_216] : memref<128x128xf32, #tpu.memory_space<vmem>>, vector<128x128xf32>
    %cst_217 = arith.constant dense<0.000000e+00> : vector<16x128xf32>
    %396 = tpu.matmul %394, %395, %cst_217 {dimension_numbers = #tpu.dot_dimension_numbers<[1], [0], [0], [1], [0, 0, 1, 1], [], []>} : vector<16x128xf32>, vector<128x128xf32>, vector<16x128xf32> -> vector<16x128xf32>
    %c0_218 = arith.constant 0 : index
    %c0_219 = arith.constant 0 : index
    %397 = vector.load %arg20[%c0_218, %c0_219] : memref<1x128xf32, #tpu.memory_space<vmem>>, vector<1x128xf32>
    %398 = vector.broadcast %397 : vector<1x128xf32> to vector<16x128xf32>
    %399 = arith.addf %396, %398 : vector<16x128xf32>
    %cst_220 = arith.constant 5.000000e-01 : f32
    %400 = vector.broadcast %cst_220 : f32 to vector<16x128xf32>
    %401 = arith.mulf %400, %399 : vector<16x128xf32>
    %cst_221 = arith.constant 0.707106769 : f32
    %402 = vector.broadcast %cst_221 : f32 to vector<16x128xf32>
    %403 = arith.mulf %399, %402 : vector<16x128xf32>
    %404 = math.erf %403 : vector<16x128xf32>
    %cst_222 = arith.constant 1.000000e+00 : f32
    %405 = vector.broadcast %cst_222 : f32 to vector<16x128xf32>
    %406 = arith.addf %405, %404 : vector<16x128xf32>
    %407 = arith.mulf %401, %406 : vector<16x128xf32>
    %c0_223 = arith.constant 0 : index
    %c0_224 = arith.constant 0 : index
    %408 = vector.load %arg21[%c0_223, %c0_224] : memref<128x128xf32, #tpu.memory_space<vmem>>, vector<128x128xf32>
    %cst_225 = arith.constant dense<0.000000e+00> : vector<16x128xf32>
    %409 = tpu.matmul %407, %408, %cst_225 {dimension_numbers = #tpu.dot_dimension_numbers<[1], [0], [0], [1], [0, 0, 1, 1], [], []>} : vector<16x128xf32>, vector<128x128xf32>, vector<16x128xf32> -> vector<16x128xf32>
    %c0_226 = arith.constant 0 : index
    %c0_227 = arith.constant 0 : index
    %410 = vector.load %arg22[%c0_226, %c0_227] : memref<1x128xf32, #tpu.memory_space<vmem>>, vector<1x128xf32>
    %411 = vector.broadcast %410 : vector<1x128xf32> to vector<16x128xf32>
    %412 = arith.addf %409, %411 : vector<16x128xf32>
    %413 = arith.addf %412, %264 : vector<16x128xf32>
    %cst_228 = arith.constant dense<0.000000e+00> : vector<16xf32>
    %414 = vector.multi_reduction <add>, %368, %cst_228 [1] : vector<16x128xf32> to vector<16xf32>
    %415 = vector.shape_cast %414 : vector<16xf32> to vector<16x1xf32>
    %cst_229 = arith.constant 3.125000e-02 : f32
    %416 = vector.broadcast %cst_229 : f32 to vector<16x1xf32>
    %417 = arith.mulf %415, %416 : vector<16x1xf32>
    %418 = vector.broadcast %417 : vector<16x1xf32> to vector<16x128xf32>
    %419 = arith.subf %368, %418 : vector<16x128xf32>
    %cst_230 = arith.constant 0.000000e+00 : f32
    %420 = vector.shape_cast %2 : vector<1x128xi1> to vector<1x128xi1>
    %421 = vector.broadcast %420 : vector<1x128xi1> to vector<16x128xi1>
    %422 = vector.broadcast %cst_230 : f32 to vector<16x128xf32>
    %423 = arith.select %421, %419, %422 : vector<16x128xi1>, vector<16x128xf32>
    %424 = arith.mulf %423, %423 : vector<16x128xf32>
    %cst_231 = arith.constant dense<0.000000e+00> : vector<16xf32>
    %425 = vector.multi_reduction <add>, %424, %cst_231 [1] : vector<16x128xf32> to vector<16xf32>
    %426 = vector.shape_cast %425 : vector<16xf32> to vector<16x1xf32>
    %cst_232 = arith.constant 3.125000e-02 : f32
    %427 = vector.broadcast %cst_232 : f32 to vector<16x1xf32>
    %428 = arith.mulf %426, %427 : vector<16x1xf32>
    %cst_233 = arith.constant 9.99999974E-6 : f32
    %429 = vector.broadcast %cst_233 : f32 to vector<16x1xf32>
    %430 = arith.addf %428, %429 : vector<16x1xf32>
    %431 = math.rsqrt %430 : vector<16x1xf32>
    %432 = vector.broadcast %431 : vector<16x1xf32> to vector<16x128xf32>
    %433 = arith.mulf %423, %432 : vector<16x128xf32>
    %c0_234 = arith.constant 0 : index
    %c0_235 = arith.constant 0 : index
    %434 = vector.load %arg37[%c0_234, %c0_235] : memref<1x128xf32, #tpu.memory_space<vmem>>, vector<1x128xf32>
    %435 = vector.broadcast %434 : vector<1x128xf32> to vector<16x128xf32>
    %436 = arith.mulf %433, %435 : vector<16x128xf32>
    %c0_236 = arith.constant 0 : index
    %c0_237 = arith.constant 0 : index
    %437 = vector.load %arg38[%c0_236, %c0_237] : memref<1x128xf32, #tpu.memory_space<vmem>>, vector<1x128xf32>
    %438 = vector.broadcast %437 : vector<1x128xf32> to vector<16x128xf32>
    %439 = arith.addf %436, %438 : vector<16x128xf32>
    %c0_238 = arith.constant 0 : index
    %c0_239 = arith.constant 0 : index
    %440 = vector.load %arg39[%c0_238, %c0_239] : memref<128x128xf32, #tpu.memory_space<vmem>>, vector<128x128xf32>
    %cst_240 = arith.constant dense<0.000000e+00> : vector<16x128xf32>
    %441 = tpu.matmul %439, %440, %cst_240 {dimension_numbers = #tpu.dot_dimension_numbers<[1], [0], [0], [1], [0, 0, 1, 1], [], []>} : vector<16x128xf32>, vector<128x128xf32>, vector<16x128xf32> -> vector<16x128xf32>
    %c0_241 = arith.constant 0 : index
    %c0_242 = arith.constant 0 : index
    %442 = vector.load %arg40[%c0_241, %c0_242] : memref<1x128xf32, #tpu.memory_space<vmem>>, vector<1x128xf32>
    %443 = vector.broadcast %442 : vector<1x128xf32> to vector<16x128xf32>
    %444 = arith.addf %441, %443 : vector<16x128xf32>
    %cst_243 = arith.constant 5.000000e-01 : f32
    %445 = vector.broadcast %cst_243 : f32 to vector<16x128xf32>
    %446 = arith.mulf %445, %444 : vector<16x128xf32>
    %cst_244 = arith.constant 0.707106769 : f32
    %447 = vector.broadcast %cst_244 : f32 to vector<16x128xf32>
    %448 = arith.mulf %444, %447 : vector<16x128xf32>
    %449 = math.erf %448 : vector<16x128xf32>
    %cst_245 = arith.constant 1.000000e+00 : f32
    %450 = vector.broadcast %cst_245 : f32 to vector<16x128xf32>
    %451 = arith.addf %450, %449 : vector<16x128xf32>
    %452 = arith.mulf %446, %451 : vector<16x128xf32>
    %c0_246 = arith.constant 0 : index
    %c0_247 = arith.constant 0 : index
    %453 = vector.load %arg41[%c0_246, %c0_247] : memref<128x128xf32, #tpu.memory_space<vmem>>, vector<128x128xf32>
    %cst_248 = arith.constant dense<0.000000e+00> : vector<16x128xf32>
    %454 = tpu.matmul %452, %453, %cst_248 {dimension_numbers = #tpu.dot_dimension_numbers<[1], [0], [0], [1], [0, 0, 1, 1], [], []>} : vector<16x128xf32>, vector<128x128xf32>, vector<16x128xf32> -> vector<16x128xf32>
    %c0_249 = arith.constant 0 : index
    %c0_250 = arith.constant 0 : index
    %455 = vector.load %arg42[%c0_249, %c0_250] : memref<1x128xf32, #tpu.memory_space<vmem>>, vector<1x128xf32>
    %456 = vector.broadcast %455 : vector<1x128xf32> to vector<16x128xf32>
    %457 = arith.addf %454, %456 : vector<16x128xf32>
    %458 = arith.addf %457, %368 : vector<16x128xf32>
    %c0_251 = arith.constant 0 : index
    %c0_252 = arith.constant 0 : index
    %459 = vector.load %arg43[%c0_251, %c0_252] : memref<16x128xf32, #tpu.memory_space<vmem>>, vector<16x128xf32>
    tpu.vector_store %arg43[%c0_251, %c0_252], %413 {strides = array<i32>} : memref<16x128xf32, #tpu.memory_space<vmem>>, vector<16x128xf32>,
    %c0_253 = arith.constant 0 : index
    %c0_254 = arith.constant 0 : index
    %460 = vector.load %arg44[%c0_253, %c0_254] : memref<16x128xf32, #tpu.memory_space<vmem>>, vector<16x128xf32>
    tpu.vector_store %arg44[%c0_253, %c0_254], %458 {strides = array<i32>} : memref<16x128xf32, #tpu.memory_space<vmem>>, vector<16x128xf32>,
    return
  }
  func.func @transform_0(%arg0: i32) -> (i32, i32) {
    %c0_i32 = arith.constant 0 : i32
    %c0_i32_0 = arith.constant 0 : i32
    return %arg0, %c0_i32 : i32, i32
  }
  func.func @transform_1(%arg0: i32) -> (i32, i32) {
    %c0_i32 = arith.constant 0 : i32
    %c0_i32_0 = arith.constant 0 : i32
    return %arg0, %c0_i32 : i32, i32
  }
  func.func @transform_2(%arg0: i32) -> (i32, i32) {
    %c0_i32 = arith.constant 0 : i32
    %c0_i32_0 = arith.constant 0 : i32
    %c0_i32_1 = arith.constant 0 : i32
    return %c0_i32, %c0_i32_0 : i32, i32
  }
  func.func @transform_3(%arg0: i32) -> (i32, i32) {
    %c0_i32 = arith.constant 0 : i32
    %c0_i32_0 = arith.constant 0 : i32
    %c0_i32_1 = arith.constant 0 : i32
    return %c0_i32, %c0_i32_0 : i32, i32
  }
  func.func @transform_4(%arg0: i32) -> (i32, i32, i32) {
    %c0_i32 = arith.constant 0 : i32
    %c0_i32_0 = arith.constant 0 : i32
    %c0_i32_1 = arith.constant 0 : i32
    %c0_i32_2 = arith.constant 0 : i32
    return %c0_i32, %c0_i32_0, %c0_i32_1 : i32, i32, i32
  }
  func.func @transform_5(%arg0: i32) -> (i32, i32, i32) {
    %c0_i32 = arith.constant 0 : i32
    %c0_i32_0 = arith.constant 0 : i32
    %c0_i32_1 = arith.constant 0 : i32
    %c0_i32_2 = arith.constant 0 : i32
    return %c0_i32, %c0_i32_0, %c0_i32_1 : i32, i32, i32
  }
  func.func @transform_6(%arg0: i32) -> (i32, i32, i32) {
    %c0_i32 = arith.constant 0 : i32
    %c0_i32_0 = arith.constant 0 : i32
    %c0_i32_1 = arith.constant 0 : i32
    %c0_i32_2 = arith.constant 0 : i32
    return %c0_i32, %c0_i32_0, %c0_i32_1 : i32, i32, i32
  }
  func.func @transform_7(%arg0: i32) -> (i32, i32, i32) {
    %c0_i32 = arith.constant 0 : i32
    %c0_i32_0 = arith.constant 0 : i32
    %c0_i32_1 = arith.constant 0 : i32
    %c0_i32_2 = arith.constant 0 : i32
    return %c0_i32, %c0_i32_0, %c0_i32_1 : i32, i32, i32
  }
  func.func @transform_8(%arg0: i32) -> (i32, i32) {
    %c0_i32 = arith.constant 0 : i32
    %c0_i32_0 = arith.constant 0 : i32
    %c0_i32_1 = arith.constant 0 : i32
    return %c0_i32, %c0_i32_0 : i32, i32
  }
  func.func @transform_9(%arg0: i32) -> (i32, i32) {
    %c0_i32 = arith.constant 0 : i32
    %c0_i32_0 = arith.constant 0 : i32
    %c0_i32_1 = arith.constant 0 : i32
    return %c0_i32, %c0_i32_0 : i32, i32
  }
  func.func @transform_10(%arg0: i32) -> (i32, i32) {
    %c0_i32 = arith.constant 0 : i32
    %c0_i32_0 = arith.constant 0 : i32
    %c0_i32_1 = arith.constant 0 : i32
    return %c0_i32, %c0_i32_0 : i32, i32
  }
  func.func @transform_11(%arg0: i32) -> (i32, i32, i32) {
    %c0_i32 = arith.constant 0 : i32
    %c0_i32_0 = arith.constant 0 : i32
    %c0_i32_1 = arith.constant 0 : i32
    %c0_i32_2 = arith.constant 0 : i32
    return %c0_i32, %c0_i32_0, %c0_i32_1 : i32, i32, i32
  }
  func.func @transform_12(%arg0: i32) -> (i32, i32, i32) {
    %c0_i32 = arith.constant 0 : i32
    %c0_i32_0 = arith.constant 0 : i32
    %c0_i32_1 = arith.constant 0 : i32
    %c0_i32_2 = arith.constant 0 : i32
    return %c0_i32, %c0_i32_0, %c0_i32_1 : i32, i32, i32
  }
  func.func @transform_13(%arg0: i32) -> (i32, i32, i32) {
    %c0_i32 = arith.constant 0 : i32
    %c0_i32_0 = arith.constant 0 : i32
    %c0_i32_1 = arith.constant 0 : i32
    %c0_i32_2 = arith.constant 0 : i32
    return %c0_i32, %c0_i32_0, %c0_i32_1 : i32, i32, i32
  }
  func.func @transform_14(%arg0: i32) -> (i32, i32, i32) {
    %c0_i32 = arith.constant 0 : i32
    %c0_i32_0 = arith.constant 0 : i32
    %c0_i32_1 = arith.constant 0 : i32
    %c0_i32_2 = arith.constant 0 : i32
    return %c0_i32, %c0_i32_0, %c0_i32_1 : i32, i32, i32
  }
  func.func @transform_15(%arg0: i32) -> (i32, i32) {
    %c0_i32 = arith.constant 0 : i32
    %c0_i32_0 = arith.constant 0 : i32
    %c0_i32_1 = arith.constant 0 : i32
    return %c0_i32, %c0_i32_0 : i32, i32
  }
  func.func @transform_16(%arg0: i32) -> (i32, i32) {
    %c0_i32 = arith.constant 0 : i32
    %c0_i32_0 = arith.constant 0 : i32
    %c0_i32_1 = arith.constant 0 : i32
    return %c0_i32, %c0_i32_0 : i32, i32
  }
  func.func @transform_17(%arg0: i32) -> (i32, i32) {
    %c0_i32 = arith.constant 0 : i32
    %c0_i32_0 = arith.constant 0 : i32
    %c0_i32_1 = arith.constant 0 : i32
    return %c0_i32, %c0_i32_0 : i32, i32
  }
  func.func @transform_18(%arg0: i32) -> (i32, i32) {
    %c0_i32 = arith.constant 0 : i32
    %c0_i32_0 = arith.constant 0 : i32
    %c0_i32_1 = arith.constant 0 : i32
    return %c0_i32, %c0_i32_0 : i32, i32
  }
  func.func @transform_19(%arg0: i32) -> (i32, i32) {
    %c0_i32 = arith.constant 0 : i32
    %c0_i32_0 = arith.constant 0 : i32
    %c0_i32_1 = arith.constant 0 : i32
    return %c0_i32, %c0_i32_0 : i32, i32
  }
  func.func @transform_20(%arg0: i32) -> (i32, i32) {
    %c0_i32 = arith.constant 0 : i32
    %c0_i32_0 = arith.constant 0 : i32
    %c0_i32_1 = arith.constant 0 : i32
    return %c0_i32, %c0_i32_0 : i32, i32
  }
  func.func @transform_21(%arg0: i32) -> (i32, i32) {
    %c0_i32 = arith.constant 0 : i32
    %c0_i32_0 = arith.constant 0 : i32
    %c0_i32_1 = arith.constant 0 : i32
    return %c0_i32, %c0_i32_0 : i32, i32
  }
  func.func @transform_22(%arg0: i32) -> (i32, i32) {
    %c0_i32 = arith.constant 0 : i32
    %c0_i32_0 = arith.constant 0 : i32
    %c0_i32_1 = arith.constant 0 : i32
    return %c0_i32, %c0_i32_0 : i32, i32
  }
  func.func @transform_23(%arg0: i32) -> (i32, i32) {
    %c0_i32 = arith.constant 0 : i32
    %c0_i32_0 = arith.constant 0 : i32
    %c0_i32_1 = arith.constant 0 : i32
    return %c0_i32, %c0_i32_0 : i32, i32
  }
  func.func @transform_24(%arg0: i32) -> (i32, i32, i32) {
    %c0_i32 = arith.constant 0 : i32
    %c0_i32_0 = arith.constant 0 : i32
    %c0_i32_1 = arith.constant 0 : i32
    %c0_i32_2 = arith.constant 0 : i32
    return %c0_i32, %c0_i32_0, %c0_i32_1 : i32, i32, i32
  }
  func.func @transform_25(%arg0: i32) -> (i32, i32, i32) {
    %c0_i32 = arith.constant 0 : i32
    %c0_i32_0 = arith.constant 0 : i32
    %c0_i32_1 = arith.constant 0 : i32
    %c0_i32_2 = arith.constant 0 : i32
    return %c0_i32, %c0_i32_0, %c0_i32_1 : i32, i32, i32
  }
  func.func @transform_26(%arg0: i32) -> (i32, i32, i32) {
    %c0_i32 = arith.constant 0 : i32
    %c0_i32_0 = arith.constant 0 : i32
    %c0_i32_1 = arith.constant 0 : i32
    %c0_i32_2 = arith.constant 0 : i32
    return %c0_i32, %c0_i32_0, %c0_i32_1 : i32, i32, i32
  }
  func.func @transform_27(%arg0: i32) -> (i32, i32, i32) {
    %c0_i32 = arith.constant 0 : i32
    %c0_i32_0 = arith.constant 0 : i32
    %c0_i32_1 = arith.constant 0 : i32
    %c0_i32_2 = arith.constant 0 : i32
    return %c0_i32, %c0_i32_0, %c0_i32_1 : i32, i32, i32
  }
  func.func @transform_28(%arg0: i32) -> (i32, i32) {
    %c0_i32 = arith.constant 0 : i32
    %c0_i32_0 = arith.constant 0 : i32
    %c0_i32_1 = arith.constant 0 : i32
    return %c0_i32, %c0_i32_0 : i32, i32
  }
  func.func @transform_29(%arg0: i32) -> (i32, i32) {
    %c0_i32 = arith.constant 0 : i32
    %c0_i32_0 = arith.constant 0 : i32
    %c0_i32_1 = arith.constant 0 : i32
    return %c0_i32, %c0_i32_0 : i32, i32
  }
  func.func @transform_30(%arg0: i32) -> (i32, i32) {
    %c0_i32 = arith.constant 0 : i32
    %c0_i32_0 = arith.constant 0 : i32
    %c0_i32_1 = arith.constant 0 : i32
    return %c0_i32, %c0_i32_0 : i32, i32
  }
  func.func @transform_31(%arg0: i32) -> (i32, i32, i32) {
    %c0_i32 = arith.constant 0 : i32
    %c0_i32_0 = arith.constant 0 : i32
    %c0_i32_1 = arith.constant 0 : i32
    %c0_i32_2 = arith.constant 0 : i32
    return %c0_i32, %c0_i32_0, %c0_i32_1 : i32, i32, i32
  }
  func.func @transform_32(%arg0: i32) -> (i32, i32, i32) {
    %c0_i32 = arith.constant 0 : i32
    %c0_i32_0 = arith.constant 0 : i32
    %c0_i32_1 = arith.constant 0 : i32
    %c0_i32_2 = arith.constant 0 : i32
    return %c0_i32, %c0_i32_0, %c0_i32_1 : i32, i32, i32
  }
  func.func @transform_33(%arg0: i32) -> (i32, i32, i32) {
    %c0_i32 = arith.constant 0 : i32
    %c0_i32_0 = arith.constant 0 : i32
    %c0_i32_1 = arith.constant 0 : i32
    %c0_i32_2 = arith.constant 0 : i32
    return %c0_i32, %c0_i32_0, %c0_i32_1 : i32, i32, i32
  }
  func.func @transform_34(%arg0: i32) -> (i32, i32, i32) {
    %c0_i32 = arith.constant 0 : i32
    %c0_i32_0 = arith.constant 0 : i32
    %c0_i32_1 = arith.constant 0 : i32
    %c0_i32_2 = arith.constant 0 : i32
    return %c0_i32, %c0_i32_0, %c0_i32_1 : i32, i32, i32
  }
  func.func @transform_35(%arg0: i32) -> (i32, i32) {
    %c0_i32 = arith.constant 0 : i32
    %c0_i32_0 = arith.constant 0 : i32
    %c0_i32_1 = arith.constant 0 : i32
    return %c0_i32, %c0_i32_0 : i32, i32
  }
  func.func @transform_36(%arg0: i32) -> (i32, i32) {
    %c0_i32 = arith.constant 0 : i32
    %c0_i32_0 = arith.constant 0 : i32
    %c0_i32_1 = arith.constant 0 : i32
    return %c0_i32, %c0_i32_0 : i32, i32
  }
  func.func @transform_37(%arg0: i32) -> (i32, i32) {
    %c0_i32 = arith.constant 0 : i32
    %c0_i32_0 = arith.constant 0 : i32
    %c0_i32_1 = arith.constant 0 : i32
    return %c0_i32, %c0_i32_0 : i32, i32
  }
  func.func @transform_38(%arg0: i32) -> (i32, i32) {
    %c0_i32 = arith.constant 0 : i32
    %c0_i32_0 = arith.constant 0 : i32
    %c0_i32_1 = arith.constant 0 : i32
    return %c0_i32, %c0_i32_0 : i32, i32
  }
  func.func @transform_39(%arg0: i32) -> (i32, i32) {
    %c0_i32 = arith.constant 0 : i32
    %c0_i32_0 = arith.constant 0 : i32
    %c0_i32_1 = arith.constant 0 : i32
    return %c0_i32, %c0_i32_0 : i32, i32
  }
  func.func @transform_40(%arg0: i32) -> (i32, i32) {
    %c0_i32 = arith.constant 0 : i32
    %c0_i32_0 = arith.constant 0 : i32
    %c0_i32_1 = arith.constant 0 : i32
    return %c0_i32, %c0_i32_0 : i32, i32
  }
  func.func @transform_41(%arg0: i32) -> (i32, i32) {
    %c0_i32 = arith.constant 0 : i32
    %c0_i32_0 = arith.constant 0 : i32
    %c0_i32_1 = arith.constant 0 : i32
    return %c0_i32, %c0_i32_0 : i32, i32
  }
  func.func @transform_42(%arg0: i32) -> (i32, i32) {
    %c0_i32 = arith.constant 0 : i32
    %c0_i32_0 = arith.constant 0 : i32
    return %arg0, %c0_i32 : i32, i32
  }
  func.func @transform_43(%arg0: i32) -> (i32, i32) {
    %c0_i32 = arith.constant 0 : i32
    %c0_i32_0 = arith.constant 0 : i32
    return %arg0, %c0_i32 : i32, i32
  }
}

</mosaic_0001>

<bundles_post_ra>
// kernel: dual_decoder.2
= control target key start
LH: loop header
LB: loop body
LE: loop exit
PB: predicated region body
PF: predicated region fallthrough
CT: control target
= control target key end

     0   :  { %s9873_s6 = smov 1   ;;  %s9874_s10 = smov 2   ;;  %s11100_s0 = inlined_call_operand.smem [shape: u32[44], index: -1, kind: input, shape index: {}] }
   0x1   :  { %s9926_s5 = sld [smem:[%s11100_s0]]   ;;  %s9875_s14 = smov 3  }
   0x2   :  { %s9931_s9 = sld [smem:[%s11100_s0 + %s9873_s6]]   ;;  %s9876_s18 = smov 4  }
   0x3   :  { %s9936_s13 = sld [smem:[%s11100_s0 + %s9874_s10]]   ;;  %s9877_s22 = smov 5  }
   0x4   :  { %s9941_s17 = sld [smem:[%s11100_s0 + %s9875_s14]]   ;;  %s9878_s26 = smov 6  }
   0x5   :  { %s9946_s21 = sld [smem:[%s11100_s0 + %s9876_s18]]   ;;  %s9879_s30 = smov 7  }
   0x6   :  { %s9951_s25 = sld [smem:[%s11100_s0 + %s9877_s22]]   ;;  %s9880_s4 = smov 8  }
   0x7   :  { %s9956_s29 = sld [smem:[%s11100_s0 + %s9878_s26]]   ;;  %s9881_s10 = smov 9  }
   0x8   :  { %s9961_s3 = sld [smem:[%s11100_s0 + %s9879_s30]]   ;;  %s9882_s15 = smov 10  }
   0x9   :  { %s9966_s8 = sld [smem:[%s11100_s0 + %s9880_s4]]   ;;  %s9883_s20 = smov 11  }
   0xa   :  { %s9971_s14 = sld [smem:[%s11100_s0 + %s9881_s10]]   ;;  %s9884_s26 = smov 12  }
   0xb   :  { %s9976_s19 = sld [smem:[%s11100_s0 + %s9882_s15]]   ;;  %s9885_s1 = smov 13  }
   0xc   :  { %s9981_s24 = sld [smem:[%s11100_s0 + %s9883_s20]]   ;;  %s9886_s7 = smov 14  }
   0xd   :  { %s9986_s30 = sld [smem:[%s11100_s0 + %s9884_s26]]   ;;  %s9887_s15 = smov 15  }
   0xe   :  { %11117 = sst [smem:[#allocation2_spill]] %s9961_s3  ;;  %s9888_s22 = smov 16  }
   0xf   :  { %s9991_s6 = sld [smem:[%s11100_s0 + %s9885_s1]]   ;;  %s9889_s28 = smov 17  }
  0x10   :  { %11118 = sst [smem:[#allocation3_spill]] %s9971_s14 }
  0x11   :  { %11119 = sst [smem:[#allocation4_spill]] %s9976_s19 }
  0x12   :  { %11120 = sst [smem:[#allocation5_spill]] %s9981_s24 }
  0x13   :  { %11121 = sst [smem:[#allocation6_spill]] %s9986_s30 }
  0x14   :  { %s9996_s12 = sld [smem:[%s11100_s0 + %s9886_s7]]   ;;  %s9890_s7 = smov 18  }
  0x15   :  { %11122 = sst [smem:[#allocation7_spill]] %s9991_s6 }
  0x16   :  { %s10001_s20 = sld [smem:[%s11100_s0 + %s9887_s15]]   ;;  %s9891_s15 = smov 19  }
  0x17   :  { %s10006_s27 = sld [smem:[%s11100_s0 + %s9888_s22]]   ;;  %s9892_s22 = smov 20  }
  0x18   :  { %s10011_s4 = sld [smem:[%s11100_s0 + %s9889_s28]]   ;;  %s9893_s28 = smov 21  }
  0x1a   :  { %11123 = sst [smem:[#allocation8_spill]] %s9996_s12 }
  0x1b   :  { %s10016_s12 = sld [smem:[%s11100_s0 + %s9890_s7]]   ;;  %s9894_s7 = smov 22  }
  0x1c   :  { %11124 = sst [smem:[#allocation9_spill]] %s10001_s20 }
  0x1d   :  { %11125 = sst [smem:[#allocation10_spill]] %s10006_s27 }
  0x1e   :  { %11126 = sst [smem:[#allocation11_spill]] %s10011_s4 }
  0x1f   :  { %s10021_s20 = sld [smem:[%s11100_s0 + %s9891_s15]]   ;;  %s9895_s15 = smov 23  }
  0x20   :  { %s10026_s27 = sld [smem:[%s11100_s0 + %s9892_s22]]   ;;  %s9896_s22 = smov 24  }
  0x21   :  { %11127 = sst [smem:[#allocation12_spill]] %s10016_s12 }
  0x22   :  { %s10031_s4 = sld [smem:[%s11100_s0 + %s9893_s28]]   ;;  %s9897_s28 = smov 25  }
  0x23   :  { %s10036_s12 = sld [smem:[%s11100_s0 + %s9894_s7]]   ;;  %s9898_s7 = smov 26  }
  0x24   :  { %s10056_s6 = sld [smem:[%s11100_s0 + %s9898_s7]]   ;;  %s9902_s7 = smov 30  }
  0x25   :  { %11128 = sst [smem:[#allocation13_spill]] %s10021_s20 }
  0x26   :  { %11129 = sst [smem:[#allocation14_spill]] %s10026_s27 }
  0x27   :  { %s10041_s20 = sld [smem:[%s11100_s0 + %s9895_s15]]   ;;  %s9899_s15 = smov 27  }
  0x28   :  { %11130 = sst [smem:[#allocation15_spill]] %s10031_s4 }
  0x29   :  { %s10046_s27 = sld [smem:[%s11100_s0 + %s9896_s22]]   ;;  %s9900_s22 = smov 28  }
  0x2a   :  { %s10051_s4 = sld [smem:[%s11100_s0 + %s9897_s28]]   ;;  %s9901_s28 = smov 29  }
  0x2b   :  { %s10061_s19 = sld [smem:[%s11100_s0 + %s9899_s15]]   ;;  %s9903_s15 = smov 31  }
  0x2c   :  { %s10066_s14 = sld [smem:[%s11100_s0 + %s9900_s22]]   ;;  %s9904_s22 = smov 32  }
  0x2d   :  { %s10071_s30 = sld [smem:[%s11100_s0 + %s9901_s28]]   ;;  %s9905_s28 = smov 33  }
  0x2e   :  { %s10076_s24 = sld [smem:[%s11100_s0 + %s9902_s7]]   ;;  %s9906_s7 = smov 34  }
  0x30   :  { %11131 = sst [smem:[#allocation16_spill]] %s10051_s4 }
  0x31   :  { %11132 = sst [smem:[#allocation17_spill]] %s10061_s19 }
  0x32   :  { %11133 = sst [smem:[#allocation18_spill]] %s10066_s14 }
  0x33   :  { %11134 = sst [smem:[#allocation19_spill]] %s10071_s30 }
  0x34   :  { %11135 = sst [smem:[#allocation20_spill]] %s10076_s24 }
  0x35   :  { %s10081_s19 = sld [smem:[%s11100_s0 + %s9903_s15]]   ;;  %s9907_s15 = smov 35  }
  0x36   :  { %s10086_s14 = sld [smem:[%s11100_s0 + %s9904_s22]]   ;;  %s9908_s22 = smov 36  }
  0x37   :  { %s10091_s30 = sld [smem:[%s11100_s0 + %s9905_s28]]   ;;  %s9909_s28 = smov 37  }
  0x38   :  { %s10096_s24 = sld [smem:[%s11100_s0 + %s9906_s7]]   ;;  %s9910_s7 = smov 38  }
  0x3b   :  { %11136 = sst [smem:[#allocation21_spill]] %s10081_s19 }
  0x3c   :  { %11137 = sst [smem:[#allocation22_spill]] %s10086_s14 }
  0x3d   :  { %11138 = sst [smem:[#allocation23_spill]] %s10091_s30 }
  0x3e   :  { %11139 = sst [smem:[#allocation24_spill]] %s10096_s24 }
  0x3f   :  { %s10101_s19 = sld [smem:[%s11100_s0 + %s9907_s15]]   ;;  %s9911_s15 = smov 39  }
  0x40   :  { %s10106_s14 = sld [smem:[%s11100_s0 + %s9908_s22]]   ;;  %s9912_s22 = smov 40  }
  0x41   :  { %s10111_s30 = sld [smem:[%s11100_s0 + %s9909_s28]]   ;;  %s9913_s28 = smov 41  }
  0x42   :  { %s10116_s24 = sld [smem:[%s11100_s0 + %s9910_s7]]   ;;  %s9914_s7 = smov 42  }
  0x45   :  { %11140 = sst [smem:[#allocation25_spill]] %s10101_s19 }
  0x46   :  { %11141 = sst [smem:[#allocation26_spill]] %s10106_s14 }
  0x47   :  { %11142 = sst [smem:[#allocation27_spill]] %s10111_s30 }
  0x48   :  { %11143 = sst [smem:[#allocation28_spill]] %s10116_s24 }
  0x49   :  { %s10121_s19 = sld [smem:[%s11100_s0 + %s9911_s15]]   ;;  %s9915_s15 = smov 43  }
  0x4a   :  { %s10126_s14 = sld [smem:[%s11100_s0 + %s9912_s22]]   ;;  %s10143_s22 = smov 0  }
  0x4b   :  { %s10131_s30 = sld [smem:[%s11100_s0 + %s9913_s28]]  }
  0x4c   :  { %s10136_s24 = sld [smem:[%s11100_s0 + %s9914_s7]]  }
  0x4f   :  { %11144 = sst [smem:[#allocation29_spill]] %s10121_s19 }
  0x50   :  { %s10141_s19 = sld [smem:[%s11100_s0 + %s9915_s15]]  }
  0x51 LB: > { %s11145_s4 = sld [smem:[#allocation16_spill]]  ;;  %s7649_s23 = sadd.s32 4294967295, %s9871_s22   ;;  %s9871_s22 = sphi %s10143_s22, %s98_s22  }
  0x52   : > { %s11146_s3 = sld [smem:[#allocation2_spill]]  ;;  %p7653_p0 = scmp.ge.s32.totalorder %s9871_s22, 1 }
  0x53   : > { %p1196_p1 = scmp.lt.s32.totalorder %s9871_s22, 3 }
  0x55   : > { %p1197_p2 = pnand %p7653_p0, %p1196_p1 }
  0x56   : > { %s7654_s26 = sshll.u32 (!%p1197_p2), %s7649_s23, 1  ;;  %s11147_s2 = sld [smem:[#allocation17_spill]] (!%p1197_p2) }
  0x57   : > { %1200 = sbr.rel (%p1197_p2) target bundleno = 5614 (0x15ee), region = 188  ;;  %p1311_p3 = scmp.lt.s32.totalorder (!%p1197_p2), %s7654_s26, 3 }
  0x58   : > { %s11148_s7 = sld [smem:[#allocation5_spill]] (!%p1197_p2) }
  0x59   : > { %s11149_s10 = sld [smem:[#allocation18_spill]] (!%p1197_p2) }
  0x5a   : > { %s11150_s11 = sld [smem:[#allocation6_spill]] (!%p1197_p2) }
  0x5b   : > { %s11151_s15 = sld [smem:[#allocation3_spill]] (!%p1197_p2) }
  0x5c   : > { %s11174_s26 = smov (!%p1311_p3, %s7654_s26), 3  ;;  %v1400_v2 = vld [vmem:[%s9946_s21 + $0x78] sm:$0xff]  ;;  %v1399_v4 = vld [vmem:[%s9946_s21 + $0x70] sm:$0xff]  ;;  %v1398_v6 = vld [vmem:[%s9946_s21 + $0x68] sm:$0xff]  ;;  %v1334_v8 = vlaneseq  ;;  %vm9917_vm1 = vmmov 0   ;;  %vm1934_vm2 = vcmask 64512  }
  0x5d   : > { %s10151_s0 = sshll.u32 %s11174_s26, 3  ;;  %v7679_v3 = vld [vmem:[%s9946_s21 + $0xf8] sm:$0xff]  ;;  %8532 = vmatprep.subr.mxu0 %v1400_v2  ;;  %v7678_v5 = vld [vmem:[%s9946_s21 + $0xf0] sm:$0xff]  ;;  %v7677_v7 = vld [vmem:[%s9946_s21 + $0xe8] sm:$0xff]  ;;  %s11152_s16 = sld [smem:[#allocation4_spill]] }
  0x5e   : > { %s10155_s28 = scalar_lea.vmem %s9926_s5, %s10151_s0  ;;  %8567 = vmatprep.subr.mxu1 %v7679_v3  ;;  %8533 = vmatpush3.msra.mxu0 %v1400_v2  ;;  %v10165_v9 = vand.u32 127, %v1334_v8  ;;  %v1397_v20 = vld [vmem:[%s9946_s21 + $0x60] sm:$0xff]  ;;  %v1396_v22 = vld [vmem:[%s9946_s21 + $0x58] sm:$0xff]  ;;  %v1395_v24 = vld [vmem:[%s9946_s21 + $0x50] sm:$0xff]  ;;  %s10330_s1 = scalar_lea.vmem %s9931_s9, %s10151_s0 }
  0x5f   : > { %v1337_v0 = vld [vmem:[%s10155_s28] sm:$0xff]  ;;  %v1338_v1 = vld [vmem:[%s10155_s28 + $0x8] sm:$0xff]  ;;  %8568 = vmatpush3.msra.mxu1 %v7679_v3  ;;  %8534 = vmatprep.subr.mxu0 %v1399_v4  ;;  %v7675_v23 = vld [vmem:[%s9946_s21 + $0xd8] sm:$0xff]  ;;  %s11153_s18 = sld [smem:[#allocation7_spill]] }
  0x60   : > { %1341 = vadd.xlane.f32.xlu0 %v1337_v0  ;;  %8569 = vmatprep.subr.mxu1 %v7678_v5  ;;  %vm1336_vm0 = vcmp.lt.s32.totalorder %v10165_v9, 32  ;;  %v7676_v21 = vld [vmem:[%s9946_s21 + $0xe0] sm:$0xff]  ;;  %v7674_v25 = vld [vmem:[%s9946_s21 + $0xd0] sm:$0xff]  ;;  %v1394_v26 = vld [vmem:[%s9946_s21 + $0x48] sm:$0xff]  ;;  %s11154_s23 = sld [smem:[#allocation8_spill]] }
  0x61   : > { %8535 = vmatpush3.msra.mxu0 %v1399_v4  ;;  %8570 = vmatpush3.msra.mxu1 %v7678_v5  ;;  %v7673_v27 = vld [vmem:[%s9946_s21 + $0xc8] sm:$0xff]  ;;  %v1393_v28 = vld [vmem:[%s9946_s21 + $0x40] sm:$0xff]  ;;  %v1392_v30 = vld [vmem:[%s9946_s21 + $0x38] sm:$0xff]  ;;  %s11155_s26 = sld [smem:[#allocation21_spill]] }
  0x62   : > { %8536 = vmatprep.subr.mxu0 %v1398_v6  ;;  %8571 = vmatprep.subr.mxu1 %v7677_v7  ;;  %v7672_v29 = vld [vmem:[%s9946_s21 + $0xc0] sm:$0xff]  ;;  %v7671_v31 = vld [vmem:[%s9946_s21 + $0xb8] sm:$0xff]  ;;  %v1391_v32 = vld [vmem:[%s9946_s21 + $0x30] sm:$0xff] }
  0x63   : > { %8537 = vmatpush3.msra.mxu0 %v1398_v6  ;;  %8572 = vmatpush3.msra.mxu1 %v7677_v7  ;;  %v7670_v33 = vld [vmem:[%s9946_s21 + $0xb0] sm:$0xff]  ;;  %v1390_v34 = vld [vmem:[%s9946_s21 + $0x28] sm:$0xff]  ;;  %v1389_v36 = vld [vmem:[%s9946_s21 + $0x20] sm:$0xff] }
  0x64   : > { %1343 = vadd.xlane.f32.xlu0 %v1338_v1  ;;  %8538 = vmatprep.subr.mxu0 %v1397_v20  ;;  %v7669_v35 = vld [vmem:[%s9946_s21 + $0xa8] sm:$0xff]  ;;  %v7668_v37 = vld [vmem:[%s9946_s21 + $0xa0] sm:$0xff]  ;;  %v1388_v38 = vld [vmem:[%s9946_s21 + $0x18] sm:$0xff] }
  0x65   : > { %8573 = vmatprep.subr.mxu1 %v7676_v21  ;;  %8539 = vmatpush3.msra.mxu0 %v1397_v20  ;;  %v7667_v39 = vld [vmem:[%s9946_s21 + $0x98] sm:$0xff]  ;;  %v1387_v40 = vld [vmem:[%s9946_s21 + $0x10] sm:$0xff]  ;;  %v1386_v42 = vld [vmem:[%s9946_s21 + $0x8] sm:$0xff] }
  0x66   : > { %8574 = vmatpush3.msra.mxu1 %v7676_v21  ;;  %8540 = vmatprep.subr.mxu0 %v1396_v22  ;;  %v7666_v41 = vld [vmem:[%s9946_s21 + $0x90] sm:$0xff]  ;;  %v7665_v43 = vld [vmem:[%s9946_s21 + $0x88] sm:$0xff]  ;;  %v1385_v44 = vld [vmem:[%s9946_s21] sm:$0xff] }
  0x67   : > { %8575 = vmatprep.subr.mxu1 %v7675_v23  ;;  %8541 = vmatpush3.msra.mxu0 %v1396_v22  ;;  %v7664_v45 = vld [vmem:[%s9946_s21 + $0x80] sm:$0xff]  ;;  %v1583_v46 = vld [vmem:[%s9951_s25 + $0x78] sm:$0xff]  ;;  %v1581_v2 = vld [vmem:[%s9951_s25 + $0x68] sm:$0xff] }
  0x68   : > { %8576 = vmatpush3.msra.mxu1 %v7675_v23  ;;  %8542 = vmatprep.subr.mxu0 %v1395_v24  ;;  %v7695_v47 = vld [vmem:[%s9951_s25 + $0xf8] sm:$0xff]  ;;  %v7662_v55 = vld [vmem:[%s9936_s13] ss:$0 sm:$0xff]  ;;  %v7693_v3 = vld [vmem:[%s9951_s25 + $0xe8] sm:$0xff] }
  0x69   : > { %8577 = vmatprep.subr.mxu1 %v7674_v25  ;;  %8543 = vmatpush3.msra.mxu0 %v1395_v24  ;;  %v7663_v57 = vld [vmem:[%s9941_s17] ss:$0 sm:$0xff]  ;;  %v1579_v6 = vld [vmem:[%s9951_s25 + $0x58] sm:$0xff]  ;;  %v1578_v8 = vld [vmem:[%s9951_s25 + $0x50] sm:$0xff] }
  0x6a   : > { %8578 = vmatpush3.msra.mxu1 %v7674_v25  ;;  %8544 = vmatprep.subr.mxu0 %v1394_v26  ;;  %v1580_v4 = vld [vmem:[%s9951_s25 + $0x60] sm:$0xff]  ;;  %v7691_v7 = vld [vmem:[%s9951_s25 + $0xd8] sm:$0xff]  ;;  %v7685_v20 = vld [vmem:[%s9951_s25 + $0xa8] sm:$0xff] }
  0x6b   : > { %8579 = vmatprep.subr.mxu1 %v7673_v27  ;;  %8545 = vmatpush3.msra.mxu0 %v1394_v26  ;;  %v7692_v5 = vld [vmem:[%s9951_s25 + $0xe0] sm:$0xff]  ;;  %v1571_v23 = vld [vmem:[%s9951_s25 + $0x18] sm:$0xff]  ;;  %v1570_v25 = vld [vmem:[%s9951_s25 + $0x10] sm:$0xff] }
  0x6c   : > { %8580 = vmatpush3.msra.mxu1 %v7673_v27  ;;  %8546 = vmatprep.subr.mxu0 %v1393_v28  ;;  %v1572_v21 = vld [vmem:[%s9951_s25 + $0x20] sm:$0xff]  ;;  %v7683_v24 = vld [vmem:[%s9951_s25 + $0x98] sm:$0xff]  ;;  %v7682_v26 = vld [vmem:[%s9951_s25 + $0x90] sm:$0xff] }
  0x6d   : > { %8581 = vmatprep.subr.mxu1 %v7672_v29  ;;  %8547 = vmatpush3.msra.mxu0 %v1393_v28  ;;  %v7684_v22 = vld [vmem:[%s9951_s25 + $0xa0] sm:$0xff]  ;;  %v1569_v27 = vld [vmem:[%s9951_s25 + $0x8] sm:$0xff] }
  0x6e   : > { %8582 = vmatpush3.msra.mxu1 %v7672_v29  ;;  %8548 = vmatprep.subr.mxu0 %v1392_v30  ;;  %v7681_v28 = vld [vmem:[%s9951_s25 + $0x88] sm:$0xff]  ;;  %v1568_v29 = vld [vmem:[%s9951_s25] sm:$0xff] }
  0x6f   : > { %8583 = vmatprep.subr.mxu1 %v7671_v31  ;;  %8549 = vmatpush3.msra.mxu0 %v1392_v30  ;;  %v7680_v30 = vld [vmem:[%s9951_s25 + $0x80] sm:$0xff] }
  0x70   : > { %8584 = vmatpush3.msra.mxu1 %v7671_v31  ;;  %8550 = vmatprep.subr.mxu0 %v1391_v32  ;;  %v1766_v31 = vld [vmem:[%s9956_s29 + $0x78] sm:$0xff] }
  0x71   : > { %8585 = vmatprep.subr.mxu1 %v7670_v33  ;;  %8551 = vmatpush3.msra.mxu0 %v1391_v32  ;;  %v7711_v32 = vld [vmem:[%s9956_s29 + $0xf8] sm:$0xff] }
  0x72   : > { %8586 = vmatpush3.msra.mxu1 %v7670_v33  ;;  %8552 = vmatprep.subr.mxu0 %v1390_v34  ;;  %v1765_v33 = vld [vmem:[%s9956_s29 + $0x70] sm:$0xff] }
  0x73   : > { %8587 = vmatprep.subr.mxu1 %v7669_v35  ;;  %8553 = vmatpush3.msra.mxu0 %v1390_v34  ;;  %v7710_v34 = vld [vmem:[%s9956_s29 + $0xf0] sm:$0xff] }
  0x74   : > { %8588 = vmatpush3.msra.mxu1 %v7669_v35  ;;  %8554 = vmatprep.subr.mxu0 %v1389_v36  ;;  %v1764_v35 = vld [vmem:[%s9956_s29 + $0x68] sm:$0xff] }
  0x75   : > { %8589 = vmatprep.subr.mxu1 %v7668_v37  ;;  %8555 = vmatpush3.msra.mxu0 %v1389_v36  ;;  %v7709_v36 = vld [vmem:[%s9956_s29 + $0xe8] sm:$0xff] }
  0x76   : > { %8590 = vmatpush3.msra.mxu1 %v7668_v37  ;;  %8556 = vmatprep.subr.mxu0 %v1388_v38  ;;  %v1763_v37 = vld [vmem:[%s9956_s29 + $0x60] sm:$0xff] }
  0x77   : > { %8591 = vmatprep.subr.mxu1 %v7667_v39  ;;  %8557 = vmatpush3.msra.mxu0 %v1388_v38  ;;  %v7708_v38 = vld [vmem:[%s9956_s29 + $0xe0] sm:$0xff] }
  0x78   : > { %8592 = vmatpush3.msra.mxu1 %v7667_v39  ;;  %8558 = vmatprep.subr.mxu0 %v1387_v40  ;;  %v1762_v39 = vld [vmem:[%s9956_s29 + $0x58] sm:$0xff] }
  0x79   : > { %8593 = vmatprep.subr.mxu1 %v7666_v41  ;;  %8559 = vmatpush3.msra.mxu0 %v1387_v40  ;;  %v7707_v40 = vld [vmem:[%s9956_s29 + $0xd8] sm:$0xff] }
  0x7a   : > { %8594 = vmatpush3.msra.mxu1 %v7666_v41  ;;  %8560 = vmatprep.subr.mxu0 %v1386_v42  ;;  %v1761_v41 = vld [vmem:[%s9956_s29 + $0x50] sm:$0xff] }
  0x7b   : > { %8595 = vmatprep.subr.mxu1 %v7665_v43  ;;  %8561 = vmatpush3.msra.mxu0 %v1386_v42  ;;  %v7706_v42 = vld [vmem:[%s9956_s29 + $0xd0] sm:$0xff] }
  0x7c   : > { %8596 = vmatpush3.msra.mxu1 %v7665_v43  ;;  %8562 = vmatprep.subr.mxu0 %v1385_v44  ;;  %v1760_v43 = vld [vmem:[%s9956_s29 + $0x48] sm:$0xff] }
  0x7d   : > { %8597 = vmatprep.subr.mxu1 %v7664_v45  ;;  %8563 = vmatpush3.msra.mxu0 %v1385_v44  ;;  %v7705_v44 = vld [vmem:[%s9956_s29 + $0xc8] sm:$0xff] }
  0x7e   : > { %8598 = vmatpush3.msra.mxu1 %v7664_v45  ;;  %8602 = vmatprep.subr.mxu0 %v1583_v46  ;;  %v1759_v45 = vld [vmem:[%s9956_s29 + $0x40] sm:$0xff] }
  0x7f   : > { %8637 = vmatprep.subr.mxu1 %v7695_v47 }
  0xe9   : > { %v1342_v10 = vpop.xlane.xlu0 %1341 }
  0xea   : > { %v1345_v11 = vmul.f32 0.03125, %v1342_v10  ;;  %v7690_v10 = vld [vmem:[%s9951_s25 + $0xd0] sm:$0xff] }
  0xec   : > { %v1347_v12 = vsub.f32 %v1337_v0, %v1345_v11  ;;  %v1582_v0 = vld [vmem:[%s9951_s25 + $0x70] sm:$0xff]  ;;  %v1577_v11 = vld [vmem:[%s9951_s25 + $0x48] sm:$0xff] }
  0xed   : > { %v1344_v13 = vpop.xlane.xlu0 %1343 }
  0xee   : > { %v1346_v14 = vmul.f32 0.03125, %v1344_v13  ;;  %v10170_v15 = vsel %vm1336_vm0, %v1347_v12, 0.0  ;;  %v7689_v12 = vld [vmem:[%s9951_s25 + $0xc8] sm:$0xff]  ;;  %v1576_v13 = vld [vmem:[%s9951_s25 + $0x40] sm:$0xff] }
  0xef   : > { %v1353_v16 = vmul.f32 %v10170_v15, %v10170_v15 }
  0xf0   : > { %v1348_v17 = vsub.f32 %v1338_v1, %v1346_v14  ;;  %v7694_v1 = vld [vmem:[%s9951_s25 + $0xf0] sm:$0xff]  ;;  %v7688_v14 = vld [vmem:[%s9951_s25 + $0xc0] sm:$0xff] }
  0xf1   : > { %1355 = vadd.xlane.f32.xlu1 %v1353_v16  ;;  %v7687_v16 = vld [vmem:[%s9951_s25 + $0xb8] sm:$0xff] }
  0xf2   : > { %v10176_v18 = vsel %vm1336_vm0, %v1348_v17, 0.0  ;;  %v1574_v17 = vld [vmem:[%s9951_s25 + $0x30] sm:$0xff] }
  0xf3   : > { %v1354_v19 = vmul.f32 %v10176_v18, %v10176_v18 }
  0xf5   : > { %1357 = vadd.xlane.f32.xlu1 %v1354_v19  ;;  %v1573_v19 = vld [vmem:[%s9951_s25 + $0x28] sm:$0xff] }
 0x17a   : > { %v1356_v48 = vpop.xlane.xlu1 %1355 }
 0x17b   : > { %v1359_v49 = vmul.f32 0.03125, %v1356_v48  ;;  %v7703_v48 = vld [vmem:[%s9956_s29 + $0xb8] sm:$0xff] }
 0x17d   : > { %v1361_v50 = vadd.f32 1e-05, %v1359_v49  ;;  %v1757_v49 = vld [vmem:[%s9956_s29 + $0x30] sm:$0xff] }
 0x17e   : > { %v1358_v51 = vpop.xlane.xlu1 %1357 }
 0x17f   : > { %9765 = vrsqrt.f32 %v1361_v50  ;;  %v1360_v52 = vmul.f32 0.03125, %v1358_v51  ;;  %v7702_v50 = vld [vmem:[%s9956_s29 + $0xb0] sm:$0xff]  ;;  %v1756_v51 = vld [vmem:[%s9956_s29 + $0x28] sm:$0xff] }
 0x181   : > { %v1362_v53 = vadd.f32 1e-05, %v1360_v52  ;;  %v7701_v52 = vld [vmem:[%s9956_s29 + $0xa8] sm:$0xff] }
 0x183   : > { %9767 = vrsqrt.f32 %v1362_v53  ;;  %v1755_v53 = vld [vmem:[%s9956_s29 + $0x20] sm:$0xff] }
 0x18c   : > { %v9766_v54 = vpop.eup %9765 }
 0x18d   : > { %v1365_v56 = vmul.f32 %v9766_v54, %v10170_v15  ;;  %v1575_v15 = vld [vmem:[%s9951_s25 + $0x38] sm:$0xff]  ;;  %v7700_v54 = vld [vmem:[%s9956_s29 + $0xa0] sm:$0xff] }
 0x18f   : > { %v1374_v58 = vmul.f32 %v7662_v55, %v1365_v56  ;;  %v7699_v56 = vld [vmem:[%s9956_s29 + $0x98] sm:$0xff] }
 0x190   : > { %v9768_v59 = vpop.eup %9767 }
 0x191   : > { %v1366_v60 = vmul.f32 %v9768_v59, %v10176_v18  ;;  %v10212_v61 = vadd.f32 %v7663_v57, %v1374_v58  ;;  %v7686_v18 = vld [vmem:[%s9951_s25 + $0xb0] sm:$0xff]  ;;  %v1752_v59 = vld [vmem:[%s9956_s29 + $0x8] sm:$0xff] }
 0x192   : > { %v7698_v58 = vld [vmem:[%s9956_s29 + $0x90] sm:$0xff] }
 0x193   : > { %v1375_v62 = vmul.f32 %v7662_v55, %v1366_v60  ;;  %8564 = vmatprep.mubr.f32.mxu0 %v10212_v61  ;;  %8599 = vmatprep.mubr.f32.mxu1 %v10212_v61  ;;  %v1754_v55 = vld [vmem:[%s9956_s29 + $0x18] sm:$0xff]  ;;  %v7697_v60 = vld [vmem:[%s9956_s29 + $0x88] sm:$0xff] }
 0x195   : > { %v10216_v63 = vadd.f32 %v7663_v57, %v1375_v62  ;;  %v1753_v57 = vld [vmem:[%s9956_s29 + $0x10] sm:$0xff]  ;;  %v7696_v62 = vld [vmem:[%s9956_s29 + $0x80] sm:$0xff] }
 0x197   : > { %8565 = vmatmul.mubr.f32.vlgmr.msra.gmra.mxu0 %v10216_v63  ;;  %8600 = vmatmul.mubr.f32.vlgmr.msra.gmra.mxu1 %v10216_v63 }
 0x198   : > { %8603 = vmatpush3.msra.mxu0 %v1583_v46  ;;  %8638 = vmatpush3.msra.mxu1 %v7695_v47  ;;  %v7704_v46 = vld [vmem:[%s9956_s29 + $0xc0] sm:$0xff]  ;;  %v1758_v47 = vld [vmem:[%s9956_s29 + $0x38] sm:$0xff] }
 0x199   : > { %8604 = vmatprep.subr.mxu0 %v1582_v0  ;;  %8634 = vmatprep.mubr.f32.mxu0 %v10212_v61 }
 0x19a   : > { %8639 = vmatprep.subr.mxu1 %v7694_v1  ;;  %8669 = vmatprep.mubr.f32.mxu1 %v10212_v61 }
 0x19b   : > { %8605 = vmatpush3.msra.mxu0 %v1582_v0  ;;  %8640 = vmatpush3.msra.mxu1 %v7694_v1  ;;  %v9916_v0 = vmov 0.0  }
 0x19c   : > { %8606 = vmatprep.subr.mxu0 %v1581_v2  ;;  %8641 = vmatprep.subr.mxu1 %v7693_v3 }
 0x19d   : > { %8607 = vmatpush3.msra.mxu0 %v1581_v2  ;;  %8642 = vmatpush3.msra.mxu1 %v7693_v3 }
 0x19e   : > { %8608 = vmatprep.subr.mxu0 %v1580_v4  ;;  %8643 = vmatprep.subr.mxu1 %v7692_v5 }
 0x19f   : > { %8609 = vmatpush3.msra.mxu0 %v1580_v4  ;;  %8644 = vmatpush3.msra.mxu1 %v7692_v5 }
 0x1a0   : > { %8610 = vmatprep.subr.mxu0 %v1579_v6  ;;  %8645 = vmatprep.subr.mxu1 %v7691_v7 }
 0x1a1   : > { %8611 = vmatpush3.msra.mxu0 %v1579_v6  ;;  %8646 = vmatpush3.msra.mxu1 %v7691_v7 }
 0x1a2   : > { %8612 = vmatprep.subr.mxu0 %v1578_v8  ;;  %8647 = vmatprep.subr.mxu1 %v7690_v10 }
 0x1a3   : > { %8613 = vmatpush3.msra.mxu0 %v1578_v8  ;;  %8648 = vmatpush3.msra.mxu1 %v7690_v10 }
 0x1a4   : > { %8614 = vmatprep.subr.mxu0 %v1577_v11  ;;  %8649 = vmatprep.subr.mxu1 %v7689_v12 }
 0x1a5   : > { %8615 = vmatpush3.msra.mxu0 %v1577_v11  ;;  %8650 = vmatpush3.msra.mxu1 %v7689_v12 }
 0x1a6   : > { %8616 = vmatprep.subr.mxu0 %v1576_v13  ;;  %8651 = vmatprep.subr.mxu1 %v7688_v14 }
 0x1a7   : > { %8617 = vmatpush3.msra.mxu0 %v1576_v13  ;;  %8652 = vmatpush3.msra.mxu1 %v7688_v14 }
 0x1a8   : > { %8618 = vmatprep.subr.mxu0 %v1575_v15  ;;  %8653 = vmatprep.subr.mxu1 %v7687_v16 }
 0x1a9   : > { %8619 = vmatpush3.msra.mxu0 %v1575_v15  ;;  %8654 = vmatpush3.msra.mxu1 %v7687_v16 }
 0x1aa   : > { %8620 = vmatprep.subr.mxu0 %v1574_v17  ;;  %8655 = vmatprep.subr.mxu1 %v7686_v18 }
 0x1ab   : > { %8621 = vmatpush3.msra.mxu0 %v1574_v17  ;;  %8656 = vmatpush3.msra.mxu1 %v7686_v18 }
 0x1ac   : > { %8622 = vmatprep.subr.mxu0 %v1573_v19  ;;  %8657 = vmatprep.subr.mxu1 %v7685_v20 }
 0x1ad   : > { %8623 = vmatpush3.msra.mxu0 %v1573_v19  ;;  %8658 = vmatpush3.msra.mxu1 %v7685_v20 }
 0x1ae   : > { %8624 = vmatprep.subr.mxu0 %v1572_v21  ;;  %8659 = vmatprep.subr.mxu1 %v7684_v22 }
 0x1af   : > { %8625 = vmatpush3.msra.mxu0 %v1572_v21  ;;  %8660 = vmatpush3.msra.mxu1 %v7684_v22 }
 0x1b0   : > { %8626 = vmatprep.subr.mxu0 %v1571_v23  ;;  %8661 = vmatprep.subr.mxu1 %v7683_v24 }
 0x1b1   : > { %8627 = vmatpush3.msra.mxu0 %v1571_v23  ;;  %8662 = vmatpush3.msra.mxu1 %v7683_v24 }
 0x1b2   : > { %8628 = vmatprep.subr.mxu0 %v1570_v25  ;;  %8663 = vmatprep.subr.mxu1 %v7682_v26 }
 0x1b3   : > { %8629 = vmatpush3.msra.mxu0 %v1570_v25  ;;  %8664 = vmatpush3.msra.mxu1 %v7682_v26 }
 0x1b4   : > { %8630 = vmatprep.subr.mxu0 %v1569_v27  ;;  %8665 = vmatprep.subr.mxu1 %v7681_v28 }
 0x1b5   : > { %8631 = vmatpush3.msra.mxu0 %v1569_v27  ;;  %8666 = vmatpush3.msra.mxu1 %v7681_v28 }
 0x1b6   : > { %8632 = vmatprep.subr.mxu0 %v1568_v29  ;;  %8667 = vmatprep.subr.mxu1 %v7680_v30 }
 0x1b7   : > { %8633 = vmatpush3.msra.mxu0 %v1568_v29  ;;  %8668 = vmatpush3.msra.mxu1 %v7680_v30 }
 0x1b8   : > { %8635 = vmatmul.mubr.f32.vlgmr.msra.gmra.mxu0 %v10216_v63  ;;  %8670 = vmatmul.mubr.f32.vlgmr.msra.gmra.mxu1 %v10216_v63 }
 0x1b9   : > { %8672 = vmatprep.subr.mxu0 %v1766_v31  ;;  %8707 = vmatprep.subr.mxu1 %v7711_v32 }
 0x1ba   : > { %8673 = vmatpush3.msra.mxu0 %v1766_v31  ;;  %8704 = vmatprep.mubr.f32.mxu0 %v10212_v61 }
 0x1bb   : > { %8708 = vmatpush3.msra.mxu1 %v7711_v32  ;;  %8739 = vmatprep.mubr.f32.mxu1 %v10212_v61  ;;  %v1751_v61 = vld [vmem:[%s9956_s29] sm:$0xff] }
 0x1bc   : > { %8674 = vmatprep.subr.mxu0 %v1765_v33  ;;  %8709 = vmatprep.subr.mxu1 %v7710_v34 }
 0x1bd   : > { %8675 = vmatpush3.msra.mxu0 %v1765_v33  ;;  %8710 = vmatpush3.msra.mxu1 %v7710_v34 }
 0x1be   : > { %8676 = vmatprep.subr.mxu0 %v1764_v35  ;;  %8711 = vmatprep.subr.mxu1 %v7709_v36 }
 0x1bf   : > { %8677 = vmatpush3.msra.mxu0 %v1764_v35  ;;  %8712 = vmatpush3.msra.mxu1 %v7709_v36 }
 0x1c0   : > { %8678 = vmatprep.subr.mxu0 %v1763_v37  ;;  %8713 = vmatprep.subr.mxu1 %v7708_v38 }
 0x1c1   : > { %8679 = vmatpush3.msra.mxu0 %v1763_v37  ;;  %8714 = vmatpush3.msra.mxu1 %v7708_v38 }
 0x1c2   : > { %8680 = vmatprep.subr.mxu0 %v1762_v39  ;;  %8715 = vmatprep.subr.mxu1 %v7707_v40 }
 0x1c3   : > { %8681 = vmatpush3.msra.mxu0 %v1762_v39  ;;  %8716 = vmatpush3.msra.mxu1 %v7707_v40 }
 0x1c4   : > { %8682 = vmatprep.subr.mxu0 %v1761_v41  ;;  %8717 = vmatprep.subr.mxu1 %v7706_v42 }
 0x1c5   : > { %8683 = vmatpush3.msra.mxu0 %v1761_v41  ;;  %8718 = vmatpush3.msra.mxu1 %v7706_v42 }
 0x1c6   : > { %8684 = vmatprep.subr.mxu0 %v1760_v43  ;;  %8719 = vmatprep.subr.mxu1 %v7705_v44 }
 0x1c7   : > { %8685 = vmatpush3.msra.mxu0 %v1760_v43  ;;  %8720 = vmatpush3.msra.mxu1 %v7705_v44 }
 0x1c8   : > { %8686 = vmatprep.subr.mxu0 %v1759_v45  ;;  %8721 = vmatprep.subr.mxu1 %v7704_v46 }
 0x1c9   : > { %8687 = vmatpush3.msra.mxu0 %v1759_v45  ;;  %8722 = vmatpush3.msra.mxu1 %v7704_v46 }
 0x1ca   : > { %8688 = vmatprep.subr.mxu0 %v1758_v47  ;;  %8723 = vmatprep.subr.mxu1 %v7703_v48 }
 0x1cb   : > { %8689 = vmatpush3.msra.mxu0 %v1758_v47  ;;  %8724 = vmatpush3.msra.mxu1 %v7703_v48 }
 0x1cc   : > { %8690 = vmatprep.subr.mxu0 %v1757_v49  ;;  %8725 = vmatprep.subr.mxu1 %v7702_v50 }
 0x1cd   : > { %8691 = vmatpush3.msra.mxu0 %v1757_v49  ;;  %8726 = vmatpush3.msra.mxu1 %v7702_v50  ;;  %v1340_v49 = vld [vmem:[%s10330_s1 + $0x8] sm:$0xff]  ;;  %v1339_v50 = vld [vmem:[%s10330_s1] sm:$0xff] }
 0x1ce   : > { %8692 = vmatprep.subr.mxu0 %v1756_v51  ;;  %8727 = vmatprep.subr.mxu1 %v7701_v52 }
 0x1cf   : > { %8693 = vmatpush3.msra.mxu0 %v1756_v51  ;;  %8728 = vmatpush3.msra.mxu1 %v7701_v52 }
 0x1d0   : > { %8694 = vmatprep.subr.mxu0 %v1755_v53  ;;  %8729 = vmatprep.subr.mxu1 %v7700_v54 }
 0x1d1   : > { %8695 = vmatpush3.msra.mxu0 %v1755_v53  ;;  %8730 = vmatpush3.msra.mxu1 %v7700_v54 }
 0x1d2   : > { %8696 = vmatprep.subr.mxu0 %v1754_v55  ;;  %8731 = vmatprep.subr.mxu1 %v7699_v56 }
 0x1d3   : > { %8697 = vmatpush3.msra.mxu0 %v1754_v55  ;;  %8732 = vmatpush3.msra.mxu1 %v7699_v56 }
 0x1d4   : > { %8698 = vmatprep.subr.mxu0 %v1753_v57  ;;  %8733 = vmatprep.subr.mxu1 %v7698_v58 }
 0x1d5   : > { %8699 = vmatpush3.msra.mxu0 %v1753_v57  ;;  %8734 = vmatpush3.msra.mxu1 %v7698_v58 }
 0x1d6   : > { %8700 = vmatprep.subr.mxu0 %v1752_v59  ;;  %8735 = vmatprep.subr.mxu1 %v7697_v60 }
 0x1d7   : > { %8701 = vmatpush3.msra.mxu0 %v1752_v59  ;;  %8736 = vmatpush3.msra.mxu1 %v7697_v60 }
 0x1d8   : > { %8702 = vmatprep.subr.mxu0 %v1751_v61  ;;  %8737 = vmatprep.subr.mxu1 %v7696_v62 }
 0x1d9   : > { %8703 = vmatpush3.msra.mxu0 %v1751_v61  ;;  %8738 = vmatpush3.msra.mxu1 %v7696_v62 }
 0x1da   : > { %8705 = vmatmul.mubr.f32.vlgmr.msra.gmra.mxu0 %v10216_v63  ;;  %8740 = vmatmul.mubr.f32.vlgmr.msra.gmra.mxu1 %v10216_v63 }
 0x1db   : > { %8747 = vmatprep.subr.mxu1 %v9916_v0  ;;  %8742 = vmatprep.subr.mxu0 %v9916_v0 }
 0x1dc   : > { %8749 = vmatprep.mubr.msk.f32.mxu1 %vm9917_vm1, %v9916_v0  ;;  %8744 = vmatprep.mubr.msk.f32.mxu0 %vm9917_vm1, %v9916_v0 }
 0x257   : > { %v8566_v1 = vpop.f32.mrf.mxu0  ;;  %v8601_v2 = vpop.f32.mrf.mxu1 }
 0x259   : > { %v1467_v3 = vpop.f32.mrf.mxu0  ;;  %v1559_v4 = vpop.f32.mrf.mxu1 }
 0x278   : > { %v8636_v5 = vpop.f32.mrf.mxu0  ;;  %v8671_v63 = vpop.f32.mrf.mxu1 }
 0x279   : > { %8748 = vmatpush3.xpose.msk.msra.mxu1 %vm1934_vm2, %v8636_v5 }
 0x27a   : > { %v1650_v6 = vpop.f32.mrf.mxu0  ;;  %8757 = vmatprep.subr.mxu1 %v9916_v0  ;;  %v1742_v7 = vpop.f32.mrf.mxu1 }
 0x27b   : > { %8743 = vmatpush3.xpose.msk.msra.mxu0 %vm1934_vm2, %v1650_v6 }
 0x27c   : > { %8750 = vmatmul.mubr.msk.f32.vlgmr.msra.gmra.mxu1 %vm1934_vm2, %v8566_v1  ;;  %8752 = vmatprep.subr.mxu0 %v9916_v0 }
 0x27d   : > { %8758 = vmatpush3.xpose.msk.msra.mxu1 %vm1934_vm2, %v8671_v63  ;;  %8759 = vmatprep.mubr.msk.f32.mxu1 %vm9917_vm1, %v9916_v0 }
 0x27e   : > { %8745 = vmatmul.mubr.msk.f32.vlgmr.msra.gmra.mxu0 %vm1934_vm2, %v1467_v3  ;;  %8767 = vmatprep.subr.mxu1 %v9916_v0 }
 0x27f   : > { %8753 = vmatpush3.xpose.msk.msra.mxu0 %vm1934_vm2, %v1742_v7  ;;  %8754 = vmatprep.mubr.msk.f32.mxu0 %vm9917_vm1, %v9916_v0 }
 0x280   : > { %8760 = vmatmul.mubr.msk.f32.vlgmr.msra.gmra.mxu1 %vm1934_vm2, %v8601_v2  ;;  %8762 = vmatprep.subr.mxu0 %v9916_v0 }
 0x281   : > { %8769 = vmatprep.mubr.msk.f32.mxu1 %vm9917_vm1, %v9916_v0 }
 0x282   : > { %8755 = vmatmul.mubr.msk.f32.vlgmr.msra.gmra.mxu0 %vm1934_vm2, %v1559_v4 }
 0x283   : > { %8764 = vmatprep.mubr.msk.f32.mxu0 %vm9917_vm1, %v9916_v0 }
 0x29a   : > { %v8706_v8 = vpop.f32.mrf.mxu0  ;;  %v10318_v11 = vpop.f32.mrf.mxu1 }
 0x29b   : > { %8768 = vmatpush3.msra.mxu1 %v8706_v8 }
 0x29c   : > { %v1833_v10 = vpop.f32.mrf.mxu0  ;;  %8777 = vmatprep.subr.mxu1 %v9916_v0  ;;  %v10320_v12 = vpop.f32.mrf.mxu1 }
 0x29d   : > { %8763 = vmatpush3.msra.mxu0 %v1833_v10 }
 0x29e   : > { %8772 = vmatprep.subr.mxu0 %v9916_v0 }
 0x33c   : > { %v2083_v13 = vpop.f32.mrf.mxu1 }
 0x33d   : > { %v2240_v14 = vmul.f32 0.17677669, %v2083_v13  ;;  %v2813_v13 = vld [vmem:[%s10046_s27 + $0x78] sm:$0xff] }
 0x33e   : > { %v2007_v15 = vpop.f32.mrf.mxu0  ;;  %v8751_v16 = vpop.f32.mrf.mxu1 }
 0x33f   : > { %v2239_v17 = vmul.f32 0.17677669, %v2007_v15  ;;  %v2246_v18 = vsel %vm1934_vm2, %v2240_v14, -inf  ;;  %v7746_v15 = vld [vmem:[%s10046_s27 + $0xf8] sm:$0xff] }
 0x340   : > { %2247 = vmax.xlane.f32.xlu1 %v2246_v18  ;;  %v8746_v19 = vpop.f32.mrf.mxu0  ;;  %v2235_v20 = vpop.f32.mrf.mxu1 }
 0x341   : > { %v2242_v21 = vmul.f32 0.17677669, %v2235_v20  ;;  %v2243_v22 = vsel %vm1934_vm2, %v2239_v17, -inf  ;;  %v10359_v20 = vld [vmem:[%s10036_s12] ss:$0 sm:$0xff] }
 0x342   : > { %v8761_v23 = vpop.f32.mrf.mxu1  ;;  %2244 = vmax.xlane.f32.xlu0 %v2243_v22  ;;  %v2159_v24 = vpop.f32.mrf.mxu0 }
 0x343   : > { %v2241_v25 = vmul.f32 0.17677669, %v2159_v24  ;;  %v2252_v26 = vsel %vm1934_vm2, %v2242_v21, -inf }
 0x344   : > { %2253 = vmax.xlane.f32.xlu1 %v2252_v26  ;;  %v8756_v27 = vpop.f32.mrf.mxu0 }
 0x345   : > { %v2249_v28 = vsel %vm1934_vm2, %v2241_v25, -inf  ;;  %v10363_v27 = vld [vmem:[%s10041_s20] ss:$0 sm:$0xff] }
 0x346   : > { %2250 = vmax.xlane.f32.xlu0 %v2249_v28  ;;  %v2812_v28 = vld [vmem:[%s10046_s27 + $0x70] sm:$0xff] }
 0x3c9   : > { %v2248_v29 = vpop.xlane.xlu1 %2247 }
 0x3ca   : > { %v2256_v30 = vsub.f32 %v2240_v14, %v2248_v29  ;;  %v2580_v14 = vld [vmem:[%s11146_s3 + $0x8] sm:$0xff] }
 0x3cb   : > { %v2245_v31 = vpop.xlane.xlu0 %2244 }
 0x3cc   : > { %v2261_v32 = vmul.f32 1.442695, %v2256_v30  ;;  %v2255_v33 = vsub.f32 %v2239_v17, %v2245_v31 }
 0x3cd   : > { %v2254_v34 = vpop.xlane.xlu1 %2253 }
 0x3ce   : > { %9769 = vpow2.f32 %v2261_v32  ;;  %v2259_v35 = vmul.f32 1.442695, %v2255_v33  ;;  %v2258_v36 = vsub.f32 %v2242_v21, %v2254_v34  ;;  %v2811_v32 = vld [vmem:[%s10046_s27 + $0x68] sm:$0xff] }
 0x3cf   : > { %v2251_v37 = vpop.xlane.xlu0 %2250 }
 0x3d0   : > { %9771 = vpow2.f32 %v2259_v35  ;;  %v2265_v38 = vmul.f32 1.442695, %v2258_v36  ;;  %v2257_v39 = vsub.f32 %v2241_v25, %v2251_v37  ;;  %v2810_v36 = vld [vmem:[%s10046_s27 + $0x60] sm:$0xff]  ;;  %v7745_v37 = vld [vmem:[%s10046_s27 + $0xf0] sm:$0xff] }
 0x3d2   : > { %9773 = vpow2.f32 %v2265_v38  ;;  %v2263_v40 = vmul.f32 1.442695, %v2257_v39  ;;  %v2809_v39 = vld [vmem:[%s10046_s27 + $0x58] sm:$0xff] }
 0x3d4   : > { %9775 = vpow2.f32 %v2263_v40  ;;  %v7744_v40 = vld [vmem:[%s10046_s27 + $0xe8] sm:$0xff] }
 0x3db   : > { %v9770_v41 = vpop.eup %9769 }
 0x3dc   : > { %v2270_v42 = vsel %vm1934_vm2, %v9770_v41, 0.0 }
 0x3dd   : > { %v9772_v43 = vpop.eup %9771  ;;  %2271 = vadd.xlane.f32.xlu1 %v2270_v42  ;;  %v7743_v42 = vld [vmem:[%s10046_s27 + $0xe0] sm:$0xff] }
 0x3de   : > { %v2267_v44 = vsel %vm1934_vm2, %v9772_v43, 0.0 }
 0x3df   : > { %v9774_v45 = vpop.eup %9773  ;;  %2268 = vadd.xlane.f32.xlu0 %v2267_v44  ;;  %v7742_v44 = vld [vmem:[%s10046_s27 + $0xd8] sm:$0xff] }
 0x3e0   : > { %v2276_v46 = vsel %vm1934_vm2, %v9774_v45, 0.0 }
 0x3e1   : > { %v9776_v47 = vpop.eup %9775  ;;  %2277 = vadd.xlane.f32.xlu1 %v2276_v46  ;;  %v7741_v46 = vld [vmem:[%s10046_s27 + $0xd0] sm:$0xff] }
 0x3e2   : > { %v2273_v48 = vsel %vm1934_vm2, %v9776_v47, 0.0 }
 0x3e3   : > { %2274 = vadd.xlane.f32.xlu0 %v2273_v48  ;;  %v7740_v48 = vld [vmem:[%s10046_s27 + $0xc8] sm:$0xff] }
 0x3e5   : > { %2758 = vadd.xlane.f32.xlu1 %v1340_v49 }
 0x3e7   : > { %2756 = vadd.xlane.f32.xlu0 %v1339_v50 }
 0x466   : > { %v2272_v51 = vpop.xlane.xlu1 %2271 }
 0x467   : > { %9777 = vrcp.f32 %v2272_v51  ;;  %v2803_v51 = vld [vmem:[%s10046_s27 + $0x28] sm:$0xff] }
 0x468   : > { %v2269_v52 = vpop.xlane.xlu0 %2268 }
 0x469   : > { %9779 = vrcp.f32 %v2269_v52  ;;  %v7738_v52 = vld [vmem:[%s10046_s27 + $0xb8] sm:$0xff] }
 0x46a   : > { %v2278_v53 = vpop.xlane.xlu1 %2277 }
 0x46b   : > { %9781 = vrcp.f32 %v2278_v53 }
 0x46c   : > { %v2275_v54 = vpop.xlane.xlu0 %2274 }
 0x46d   : > { %9783 = vrcp.f32 %v2275_v54  ;;  %v2802_v54 = vld [vmem:[%s10046_s27 + $0x20] sm:$0xff] }
 0x46e   : > { %v2759_v55 = vpop.xlane.xlu1 %2758 }
 0x46f   : > { %v2761_v56 = vmul.f32 0.03125, %v2759_v55  ;;  %v7737_v55 = vld [vmem:[%s10046_s27 + $0xb0] sm:$0xff] }
 0x470   : > { %v2757_v57 = vpop.xlane.xlu0 %2756 }
 0x471   : > { %v2763_v58 = vsub.f32 %v1340_v49, %v2761_v56  ;;  %v2760_v59 = vmul.f32 0.03125, %v2757_v57  ;;  %v2804_v49 = vld [vmem:[%s10046_s27 + $0x30] sm:$0xff]  ;;  %v2801_v56 = vld [vmem:[%s10046_s27 + $0x18] sm:$0xff] }
 0x473   : > { %v2762_v60 = vsub.f32 %v1339_v50, %v2760_v59  ;;  %v10338_v61 = vsel %vm1336_vm0, %v2763_v58, 0.0  ;;  %v7739_v50 = vld [vmem:[%s10046_s27 + $0xc0] sm:$0xff]  ;;  %v7736_v58 = vld [vmem:[%s10046_s27 + $0xa8] sm:$0xff]  ;;  %v2800_v59 = vld [vmem:[%s10046_s27 + $0x10] sm:$0xff] }
 0x474   : > { %v9778_v62 = vpop.eup %9777  ;;  %v2767_v1 = vmul.f32 %v10338_v61, %v10338_v61 }
 0x475   : > { %v2284_v2 = vmul.f32 %v9778_v62, %v9770_v41  ;;  %v2764_v3 = vsel %vm1336_vm0, %v2762_v60, 0.0  ;;  %v2808_v41 = vld [vmem:[%s10046_s27 + $0x50] sm:$0xff]  ;;  %v7735_v60 = vld [vmem:[%s10046_s27 + $0xa0] sm:$0xff]  ;;  %v2799_v62 = vld [vmem:[%s10046_s27 + $0x8] sm:$0xff] }
 0x476   : > { %v9780_v4 = vpop.eup %9779  ;;  %2770 = vadd.xlane.f32.xlu1 %v2767_v1  ;;  %v2766_v5 = vmul.f32 %v2764_v3, %v2764_v3 }
 0x477   : > { %8770 = vmatmul.mubr.msk.f32.vlgmr.msra.gmra.mxu1 %vm1934_vm2, %v2284_v2  ;;  %v2283_v63 = vmul.f32 %v9780_v4, %v9772_v43  ;;  %v2807_v43 = vld [vmem:[%s10046_s27 + $0x48] sm:$0xff]  ;;  %v2798_v2 = vld [vmem:[%s10046_s27] sm:$0xff] }
 0x478   : > { %v9782_v6 = vpop.eup %9781  ;;  %8778 = vmatpush3.msra.mxu1 %v10318_v11  ;;  %2768 = vadd.xlane.f32.xlu0 %v2766_v5  ;;  %v2579_v11 = vld [vmem:[%s11146_s3] sm:$0xff]  ;;  %v7732_v5 = vld [vmem:[%s10046_s27 + $0x88] sm:$0xff]  ;;  %s11169_s3 = sld [smem:[#allocation27_spill]] }
 0x479   : > { %8765 = vmatmul.mubr.msk.f32.vlgmr.msra.gmra.mxu0 %vm1934_vm2, %v2283_v63  ;;  %8779 = vmatprep.mubr.msk.f32.mxu1 %vm9917_vm1, %v9916_v0  ;;  %v2286_v7 = vmul.f32 %v9782_v6, %v9774_v45  ;;  %v2806_v45 = vld [vmem:[%s10046_s27 + $0x40] sm:$0xff]  ;;  %v2996_v63 = vld [vmem:[%s11145_s4 + $0x78] sm:$0xff] }
 0x47a   : > { %v9784_v8 = vpop.eup %9783  ;;  %8773 = vmatpush3.msra.mxu0 %v10320_v12  ;;  %8774 = vmatprep.mubr.msk.f32.mxu0 %vm9917_vm1, %v9916_v0  ;;  %v7731_v6 = vld [vmem:[%s10046_s27 + $0x80] sm:$0xff] }
 0x47b   : > { %8780 = vmatmul.mubr.msk.f32.vlgmr.msra.gmra.mxu1 %vm1934_vm2, %v2286_v7  ;;  %v2285_v10 = vmul.f32 %v9784_v8, %v9776_v47  ;;  %8782 = vmatprep.subr.mxu0 %v2579_v11  ;;  %v2805_v47 = vld [vmem:[%s10046_s27 + $0x38] sm:$0xff]  ;;  %v2995_v7 = vld [vmem:[%s11145_s4 + $0x70] sm:$0xff]  ;;  %v2994_v8 = vld [vmem:[%s11145_s4 + $0x68] sm:$0xff] }
 0x47c   : > { %8787 = vmatprep.subr.mxu1 %v2580_v14 }
 0x47d   : > { %8775 = vmatmul.mubr.msk.f32.vlgmr.msra.gmra.mxu0 %vm1934_vm2, %v2285_v10  ;;  %8788 = vmatpush3.msra.mxu1 %v2580_v14  ;;  %v7762_v10 = vld [vmem:[%s11145_s4 + $0xf8] sm:$0xff] }
 0x47e   : > { %8783 = vmatpush3.msra.mxu0 %v2579_v11  ;;  %8827 = vmatprep.subr.mxu1 %v7746_v15  ;;  %v2993_v11 = vld [vmem:[%s11145_s4 + $0x60] sm:$0xff]  ;;  %v2992_v14 = vld [vmem:[%s11145_s4 + $0x58] sm:$0xff] }
 0x47f   : > { %8792 = vmatprep.subr.mxu0 %v2813_v13 }
 0x4ff   : > { %v2771_v21 = vpop.xlane.xlu1 %2770 }
 0x500   : > { %v2773_v24 = vmul.f32 0.03125, %v2771_v21  ;;  %v2988_v21 = vld [vmem:[%s11145_s4 + $0x38] sm:$0xff] }
 0x501   : > { %v2769_v12 = vpop.xlane.xlu0 %2768 }
 0x502   : > { %v2772_v16 = vmul.f32 0.03125, %v2769_v12  ;;  %v2775_v33 = vadd.f32 1e-05, %v2773_v24  ;;  %v2991_v12 = vld [vmem:[%s11145_s4 + $0x50] sm:$0xff]  ;;  %v7755_v24 = vld [vmem:[%s11145_s4 + $0xc0] sm:$0xff] }
 0x504   : > { %v2774_v17 = vadd.f32 1e-05, %v2772_v16  ;;  %v7759_v16 = vld [vmem:[%s11145_s4 + $0xe0] sm:$0xff] }
 0x506   : > { %9785 = vrsqrt.f32 %v2774_v17  ;;  %v2990_v17 = vld [vmem:[%s11145_s4 + $0x48] sm:$0xff] }
 0x507   : > { %9787 = vrsqrt.f32 %v2775_v33  ;;  %v7751_v33 = vld [vmem:[%s11145_s4 + $0xa0] sm:$0xff] }
 0x513   : > { %v9786_v18 = vpop.eup %9785 }
 0x514   : > { %v2778_v19 = vmul.f32 %v9786_v18, %v2764_v3  ;;  %v9788_v53 = vpop.eup %9787  ;;  %v7733_v3 = vld [vmem:[%s10046_s27 + $0x90] sm:$0xff]  ;;  %v7758_v18 = vld [vmem:[%s11145_s4 + $0xd8] sm:$0xff] }
 0x515   : > { %v2779_v57 = vmul.f32 %v9788_v53, %v10338_v61  ;;  %v7734_v61 = vld [vmem:[%s10046_s27 + $0x98] sm:$0xff] }
 0x516   : > { %v2787_v22 = vmul.f32 %v10359_v20, %v2778_v19  ;;  %v2989_v19 = vld [vmem:[%s11145_s4 + $0x40] sm:$0xff]  ;;  %v3171_v53 = vld [vmem:[%s10056_s6 + $0x38] sm:$0xff] }
 0x517   : > { %v2788_v1 = vmul.f32 %v10359_v20, %v2779_v57  ;;  %v7757_v20 = vld [vmem:[%s11145_s4 + $0xd0] sm:$0xff]  ;;  %v3169_v57 = vld [vmem:[%s10056_s6 + $0x28] sm:$0xff] }
 0x518   : > { %v10368_v29 = vadd.f32 %v10363_v27, %v2787_v22  ;;  %v7756_v22 = vld [vmem:[%s11145_s4 + $0xc8] sm:$0xff] }
 0x519   : > { %v10405_v4 = vadd.f32 %v10363_v27, %v2788_v1  ;;  %v2985_v27 = vld [vmem:[%s11145_s4 + $0x20] sm:$0xff]  ;;  %v7768_v1 = vld [vmem:[%s10056_s6 + $0xa8] sm:$0xff] }
 0x537   : > { %v2429_v23 = vpop.f32.mrf.mxu1 }
 0x539   : > { %v2356_v25 = vpop.f32.mrf.mxu0  ;;  %v8771_v26 = vpop.f32.mrf.mxu1 }
 0x53a   : > { %8784 = vmatprep.mubr.msk.f32.mxu0 %vm1934_vm2, %v2356_v25  ;;  %v2986_v25 = vld [vmem:[%s11145_s4 + $0x28] sm:$0xff]  ;;  %v7754_v26 = vld [vmem:[%s11145_s4 + $0xb8] sm:$0xff] }
 0x53b   : > { %v8766_v30 = vpop.f32.mrf.mxu0  ;;  %v2575_v31 = vpop.f32.mrf.mxu1  ;;  %8785 = vmatmul.mubr.msk.f32.vlgmr.msra.gmra.mxu0 %vm1934_vm2, %v2429_v23  ;;  %v2987_v23 = vld [vmem:[%s11145_s4 + $0x30] sm:$0xff] }
 0x53c   : > { %8793 = vmatpush3.msra.mxu0 %v2813_v13  ;;  %8824 = vmatprep.mubr.f32.mxu0 %v10368_v29  ;;  %v7761_v13 = vld [vmem:[%s11145_s4 + $0xf0] sm:$0xff]  ;;  %v2984_v30 = vld [vmem:[%s11145_s4 + $0x18] sm:$0xff] }
 0x53d   : > { %8794 = vmatprep.subr.mxu0 %v2812_v28  ;;  %v2502_v34 = vpop.f32.mrf.mxu0  ;;  %v8781_v35 = vpop.f32.mrf.mxu1 }
 0x53e   : > { %8795 = vmatpush3.msra.mxu0 %v2812_v28  ;;  %8789 = vmatprep.mubr.msk.f32.mxu1 %vm1934_vm2, %v2502_v34  ;;  %v7753_v28 = vld [vmem:[%s11145_s4 + $0xb0] sm:$0xff]  ;;  %v2982_v34 = vld [vmem:[%s11145_s4 + $0x8] sm:$0xff]  ;;  %v7750_v35 = vld [vmem:[%s11145_s4 + $0x98] sm:$0xff] }
 0x53f   : > { %8796 = vmatprep.subr.mxu0 %v2811_v32  ;;  %v8776_v38 = vpop.f32.mrf.mxu0  ;;  %8790 = vmatmul.mubr.msk.f32.vlgmr.msra.gmra.mxu1 %vm1934_vm2, %v2575_v31  ;;  %v7752_v31 = vld [vmem:[%s11145_s4 + $0xa8] sm:$0xff] }
 0x540   : > { %8797 = vmatpush3.msra.mxu0 %v2811_v32  ;;  %8828 = vmatpush3.msra.mxu1 %v7746_v15  ;;  %v7760_v15 = vld [vmem:[%s11145_s4 + $0xe8] sm:$0xff]  ;;  %v2983_v32 = vld [vmem:[%s11145_s4 + $0x10] sm:$0xff] }
 0x541   : > { %8798 = vmatprep.subr.mxu0 %v2810_v36  ;;  %8829 = vmatprep.subr.mxu1 %v7745_v37  ;;  %v7748_v38 = vld [vmem:[%s11145_s4 + $0x88] sm:$0xff] }
 0x542   : > { %8859 = vmatprep.mubr.f32.mxu1 %v10368_v29  ;;  %8799 = vmatpush3.msra.mxu0 %v2810_v36  ;;  %v2981_v36 = vld [vmem:[%s11145_s4] sm:$0xff] }
 0x543   : > { %8830 = vmatpush3.msra.mxu1 %v7745_v37  ;;  %8800 = vmatprep.subr.mxu0 %v2809_v39  ;;  %v7749_v37 = vld [vmem:[%s11145_s4 + $0x90] sm:$0xff] }
 0x544   : > { %8831 = vmatprep.subr.mxu1 %v7744_v40  ;;  %8801 = vmatpush3.msra.mxu0 %v2809_v39  ;;  %v3179_v39 = vld [vmem:[%s10056_s6 + $0x78] sm:$0xff] }
 0x545   : > { %8832 = vmatpush3.msra.mxu1 %v7744_v40  ;;  %8802 = vmatprep.subr.mxu0 %v2808_v41  ;;  %v7747_v40 = vld [vmem:[%s11145_s4 + $0x80] sm:$0xff]  ;;  %s11170_s4 = sld [smem:[#allocation13_spill]] }
 0x546   : > { %8833 = vmatprep.subr.mxu1 %v7743_v42  ;;  %8803 = vmatpush3.msra.mxu0 %v2808_v41  ;;  %v3178_v41 = vld [vmem:[%s10056_s6 + $0x70] sm:$0xff] }
 0x547   : > { %8834 = vmatpush3.msra.mxu1 %v7743_v42  ;;  %8804 = vmatprep.subr.mxu0 %v2807_v43  ;;  %v3177_v42 = vld [vmem:[%s10056_s6 + $0x68] sm:$0xff] }
 0x548   : > { %8835 = vmatprep.subr.mxu1 %v7742_v44  ;;  %8805 = vmatpush3.msra.mxu0 %v2807_v43  ;;  %v7778_v43 = vld [vmem:[%s10056_s6 + $0xf8] sm:$0xff] }
 0x549   : > { %8836 = vmatpush3.msra.mxu1 %v7742_v44  ;;  %8806 = vmatprep.subr.mxu0 %v2806_v45  ;;  %v3176_v44 = vld [vmem:[%s10056_s6 + $0x60] sm:$0xff] }
 0x54a   : > { %8837 = vmatprep.subr.mxu1 %v7741_v46  ;;  %8807 = vmatpush3.msra.mxu0 %v2806_v45  ;;  %v7777_v45 = vld [vmem:[%s10056_s6 + $0xf0] sm:$0xff] }
 0x54b   : > { %8838 = vmatpush3.msra.mxu1 %v7741_v46  ;;  %8808 = vmatprep.subr.mxu0 %v2805_v47  ;;  %v3175_v46 = vld [vmem:[%s10056_s6 + $0x58] sm:$0xff] }
 0x54c   : > { %8839 = vmatprep.subr.mxu1 %v7740_v48  ;;  %8809 = vmatpush3.msra.mxu0 %v2805_v47  ;;  %v7776_v47 = vld [vmem:[%s10056_s6 + $0xe8] sm:$0xff] }
 0x54d   : > { %8840 = vmatpush3.msra.mxu1 %v7740_v48  ;;  %8810 = vmatprep.subr.mxu0 %v2804_v49  ;;  %v3174_v48 = vld [vmem:[%s10056_s6 + $0x50] sm:$0xff] }
 0x54e   : > { %8841 = vmatprep.subr.mxu1 %v7739_v50  ;;  %8811 = vmatpush3.msra.mxu0 %v2804_v49  ;;  %v7775_v49 = vld [vmem:[%s10056_s6 + $0xe0] sm:$0xff] }
 0x54f   : > { %8842 = vmatpush3.msra.mxu1 %v7739_v50  ;;  %8812 = vmatprep.subr.mxu0 %v2803_v51  ;;  %v3173_v50 = vld [vmem:[%s10056_s6 + $0x48] sm:$0xff] }
 0x550   : > { %8843 = vmatprep.subr.mxu1 %v7738_v52  ;;  %8813 = vmatpush3.msra.mxu0 %v2803_v51  ;;  %v7774_v51 = vld [vmem:[%s10056_s6 + $0xd8] sm:$0xff] }
 0x551   : > { %8844 = vmatpush3.msra.mxu1 %v7738_v52  ;;  %8814 = vmatprep.subr.mxu0 %v2802_v54  ;;  %v7773_v52 = vld [vmem:[%s10056_s6 + $0xd0] sm:$0xff] }
 0x552   : > { %8845 = vmatprep.subr.mxu1 %v7737_v55  ;;  %8815 = vmatpush3.msra.mxu0 %v2802_v54  ;;  %v7772_v54 = vld [vmem:[%s10056_s6 + $0xc8] sm:$0xff] }
 0x553   : > { %8846 = vmatpush3.msra.mxu1 %v7737_v55  ;;  %8816 = vmatprep.subr.mxu0 %v2801_v56  ;;  %v3170_v55 = vld [vmem:[%s10056_s6 + $0x30] sm:$0xff] }
 0x554   : > { %8847 = vmatprep.subr.mxu1 %v7736_v58  ;;  %8817 = vmatpush3.msra.mxu0 %v2801_v56  ;;  %v7771_v56 = vld [vmem:[%s10056_s6 + $0xc0] sm:$0xff] }
 0x555   : > { %8848 = vmatpush3.msra.mxu1 %v7736_v58  ;;  %8818 = vmatprep.subr.mxu0 %v2800_v59  ;;  %v7770_v58 = vld [vmem:[%s10056_s6 + $0xb8] sm:$0xff] }
 0x556   : > { %8849 = vmatprep.subr.mxu1 %v7735_v60  ;;  %8819 = vmatpush3.msra.mxu0 %v2800_v59  ;;  %v3168_v59 = vld [vmem:[%s10056_s6 + $0x20] sm:$0xff] }
 0x557   : > { %8850 = vmatpush3.msra.mxu1 %v7735_v60  ;;  %8820 = vmatprep.subr.mxu0 %v2799_v62  ;;  %v7769_v60 = vld [vmem:[%s10056_s6 + $0xb0] sm:$0xff] }
 0x558   : > { %8851 = vmatprep.subr.mxu1 %v7734_v61  ;;  %8821 = vmatpush3.msra.mxu0 %v2799_v62  ;;  %v3167_v62 = vld [vmem:[%s10056_s6 + $0x18] sm:$0xff] }
 0x559   : > { %8852 = vmatpush3.msra.mxu1 %v7734_v61  ;;  %8822 = vmatprep.subr.mxu0 %v2798_v2  ;;  %v3166_v61 = vld [vmem:[%s10056_s6 + $0x10] sm:$0xff] }
 0x55a   : > { %8853 = vmatprep.subr.mxu1 %v7733_v3  ;;  %8823 = vmatpush3.msra.mxu0 %v2798_v2  ;;  %v7767_v2 = vld [vmem:[%s10056_s6 + $0xa0] sm:$0xff] }
 0x55b   : > { %8854 = vmatpush3.msra.mxu1 %v7733_v3  ;;  %8825 = vmatmul.mubr.f32.vlgmr.msra.gmra.mxu0 %v10405_v4  ;;  %v3165_v3 = vld [vmem:[%s10056_s6 + $0x8] sm:$0xff] }
 0x55c   : > { %8855 = vmatprep.subr.mxu1 %v7732_v5  ;;  %8862 = vmatprep.subr.mxu0 %v2996_v63 }
 0x55d   : > { %8856 = vmatpush3.msra.mxu1 %v7732_v5  ;;  %8863 = vmatpush3.msra.mxu0 %v2996_v63  ;;  %v7766_v5 = vld [vmem:[%s10056_s6 + $0x98] sm:$0xff]  ;;  %v3164_v63 = vld [vmem:[%s10056_s6] sm:$0xff] }
 0x55e   : > { %8894 = vmatprep.mubr.f32.mxu0 %v10368_v29  ;;  %8857 = vmatprep.subr.mxu1 %v7731_v6 }
 0x55f   : > { %8864 = vmatprep.subr.mxu0 %v2995_v7  ;;  %8858 = vmatpush3.msra.mxu1 %v7731_v6  ;;  %v7765_v6 = vld [vmem:[%s10056_s6 + $0x90] sm:$0xff] }
 0x560   : > { %8865 = vmatpush3.msra.mxu0 %v2995_v7  ;;  %8860 = vmatmul.mubr.f32.vlgmr.msra.gmra.mxu1 %v10405_v4  ;;  %v7764_v7 = vld [vmem:[%s10056_s6 + $0x88] sm:$0xff] }
 0x561   : > { %8866 = vmatprep.subr.mxu0 %v2994_v8  ;;  %8897 = vmatprep.subr.mxu1 %v7762_v10 }
 0x562   : > { %8867 = vmatpush3.msra.mxu0 %v2994_v8  ;;  %8898 = vmatpush3.msra.mxu1 %v7762_v10  ;;  %v7763_v8 = vld [vmem:[%s10056_s6 + $0x80] sm:$0xff] }
 0x563   : > { %8929 = vmatprep.mubr.f32.mxu1 %v10368_v29  ;;  %8868 = vmatprep.subr.mxu0 %v2993_v11 }
 0x564   : > { %8899 = vmatprep.subr.mxu1 %v7761_v13  ;;  %8869 = vmatpush3.msra.mxu0 %v2993_v11 }
 0x565   : > { %8900 = vmatpush3.msra.mxu1 %v7761_v13  ;;  %8870 = vmatprep.subr.mxu0 %v2992_v14 }
 0x566   : > { %8901 = vmatprep.subr.mxu1 %v7760_v15  ;;  %8871 = vmatpush3.msra.mxu0 %v2992_v14 }
 0x567   : > { %8902 = vmatpush3.msra.mxu1 %v7760_v15  ;;  %8872 = vmatprep.subr.mxu0 %v2991_v12 }
 0x568   : > { %8903 = vmatprep.subr.mxu1 %v7759_v16  ;;  %8873 = vmatpush3.msra.mxu0 %v2991_v12 }
 0x569   : > { %8904 = vmatpush3.msra.mxu1 %v7759_v16  ;;  %8874 = vmatprep.subr.mxu0 %v2990_v17 }
 0x56a   : > { %8905 = vmatprep.subr.mxu1 %v7758_v18  ;;  %8875 = vmatpush3.msra.mxu0 %v2990_v17 }
 0x56b   : > { %8906 = vmatpush3.msra.mxu1 %v7758_v18  ;;  %8876 = vmatprep.subr.mxu0 %v2989_v19 }
 0x56c   : > { %8907 = vmatprep.subr.mxu1 %v7757_v20  ;;  %8877 = vmatpush3.msra.mxu0 %v2989_v19 }
 0x56d   : > { %8908 = vmatpush3.msra.mxu1 %v7757_v20  ;;  %8878 = vmatprep.subr.mxu0 %v2988_v21 }
 0x56e   : > { %8909 = vmatprep.subr.mxu1 %v7756_v22  ;;  %8879 = vmatpush3.msra.mxu0 %v2988_v21 }
 0x56f   : > { %8910 = vmatpush3.msra.mxu1 %v7756_v22  ;;  %8880 = vmatprep.subr.mxu0 %v2987_v23 }
 0x570   : > { %8911 = vmatprep.subr.mxu1 %v7755_v24  ;;  %8881 = vmatpush3.msra.mxu0 %v2987_v23 }
 0x571   : > { %8912 = vmatpush3.msra.mxu1 %v7755_v24  ;;  %8882 = vmatprep.subr.mxu0 %v2986_v25 }
 0x572   : > { %8913 = vmatprep.subr.mxu1 %v7754_v26  ;;  %8883 = vmatpush3.msra.mxu0 %v2986_v25 }
 0x573   : > { %8914 = vmatpush3.msra.mxu1 %v7754_v26  ;;  %8884 = vmatprep.subr.mxu0 %v2985_v27 }
 0x574   : > { %8915 = vmatprep.subr.mxu1 %v7753_v28  ;;  %8885 = vmatpush3.msra.mxu0 %v2985_v27 }
 0x575   : > { %8916 = vmatpush3.msra.mxu1 %v7753_v28  ;;  %8886 = vmatprep.subr.mxu0 %v2984_v30 }
 0x576   : > { %8917 = vmatprep.subr.mxu1 %v7752_v31  ;;  %8887 = vmatpush3.msra.mxu0 %v2984_v30 }
 0x577   : > { %8918 = vmatpush3.msra.mxu1 %v7752_v31  ;;  %8888 = vmatprep.subr.mxu0 %v2983_v32 }
 0x578   : > { %8919 = vmatprep.subr.mxu1 %v7751_v33  ;;  %8889 = vmatpush3.msra.mxu0 %v2983_v32 }
 0x579   : > { %8920 = vmatpush3.msra.mxu1 %v7751_v33  ;;  %8890 = vmatprep.subr.mxu0 %v2982_v34 }
 0x57a   : > { %8921 = vmatprep.subr.mxu1 %v7750_v35  ;;  %8891 = vmatpush3.msra.mxu0 %v2982_v34 }
 0x57b   : > { %8922 = vmatpush3.msra.mxu1 %v7750_v35  ;;  %8892 = vmatprep.subr.mxu0 %v2981_v36 }
 0x57c   : > { %8923 = vmatprep.subr.mxu1 %v7749_v37  ;;  %8893 = vmatpush3.msra.mxu0 %v2981_v36 }
 0x57d   : > { %8924 = vmatpush3.msra.mxu1 %v7749_v37  ;;  %8895 = vmatmul.mubr.f32.vlgmr.msra.gmra.mxu0 %v10405_v4 }
 0x57e   : > { %8925 = vmatprep.subr.mxu1 %v7748_v38  ;;  %8932 = vmatprep.subr.mxu0 %v3179_v39 }
 0x57f   : > { %8926 = vmatpush3.msra.mxu1 %v7748_v38  ;;  %8933 = vmatpush3.msra.mxu0 %v3179_v39 }
 0x580   : > { %8964 = vmatprep.mubr.f32.mxu0 %v10368_v29  ;;  %8927 = vmatprep.subr.mxu1 %v7747_v40 }
 0x581   : > { %8934 = vmatprep.subr.mxu0 %v3178_v41  ;;  %8928 = vmatpush3.msra.mxu1 %v7747_v40 }
 0x582   : > { %8935 = vmatpush3.msra.mxu0 %v3178_v41  ;;  %8930 = vmatmul.mubr.f32.vlgmr.msra.gmra.mxu1 %v10405_v4 }
 0x583   : > { %8936 = vmatprep.subr.mxu0 %v3177_v42  ;;  %8967 = vmatprep.subr.mxu1 %v7778_v43 }
 0x584   : > { %8937 = vmatpush3.msra.mxu0 %v3177_v42  ;;  %8968 = vmatpush3.msra.mxu1 %v7778_v43 }
 0x585   : > { %8999 = vmatprep.mubr.f32.mxu1 %v10368_v29  ;;  %8938 = vmatprep.subr.mxu0 %v3176_v44  ;;  %v3172_v29 = vld [vmem:[%s10056_s6 + $0x40] sm:$0xff] }
 0x586   : > { %8969 = vmatprep.subr.mxu1 %v7777_v45  ;;  %8939 = vmatpush3.msra.mxu0 %v3176_v44 }
 0x587   : > { %8970 = vmatpush3.msra.mxu1 %v7777_v45  ;;  %8940 = vmatprep.subr.mxu0 %v3175_v46 }
 0x588   : > { %8971 = vmatprep.subr.mxu1 %v7776_v47  ;;  %8941 = vmatpush3.msra.mxu0 %v3175_v46 }
 0x589   : > { %8972 = vmatpush3.msra.mxu1 %v7776_v47  ;;  %8942 = vmatprep.subr.mxu0 %v3174_v48 }
 0x58a   : > { %8973 = vmatprep.subr.mxu1 %v7775_v49  ;;  %8943 = vmatpush3.msra.mxu0 %v3174_v48 }
 0x58b   : > { %8974 = vmatpush3.msra.mxu1 %v7775_v49  ;;  %8944 = vmatprep.subr.mxu0 %v3173_v50 }
 0x58c   : > { %8975 = vmatprep.subr.mxu1 %v7774_v51  ;;  %8945 = vmatpush3.msra.mxu0 %v3173_v50 }
 0x58d   : > { %8976 = vmatpush3.msra.mxu1 %v7774_v51  ;;  %8946 = vmatprep.subr.mxu0 %v3172_v29 }
 0x58e   : > { %8977 = vmatprep.subr.mxu1 %v7773_v52  ;;  %8947 = vmatpush3.msra.mxu0 %v3172_v29 }
 0x58f   : > { %8978 = vmatpush3.msra.mxu1 %v7773_v52  ;;  %8948 = vmatprep.subr.mxu0 %v3171_v53 }
 0x590   : > { %8979 = vmatprep.subr.mxu1 %v7772_v54  ;;  %8949 = vmatpush3.msra.mxu0 %v3171_v53 }
 0x591   : > { %8980 = vmatpush3.msra.mxu1 %v7772_v54  ;;  %8950 = vmatprep.subr.mxu0 %v3170_v55 }
 0x592   : > { %8981 = vmatprep.subr.mxu1 %v7771_v56  ;;  %8951 = vmatpush3.msra.mxu0 %v3170_v55 }
 0x593   : > { %8982 = vmatpush3.msra.mxu1 %v7771_v56  ;;  %8952 = vmatprep.subr.mxu0 %v3169_v57 }
 0x594   : > { %8983 = vmatprep.subr.mxu1 %v7770_v58  ;;  %8953 = vmatpush3.msra.mxu0 %v3169_v57 }
 0x595   : > { %8984 = vmatpush3.msra.mxu1 %v7770_v58  ;;  %8954 = vmatprep.subr.mxu0 %v3168_v59  ;;  %v7728_v58 = vld [vmem:[%s9966_s8] ss:$0 sm:$0xff] }
 0x596   : > { %8985 = vmatprep.subr.mxu1 %v7769_v60  ;;  %8955 = vmatpush3.msra.mxu0 %v3168_v59 }
 0x597   : > { %8986 = vmatpush3.msra.mxu1 %v7769_v60  ;;  %8956 = vmatprep.subr.mxu0 %v3167_v62 }
 0x598   : > { %8987 = vmatprep.subr.mxu1 %v7768_v1  ;;  %8957 = vmatpush3.msra.mxu0 %v3167_v62 }
 0x599   : > { %8988 = vmatpush3.msra.mxu1 %v7768_v1  ;;  %8958 = vmatprep.subr.mxu0 %v3166_v61 }
 0x59a   : > { %8989 = vmatprep.subr.mxu1 %v7767_v2  ;;  %8959 = vmatpush3.msra.mxu0 %v3166_v61 }
 0x59b   : > { %8990 = vmatpush3.msra.mxu1 %v7767_v2  ;;  %8960 = vmatprep.subr.mxu0 %v3165_v3 }
 0x59c   : > { %8991 = vmatprep.subr.mxu1 %v7766_v5  ;;  %8961 = vmatpush3.msra.mxu0 %v3165_v3 }
 0x59d   : > { %8992 = vmatpush3.msra.mxu1 %v7766_v5  ;;  %8962 = vmatprep.subr.mxu0 %v3164_v63  ;;  %v9861_v5 = vld [vmem:[%s10155_s28 + $0x8] sm:$0xff] }
 0x59e   : > { %8993 = vmatprep.subr.mxu1 %v7765_v6  ;;  %8963 = vmatpush3.msra.mxu0 %v3164_v63 }
 0x59f   : > { %8994 = vmatpush3.msra.mxu1 %v7765_v6  ;;  %8965 = vmatmul.mubr.f32.vlgmr.msra.gmra.mxu0 %v10405_v4  ;;  %v9862_v6 = vld [vmem:[%s10155_s28] sm:$0xff]  ;;  %s11156_s28 = sld [smem:[#allocation19_spill]] }
 0x5a0   : > { %8995 = vmatprep.subr.mxu1 %v7764_v7  ;;  %9002 = vmatprep.subr.mxu0 %v9916_v0 }
 0x5a1   : > { %8996 = vmatpush3.msra.mxu1 %v7764_v7  ;;  %9004 = vmatprep.mubr.msk.f32.mxu0 %vm9917_vm1, %v9916_v0 }
 0x5a2   : > { %8997 = vmatprep.subr.mxu1 %v7763_v8 }
 0x5a3   : > { %8998 = vmatpush3.msra.mxu1 %v7763_v8 }
 0x5a4   : > { %9000 = vmatmul.mubr.f32.vlgmr.msra.gmra.mxu1 %v10405_v4  ;;  %9007 = vmatprep.subr.mxu1 %v9916_v0 }
 0x5a5   : > { %9009 = vmatprep.mubr.msk.f32.mxu1 %vm9917_vm1, %v9916_v0 }
 0x5fb   : > { %v8786_v10 = vpop.f32.mrf.mxu0 }
 0x5fd   : > { %v2653_v14 = vpop.f32.mrf.mxu0 }
 0x5ff   : > { %v8791_v11 = vpop.f32.mrf.mxu1 }
 0x600   : > { %v10489_v13 = vadd.f32 %v8791_v11, %v8786_v10 }
 0x601   : > { %v2734_v15 = vpop.f32.mrf.mxu1 }
 0x602   : > { %v10491_v12 = vadd.f32 %v2734_v15, %v2653_v14  ;;  %v2753_v62 = vadd.f32 %v7728_v58, %v10489_v13 }
 0x604   : > { %v2752_v2 = vadd.f32 %v7728_v58, %v10491_v12  ;;  %v10531_v63 = vadd.f32 %v9861_v5, %v2753_v62  ;;  %v7811_v58 = vld [vmem:[%s11148_s7 + $0xe8] sm:$0xff]  ;;  %v4249_v62 = vld [vmem:[%s11148_s7 + $0x58] sm:$0xff] }
 0x605   : > { %v7807_v5 = vld [vmem:[%s11148_s7 + $0xc8] sm:$0xff] }
 0x606   : > { %v10535_v7 = vadd.f32 %v9862_v6, %v2752_v2  ;;  %v7808_v2 = vld [vmem:[%s11148_s7 + $0xd0] sm:$0xff]  ;;  %v4246_v6 = vld [vmem:[%s11148_s7 + $0x40] sm:$0xff] }
 0x61b   : > { %v8826_v16 = vpop.f32.mrf.mxu0 }
 0x61d   : > { %v2880_v17 = vpop.f32.mrf.mxu0 }
 0x620   : > { %v8861_v18 = vpop.f32.mrf.mxu1 }
 0x622   : > { %v2972_v20 = vpop.f32.mrf.mxu1 }
 0x63d   : > { %v8896_v19 = vpop.f32.mrf.mxu0 }
 0x63e   : > { %9008 = vmatpush3.xpose.msk.msra.mxu1 %vm1934_vm2, %v8896_v19 }
 0x63f   : > { %v3063_v4 = vpop.f32.mrf.mxu0  ;;  %9017 = vmatprep.subr.mxu1 %v9916_v0 }
 0x640   : > { %9003 = vmatpush3.xpose.msk.msra.mxu0 %vm1934_vm2, %v3063_v4 }
 0x641   : > { %9010 = vmatmul.mubr.msk.f32.vlgmr.msra.gmra.mxu1 %vm1934_vm2, %v8826_v16  ;;  %9012 = vmatprep.subr.mxu0 %v9916_v0 }
 0x642   : > { %v8931_v21 = vpop.f32.mrf.mxu1  ;;  %9019 = vmatprep.mubr.msk.f32.mxu1 %vm9917_vm1, %v9916_v0 }
 0x643   : > { %9018 = vmatpush3.xpose.msk.msra.mxu1 %vm1934_vm2, %v8931_v21  ;;  %9005 = vmatmul.mubr.msk.f32.vlgmr.msra.gmra.mxu0 %vm1934_vm2, %v2880_v17  ;;  %v3992_v21 = vld [vmem:[%s11147_s2 + $0x8] sm:$0xff] }
 0x644   : > { %v3155_v22 = vpop.f32.mrf.mxu1  ;;  %9014 = vmatprep.mubr.msk.f32.mxu0 %vm9917_vm1, %v9916_v0  ;;  %9027 = vmatprep.subr.mxu1 %v9916_v0 }
 0x645   : > { %9013 = vmatpush3.xpose.msk.msra.mxu0 %vm1934_vm2, %v3155_v22 }
 0x646   : > { %9020 = vmatmul.mubr.msk.f32.vlgmr.msra.gmra.mxu1 %vm1934_vm2, %v8861_v18  ;;  %9022 = vmatprep.subr.mxu0 %v9916_v0 }
 0x647   : > { %9029 = vmatprep.mubr.msk.f32.mxu1 %vm9917_vm1, %v9916_v0 }
 0x648   : > { %9015 = vmatmul.mubr.msk.f32.vlgmr.msra.gmra.mxu0 %vm1934_vm2, %v2972_v20  ;;  %v3991_v20 = vld [vmem:[%s11147_s2] sm:$0xff]  ;;  %s11165_s2 = sld [smem:[#allocation10_spill]] }
 0x649   : > { %9024 = vmatprep.mubr.msk.f32.mxu0 %vm9917_vm1, %v9916_v0 }
 0x65f   : > { %v8966_v23 = vpop.f32.mrf.mxu0 }
 0x660   : > { %9028 = vmatpush3.msra.mxu1 %v8966_v23 }
 0x661   : > { %v3246_v24 = vpop.f32.mrf.mxu0  ;;  %9037 = vmatprep.subr.mxu1 %v9916_v0 }
 0x662   : > { %9023 = vmatpush3.msra.mxu0 %v3246_v24 }
 0x663   : > { %9032 = vmatprep.subr.mxu0 %v9916_v0 }
 0x664   : > { %v10515_v25 = vpop.f32.mrf.mxu1 }
 0x666   : > { %v10517_v26 = vpop.f32.mrf.mxu1 }
 0x701   : > { %v3495_v27 = vpop.f32.mrf.mxu1 }
 0x702   : > { %v3652_v28 = vmul.f32 0.17677669, %v3495_v27 }
 0x703   : > { %v3419_v30 = vpop.f32.mrf.mxu0  ;;  %v9011_v31 = vpop.f32.mrf.mxu1 }
 0x704   : > { %v3651_v32 = vmul.f32 0.17677669, %v3419_v30  ;;  %v3658_v33 = vsel %vm1934_vm2, %v3652_v28, -inf  ;;  %v4253_v31 = vld [vmem:[%s11148_s7 + $0x78] sm:$0xff] }
 0x705   : > { %3659 = vmax.xlane.f32.xlu1 %v3658_v33  ;;  %v9006_v34 = vpop.f32.mrf.mxu0 }
 0x706   : > { %v3647_v35 = vpop.f32.mrf.mxu1  ;;  %v3655_v36 = vsel %vm1934_vm2, %v3651_v32, -inf }
 0x707   : > { %v3654_v37 = vmul.f32 0.17677669, %v3647_v35  ;;  %3656 = vmax.xlane.f32.xlu0 %v3655_v36 }
 0x708   : > { %v9021_v38 = vpop.f32.mrf.mxu1  ;;  %v3571_v39 = vpop.f32.mrf.mxu0 }
 0x709   : > { %v3653_v40 = vmul.f32 0.17677669, %v3571_v39  ;;  %v3664_v41 = vsel %vm1934_vm2, %v3654_v37, -inf  ;;  %v7795_v39 = vld [vmem:[%s11149_s10] ss:$0 sm:$0xff]  ;;  %s11158_s10 = sld [smem:[#allocation22_spill]] }
 0x70a   : > { %3665 = vmax.xlane.f32.xlu1 %v3664_v41  ;;  %v9016_v42 = vpop.f32.mrf.mxu0 }
 0x70b   : > { %v3661_v43 = vsel %vm1934_vm2, %v3653_v40, -inf }
 0x70c   : > { %3662 = vmax.xlane.f32.xlu0 %v3661_v43 }
 0x78e   : > { %v3660_v44 = vpop.xlane.xlu1 %3659 }
 0x78f   : > { %v3668_v45 = vsub.f32 %v3652_v28, %v3660_v44 }
 0x790   : > { %v3657_v46 = vpop.xlane.xlu0 %3656 }
 0x791   : > { %v3673_v47 = vmul.f32 1.442695, %v3668_v45  ;;  %v3667_v48 = vsub.f32 %v3651_v32, %v3657_v46  ;;  %v7813_v32 = vld [vmem:[%s11148_s7 + $0xf8] sm:$0xff] }
 0x793   : > { %9789 = vpow2.f32 %v3673_v47  ;;  %v3671_v49 = vmul.f32 1.442695, %v3667_v48  ;;  %v3666_v50 = vpop.xlane.xlu1 %3665  ;;  %v9863_v48 = vld [vmem:[%s10330_s1 + $0x8] sm:$0xff] }
 0x794   : > { %v3670_v51 = vsub.f32 %v3654_v37, %v3666_v50 }
 0x795   : > { %9791 = vpow2.f32 %v3671_v49  ;;  %v3663_v29 = vpop.xlane.xlu0 %3662 }
 0x796   : > { %v3677_v52 = vmul.f32 1.442695, %v3670_v51  ;;  %v3669_v53 = vsub.f32 %v3653_v40, %v3663_v29  ;;  %v9864_v51 = vld [vmem:[%s10330_s1] sm:$0xff]  ;;  %s11157_s1 = sld [smem:[#allocation20_spill]] }
 0x798   : > { %9793 = vpow2.f32 %v3677_v52  ;;  %v3675_v54 = vmul.f32 1.442695, %v3669_v53 }
 0x79a   : > { %9795 = vpow2.f32 %v3675_v54 }
 0x7a0   : > { %v9790_v55 = vpop.eup %9789 }
 0x7a1   : > { %v3682_v56 = vsel %vm1934_vm2, %v9790_v55, 0.0 }
 0x7a2   : > { %v9792_v57 = vpop.eup %9791  ;;  %3683 = vadd.xlane.f32.xlu1 %v3682_v56  ;;  %v7812_v56 = vld [vmem:[%s11148_s7 + $0xf0] sm:$0xff] }
 0x7a3   : > { %v3679_v59 = vsel %vm1934_vm2, %v9792_v57, 0.0 }
 0x7a4   : > { %3680 = vadd.xlane.f32.xlu0 %v3679_v59  ;;  %v4250_v59 = vld [vmem:[%s11148_s7 + $0x60] sm:$0xff] }
 0x7a5   : > { %v9794_v60 = vpop.eup %9793 }
 0x7a6   : > { %v3688_v1 = vsel %vm1934_vm2, %v9794_v60, 0.0 }
 0x7a7   : > { %v9796_v61 = vpop.eup %9795  ;;  %3689 = vadd.xlane.f32.xlu1 %v3688_v1  ;;  %v7809_v1 = vld [vmem:[%s11148_s7 + $0xd8] sm:$0xff] }
 0x7a8   : > { %v3685_v3 = vsel %vm1934_vm2, %v9796_v61, 0.0 }
 0x7a9   : > { %3686 = vadd.xlane.f32.xlu0 %v3685_v3  ;;  %v4247_v3 = vld [vmem:[%s11148_s7 + $0x48] sm:$0xff] }
 0x7ab   : > { %4170 = vadd.xlane.f32.xlu1 %v10531_v63 }
 0x7ad   : > { %4168 = vadd.xlane.f32.xlu0 %v10535_v7 }
 0x82b   : > { %v3684_v8 = vpop.xlane.xlu1 %3683 }
 0x82c   : > { %9797 = vrcp.f32 %v3684_v8  ;;  %v7806_v8 = vld [vmem:[%s11148_s7 + $0xc0] sm:$0xff] }
 0x82d   : > { %v3681_v10 = vpop.xlane.xlu0 %3680 }
 0x82e   : > { %9799 = vrcp.f32 %v3681_v10  ;;  %v4245_v10 = vld [vmem:[%s11148_s7 + $0x38] sm:$0xff] }
 0x830   : > { %v3690_v11 = vpop.xlane.xlu1 %3689 }
 0x831   : > { %9801 = vrcp.f32 %v3690_v11  ;;  %v7805_v11 = vld [vmem:[%s11148_s7 + $0xb8] sm:$0xff] }
 0x832   : > { %v3687_v13 = vpop.xlane.xlu0 %3686 }
 0x833   : > { %9803 = vrcp.f32 %v3687_v13  ;;  %v4244_v13 = vld [vmem:[%s11148_s7 + $0x30] sm:$0xff] }
 0x834   : > { %v4171_v33 = vpop.xlane.xlu1 %4170 }
 0x835   : > { %v4173_v35 = vmul.f32 0.03125, %v4171_v33 }
 0x836   : > { %v4169_v34 = vpop.xlane.xlu0 %4168 }
 0x837   : > { %v4172_v37 = vmul.f32 0.03125, %v4169_v34  ;;  %v4175_v41 = vsub.f32 %v10531_v63, %v4173_v35 }
 0x839   : > { %v9798_v14 = vpop.eup %9797  ;;  %v4174_v46 = vsub.f32 %v10535_v7, %v4172_v37  ;;  %v10564_v50 = vsel %vm1336_vm0, %v4175_v41, 0.0 }
 0x83a   : > { %v3696_v15 = vmul.f32 %v9798_v14, %v9790_v55  ;;  %v4179_v53 = vmul.f32 %v10564_v50, %v10564_v50  ;;  %v4252_v55 = vld [vmem:[%s11148_s7 + $0x70] sm:$0xff] }
 0x83b   : > { %v9800_v12 = vpop.eup %9799  ;;  %v10572_v52 = vsel %vm1336_vm0, %v4174_v46, 0.0  ;;  %v7804_v14 = vld [vmem:[%s11148_s7 + $0xb0] sm:$0xff] }
 0x83c   : > { %9030 = vmatmul.mubr.msk.f32.vlgmr.msra.gmra.mxu1 %vm1934_vm2, %v3696_v15  ;;  %v3695_v16 = vmul.f32 %v9800_v12, %v9792_v57  ;;  %v4178_v54 = vmul.f32 %v10572_v52, %v10572_v52  ;;  %v4251_v57 = vld [vmem:[%s11148_s7 + $0x68] sm:$0xff] }
 0x83d   : > { %9038 = vmatpush3.msra.mxu1 %v10515_v25  ;;  %9039 = vmatprep.mubr.msk.f32.mxu1 %vm9917_vm1, %v9916_v0  ;;  %v4243_v15 = vld [vmem:[%s11148_s7 + $0x28] sm:$0xff] }
 0x83e   : > { %v9802_v17 = vpop.eup %9801  ;;  %9025 = vmatmul.mubr.msk.f32.vlgmr.msra.gmra.mxu0 %vm1934_vm2, %v3695_v16  ;;  %9047 = vmatprep.subr.mxu1 %v3992_v21  ;;  %v7803_v12 = vld [vmem:[%s11148_s7 + $0xa8] sm:$0xff]  ;;  %v4242_v16 = vld [vmem:[%s11148_s7 + $0x20] sm:$0xff] }
 0x83f   : > { %9033 = vmatpush3.msra.mxu0 %v10517_v26  ;;  %v3698_v18 = vmul.f32 %v9802_v17, %v9794_v60  ;;  %9034 = vmatprep.mubr.msk.f32.mxu0 %vm9917_vm1, %v9916_v0  ;;  %v7810_v60 = vld [vmem:[%s11148_s7 + $0xe0] sm:$0xff] }
 0x840   : > { %v9804_v19 = vpop.eup %9803  ;;  %9042 = vmatprep.subr.mxu0 %v3991_v20  ;;  %v7802_v17 = vld [vmem:[%s11148_s7 + $0xa0] sm:$0xff] }
 0x841   : > { %9040 = vmatmul.mubr.msk.f32.vlgmr.msra.gmra.mxu1 %vm1934_vm2, %v3698_v18  ;;  %v3697_v4 = vmul.f32 %v9804_v19, %v9796_v61  ;;  %v4248_v61 = vld [vmem:[%s11148_s7 + $0x50] sm:$0xff]  ;;  %v4241_v18 = vld [vmem:[%s11148_s7 + $0x18] sm:$0xff] }
 0x842   : > { %9048 = vmatpush3.msra.mxu1 %v3992_v21  ;;  %v7801_v19 = vld [vmem:[%s11148_s7 + $0x98] sm:$0xff]  ;;  %v4239_v21 = vld [vmem:[%s11148_s7 + $0x8] sm:$0xff] }
 0x843   : > { %9035 = vmatmul.mubr.msk.f32.vlgmr.msra.gmra.mxu0 %vm1934_vm2, %v3697_v4  ;;  %9087 = vmatprep.subr.mxu1 %v7813_v32  ;;  %v4240_v4 = vld [vmem:[%s11148_s7 + $0x10] sm:$0xff] }
 0x844   : > { %9043 = vmatpush3.msra.mxu0 %v3991_v20  ;;  %v7800_v20 = vld [vmem:[%s11148_s7 + $0x90] sm:$0xff] }
 0x845   : > { %9052 = vmatprep.subr.mxu0 %v4253_v31 }
 0x8fc   : > { %v3841_v22 = vpop.f32.mrf.mxu1 }
 0x8fe   : > { %v3768_v23 = vpop.f32.mrf.mxu0  ;;  %v9031_v24 = vpop.f32.mrf.mxu1 }
 0x8ff   : > { %9044 = vmatprep.mubr.msk.f32.mxu0 %vm1934_vm2, %v3768_v23  ;;  %v4238_v23 = vld [vmem:[%s11148_s7] sm:$0xff] }
 0x900   : > { %v9026_v25 = vpop.f32.mrf.mxu0  ;;  %9045 = vmatmul.mubr.msk.f32.vlgmr.msra.gmra.mxu0 %vm1934_vm2, %v3841_v22  ;;  %v7799_v22 = vld [vmem:[%s11148_s7 + $0x88] sm:$0xff]  ;;  %v7798_v24 = vld [vmem:[%s11148_s7 + $0x80] sm:$0xff] }
 0x901   : > { %v3987_v26 = vpop.f32.mrf.mxu1  ;;  %9053 = vmatpush3.msra.mxu0 %v4253_v31  ;;  %v4436_v25 = vld [vmem:[%s11150_s11 + $0x78] sm:$0xff] }
 0x902   : > { %9054 = vmatprep.subr.mxu0 %v4252_v55 }
 0x903   : > { %v3914_v27 = vpop.f32.mrf.mxu0  ;;  %v9041_v28 = vpop.f32.mrf.mxu1  ;;  %9055 = vmatpush3.msra.mxu0 %v4252_v55 }
 0x904   : > { %9049 = vmatprep.mubr.msk.f32.mxu1 %vm1934_vm2, %v3914_v27  ;;  %9056 = vmatprep.subr.mxu0 %v4251_v57 }
 0x905   : > { %v9036_v30 = vpop.f32.mrf.mxu0  ;;  %9050 = vmatmul.mubr.msk.f32.vlgmr.msra.gmra.mxu1 %vm1934_vm2, %v3987_v26  ;;  %9057 = vmatpush3.msra.mxu0 %v4251_v57  ;;  %v7829_v26 = vld [vmem:[%s11150_s11 + $0xf8] sm:$0xff]  ;;  %v7828_v57 = vld [vmem:[%s11150_s11 + $0xf0] sm:$0xff] }
 0x906   : > { %9088 = vmatpush3.msra.mxu1 %v7813_v32  ;;  %9058 = vmatprep.subr.mxu0 %v4250_v59 }
 0x907   : > { %9089 = vmatprep.subr.mxu1 %v7812_v56  ;;  %9059 = vmatpush3.msra.mxu0 %v4250_v59  ;;  %v4433_v59 = vld [vmem:[%s11150_s11 + $0x60] sm:$0xff] }
 0x908   : > { %9090 = vmatpush3.msra.mxu1 %v7812_v56  ;;  %9060 = vmatprep.subr.mxu0 %v4249_v62  ;;  %v4435_v56 = vld [vmem:[%s11150_s11 + $0x70] sm:$0xff] }
 0x909   : > { %9091 = vmatprep.subr.mxu1 %v7811_v58  ;;  %9061 = vmatpush3.msra.mxu0 %v4249_v62  ;;  %v4432_v62 = vld [vmem:[%s11150_s11 + $0x58] sm:$0xff] }
 0x90a   : > { %9092 = vmatpush3.msra.mxu1 %v7811_v58  ;;  %9062 = vmatprep.subr.mxu0 %v4248_v61  ;;  %v7827_v58 = vld [vmem:[%s11150_s11 + $0xe8] sm:$0xff] }
 0x90b   : > { %9093 = vmatprep.subr.mxu1 %v7810_v60  ;;  %9063 = vmatpush3.msra.mxu0 %v4248_v61  ;;  %v4431_v61 = vld [vmem:[%s11150_s11 + $0x50] sm:$0xff] }
 0x90c   : > { %9094 = vmatpush3.msra.mxu1 %v7810_v60  ;;  %9064 = vmatprep.subr.mxu0 %v4247_v3  ;;  %v7826_v60 = vld [vmem:[%s11150_s11 + $0xe0] sm:$0xff] }
 0x90d   : > { %9095 = vmatprep.subr.mxu1 %v7809_v1  ;;  %9065 = vmatpush3.msra.mxu0 %v4247_v3  ;;  %v4430_v3 = vld [vmem:[%s11150_s11 + $0x48] sm:$0xff] }
 0x90e   : > { %9096 = vmatpush3.msra.mxu1 %v7809_v1  ;;  %9066 = vmatprep.subr.mxu0 %v4246_v6  ;;  %v7825_v1 = vld [vmem:[%s11150_s11 + $0xd8] sm:$0xff] }
 0x90f   : > { %9097 = vmatprep.subr.mxu1 %v7808_v2  ;;  %9067 = vmatpush3.msra.mxu0 %v4246_v6  ;;  %v4429_v6 = vld [vmem:[%s11150_s11 + $0x40] sm:$0xff] }
 0x910   : > { %9098 = vmatpush3.msra.mxu1 %v7808_v2  ;;  %9068 = vmatprep.subr.mxu0 %v4245_v10  ;;  %v7824_v2 = vld [vmem:[%s11150_s11 + $0xd0] sm:$0xff] }
 0x911   : > { %9099 = vmatprep.subr.mxu1 %v7807_v5  ;;  %9069 = vmatpush3.msra.mxu0 %v4245_v10  ;;  %v4428_v10 = vld [vmem:[%s11150_s11 + $0x38] sm:$0xff] }
 0x912   : > { %9100 = vmatpush3.msra.mxu1 %v7807_v5  ;;  %9070 = vmatprep.subr.mxu0 %v4244_v13  ;;  %v7823_v5 = vld [vmem:[%s11150_s11 + $0xc8] sm:$0xff] }
 0x913   : > { %9101 = vmatprep.subr.mxu1 %v7806_v8  ;;  %9071 = vmatpush3.msra.mxu0 %v4244_v13  ;;  %v4427_v13 = vld [vmem:[%s11150_s11 + $0x30] sm:$0xff] }
 0x914   : > { %9102 = vmatpush3.msra.mxu1 %v7806_v8  ;;  %9072 = vmatprep.subr.mxu0 %v4243_v15  ;;  %v7822_v8 = vld [vmem:[%s11150_s11 + $0xc0] sm:$0xff] }
 0x915   : > { %9103 = vmatprep.subr.mxu1 %v7805_v11  ;;  %9073 = vmatpush3.msra.mxu0 %v4243_v15  ;;  %v4426_v15 = vld [vmem:[%s11150_s11 + $0x28] sm:$0xff] }
 0x916   : > { %9104 = vmatpush3.msra.mxu1 %v7805_v11  ;;  %9074 = vmatprep.subr.mxu0 %v4242_v16  ;;  %v7821_v11 = vld [vmem:[%s11150_s11 + $0xb8] sm:$0xff] }
 0x917   : > { %9105 = vmatprep.subr.mxu1 %v7804_v14  ;;  %9075 = vmatpush3.msra.mxu0 %v4242_v16  ;;  %v4425_v16 = vld [vmem:[%s11150_s11 + $0x20] sm:$0xff] }
 0x918   : > { %9106 = vmatpush3.msra.mxu1 %v7804_v14  ;;  %9076 = vmatprep.subr.mxu0 %v4241_v18  ;;  %v7820_v14 = vld [vmem:[%s11150_s11 + $0xb0] sm:$0xff] }
 0x919   : > { %9107 = vmatprep.subr.mxu1 %v7803_v12  ;;  %9077 = vmatpush3.msra.mxu0 %v4241_v18  ;;  %v4424_v18 = vld [vmem:[%s11150_s11 + $0x18] sm:$0xff] }
 0x91a   : > { %9108 = vmatpush3.msra.mxu1 %v7803_v12  ;;  %9078 = vmatprep.subr.mxu0 %v4240_v4  ;;  %v7819_v12 = vld [vmem:[%s11150_s11 + $0xa8] sm:$0xff] }
 0x91b   : > { %9109 = vmatprep.subr.mxu1 %v7802_v17  ;;  %9079 = vmatpush3.msra.mxu0 %v4240_v4  ;;  %v4423_v4 = vld [vmem:[%s11150_s11 + $0x10] sm:$0xff] }
 0x91c   : > { %9110 = vmatpush3.msra.mxu1 %v7802_v17  ;;  %9080 = vmatprep.subr.mxu0 %v4239_v21  ;;  %v7818_v17 = vld [vmem:[%s11150_s11 + $0xa0] sm:$0xff] }
 0x91d   : > { %9111 = vmatprep.subr.mxu1 %v7801_v19  ;;  %9081 = vmatpush3.msra.mxu0 %v4239_v21  ;;  %v4422_v21 = vld [vmem:[%s11150_s11 + $0x8] sm:$0xff] }
 0x91e   : > { %9112 = vmatpush3.msra.mxu1 %v7801_v19  ;;  %9082 = vmatprep.subr.mxu0 %v4238_v23  ;;  %v7817_v19 = vld [vmem:[%s11150_s11 + $0x98] sm:$0xff] }
 0x91f   : > { %9113 = vmatprep.subr.mxu1 %v7800_v20  ;;  %9083 = vmatpush3.msra.mxu0 %v4238_v23  ;;  %v4421_v23 = vld [vmem:[%s11150_s11] sm:$0xff] }
 0x920   : > { %9114 = vmatpush3.msra.mxu1 %v7800_v20  ;;  %9122 = vmatprep.subr.mxu0 %v4436_v25  ;;  %v7816_v20 = vld [vmem:[%s11150_s11 + $0x90] sm:$0xff] }
 0x921   : > { %9115 = vmatprep.subr.mxu1 %v7799_v22 }
 0x922   : > { %9116 = vmatpush3.msra.mxu1 %v7799_v22  ;;  %v7815_v22 = vld [vmem:[%s11150_s11 + $0x88] sm:$0xff] }
 0x923   : > { %9117 = vmatprep.subr.mxu1 %v7798_v24 }
 0x924   : > { %9118 = vmatpush3.msra.mxu1 %v7798_v24  ;;  %v7814_v24 = vld [vmem:[%s11150_s11 + $0x80] sm:$0xff] }
 0x925   : > { %9157 = vmatprep.subr.mxu1 %v7829_v26 }
 0x9c0   : > { %v9046_v36 = vpop.f32.mrf.mxu0 }
 0x9c2   : > { %v4065_v42 = vpop.f32.mrf.mxu0 }
 0x9c5   : > { %v9051_v38 = vpop.f32.mrf.mxu1 }
 0x9c6   : > { %v4156_v40 = vadd.f32 %v9051_v38, %v9046_v36 }
 0x9c7   : > { %v4146_v43 = vpop.f32.mrf.mxu1 }
 0x9c8   : > { %v4165_v44 = vadd.f32 %v7795_v39, %v4156_v40  ;;  %v4155_v45 = vadd.f32 %v4146_v43, %v4065_v42 }
 0x9ca   : > { %v4164_v47 = vadd.f32 %v7795_v39, %v4155_v45  ;;  %v10560_v49 = vadd.f32 %v9863_v48, %v4165_v44  ;;  %v10626_v45 = vld [vmem:[%s11151_s15] ss:$0 sm:$0xff]  ;;  %s11159_s15 = sld [smem:[#allocation23_spill]] }
 0x9cc   : > { %4212 = vadd.xlane.f32.xlu1 %v10560_v49  ;;  %v10568_v29 = vadd.f32 %v9864_v51, %v4164_v47 }
 0x9ce   : > { %4210 = vadd.xlane.f32.xlu0 %v10568_v29 }
 0x9d0   : > { %4182 = vadd.xlane.f32.xlu1 %v4179_v53 }
 0x9d2   : > { %4180 = vadd.xlane.f32.xlu0 %v4178_v54  ;;  %v10639_v54 = vld [vmem:[%s11152_s16] ss:$0 sm:$0xff]  ;;  %s11160_s16 = sld [smem:[#allocation9_spill]] }
 0xa55   : > { %v4213_v27 = vpop.xlane.xlu1 %4212 }
 0xa56   : > { %v4215_v28 = vmul.f32 0.03125, %v4213_v27 }
 0xa57   : > { %v4211_v30 = vpop.xlane.xlu0 %4210 }
 0xa58   : > { %v4217_v31 = vsub.f32 %v10560_v49, %v4215_v28  ;;  %v4214_v32 = vmul.f32 0.03125, %v4211_v30 }
 0xa59   : > { %v4183_v33 = vpop.xlane.xlu1 %4182 }
 0xa5a   : > { %v4216_v34 = vsub.f32 %v10568_v29, %v4214_v32  ;;  %v4185_v35 = vmul.f32 0.03125, %v4183_v33  ;;  %v10615_v36 = vsel %vm1336_vm0, %v4217_v31, 0.0 }
 0xa5b   : > { %v4181_v37 = vpop.xlane.xlu0 %4180  ;;  %v4221_v38 = vmul.f32 %v10615_v36, %v10615_v36 }
 0xa5c   : > { %v4187_v39 = vadd.f32 1e-05, %v4185_v35  ;;  %v4184_v40 = vmul.f32 0.03125, %v4181_v37  ;;  %v10621_v41 = vsel %vm1336_vm0, %v4216_v34, 0.0 }
 0xa5d   : > { %4224 = vadd.xlane.f32.xlu1 %v4221_v38  ;;  %v4220_v42 = vmul.f32 %v10621_v41, %v10621_v41 }
 0xa5e   : > { %9805 = vrsqrt.f32 %v4187_v39  ;;  %v4186_v43 = vadd.f32 1e-05, %v4184_v40 }
 0xa5f   : > { %4222 = vadd.xlane.f32.xlu0 %v4220_v42 }
 0xa60   : > { %9807 = vrsqrt.f32 %v4186_v43 }
 0xa6b   : > { %v9806_v44 = vpop.eup %9805 }
 0xa6c   : > { %v10629_v46 = vmul.f32 %v9806_v44, %v10564_v50  ;;  %v4617_v44 = vld [vmem:[%s11153_s18 + $0x68] sm:$0xff] }
 0xa6d   : > { %v9808_v47 = vpop.eup %9807 }
 0xa6e   : > { %v10632_v48 = vmul.f32 %v9808_v47, %v10572_v52  ;;  %v4200_v51 = vmul.f32 %v10626_v45, %v10629_v46  ;;  %v4434_v52 = vld [vmem:[%s11150_s11 + $0x68] sm:$0xff]  ;;  %v4616_v47 = vld [vmem:[%s11153_s18 + $0x60] sm:$0xff] }
 0xa70   : > { %v4199_v53 = vmul.f32 %v10626_v45, %v10632_v48  ;;  %v4209_v50 = vadd.f32 %v10639_v54, %v4200_v51  ;;  %v7842_v51 = vld [vmem:[%s11153_s18 + $0xe0] sm:$0xff] }
 0xa72   : > { %v4208_v55 = vadd.f32 %v10639_v54, %v4199_v53  ;;  %v4615_v53 = vld [vmem:[%s11153_s18 + $0x58] sm:$0xff] }
 0xa74   : > { %9084 = vmatprep.mubr.f32.mxu0 %v4208_v55  ;;  %9119 = vmatprep.mubr.f32.mxu1 %v4208_v55  ;;  %v4614_v55 = vld [vmem:[%s11153_s18 + $0x50] sm:$0xff] }
 0xa75   : > { %9085 = vmatmul.mubr.f32.vlgmr.msra.gmra.mxu0 %v4209_v50  ;;  %9120 = vmatmul.mubr.f32.vlgmr.msra.gmra.mxu1 %v4209_v50  ;;  %v7840_v50 = vld [vmem:[%s11153_s18 + $0xd0] sm:$0xff] }
 0xa76   : > { %9123 = vmatpush3.msra.mxu0 %v4436_v25  ;;  %9158 = vmatpush3.msra.mxu1 %v7829_v26  ;;  %v4619_v25 = vld [vmem:[%s11153_s18 + $0x78] sm:$0xff] }
 0xa77   : > { %9124 = vmatprep.subr.mxu0 %v4435_v56  ;;  %9159 = vmatprep.subr.mxu1 %v7828_v57  ;;  %v7845_v26 = vld [vmem:[%s11153_s18 + $0xf8] sm:$0xff] }
 0xa78   : > { %9125 = vmatpush3.msra.mxu0 %v4435_v56  ;;  %9160 = vmatpush3.msra.mxu1 %v7828_v57  ;;  %v4613_v56 = vld [vmem:[%s11153_s18 + $0x48] sm:$0xff] }
 0xa79   : > { %9126 = vmatprep.subr.mxu0 %v4434_v52  ;;  %9161 = vmatprep.subr.mxu1 %v7827_v58  ;;  %v7839_v57 = vld [vmem:[%s11153_s18 + $0xc8] sm:$0xff] }
 0xa7a   : > { %9127 = vmatpush3.msra.mxu0 %v4434_v52  ;;  %9162 = vmatpush3.msra.mxu1 %v7827_v58  ;;  %v4612_v52 = vld [vmem:[%s11153_s18 + $0x40] sm:$0xff] }
 0xa7b   : > { %9128 = vmatprep.subr.mxu0 %v4433_v59  ;;  %9163 = vmatprep.subr.mxu1 %v7826_v60  ;;  %v7838_v58 = vld [vmem:[%s11153_s18 + $0xc0] sm:$0xff] }
 0xa7c   : > { %9129 = vmatpush3.msra.mxu0 %v4433_v59  ;;  %9164 = vmatpush3.msra.mxu1 %v7826_v60  ;;  %v4611_v59 = vld [vmem:[%s11153_s18 + $0x38] sm:$0xff] }
 0xa7d   : > { %9130 = vmatprep.subr.mxu0 %v4432_v62  ;;  %9165 = vmatprep.subr.mxu1 %v7825_v1  ;;  %v7837_v60 = vld [vmem:[%s11153_s18 + $0xb8] sm:$0xff] }
 0xa7e   : > { %9131 = vmatpush3.msra.mxu0 %v4432_v62  ;;  %9166 = vmatpush3.msra.mxu1 %v7825_v1  ;;  %v4610_v62 = vld [vmem:[%s11153_s18 + $0x30] sm:$0xff] }
 0xa7f   : > { %9132 = vmatprep.subr.mxu0 %v4431_v61  ;;  %9167 = vmatprep.subr.mxu1 %v7824_v2  ;;  %v7836_v1 = vld [vmem:[%s11153_s18 + $0xb0] sm:$0xff] }
 0xa80   : > { %9133 = vmatpush3.msra.mxu0 %v4431_v61  ;;  %9168 = vmatpush3.msra.mxu1 %v7824_v2  ;;  %v4609_v61 = vld [vmem:[%s11153_s18 + $0x28] sm:$0xff] }
 0xa81   : > { %9134 = vmatprep.subr.mxu0 %v4430_v3  ;;  %9169 = vmatprep.subr.mxu1 %v7823_v5  ;;  %v7835_v2 = vld [vmem:[%s11153_s18 + $0xa8] sm:$0xff] }
 0xa82   : > { %9135 = vmatpush3.msra.mxu0 %v4430_v3  ;;  %9170 = vmatpush3.msra.mxu1 %v7823_v5  ;;  %v4608_v3 = vld [vmem:[%s11153_s18 + $0x20] sm:$0xff] }
 0xa83   : > { %9136 = vmatprep.subr.mxu0 %v4429_v6  ;;  %9171 = vmatprep.subr.mxu1 %v7822_v8  ;;  %v7834_v5 = vld [vmem:[%s11153_s18 + $0xa0] sm:$0xff] }
 0xa84   : > { %9137 = vmatpush3.msra.mxu0 %v4429_v6  ;;  %9172 = vmatpush3.msra.mxu1 %v7822_v8  ;;  %v4607_v6 = vld [vmem:[%s11153_s18 + $0x18] sm:$0xff] }
 0xa85   : > { %9138 = vmatprep.subr.mxu0 %v4428_v10  ;;  %9173 = vmatprep.subr.mxu1 %v7821_v11  ;;  %v7833_v8 = vld [vmem:[%s11153_s18 + $0x98] sm:$0xff] }
 0xa86   : > { %9139 = vmatpush3.msra.mxu0 %v4428_v10  ;;  %9174 = vmatpush3.msra.mxu1 %v7821_v11  ;;  %v4606_v10 = vld [vmem:[%s11153_s18 + $0x10] sm:$0xff] }
 0xa87   : > { %9140 = vmatprep.subr.mxu0 %v4427_v13  ;;  %9175 = vmatprep.subr.mxu1 %v7820_v14  ;;  %v7832_v11 = vld [vmem:[%s11153_s18 + $0x90] sm:$0xff] }
 0xa88   : > { %9141 = vmatpush3.msra.mxu0 %v4427_v13  ;;  %9176 = vmatpush3.msra.mxu1 %v7820_v14  ;;  %v4605_v13 = vld [vmem:[%s11153_s18 + $0x8] sm:$0xff] }
 0xa89   : > { %9142 = vmatprep.subr.mxu0 %v4426_v15  ;;  %9177 = vmatprep.subr.mxu1 %v7819_v12  ;;  %v7831_v14 = vld [vmem:[%s11153_s18 + $0x88] sm:$0xff] }
 0xa8a   : > { %9143 = vmatpush3.msra.mxu0 %v4426_v15  ;;  %9178 = vmatpush3.msra.mxu1 %v7819_v12  ;;  %v4604_v15 = vld [vmem:[%s11153_s18] sm:$0xff] }
 0xa8b   : > { %9144 = vmatprep.subr.mxu0 %v4425_v16  ;;  %9179 = vmatprep.subr.mxu1 %v7818_v17  ;;  %v7830_v12 = vld [vmem:[%s11153_s18 + $0x80] sm:$0xff] }
 0xa8c   : > { %9145 = vmatpush3.msra.mxu0 %v4425_v16  ;;  %9180 = vmatpush3.msra.mxu1 %v7818_v17 }
 0xa8d   : > { %9146 = vmatprep.subr.mxu0 %v4424_v18  ;;  %9181 = vmatprep.subr.mxu1 %v7817_v19 }
 0xa8e   : > { %9147 = vmatpush3.msra.mxu0 %v4424_v18  ;;  %9182 = vmatpush3.msra.mxu1 %v7817_v19 }
 0xa8f   : > { %9148 = vmatprep.subr.mxu0 %v4423_v4  ;;  %9183 = vmatprep.subr.mxu1 %v7816_v20 }
 0xa90   : > { %9149 = vmatpush3.msra.mxu0 %v4423_v4  ;;  %9184 = vmatpush3.msra.mxu1 %v7816_v20 }
 0xa91   : > { %9150 = vmatprep.subr.mxu0 %v4422_v21  ;;  %9185 = vmatprep.subr.mxu1 %v7815_v22 }
 0xa92   : > { %9151 = vmatpush3.msra.mxu0 %v4422_v21  ;;  %9186 = vmatpush3.msra.mxu1 %v7815_v22 }
 0xa93   : > { %9152 = vmatprep.subr.mxu0 %v4421_v23  ;;  %9187 = vmatprep.subr.mxu1 %v7814_v24 }
 0xa94   : > { %9153 = vmatpush3.msra.mxu0 %v4421_v23  ;;  %9188 = vmatpush3.msra.mxu1 %v7814_v24 }
 0xa95   : > { %9192 = vmatprep.subr.mxu0 %v4619_v25  ;;  %9227 = vmatprep.subr.mxu1 %v7845_v26 }
 0xae6   : > { %v4225_v27 = vpop.xlane.xlu1 %4224 }
 0xae7   : > { %v4227_v28 = vmul.f32 0.03125, %v4225_v27 }
 0xae8   : > { %v4223_v30 = vpop.xlane.xlu0 %4222 }
 0xae9   : > { %v4229_v31 = vadd.f32 1e-05, %v4227_v28  ;;  %v4226_v32 = vmul.f32 0.03125, %v4223_v30 }
 0xaeb   : > { %9809 = vrsqrt.f32 %v4229_v31  ;;  %v4228_v33 = vadd.f32 1e-05, %v4226_v32 }
 0xaed   : > { %9811 = vrsqrt.f32 %v4228_v33 }
 0xaf8   : > { %v9810_v34 = vpop.eup %9809 }
 0xaf9   : > { %v10676_v35 = vmul.f32 %v9810_v34, %v10615_v36  ;;  %v4618_v36 = vld [vmem:[%s11153_s18 + $0x70] sm:$0xff] }
 0xafa   : > { %v9812_v37 = vpop.eup %9811 }
 0xafb   : > { %v10679_v38 = vmul.f32 %v9812_v37, %v10621_v41  ;;  %v4235_v39 = vmul.f32 %v10626_v45, %v10676_v35  ;;  %v7844_v41 = vld [vmem:[%s11153_s18 + $0xf0] sm:$0xff] }
 0xafd   : > { %v4234_v40 = vmul.f32 %v10626_v45, %v10679_v38  ;;  %v10687_v43 = vadd.f32 %v10639_v54, %v4235_v39  ;;  %v7843_v45 = vld [vmem:[%s11153_s18 + $0xe8] sm:$0xff] }
 0xaff   : > { %v4236_v42 = vadd.f32 %v10639_v54, %v4234_v40  ;;  %v7841_v54 = vld [vmem:[%s11153_s18 + $0xd8] sm:$0xff] }
 0xb01   : > { %9154 = vmatprep.mubr.f32.mxu0 %v4236_v42  ;;  %9189 = vmatprep.mubr.f32.mxu1 %v4236_v42 }
 0xb02   : > { %9155 = vmatmul.mubr.f32.vlgmr.msra.gmra.mxu0 %v10687_v43  ;;  %9190 = vmatmul.mubr.f32.vlgmr.msra.gmra.mxu1 %v10687_v43 }
 0xb03   : > { %9193 = vmatpush3.msra.mxu0 %v4619_v25  ;;  %9228 = vmatpush3.msra.mxu1 %v7845_v26 }
 0xb04   : > { %9194 = vmatprep.subr.mxu0 %v4618_v36  ;;  %9224 = vmatprep.mubr.f32.mxu0 %v4236_v42 }
 0xb05   : > { %9229 = vmatprep.subr.mxu1 %v7844_v41  ;;  %9259 = vmatprep.mubr.f32.mxu1 %v4236_v42 }
 0xb06   : > { %9195 = vmatpush3.msra.mxu0 %v4618_v36  ;;  %9230 = vmatpush3.msra.mxu1 %v7844_v41 }
 0xb07   : > { %9196 = vmatprep.subr.mxu0 %v4617_v44  ;;  %9231 = vmatprep.subr.mxu1 %v7843_v45 }
 0xb08   : > { %9197 = vmatpush3.msra.mxu0 %v4617_v44  ;;  %9232 = vmatpush3.msra.mxu1 %v7843_v45 }
 0xb09   : > { %9198 = vmatprep.subr.mxu0 %v4616_v47  ;;  %9233 = vmatprep.subr.mxu1 %v7842_v51 }
 0xb0a   : > { %9199 = vmatpush3.msra.mxu0 %v4616_v47  ;;  %9234 = vmatpush3.msra.mxu1 %v7842_v51 }
 0xb0b   : > { %9200 = vmatprep.subr.mxu0 %v4615_v53  ;;  %9235 = vmatprep.subr.mxu1 %v7841_v54 }
 0xb0c   : > { %9201 = vmatpush3.msra.mxu0 %v4615_v53  ;;  %9236 = vmatpush3.msra.mxu1 %v7841_v54 }
 0xb0d   : > { %9202 = vmatprep.subr.mxu0 %v4614_v55  ;;  %9237 = vmatprep.subr.mxu1 %v7840_v50 }
 0xb0e   : > { %9203 = vmatpush3.msra.mxu0 %v4614_v55  ;;  %9238 = vmatpush3.msra.mxu1 %v7840_v50 }
 0xb0f   : > { %9204 = vmatprep.subr.mxu0 %v4613_v56  ;;  %9239 = vmatprep.subr.mxu1 %v7839_v57 }
 0xb10   : > { %9205 = vmatpush3.msra.mxu0 %v4613_v56  ;;  %9240 = vmatpush3.msra.mxu1 %v7839_v57 }
 0xb11   : > { %9206 = vmatprep.subr.mxu0 %v4612_v52  ;;  %9241 = vmatprep.subr.mxu1 %v7838_v58 }
 0xb12   : > { %9207 = vmatpush3.msra.mxu0 %v4612_v52  ;;  %9242 = vmatpush3.msra.mxu1 %v7838_v58 }
 0xb13   : > { %9208 = vmatprep.subr.mxu0 %v4611_v59  ;;  %9243 = vmatprep.subr.mxu1 %v7837_v60 }
 0xb14   : > { %9209 = vmatpush3.msra.mxu0 %v4611_v59  ;;  %9244 = vmatpush3.msra.mxu1 %v7837_v60 }
 0xb15   : > { %9210 = vmatprep.subr.mxu0 %v4610_v62  ;;  %9245 = vmatprep.subr.mxu1 %v7836_v1 }
 0xb16   : > { %9211 = vmatpush3.msra.mxu0 %v4610_v62  ;;  %9246 = vmatpush3.msra.mxu1 %v7836_v1 }
 0xb17   : > { %9212 = vmatprep.subr.mxu0 %v4609_v61  ;;  %9247 = vmatprep.subr.mxu1 %v7835_v2 }
 0xb18   : > { %9213 = vmatpush3.msra.mxu0 %v4609_v61  ;;  %9248 = vmatpush3.msra.mxu1 %v7835_v2 }
 0xb19   : > { %9214 = vmatprep.subr.mxu0 %v4608_v3  ;;  %9249 = vmatprep.subr.mxu1 %v7834_v5 }
 0xb1a   : > { %9215 = vmatpush3.msra.mxu0 %v4608_v3  ;;  %9250 = vmatpush3.msra.mxu1 %v7834_v5 }
 0xb1b   : > { %9216 = vmatprep.subr.mxu0 %v4607_v6  ;;  %9251 = vmatprep.subr.mxu1 %v7833_v8 }
 0xb1c   : > { %9217 = vmatpush3.msra.mxu0 %v4607_v6  ;;  %9252 = vmatpush3.msra.mxu1 %v7833_v8 }
 0xb1d   : > { %9218 = vmatprep.subr.mxu0 %v4606_v10  ;;  %9253 = vmatprep.subr.mxu1 %v7832_v11 }
 0xb1e   : > { %9219 = vmatpush3.msra.mxu0 %v4606_v10  ;;  %9254 = vmatpush3.msra.mxu1 %v7832_v11 }
 0xb1f   : > { %9220 = vmatprep.subr.mxu0 %v4605_v13  ;;  %9255 = vmatprep.subr.mxu1 %v7831_v14 }
 0xb20   : > { %9221 = vmatpush3.msra.mxu0 %v4605_v13  ;;  %9256 = vmatpush3.msra.mxu1 %v7831_v14 }
 0xb21   : > { %9222 = vmatprep.subr.mxu0 %v4604_v15  ;;  %9257 = vmatprep.subr.mxu1 %v7830_v12 }
 0xb22   : > { %9223 = vmatpush3.msra.mxu0 %v4604_v15  ;;  %9258 = vmatpush3.msra.mxu1 %v7830_v12 }
 0xb23   : > { %9225 = vmatmul.mubr.f32.vlgmr.msra.gmra.mxu0 %v10687_v43  ;;  %9260 = vmatmul.mubr.f32.vlgmr.msra.gmra.mxu1 %v10687_v43 }
 0xb24   : > { %9267 = vmatprep.subr.mxu1 %v9916_v0  ;;  %9262 = vmatprep.subr.mxu0 %v9916_v0 }
 0xb25   : > { %9269 = vmatprep.mubr.msk.f32.mxu1 %vm9917_vm1, %v9916_v0  ;;  %9264 = vmatprep.mubr.msk.f32.mxu0 %vm9917_vm1, %v9916_v0 }
 0xb35   : > { %v9086_v16 = vpop.f32.mrf.mxu0  ;;  %v9121_v17 = vpop.f32.mrf.mxu1 }
 0xb37   : > { %v4320_v18 = vpop.f32.mrf.mxu0  ;;  %v4412_v19 = vpop.f32.mrf.mxu1 }
 0xbc2   : > { %v9156_v4 = vpop.f32.mrf.mxu0  ;;  %v9191_v20 = vpop.f32.mrf.mxu1 }
 0xbc3   : > { %9268 = vmatpush3.xpose.msk.msra.mxu1 %vm1934_vm2, %v9156_v4 }
 0xbc4   : > { %v4503_v21 = vpop.f32.mrf.mxu0  ;;  %9277 = vmatprep.subr.mxu1 %v9916_v0  ;;  %v4595_v22 = vpop.f32.mrf.mxu1 }
 0xbc5   : > { %9263 = vmatpush3.xpose.msk.msra.mxu0 %vm1934_vm2, %v4503_v21  ;;  %v5431_v21 = vld [vmem:[%s11154_s23] sm:$0xff] }
 0xbc6   : > { %9270 = vmatmul.mubr.msk.f32.vlgmr.msra.gmra.mxu1 %vm1934_vm2, %v9086_v16  ;;  %9272 = vmatprep.subr.mxu0 %v9916_v0 }
 0xbc7   : > { %9278 = vmatpush3.xpose.msk.msra.mxu1 %vm1934_vm2, %v9191_v20  ;;  %9279 = vmatprep.mubr.msk.f32.mxu1 %vm9917_vm1, %v9916_v0 }
 0xbc8   : > { %9265 = vmatmul.mubr.msk.f32.vlgmr.msra.gmra.mxu0 %vm1934_vm2, %v4320_v18  ;;  %9287 = vmatprep.subr.mxu1 %v9916_v0 }
 0xbc9   : > { %9273 = vmatpush3.xpose.msk.msra.mxu0 %vm1934_vm2, %v4595_v22  ;;  %9274 = vmatprep.mubr.msk.f32.mxu0 %vm9917_vm1, %v9916_v0  ;;  %v5645_v22 = vld [vmem:[%s11155_s26 + $0x78] sm:$0xff] }
 0xbca   : > { %9280 = vmatmul.mubr.msk.f32.vlgmr.msra.gmra.mxu1 %vm1934_vm2, %v9121_v17  ;;  %9282 = vmatprep.subr.mxu0 %v9916_v0 }
 0xbcb   : > { %9289 = vmatprep.mubr.msk.f32.mxu1 %vm9917_vm1, %v9916_v0 }
 0xbcc   : > { %9275 = vmatmul.mubr.msk.f32.vlgmr.msra.gmra.mxu0 %vm1934_vm2, %v4412_v19 }
 0xbcd   : > { %9284 = vmatprep.mubr.msk.f32.mxu0 %vm9917_vm1, %v9916_v0 }
 0xbe3   : > { %v9226_v23 = vpop.f32.mrf.mxu0  ;;  %v10751_v25 = vpop.f32.mrf.mxu1 }
 0xbe4   : > { %9288 = vmatpush3.msra.mxu1 %v9226_v23  ;;  %v5432_v23 = vld [vmem:[%s11154_s23 + $0x8] sm:$0xff] }
 0xbe5   : > { %v4686_v24 = vpop.f32.mrf.mxu0  ;;  %9297 = vmatprep.subr.mxu1 %v9916_v0  ;;  %v10753_v26 = vpop.f32.mrf.mxu1 }
 0xbe6   : > { %9283 = vmatpush3.msra.mxu0 %v4686_v24  ;;  %v7880_v24 = vld [vmem:[%s11155_s26 + $0xf8] sm:$0xff] }
 0xbe7   : > { %9292 = vmatprep.subr.mxu0 %v9916_v0 }
 0xc86   : > { %v4935_v27 = vpop.f32.mrf.mxu1 }
 0xc87   : > { %v5092_v28 = vmul.f32 0.17677669, %v4935_v27 }
 0xc88   : > { %v4859_v30 = vpop.f32.mrf.mxu0  ;;  %v9271_v31 = vpop.f32.mrf.mxu1 }
 0xc89   : > { %v5091_v32 = vmul.f32 0.17677669, %v4859_v30  ;;  %v5098_v33 = vsel %vm1934_vm2, %v5092_v28, -inf  ;;  %v10783_v31 = vld [vmem:[%s11157_s1] ss:$0 sm:$0xff]  ;;  %s11162_s1 = sld [smem:[#allocation12_spill]] }
 0xc8a   : > { %5099 = vmax.xlane.f32.xlu1 %v5098_v33  ;;  %v9266_v34 = vpop.f32.mrf.mxu0  ;;  %v5087_v37 = vpop.f32.mrf.mxu1 }
 0xc8b   : > { %v5094_v39 = vmul.f32 0.17677669, %v5087_v37  ;;  %v5095_v40 = vsel %vm1934_vm2, %v5091_v32, -inf }
 0xc8c   : > { %v9281_v42 = vpop.f32.mrf.mxu1  ;;  %5096 = vmax.xlane.f32.xlu0 %v5095_v40  ;;  %v5011_v43 = vpop.f32.mrf.mxu0 }
 0xc8d   : > { %v5093_v36 = vmul.f32 0.17677669, %v5011_v43  ;;  %v5104_v41 = vsel %vm1934_vm2, %v5094_v39, -inf  ;;  %v5642_v42 = vld [vmem:[%s11155_s26 + $0x60] sm:$0xff]  ;;  %v7879_v43 = vld [vmem:[%s11155_s26 + $0xf0] sm:$0xff] }
 0xc8e   : > { %5105 = vmax.xlane.f32.xlu1 %v5104_v41  ;;  %v9276_v44 = vpop.f32.mrf.mxu0  ;;  %v5641_v41 = vld [vmem:[%s11155_s26 + $0x58] sm:$0xff] }
 0xc8f   : > { %v5101_v45 = vsel %vm1934_vm2, %v5093_v36, -inf  ;;  %v7878_v44 = vld [vmem:[%s11155_s26 + $0xe8] sm:$0xff] }
 0xc90   : > { %5102 = vmax.xlane.f32.xlu0 %v5101_v45  ;;  %v5640_v45 = vld [vmem:[%s11155_s26 + $0x50] sm:$0xff] }
 0xd13   : > { %v5100_v47 = vpop.xlane.xlu1 %5099 }
 0xd14   : > { %v5108_v51 = vsub.f32 %v5092_v28, %v5100_v47  ;;  %v7877_v47 = vld [vmem:[%s11155_s26 + $0xe0] sm:$0xff] }
 0xd15   : > { %v5097_v53 = vpop.xlane.xlu0 %5096 }
 0xd16   : > { %v5113_v54 = vmul.f32 1.442695, %v5108_v51  ;;  %v5107_v55 = vsub.f32 %v5091_v32, %v5097_v53  ;;  %v5644_v32 = vld [vmem:[%s11155_s26 + $0x70] sm:$0xff]  ;;  %v5639_v51 = vld [vmem:[%s11155_s26 + $0x48] sm:$0xff]  ;;  %v7876_v53 = vld [vmem:[%s11155_s26 + $0xd8] sm:$0xff] }
 0xd17   : > { %v5106_v50 = vpop.xlane.xlu1 %5105 }
 0xd18   : > { %9813 = vpow2.f32 %v5113_v54  ;;  %v5111_v56 = vmul.f32 1.442695, %v5107_v55  ;;  %v5110_v57 = vsub.f32 %v5094_v39, %v5106_v50  ;;  %v5638_v54 = vld [vmem:[%s11155_s26 + $0x40] sm:$0xff]  ;;  %v7875_v55 = vld [vmem:[%s11155_s26 + $0xd0] sm:$0xff]  ;;  %v5637_v50 = vld [vmem:[%s11155_s26 + $0x38] sm:$0xff] }
 0xd19   : > { %v5103_v52 = vpop.xlane.xlu0 %5102 }
 0xd1a   : > { %9815 = vpow2.f32 %v5111_v56  ;;  %v5117_v58 = vmul.f32 1.442695, %v5110_v57  ;;  %v5109_v59 = vsub.f32 %v5093_v36, %v5103_v52  ;;  %v7874_v56 = vld [vmem:[%s11155_s26 + $0xc8] sm:$0xff]  ;;  %v5636_v57 = vld [vmem:[%s11155_s26 + $0x30] sm:$0xff]  ;;  %v7873_v52 = vld [vmem:[%s11155_s26 + $0xc0] sm:$0xff] }
 0xd1c   : > { %9817 = vpow2.f32 %v5117_v58  ;;  %v5115_v60 = vmul.f32 1.442695, %v5109_v59  ;;  %v5635_v58 = vld [vmem:[%s11155_s26 + $0x28] sm:$0xff]  ;;  %v7872_v59 = vld [vmem:[%s11155_s26 + $0xb8] sm:$0xff] }
 0xd1e   : > { %9819 = vpow2.f32 %v5115_v60  ;;  %v5634_v60 = vld [vmem:[%s11155_s26 + $0x20] sm:$0xff] }
 0xd25   : > { %v9814_v62 = vpop.eup %9813 }
 0xd26   : > { %v5122_v1 = vsel %vm1934_vm2, %v9814_v62, 0.0 }
 0xd27   : > { %v9816_v61 = vpop.eup %9815  ;;  %5123 = vadd.xlane.f32.xlu1 %v5122_v1  ;;  %v5633_v1 = vld [vmem:[%s11155_s26 + $0x18] sm:$0xff] }
 0xd28   : > { %v5119_v2 = vsel %vm1934_vm2, %v9816_v61, 0.0 }
 0xd29   : > { %v9818_v3 = vpop.eup %9817  ;;  %5120 = vadd.xlane.f32.xlu0 %v5119_v2  ;;  %v5632_v2 = vld [vmem:[%s11155_s26 + $0x10] sm:$0xff] }
 0xd2a   : > { %v5128_v5 = vsel %vm1934_vm2, %v9818_v3, 0.0 }
 0xd2b   : > { %v9820_v6 = vpop.eup %9819  ;;  %5129 = vadd.xlane.f32.xlu1 %v5128_v5  ;;  %v5631_v5 = vld [vmem:[%s11155_s26 + $0x8] sm:$0xff] }
 0xd2c   : > { %v5125_v8 = vsel %vm1934_vm2, %v9820_v6, 0.0 }
 0xd2d   : > { %5126 = vadd.xlane.f32.xlu0 %v5125_v8 }
 0xdb0   : > { %v5124_v10 = vpop.xlane.xlu1 %5123 }
 0xdb1   : > { %9821 = vrcp.f32 %v5124_v10  ;;  %v5630_v10 = vld [vmem:[%s11155_s26] sm:$0xff] }
 0xdb2   : > { %v5121_v11 = vpop.xlane.xlu0 %5120 }
 0xdb3   : > { %9823 = vrcp.f32 %v5121_v11  ;;  %v7867_v11 = vld [vmem:[%s11155_s26 + $0x90] sm:$0xff] }
 0xdb4   : > { %v5130_v13 = vpop.xlane.xlu1 %5129 }
 0xdb5   : > { %9825 = vrcp.f32 %v5130_v13 }
 0xdb6   : > { %v5127_v14 = vpop.xlane.xlu0 %5126 }
 0xdb7   : > { %9827 = vrcp.f32 %v5127_v14 }
 0xdbe   : > { %v9822_v15 = vpop.eup %9821 }
 0xdbf   : > { %v5136_v12 = vmul.f32 %v9822_v15, %v9814_v62  ;;  %v7871_v62 = vld [vmem:[%s11155_s26 + $0xb0] sm:$0xff]  ;;  %v7866_v15 = vld [vmem:[%s11155_s26 + $0x88] sm:$0xff] }
 0xdc0   : > { %v9824_v16 = vpop.eup %9823 }
 0xdc1   : > { %9290 = vmatmul.mubr.msk.f32.vlgmr.msra.gmra.mxu1 %vm1934_vm2, %v5136_v12  ;;  %v5135_v17 = vmul.f32 %v9824_v16, %v9816_v61  ;;  %v7870_v61 = vld [vmem:[%s11155_s26 + $0xa8] sm:$0xff]  ;;  %v7865_v12 = vld [vmem:[%s11155_s26 + $0x80] sm:$0xff] }
 0xdc2   : > { %v9826_v18 = vpop.eup %9825  ;;  %9298 = vmatpush3.msra.mxu1 %v10751_v25  ;;  %9299 = vmatprep.mubr.msk.f32.mxu1 %vm9917_vm1, %v9916_v0  ;;  %v10778_v25 = vld [vmem:[%s11156_s28] ss:$0 sm:$0xff]  ;;  %s11161_s28 = sld [smem:[#allocation24_spill]] }
 0xdc3   : > { %9285 = vmatmul.mubr.msk.f32.vlgmr.msra.gmra.mxu0 %vm1934_vm2, %v5135_v17  ;;  %v5138_v19 = vmul.f32 %v9826_v18, %v9818_v3  ;;  %9307 = vmatprep.subr.mxu1 %v5432_v23  ;;  %v7869_v3 = vld [vmem:[%s11155_s26 + $0xa0] sm:$0xff]  ;;  %v5616_v8 = vmul.f32 %v10778_v25, %v10676_v35  ;;  %v5626_v13 = vmul.f32 %v10778_v25, %v10632_v48  ;;  %v5828_v35 = vld [vmem:[%s11158_s10 + $0x78] sm:$0xff]  ;;  %v5827_v48 = vld [vmem:[%s11158_s10 + $0x70] sm:$0xff] }
 0xdc4   : > { %v9828_v4 = vpop.eup %9827  ;;  %9293 = vmatpush3.msra.mxu0 %v10753_v26  ;;  %9294 = vmatprep.mubr.msk.f32.mxu0 %vm9917_vm1, %v9916_v0  ;;  %v5615_v26 = vmul.f32 %v10778_v25, %v10679_v38  ;;  %v5643_v38 = vld [vmem:[%s11155_s26 + $0x68] sm:$0xff]  ;;  %v7896_v18 = vld [vmem:[%s11158_s10 + $0xf8] sm:$0xff] }
 0xdc5   : > { %9300 = vmatmul.mubr.msk.f32.vlgmr.msra.gmra.mxu1 %vm1934_vm2, %v5138_v19  ;;  %v5137_v20 = vmul.f32 %v9828_v4, %v9820_v6  ;;  %9302 = vmatprep.subr.mxu0 %v5431_v21  ;;  %v7868_v6 = vld [vmem:[%s11155_s26 + $0x98] sm:$0xff]  ;;  %v5625_v14 = vadd.f32 %v10783_v31, %v5616_v8  ;;  %v10827_v16 = vadd.f32 %v10783_v31, %v5626_v13  ;;  %v5826_v17 = vld [vmem:[%s11158_s10 + $0x68] sm:$0xff]  ;;  %v5825_v19 = vld [vmem:[%s11158_s10 + $0x60] sm:$0xff] }
 0xdc6   : > { %9308 = vmatpush3.msra.mxu1 %v5432_v23  ;;  %v5624_v33 = vadd.f32 %v10783_v31, %v5615_v26  ;;  %v7895_v4 = vld [vmem:[%s11158_s10 + $0xf0] sm:$0xff]  ;;  %v7893_v23 = vld [vmem:[%s11158_s10 + $0xe0] sm:$0xff]  ;;  %v7892_v26 = vld [vmem:[%s11158_s10 + $0xd8] sm:$0xff] }
 0xdc7   : > { %9295 = vmatmul.mubr.msk.f32.vlgmr.msra.gmra.mxu0 %vm1934_vm2, %v5137_v20  ;;  %9347 = vmatprep.subr.mxu1 %v7880_v24  ;;  %v5824_v20 = vld [vmem:[%s11158_s10 + $0x58] sm:$0xff]  ;;  %v6002_v8 = vld [vmem:[%s11159_s15 + $0x30] sm:$0xff] }
 0xdc8   : > { %9303 = vmatpush3.msra.mxu0 %v5431_v21  ;;  %v7894_v21 = vld [vmem:[%s11158_s10 + $0xe8] sm:$0xff]  ;;  %v7904_v13 = vld [vmem:[%s11159_s15 + $0xb8] sm:$0xff] }
 0xdc9   : > { %9312 = vmatprep.subr.mxu0 %v5645_v22 }
 0xe81   : > { %v5281_v27 = vpop.f32.mrf.mxu1 }
 0xe83   : > { %v5208_v28 = vpop.f32.mrf.mxu0  ;;  %v9291_v30 = vpop.f32.mrf.mxu1 }
 0xe84   : > { %9304 = vmatprep.mubr.msk.f32.mxu0 %vm1934_vm2, %v5208_v28  ;;  %v7891_v28 = vld [vmem:[%s11158_s10 + $0xd0] sm:$0xff]  ;;  %v5820_v30 = vld [vmem:[%s11158_s10 + $0x38] sm:$0xff] }
 0xe85   : > { %v9286_v34 = vpop.f32.mrf.mxu0  ;;  %v5427_v37 = vpop.f32.mrf.mxu1  ;;  %9305 = vmatmul.mubr.msk.f32.vlgmr.msra.gmra.mxu0 %vm1934_vm2, %v5281_v27  ;;  %v5821_v27 = vld [vmem:[%s11158_s10 + $0x40] sm:$0xff] }
 0xe86   : > { %9313 = vmatpush3.msra.mxu0 %v5645_v22  ;;  %9344 = vmatprep.mubr.f32.mxu0 %v5624_v33  ;;  %v5823_v22 = vld [vmem:[%s11158_s10 + $0x50] sm:$0xff]  ;;  %v7889_v34 = vld [vmem:[%s11158_s10 + $0xc0] sm:$0xff] }
 0xe87   : > { %9314 = vmatprep.subr.mxu0 %v5644_v32  ;;  %v5354_v39 = vpop.f32.mrf.mxu0  ;;  %v9301_v40 = vpop.f32.mrf.mxu1 }
 0xe88   : > { %9315 = vmatpush3.msra.mxu0 %v5644_v32  ;;  %9309 = vmatprep.mubr.msk.f32.mxu1 %vm1934_vm2, %v5354_v39  ;;  %v7890_v32 = vld [vmem:[%s11158_s10 + $0xc8] sm:$0xff]  ;;  %v5817_v39 = vld [vmem:[%s11158_s10 + $0x20] sm:$0xff]  ;;  %v7887_v40 = vld [vmem:[%s11158_s10 + $0xb0] sm:$0xff] }
 0xe89   : > { %9316 = vmatprep.subr.mxu0 %v5643_v38  ;;  %v9296_v36 = vpop.f32.mrf.mxu0  ;;  %9310 = vmatmul.mubr.msk.f32.vlgmr.msra.gmra.mxu1 %vm1934_vm2, %v5427_v37  ;;  %v5818_v37 = vld [vmem:[%s11158_s10 + $0x28] sm:$0xff] }
 0xe8a   : > { %9317 = vmatpush3.msra.mxu0 %v5643_v38  ;;  %9348 = vmatpush3.msra.mxu1 %v7880_v24  ;;  %v5822_v24 = vld [vmem:[%s11158_s10 + $0x48] sm:$0xff]  ;;  %v7888_v38 = vld [vmem:[%s11158_s10 + $0xb8] sm:$0xff]  ;;  %v5815_v36 = vld [vmem:[%s11158_s10 + $0x10] sm:$0xff] }
 0xe8b   : > { %9318 = vmatprep.subr.mxu0 %v5642_v42  ;;  %9349 = vmatprep.subr.mxu1 %v7879_v43 }
 0xe8c   : > { %9379 = vmatprep.mubr.f32.mxu1 %v5624_v33  ;;  %9319 = vmatpush3.msra.mxu0 %v5642_v42  ;;  %v5819_v33 = vld [vmem:[%s11158_s10 + $0x30] sm:$0xff]  ;;  %v5816_v42 = vld [vmem:[%s11158_s10 + $0x18] sm:$0xff] }
 0xe8d   : > { %9350 = vmatpush3.msra.mxu1 %v7879_v43  ;;  %9320 = vmatprep.subr.mxu0 %v5641_v41  ;;  %v7886_v43 = vld [vmem:[%s11158_s10 + $0xa8] sm:$0xff] }
 0xe8e   : > { %9351 = vmatprep.subr.mxu1 %v7878_v44  ;;  %9321 = vmatpush3.msra.mxu0 %v5641_v41  ;;  %v7885_v41 = vld [vmem:[%s11158_s10 + $0xa0] sm:$0xff] }
 0xe8f   : > { %9352 = vmatpush3.msra.mxu1 %v7878_v44  ;;  %9322 = vmatprep.subr.mxu0 %v5640_v45  ;;  %v5814_v44 = vld [vmem:[%s11158_s10 + $0x8] sm:$0xff] }
 0xe90   : > { %9353 = vmatprep.subr.mxu1 %v7877_v47  ;;  %9323 = vmatpush3.msra.mxu0 %v5640_v45  ;;  %v7884_v45 = vld [vmem:[%s11158_s10 + $0x98] sm:$0xff] }
 0xe91   : > { %9354 = vmatpush3.msra.mxu1 %v7877_v47  ;;  %9324 = vmatprep.subr.mxu0 %v5639_v51  ;;  %v5627_v47 = vmul.f32 %v10778_v25, %v10629_v46  ;;  %v7881_v46 = vld [vmem:[%s11158_s10 + $0x80] sm:$0xff]  ;;  %v6010_v25 = vld [vmem:[%s11159_s15 + $0x70] sm:$0xff] }
 0xe92   : > { %9355 = vmatprep.subr.mxu1 %v7876_v53  ;;  %9325 = vmatpush3.msra.mxu0 %v5639_v51  ;;  %v5813_v51 = vld [vmem:[%s11158_s10] sm:$0xff] }
 0xe93   : > { %9356 = vmatpush3.msra.mxu1 %v7876_v53  ;;  %9326 = vmatprep.subr.mxu0 %v5638_v54  ;;  %v7883_v53 = vld [vmem:[%s11158_s10 + $0x90] sm:$0xff] }
 0xe94   : > { %9357 = vmatprep.subr.mxu1 %v7875_v55  ;;  %9327 = vmatpush3.msra.mxu0 %v5638_v54  ;;  %v10863_v54 = vadd.f32 %v10783_v31, %v5627_v47  ;;  %v6009_v31 = vld [vmem:[%s11159_s15 + $0x68] sm:$0xff] }
 0xe95   : > { %9358 = vmatpush3.msra.mxu1 %v7875_v55  ;;  %9328 = vmatprep.subr.mxu0 %v5637_v50  ;;  %v7882_v55 = vld [vmem:[%s11158_s10 + $0x88] sm:$0xff] }
 0xe96   : > { %9359 = vmatprep.subr.mxu1 %v7874_v56  ;;  %9329 = vmatpush3.msra.mxu0 %v5637_v50  ;;  %v6011_v50 = vld [vmem:[%s11159_s15 + $0x78] sm:$0xff] }
 0xe97   : > { %9360 = vmatpush3.msra.mxu1 %v7874_v56  ;;  %9330 = vmatprep.subr.mxu0 %v5636_v57  ;;  %v7912_v56 = vld [vmem:[%s11159_s15 + $0xf8] sm:$0xff] }
 0xe98   : > { %9361 = vmatprep.subr.mxu1 %v7873_v52  ;;  %9331 = vmatpush3.msra.mxu0 %v5636_v57  ;;  %v6008_v57 = vld [vmem:[%s11159_s15 + $0x60] sm:$0xff] }
 0xe99   : > { %9362 = vmatpush3.msra.mxu1 %v7873_v52  ;;  %9332 = vmatprep.subr.mxu0 %v5635_v58  ;;  %v7911_v52 = vld [vmem:[%s11159_s15 + $0xf0] sm:$0xff] }
 0xe9a   : > { %9363 = vmatprep.subr.mxu1 %v7872_v59  ;;  %9333 = vmatpush3.msra.mxu0 %v5635_v58  ;;  %v6007_v58 = vld [vmem:[%s11159_s15 + $0x58] sm:$0xff] }
 0xe9b   : > { %9364 = vmatpush3.msra.mxu1 %v7872_v59  ;;  %9334 = vmatprep.subr.mxu0 %v5634_v60  ;;  %v7910_v59 = vld [vmem:[%s11159_s15 + $0xe8] sm:$0xff] }
 0xe9c   : > { %9365 = vmatprep.subr.mxu1 %v7871_v62  ;;  %9335 = vmatpush3.msra.mxu0 %v5634_v60  ;;  %v6006_v60 = vld [vmem:[%s11159_s15 + $0x50] sm:$0xff] }
 0xe9d   : > { %9366 = vmatpush3.msra.mxu1 %v7871_v62  ;;  %9336 = vmatprep.subr.mxu0 %v5633_v1  ;;  %v7909_v62 = vld [vmem:[%s11159_s15 + $0xe0] sm:$0xff] }
 0xe9e   : > { %9367 = vmatprep.subr.mxu1 %v7870_v61  ;;  %9337 = vmatpush3.msra.mxu0 %v5633_v1  ;;  %v6005_v1 = vld [vmem:[%s11159_s15 + $0x48] sm:$0xff] }
 0xe9f   : > { %9368 = vmatpush3.msra.mxu1 %v7870_v61  ;;  %9338 = vmatprep.subr.mxu0 %v5632_v2  ;;  %v7908_v61 = vld [vmem:[%s11159_s15 + $0xd8] sm:$0xff] }
 0xea0   : > { %9369 = vmatprep.subr.mxu1 %v7869_v3  ;;  %9339 = vmatpush3.msra.mxu0 %v5632_v2  ;;  %v6004_v2 = vld [vmem:[%s11159_s15 + $0x40] sm:$0xff] }
 0xea1   : > { %9370 = vmatpush3.msra.mxu1 %v7869_v3  ;;  %9340 = vmatprep.subr.mxu0 %v5631_v5  ;;  %v7907_v3 = vld [vmem:[%s11159_s15 + $0xd0] sm:$0xff] }
 0xea2   : > { %9371 = vmatprep.subr.mxu1 %v7868_v6  ;;  %9341 = vmatpush3.msra.mxu0 %v5631_v5  ;;  %v6003_v5 = vld [vmem:[%s11159_s15 + $0x38] sm:$0xff] }
 0xea3   : > { %9372 = vmatpush3.msra.mxu1 %v7868_v6  ;;  %9342 = vmatprep.subr.mxu0 %v5630_v10  ;;  %v7906_v6 = vld [vmem:[%s11159_s15 + $0xc8] sm:$0xff] }
 0xea4   : > { %9373 = vmatprep.subr.mxu1 %v7867_v11  ;;  %9343 = vmatpush3.msra.mxu0 %v5630_v10  ;;  %v7905_v10 = vld [vmem:[%s11159_s15 + $0xc0] sm:$0xff] }
 0xea5   : > { %9374 = vmatpush3.msra.mxu1 %v7867_v11  ;;  %9345 = vmatmul.mubr.f32.vlgmr.msra.gmra.mxu0 %v5625_v14  ;;  %v6001_v11 = vld [vmem:[%s11159_s15 + $0x28] sm:$0xff] }
 0xea6   : > { %9375 = vmatprep.subr.mxu1 %v7866_v15  ;;  %9382 = vmatprep.subr.mxu0 %v5828_v35 }
 0xea7   : > { %9376 = vmatpush3.msra.mxu1 %v7866_v15  ;;  %9383 = vmatpush3.msra.mxu0 %v5828_v35  ;;  %v7903_v15 = vld [vmem:[%s11159_s15 + $0xb0] sm:$0xff]  ;;  %v5999_v35 = vld [vmem:[%s11159_s15 + $0x18] sm:$0xff] }
 0xea8   : > { %9414 = vmatprep.mubr.f32.mxu0 %v10827_v16  ;;  %9377 = vmatprep.subr.mxu1 %v7865_v12 }
 0xea9   : > { %9384 = vmatprep.subr.mxu0 %v5827_v48  ;;  %9378 = vmatpush3.msra.mxu1 %v7865_v12  ;;  %v7902_v12 = vld [vmem:[%s11159_s15 + $0xa8] sm:$0xff] }
 0xeaa   : > { %9385 = vmatpush3.msra.mxu0 %v5827_v48  ;;  %9380 = vmatmul.mubr.f32.vlgmr.msra.gmra.mxu1 %v5625_v14  ;;  %v6000_v14 = vld [vmem:[%s11159_s15 + $0x20] sm:$0xff] }
 0xeab   : > { %9386 = vmatprep.subr.mxu0 %v5826_v17  ;;  %9417 = vmatprep.subr.mxu1 %v7896_v18  ;;  %v7901_v48 = vld [vmem:[%s11159_s15 + $0xa0] sm:$0xff] }
 0xeac   : > { %9387 = vmatpush3.msra.mxu0 %v5826_v17  ;;  %9418 = vmatpush3.msra.mxu1 %v7896_v18  ;;  %v5997_v17 = vld [vmem:[%s11159_s15 + $0x8] sm:$0xff]  ;;  %v7900_v18 = vld [vmem:[%s11159_s15 + $0x98] sm:$0xff] }
 0xead   : > { %9449 = vmatprep.mubr.f32.mxu1 %v10827_v16  ;;  %9388 = vmatprep.subr.mxu0 %v5825_v19 }
 0xeae   : > { %9419 = vmatprep.subr.mxu1 %v7895_v4  ;;  %9389 = vmatpush3.msra.mxu0 %v5825_v19  ;;  %v5996_v19 = vld [vmem:[%s11159_s15] sm:$0xff] }
 0xeaf   : > { %9420 = vmatpush3.msra.mxu1 %v7895_v4  ;;  %9390 = vmatprep.subr.mxu0 %v5824_v20  ;;  %v7899_v4 = vld [vmem:[%s11159_s15 + $0x90] sm:$0xff] }
 0xeb0   : > { %9421 = vmatprep.subr.mxu1 %v7894_v21  ;;  %9391 = vmatpush3.msra.mxu0 %v5824_v20  ;;  %v7898_v20 = vld [vmem:[%s11159_s15 + $0x88] sm:$0xff] }
 0xeb1   : > { %9422 = vmatpush3.msra.mxu1 %v7894_v21  ;;  %9392 = vmatprep.subr.mxu0 %v5823_v22  ;;  %v7897_v21 = vld [vmem:[%s11159_s15 + $0x80] sm:$0xff] }
 0xeb2   : > { %9423 = vmatprep.subr.mxu1 %v7893_v23  ;;  %9393 = vmatpush3.msra.mxu0 %v5823_v22 }
 0xeb3   : > { %9424 = vmatpush3.msra.mxu1 %v7893_v23  ;;  %9394 = vmatprep.subr.mxu0 %v5822_v24 }
 0xeb4   : > { %9425 = vmatprep.subr.mxu1 %v7892_v26  ;;  %9395 = vmatpush3.msra.mxu0 %v5822_v24 }
 0xeb5   : > { %9426 = vmatpush3.msra.mxu1 %v7892_v26  ;;  %9396 = vmatprep.subr.mxu0 %v5821_v27 }
 0xeb6   : > { %9427 = vmatprep.subr.mxu1 %v7891_v28  ;;  %9397 = vmatpush3.msra.mxu0 %v5821_v27 }
 0xeb7   : > { %9428 = vmatpush3.msra.mxu1 %v7891_v28  ;;  %9398 = vmatprep.subr.mxu0 %v5820_v30 }
 0xeb8   : > { %9429 = vmatprep.subr.mxu1 %v7890_v32  ;;  %9399 = vmatpush3.msra.mxu0 %v5820_v30 }
 0xeb9   : > { %9430 = vmatpush3.msra.mxu1 %v7890_v32  ;;  %9400 = vmatprep.subr.mxu0 %v5819_v33 }
 0xeba   : > { %9431 = vmatprep.subr.mxu1 %v7889_v34  ;;  %9401 = vmatpush3.msra.mxu0 %v5819_v33 }
 0xebb   : > { %9432 = vmatpush3.msra.mxu1 %v7889_v34  ;;  %9402 = vmatprep.subr.mxu0 %v5818_v37 }
 0xebc   : > { %9433 = vmatprep.subr.mxu1 %v7888_v38  ;;  %9403 = vmatpush3.msra.mxu0 %v5818_v37 }
 0xebd   : > { %9434 = vmatpush3.msra.mxu1 %v7888_v38  ;;  %9404 = vmatprep.subr.mxu0 %v5817_v39 }
 0xebe   : > { %9435 = vmatprep.subr.mxu1 %v7887_v40  ;;  %9405 = vmatpush3.msra.mxu0 %v5817_v39 }
 0xebf   : > { %9436 = vmatpush3.msra.mxu1 %v7887_v40  ;;  %9406 = vmatprep.subr.mxu0 %v5816_v42 }
 0xec0   : > { %9437 = vmatprep.subr.mxu1 %v7886_v43  ;;  %9407 = vmatpush3.msra.mxu0 %v5816_v42 }
 0xec1   : > { %9438 = vmatpush3.msra.mxu1 %v7886_v43  ;;  %9408 = vmatprep.subr.mxu0 %v5815_v36 }
 0xec2   : > { %9439 = vmatprep.subr.mxu1 %v7885_v41  ;;  %9409 = vmatpush3.msra.mxu0 %v5815_v36 }
 0xec3   : > { %9440 = vmatpush3.msra.mxu1 %v7885_v41  ;;  %9410 = vmatprep.subr.mxu0 %v5814_v44 }
 0xec4   : > { %9441 = vmatprep.subr.mxu1 %v7884_v45  ;;  %9411 = vmatpush3.msra.mxu0 %v5814_v44 }
 0xec5   : > { %9442 = vmatpush3.msra.mxu1 %v7884_v45  ;;  %9412 = vmatprep.subr.mxu0 %v5813_v51 }
 0xec6   : > { %9443 = vmatprep.subr.mxu1 %v7883_v53  ;;  %9413 = vmatpush3.msra.mxu0 %v5813_v51 }
 0xec7   : > { %9444 = vmatpush3.msra.mxu1 %v7883_v53  ;;  %9415 = vmatmul.mubr.f32.vlgmr.msra.gmra.mxu0 %v10863_v54 }
 0xec8   : > { %9445 = vmatprep.subr.mxu1 %v7882_v55  ;;  %9452 = vmatprep.subr.mxu0 %v6011_v50 }
 0xec9   : > { %9446 = vmatpush3.msra.mxu1 %v7882_v55  ;;  %9453 = vmatpush3.msra.mxu0 %v6011_v50 }
 0xeca   : > { %9484 = vmatprep.mubr.f32.mxu0 %v10827_v16  ;;  %9447 = vmatprep.subr.mxu1 %v7881_v46 }
 0xecb   : > { %9454 = vmatprep.subr.mxu0 %v6010_v25  ;;  %9448 = vmatpush3.msra.mxu1 %v7881_v46 }
 0xecc   : > { %9455 = vmatpush3.msra.mxu0 %v6010_v25  ;;  %9450 = vmatmul.mubr.f32.vlgmr.msra.gmra.mxu1 %v10863_v54 }
 0xecd   : > { %9456 = vmatprep.subr.mxu0 %v6009_v31  ;;  %9487 = vmatprep.subr.mxu1 %v7912_v56 }
 0xece   : > { %9457 = vmatpush3.msra.mxu0 %v6009_v31  ;;  %9488 = vmatpush3.msra.mxu1 %v7912_v56 }
 0xecf   : > { %9519 = vmatprep.mubr.f32.mxu1 %v10827_v16  ;;  %9458 = vmatprep.subr.mxu0 %v6008_v57  ;;  %v5998_v16 = vld [vmem:[%s11159_s15 + $0x10] sm:$0xff] }
 0xed0   : > { %9489 = vmatprep.subr.mxu1 %v7911_v52  ;;  %9459 = vmatpush3.msra.mxu0 %v6008_v57 }
 0xed1   : > { %9490 = vmatpush3.msra.mxu1 %v7911_v52  ;;  %9460 = vmatprep.subr.mxu0 %v6007_v58 }
 0xed2   : > { %9491 = vmatprep.subr.mxu1 %v7910_v59  ;;  %9461 = vmatpush3.msra.mxu0 %v6007_v58 }
 0xed3   : > { %9492 = vmatpush3.msra.mxu1 %v7910_v59  ;;  %9462 = vmatprep.subr.mxu0 %v6006_v60 }
 0xed4   : > { %9493 = vmatprep.subr.mxu1 %v7909_v62  ;;  %9463 = vmatpush3.msra.mxu0 %v6006_v60 }
 0xed5   : > { %9494 = vmatpush3.msra.mxu1 %v7909_v62  ;;  %9464 = vmatprep.subr.mxu0 %v6005_v1 }
 0xed6   : > { %9495 = vmatprep.subr.mxu1 %v7908_v61  ;;  %9465 = vmatpush3.msra.mxu0 %v6005_v1 }
 0xed7   : > { %9496 = vmatpush3.msra.mxu1 %v7908_v61  ;;  %9466 = vmatprep.subr.mxu0 %v6004_v2 }
 0xed8   : > { %9497 = vmatprep.subr.mxu1 %v7907_v3  ;;  %9467 = vmatpush3.msra.mxu0 %v6004_v2 }
 0xed9   : > { %9498 = vmatpush3.msra.mxu1 %v7907_v3  ;;  %9468 = vmatprep.subr.mxu0 %v6003_v5 }
 0xeda   : > { %9499 = vmatprep.subr.mxu1 %v7906_v6  ;;  %9469 = vmatpush3.msra.mxu0 %v6003_v5 }
 0xedb   : > { %9500 = vmatpush3.msra.mxu1 %v7906_v6  ;;  %9470 = vmatprep.subr.mxu0 %v6002_v8 }
 0xedc   : > { %9501 = vmatprep.subr.mxu1 %v7905_v10  ;;  %9471 = vmatpush3.msra.mxu0 %v6002_v8 }
 0xedd   : > { %9502 = vmatpush3.msra.mxu1 %v7905_v10  ;;  %9472 = vmatprep.subr.mxu0 %v6001_v11 }
 0xede   : > { %9503 = vmatprep.subr.mxu1 %v7904_v13  ;;  %9473 = vmatpush3.msra.mxu0 %v6001_v11 }
 0xedf   : > { %9504 = vmatpush3.msra.mxu1 %v7904_v13  ;;  %9474 = vmatprep.subr.mxu0 %v6000_v14 }
 0xee0   : > { %9505 = vmatprep.subr.mxu1 %v7903_v15  ;;  %9475 = vmatpush3.msra.mxu0 %v6000_v14 }
 0xee1   : > { %9506 = vmatpush3.msra.mxu1 %v7903_v15  ;;  %9476 = vmatprep.subr.mxu0 %v5999_v35 }
 0xee2   : > { %9507 = vmatprep.subr.mxu1 %v7902_v12  ;;  %9477 = vmatpush3.msra.mxu0 %v5999_v35 }
 0xee3   : > { %9508 = vmatpush3.msra.mxu1 %v7902_v12  ;;  %9478 = vmatprep.subr.mxu0 %v5998_v16  ;;  %v7862_v12 = vld [vmem:[%s11160_s16] ss:$0 sm:$0xff]  ;;  %s11163_s16 = sld [smem:[#allocation25_spill]] }
 0xee4   : > { %9509 = vmatprep.subr.mxu1 %v7901_v48  ;;  %9479 = vmatpush3.msra.mxu0 %v5998_v16 }
 0xee5   : > { %9510 = vmatpush3.msra.mxu1 %v7901_v48  ;;  %9480 = vmatprep.subr.mxu0 %v5997_v17 }
 0xee6   : > { %9511 = vmatprep.subr.mxu1 %v7900_v18  ;;  %9481 = vmatpush3.msra.mxu0 %v5997_v17 }
 0xee7   : > { %9512 = vmatpush3.msra.mxu1 %v7900_v18  ;;  %9482 = vmatprep.subr.mxu0 %v5996_v19 }
 0xee8   : > { %9513 = vmatprep.subr.mxu1 %v7899_v4  ;;  %9483 = vmatpush3.msra.mxu0 %v5996_v19 }
 0xee9   : > { %9514 = vmatpush3.msra.mxu1 %v7899_v4  ;;  %9485 = vmatmul.mubr.f32.vlgmr.msra.gmra.mxu0 %v10863_v54 }
 0xeea   : > { %9515 = vmatprep.subr.mxu1 %v7898_v20  ;;  %9522 = vmatprep.subr.mxu0 %v9916_v0 }
 0xeeb   : > { %9516 = vmatpush3.msra.mxu1 %v7898_v20  ;;  %9524 = vmatprep.mubr.msk.f32.mxu0 %vm9917_vm1, %v9916_v0 }
 0xeec   : > { %9517 = vmatprep.subr.mxu1 %v7897_v21 }
 0xeed   : > { %9518 = vmatpush3.msra.mxu1 %v7897_v21 }
 0xeee   : > { %9520 = vmatmul.mubr.f32.vlgmr.msra.gmra.mxu1 %v10863_v54  ;;  %9527 = vmatprep.subr.mxu1 %v9916_v0 }
 0xeef   : > { %9529 = vmatprep.mubr.msk.f32.mxu1 %vm9917_vm1, %v9916_v0 }
 0xf45   : > { %v9306_v22 = vpop.f32.mrf.mxu0 }
 0xf47   : > { %v5505_v26 = vpop.f32.mrf.mxu0 }
 0xf49   : > { %v9311_v23 = vpop.f32.mrf.mxu1 }
 0xf4a   : > { %v10911_v24 = vadd.f32 %v9311_v23, %v9306_v22 }
 0xf4b   : > { %v5586_v27 = vpop.f32.mrf.mxu1 }
 0xf4c   : > { %v10913_v28 = vadd.f32 %v5586_v27, %v5505_v26  ;;  %v5605_v17 = vadd.f32 %v7862_v12, %v10911_v24 }
 0xf4e   : > { %v5604_v4 = vadd.f32 %v7862_v12, %v10913_v28  ;;  %v10953_v21 = vadd.f32 %v5605_v17, %v10531_v63  ;;  %v7047_v12 = vld [vmem:[%s11162_s1 + $0x28] sm:$0xff]  ;;  %v7044_v17 = vld [vmem:[%s11162_s1 + $0x10] sm:$0xff] }
 0xf50   : > { %v10957_v22 = vadd.f32 %v5604_v4, %v10535_v7 }
 0xf65   : > { %v9346_v30 = vpop.f32.mrf.mxu0 }
 0xf67   : > { %v5712_v32 = vpop.f32.mrf.mxu0 }
 0xf6a   : > { %v9381_v33 = vpop.f32.mrf.mxu1 }
 0xf6c   : > { %v5804_v38 = vpop.f32.mrf.mxu1 }
 0xf87   : > { %v9416_v34 = vpop.f32.mrf.mxu0 }
 0xf88   : > { %9528 = vmatpush3.xpose.msk.msra.mxu1 %vm1934_vm2, %v9416_v34 }
 0xf89   : > { %v5895_v37 = vpop.f32.mrf.mxu0  ;;  %9537 = vmatprep.subr.mxu1 %v9916_v0 }
 0xf8a   : > { %9523 = vmatpush3.xpose.msk.msra.mxu0 %vm1934_vm2, %v5895_v37 }
 0xf8b   : > { %9530 = vmatmul.mubr.msk.f32.vlgmr.msra.gmra.mxu1 %vm1934_vm2, %v9346_v30  ;;  %9532 = vmatprep.subr.mxu0 %v9916_v0 }
 0xf8c   : > { %v9451_v39 = vpop.f32.mrf.mxu1  ;;  %9539 = vmatprep.mubr.msk.f32.mxu1 %vm9917_vm1, %v9916_v0 }
 0xf8d   : > { %9538 = vmatpush3.xpose.msk.msra.mxu1 %vm1934_vm2, %v9451_v39  ;;  %9525 = vmatmul.mubr.msk.f32.vlgmr.msra.gmra.mxu0 %vm1934_vm2, %v5712_v32  ;;  %v6824_v39 = vld [vmem:[%s11161_s28 + $0x8] sm:$0xff] }
 0xf8e   : > { %v5987_v40 = vpop.f32.mrf.mxu1  ;;  %9534 = vmatprep.mubr.msk.f32.mxu0 %vm9917_vm1, %v9916_v0  ;;  %9547 = vmatprep.subr.mxu1 %v9916_v0 }
 0xf8f   : > { %9533 = vmatpush3.xpose.msk.msra.mxu0 %vm1934_vm2, %v5987_v40 }
 0xf90   : > { %9540 = vmatmul.mubr.msk.f32.vlgmr.msra.gmra.mxu1 %vm1934_vm2, %v9381_v33  ;;  %9542 = vmatprep.subr.mxu0 %v9916_v0 }
 0xf91   : > { %9549 = vmatprep.mubr.msk.f32.mxu1 %vm9917_vm1, %v9916_v0 }
 0xf92   : > { %9535 = vmatmul.mubr.msk.f32.vlgmr.msra.gmra.mxu0 %vm1934_vm2, %v5804_v38  ;;  %v6823_v38 = vld [vmem:[%s11161_s28] sm:$0xff] }
 0xf93   : > { %9544 = vmatprep.mubr.msk.f32.mxu0 %vm9917_vm1, %v9916_v0 }
 0xfa9   : > { %v9486_v42 = vpop.f32.mrf.mxu0 }
 0xfaa   : > { %9548 = vmatpush3.msra.mxu1 %v9486_v42 }
 0xfab   : > { %v6078_v43 = vpop.f32.mrf.mxu0  ;;  %9557 = vmatprep.subr.mxu1 %v9916_v0 }
 0xfac   : > { %9543 = vmatpush3.msra.mxu0 %v6078_v43 }
 0xfad   : > { %9552 = vmatprep.subr.mxu0 %v9916_v0 }
 0xfae   : > { %v10937_v36 = vpop.f32.mrf.mxu1 }
 0xfb0   : > { %v10939_v41 = vpop.f32.mrf.mxu1 }
0x104b   : > { %v6327_v44 = vpop.f32.mrf.mxu1 }
0x104c   : > { %v6484_v45 = vmul.f32 0.17677669, %v6327_v44 }
0x104d   : > { %v6251_v47 = vpop.f32.mrf.mxu0  ;;  %v9531_v51 = vpop.f32.mrf.mxu1 }
0x104e   : > { %v6483_v53 = vmul.f32 0.17677669, %v6251_v47  ;;  %v6490_v54 = vsel %vm1934_vm2, %v6484_v45, -inf  ;;  %v7057_v47 = vld [vmem:[%s11162_s1 + $0x78] sm:$0xff] }
0x104f   : > { %6491 = vmax.xlane.f32.xlu1 %v6490_v54  ;;  %v9526_v55 = vpop.f32.mrf.mxu0 }
0x1050   : > { %v6479_v50 = vpop.f32.mrf.mxu1  ;;  %v6487_v46 = vsel %vm1934_vm2, %v6483_v53, -inf }
0x1051   : > { %v6486_v25 = vmul.f32 0.17677669, %v6479_v50  ;;  %6488 = vmax.xlane.f32.xlu0 %v6487_v46 }
0x1052   : > { %v9541_v31 = vpop.f32.mrf.mxu1  ;;  %v6403_v56 = vpop.f32.mrf.mxu0 }
0x1053   : > { %v6485_v57 = vmul.f32 0.17677669, %v6403_v56  ;;  %v6496_v52 = vsel %vm1934_vm2, %v6486_v25, -inf }
0x1054   : > { %6497 = vmax.xlane.f32.xlu1 %v6496_v52  ;;  %v9536_v58 = vpop.f32.mrf.mxu0 }
0x1055   : > { %v6493_v59 = vsel %vm1934_vm2, %v6485_v57, -inf }
0x1056   : > { %6494 = vmax.xlane.f32.xlu0 %v6493_v59 }
0x10d8   : > { %v6492_v60 = vpop.xlane.xlu1 %6491 }
0x10d9   : > { %v6500_v62 = vsub.f32 %v6484_v45, %v6492_v60 }
0x10da   : > { %v6489_v1 = vpop.xlane.xlu0 %6488 }
0x10db   : > { %v6505_v61 = vmul.f32 1.442695, %v6500_v62  ;;  %v6499_v2 = vsub.f32 %v6483_v53, %v6489_v1 }
0x10dd   : > { %9829 = vpow2.f32 %v6505_v61  ;;  %v6503_v3 = vmul.f32 1.442695, %v6499_v2  ;;  %v6498_v5 = vpop.xlane.xlu1 %6497 }
0x10de   : > { %v6502_v6 = vsub.f32 %v6486_v25, %v6498_v5  ;;  %v7929_v25 = vld [vmem:[%s11163_s16] ss:$0 sm:$0xff]  ;;  %s11164_s16 = sld [smem:[#allocation28_spill]] }
0x10df   : > { %9831 = vpow2.f32 %v6503_v3  ;;  %v6495_v8 = vpop.xlane.xlu0 %6494 }
0x10e0   : > { %v6509_v10 = vmul.f32 1.442695, %v6502_v6  ;;  %v6501_v11 = vsub.f32 %v6485_v57, %v6495_v8  ;;  %v7056_v6 = vld [vmem:[%s11162_s1 + $0x70] sm:$0xff]  ;;  %v7054_v8 = vld [vmem:[%s11162_s1 + $0x60] sm:$0xff] }
0x10e2   : > { %9833 = vpow2.f32 %v6509_v10  ;;  %v6507_v13 = vmul.f32 1.442695, %v6501_v11  ;;  %v7053_v10 = vld [vmem:[%s11162_s1 + $0x58] sm:$0xff]  ;;  %v7052_v11 = vld [vmem:[%s11162_s1 + $0x50] sm:$0xff] }
0x10e4   : > { %9835 = vpow2.f32 %v6507_v13  ;;  %v7051_v13 = vld [vmem:[%s11162_s1 + $0x48] sm:$0xff]  ;;  %v7307_v4 = vld [vmem:[%s11164_s16 + $0x78] sm:$0xff] }
0x10ea   : > { %v9830_v14 = vpop.eup %9829 }
0x10eb   : > { %v6514_v15 = vsel %vm1934_vm2, %v9830_v14, 0.0 }
0x10ec   : > { %v9832_v35 = vpop.eup %9831  ;;  %6515 = vadd.xlane.f32.xlu1 %v6514_v15  ;;  %v7049_v15 = vld [vmem:[%s11162_s1 + $0x38] sm:$0xff] }
0x10ed   : > { %v6511_v16 = vsel %vm1934_vm2, %v9832_v35, 0.0 }
0x10ee   : > { %6512 = vadd.xlane.f32.xlu0 %v6511_v16  ;;  %v7046_v16 = vld [vmem:[%s11162_s1 + $0x20] sm:$0xff] }
0x10ef   : > { %v9834_v48 = vpop.eup %9833 }
0x10f0   : > { %v6520_v18 = vsel %vm1934_vm2, %v9834_v48, 0.0 }
0x10f1   : > { %v9836_v19 = vpop.eup %9835  ;;  %6521 = vadd.xlane.f32.xlu1 %v6520_v18  ;;  %v7043_v18 = vld [vmem:[%s11162_s1 + $0x8] sm:$0xff] }
0x10f2   : > { %v6517_v20 = vsel %vm1934_vm2, %v9836_v19, 0.0 }
0x10f3   : > { %6518 = vadd.xlane.f32.xlu0 %v6517_v20 }
0x10f5   : > { %7002 = vadd.xlane.f32.xlu1 %v10953_v21 }
0x10f7   : > { %7000 = vadd.xlane.f32.xlu0 %v10957_v22 }
0x1175   : > { %v6516_v23 = vpop.xlane.xlu1 %6515 }
0x1176   : > { %9837 = vrcp.f32 %v6516_v23 }
0x1177   : > { %v6513_v24 = vpop.xlane.xlu0 %6512 }
0x1178   : > { %9839 = vrcp.f32 %v6513_v24 }
0x117a   : > { %v6522_v26 = vpop.xlane.xlu1 %6521 }
0x117b   : > { %9841 = vrcp.f32 %v6522_v26 }
0x117c   : > { %v6519_v27 = vpop.xlane.xlu0 %6518 }
0x117d   : > { %9843 = vrcp.f32 %v6519_v27 }
0x117e   : > { %v7003_v51 = vpop.xlane.xlu1 %7002 }
0x117f   : > { %v7005_v54 = vmul.f32 0.03125, %v7003_v51 }
0x1180   : > { %v7001_v53 = vpop.xlane.xlu0 %7000 }
0x1181   : > { %v7004_v50 = vmul.f32 0.03125, %v7001_v53  ;;  %v7007_v56 = vsub.f32 %v10953_v21, %v7005_v54  ;;  %v7306_v53 = vld [vmem:[%s11164_s16 + $0x70] sm:$0xff]  ;;  %v7305_v54 = vld [vmem:[%s11164_s16 + $0x68] sm:$0xff] }
0x1183   : > { %v9838_v28 = vpop.eup %9837  ;;  %v7006_v60 = vsub.f32 %v10957_v22, %v7004_v50  ;;  %v10985_v61 = vsel %vm1336_vm0, %v7007_v56, 0.0  ;;  %v7303_v50 = vld [vmem:[%s11164_s16 + $0x58] sm:$0xff] }
0x1184   : > { %v6528_v30 = vmul.f32 %v9838_v28, %v9830_v14  ;;  %v7050_v14 = vld [vmem:[%s11162_s1 + $0x40] sm:$0xff]  ;;  %v7299_v56 = vld [vmem:[%s11164_s16 + $0x38] sm:$0xff] }
0x1185   : > { %v9840_v63 = vpop.eup %9839  ;;  %v10993_v3 = vsel %vm1336_vm0, %v7006_v60, 0.0  ;;  %v7297_v60 = vld [vmem:[%s11164_s16 + $0x28] sm:$0xff] }
0x1186   : > { %9550 = vmatmul.mubr.msk.f32.vlgmr.msra.gmra.mxu1 %vm1934_vm2, %v6528_v30  ;;  %v6527_v32 = vmul.f32 %v9840_v63, %v9832_v35  ;;  %v7010_v5 = vmul.f32 %v10993_v3, %v10993_v3  ;;  %v7048_v35 = vld [vmem:[%s11162_s1 + $0x30] sm:$0xff] }
0x1187   : > { %9558 = vmatpush3.msra.mxu1 %v10937_v36  ;;  %9559 = vmatprep.mubr.msk.f32.mxu1 %vm9917_vm1, %v9916_v0 }
0x1188   : > { %v9842_v7 = vpop.eup %9841  ;;  %9545 = vmatmul.mubr.msk.f32.vlgmr.msra.gmra.mxu0 %vm1934_vm2, %v6527_v32  ;;  %9567 = vmatprep.subr.mxu1 %v6824_v39 }
0x1189   : > { %9553 = vmatpush3.msra.mxu0 %v10939_v41  ;;  %v6530_v33 = vmul.f32 %v9842_v7, %v9834_v48  ;;  %9554 = vmatprep.mubr.msk.f32.mxu0 %vm9917_vm1, %v9916_v0  ;;  %v7045_v48 = vld [vmem:[%s11162_s1 + $0x18] sm:$0xff] }
0x118a   : > { %v9844_v34 = vpop.eup %9843  ;;  %9562 = vmatprep.subr.mxu0 %v6823_v38 }
0x118b   : > { %9560 = vmatmul.mubr.msk.f32.vlgmr.msra.gmra.mxu1 %vm1934_vm2, %v6530_v33  ;;  %v6529_v37 = vmul.f32 %v9844_v34, %v9836_v19  ;;  %v7042_v19 = vld [vmem:[%s11162_s1] sm:$0xff] }
0x118c   : > { %9568 = vmatpush3.msra.mxu1 %v6824_v39 }
0x118d   : > { %9555 = vmatmul.mubr.msk.f32.vlgmr.msra.gmra.mxu0 %vm1934_vm2, %v6529_v37 }
0x118e   : > { %9563 = vmatpush3.msra.mxu0 %v6823_v38 }
0x118f   : > { %9572 = vmatprep.subr.mxu0 %v7057_v47 }
0x1246   : > { %v6673_v40 = vpop.f32.mrf.mxu1 }
0x1248   : > { %v6600_v42 = vpop.f32.mrf.mxu0  ;;  %v9551_v43 = vpop.f32.mrf.mxu1 }
0x1249   : > { %9564 = vmatprep.mubr.msk.f32.mxu0 %vm1934_vm2, %v6600_v42 }
0x124a   : > { %v9546_v36 = vpop.f32.mrf.mxu0  ;;  %9565 = vmatmul.mubr.msk.f32.vlgmr.msra.gmra.mxu0 %vm1934_vm2, %v6673_v40 }
0x124b   : > { %v6819_v0 = vpop.f32.mrf.mxu1  ;;  %9573 = vmatpush3.msra.mxu0 %v7057_v47  ;;  %v7930_v36 = vld [vmem:[%s11165_s2] ss:$0 sm:$0xff]  ;;  %s11167_s2 = sld [smem:[#allocation14_spill]] }
0x124c   : > { %9574 = vmatprep.subr.mxu0 %v7056_v6 }
0x124d   : > { %v6746_v41 = vpop.f32.mrf.mxu0  ;;  %v9561_v44 = vpop.f32.mrf.mxu1  ;;  %9575 = vmatpush3.msra.mxu0 %v7056_v6 }
0x124e   : > { %9569 = vmatprep.mubr.msk.f32.mxu1 %vm1934_vm2, %v6746_v41 }
0x124f   : > { %v9556_v45 = vpop.f32.mrf.mxu0  ;;  %9570 = vmatmul.mubr.msk.f32.vlgmr.msra.gmra.mxu1 %vm1934_vm2, %v6819_v0 }
0x1251   : > { %v7162_v6 = vld [vmem:[%s11167_s2 + $0x60] sm:$0xff] }
0x130a   : > { %v9566_v55 = vpop.f32.mrf.mxu0 }
0x130c   : > { %v6897_v57 = vpop.f32.mrf.mxu0 }
0x130f   : > { %v9571_v46 = vpop.f32.mrf.mxu1 }
0x1310   : > { %v6988_v31 = vadd.f32 %v9571_v46, %v9566_v55  ;;  %v7304_v55 = vld [vmem:[%s11164_s16 + $0x60] sm:$0xff]  ;;  %v7302_v46 = vld [vmem:[%s11164_s16 + $0x50] sm:$0xff] }
0x1311   : > { %v6978_v52 = vpop.f32.mrf.mxu1 }
0x1312   : > { %v6997_v58 = vadd.f32 %v7929_v25, %v6988_v31  ;;  %v6987_v59 = vadd.f32 %v6978_v52, %v6897_v57  ;;  %v7300_v31 = vld [vmem:[%s11164_s16 + $0x40] sm:$0xff]  ;;  %v7165_v57 = vld [vmem:[%s11167_s2 + $0x78] sm:$0xff]  ;;  %v7164_v52 = vld [vmem:[%s11167_s2 + $0x70] sm:$0xff] }
0x1313   : > { %9607 = vmatprep.subr.mxu1 %v7165_v57 }
0x1314   : > { %v6996_v62 = vadd.f32 %v7929_v25, %v6987_v59  ;;  %v10981_v1 = vadd.f32 %v6997_v58, %v10560_v49  ;;  %v7011_v49 = vmul.f32 %v10985_v61, %v10985_v61  ;;  %v7301_v25 = vld [vmem:[%s11164_s16 + $0x48] sm:$0xff]  ;;  %v7298_v58 = vld [vmem:[%s11164_s16 + $0x30] sm:$0xff]  ;;  %9608 = vmatpush3.msra.mxu1 %v7165_v57 }
0x1315   : > { %v7163_v59 = vld [vmem:[%s11167_s2 + $0x68] sm:$0xff]  ;;  %9609 = vmatprep.subr.mxu1 %v7164_v52 }
0x1316   : > { %7252 = vadd.xlane.f32.xlu1 %v10981_v1  ;;  %v10989_v2 = vadd.f32 %v6996_v62, %v10568_v29  ;;  %v7055_v29 = vld [vmem:[%s11162_s1 + $0x68] sm:$0xff]  ;;  %s11166_s1 = sld [smem:[#allocation11_spill]]  ;;  %9610 = vmatpush3.msra.mxu1 %v7164_v52  ;;  %v7296_v62 = vld [vmem:[%s11164_s16 + $0x20] sm:$0xff] }
0x1317   : > { %9576 = vmatprep.subr.mxu0 %v7055_v29  ;;  %9611 = vmatprep.subr.mxu1 %v7163_v59  ;;  %v7409_v57 = vld [vmem:[%s10126_s14 + $0x48] sm:$0xff]  ;;  %v7408_v52 = vld [vmem:[%s10126_s14 + $0x40] sm:$0xff] }
0x1318   : > { %7250 = vadd.xlane.f32.xlu0 %v10989_v2  ;;  %9577 = vmatpush3.msra.mxu0 %v7055_v29  ;;  %v7161_v29 = vld [vmem:[%s11167_s2 + $0x58] sm:$0xff] }
0x1319   : > { %9578 = vmatprep.subr.mxu0 %v7054_v8  ;;  %9612 = vmatpush3.msra.mxu1 %v7163_v59  ;;  %v7406_v59 = vld [vmem:[%s10126_s14 + $0x30] sm:$0xff] }
0x131a   : > { %7014 = vadd.xlane.f32.xlu1 %v7011_v49  ;;  %9579 = vmatpush3.msra.mxu0 %v7054_v8  ;;  %v7293_v49 = vld [vmem:[%s11164_s16 + $0x8] sm:$0xff]  ;;  %v7160_v8 = vld [vmem:[%s11167_s2 + $0x50] sm:$0xff] }
0x131b   : > { %9580 = vmatprep.subr.mxu0 %v7053_v10  ;;  %9613 = vmatprep.subr.mxu1 %v7162_v6 }
0x131c   : > { %7012 = vadd.xlane.f32.xlu0 %v7010_v5  ;;  %9581 = vmatpush3.msra.mxu0 %v7053_v10  ;;  %v7931_v45 = vld [vmem:[%s11166_s1] ss:$0 sm:$0xff]  ;;  %v7159_v10 = vld [vmem:[%s11167_s2 + $0x48] sm:$0xff]  ;;  %s11168_s1 = sld [smem:[#allocation26_spill]] }
0x131d   : > { %9582 = vmatprep.subr.mxu0 %v7052_v11  ;;  %v7292_v5 = vld [vmem:[%s11164_s16] sm:$0xff]  ;;  %9614 = vmatpush3.msra.mxu1 %v7162_v6 }
0x131e   : > { %9583 = vmatpush3.msra.mxu0 %v7052_v11  ;;  %9615 = vmatprep.subr.mxu1 %v7161_v29  ;;  %v7158_v11 = vld [vmem:[%s11167_s2 + $0x40] sm:$0xff] }
0x131f   : > { %9584 = vmatprep.subr.mxu0 %v7051_v13  ;;  %9616 = vmatpush3.msra.mxu1 %v7161_v29 }
0x1320   : > { %9585 = vmatpush3.msra.mxu0 %v7051_v13  ;;  %9617 = vmatprep.subr.mxu1 %v7160_v8  ;;  %v7157_v13 = vld [vmem:[%s11167_s2 + $0x38] sm:$0xff] }
0x1321   : > { %9586 = vmatprep.subr.mxu0 %v7050_v14  ;;  %9618 = vmatpush3.msra.mxu1 %v7160_v8 }
0x1322   : > { %9587 = vmatpush3.msra.mxu0 %v7050_v14  ;;  %9619 = vmatprep.subr.mxu1 %v7159_v10  ;;  %v7156_v14 = vld [vmem:[%s11167_s2 + $0x30] sm:$0xff] }
0x1323   : > { %9588 = vmatprep.subr.mxu0 %v7049_v15  ;;  %9620 = vmatpush3.msra.mxu1 %v7159_v10 }
0x1324   : > { %9589 = vmatpush3.msra.mxu0 %v7049_v15  ;;  %9621 = vmatprep.subr.mxu1 %v7158_v11  ;;  %v7155_v15 = vld [vmem:[%s11167_s2 + $0x28] sm:$0xff] }
0x1325   : > { %9590 = vmatprep.subr.mxu0 %v7048_v35  ;;  %9622 = vmatpush3.msra.mxu1 %v7158_v11 }
0x1326   : > { %9591 = vmatpush3.msra.mxu0 %v7048_v35  ;;  %9623 = vmatprep.subr.mxu1 %v7157_v13  ;;  %v7154_v35 = vld [vmem:[%s11167_s2 + $0x20] sm:$0xff] }
0x1327   : > { %9592 = vmatprep.subr.mxu0 %v7047_v12  ;;  %9624 = vmatpush3.msra.mxu1 %v7157_v13 }
0x1328   : > { %9593 = vmatpush3.msra.mxu0 %v7047_v12  ;;  %9625 = vmatprep.subr.mxu1 %v7156_v14  ;;  %v7153_v12 = vld [vmem:[%s11167_s2 + $0x18] sm:$0xff] }
0x1329   : > { %9594 = vmatprep.subr.mxu0 %v7046_v16  ;;  %9626 = vmatpush3.msra.mxu1 %v7156_v14 }
0x132a   : > { %9595 = vmatpush3.msra.mxu0 %v7046_v16  ;;  %9627 = vmatprep.subr.mxu1 %v7155_v15  ;;  %v7152_v16 = vld [vmem:[%s11167_s2 + $0x10] sm:$0xff] }
0x132b   : > { %9596 = vmatprep.subr.mxu0 %v7045_v48  ;;  %9628 = vmatpush3.msra.mxu1 %v7155_v15 }
0x132c   : > { %9597 = vmatpush3.msra.mxu0 %v7045_v48  ;;  %9629 = vmatprep.subr.mxu1 %v7154_v35  ;;  %v7151_v48 = vld [vmem:[%s11167_s2 + $0x8] sm:$0xff] }
0x132d   : > { %9598 = vmatprep.subr.mxu0 %v7044_v17  ;;  %9630 = vmatpush3.msra.mxu1 %v7154_v35 }
0x132e   : > { %9599 = vmatpush3.msra.mxu0 %v7044_v17  ;;  %9631 = vmatprep.subr.mxu1 %v7153_v12  ;;  %v7150_v17 = vld [vmem:[%s11167_s2] sm:$0xff] }
0x132f   : > { %9600 = vmatprep.subr.mxu0 %v7043_v18  ;;  %9632 = vmatpush3.msra.mxu1 %v7153_v12 }
0x1330   : > { %9601 = vmatpush3.msra.mxu0 %v7043_v18  ;;  %9633 = vmatprep.subr.mxu1 %v7152_v16  ;;  %v7415_v18 = vld [vmem:[%s10126_s14 + $0x78] sm:$0xff] }
0x1331   : > { %9602 = vmatprep.subr.mxu0 %v7042_v19  ;;  %9634 = vmatpush3.msra.mxu1 %v7152_v16 }
0x1332   : > { %9603 = vmatpush3.msra.mxu0 %v7042_v19  ;;  %9635 = vmatprep.subr.mxu1 %v7151_v48 }
0x1333   : > { %9642 = vmatprep.subr.mxu0 %v7307_v4  ;;  %9636 = vmatpush3.msra.mxu1 %v7151_v48 }
0x1334   : > { %9637 = vmatprep.subr.mxu1 %v7150_v17 }
0x1335   : > { %9638 = vmatpush3.msra.mxu1 %v7150_v17 }
0x1336   : > { %9677 = vmatprep.subr.mxu1 %v7415_v18 }
0x139f   : > { %v7253_v20 = vpop.xlane.xlu1 %7252 }
0x13a0   : > { %v7255_v23 = vmul.f32 0.03125, %v7253_v20 }
0x13a1   : > { %v7251_v24 = vpop.xlane.xlu0 %7250 }
0x13a2   : > { %v7257_v26 = vsub.f32 %v10981_v1, %v7255_v23  ;;  %v7254_v27 = vmul.f32 0.03125, %v7251_v24 }
0x13a3   : > { %v7015_v28 = vpop.xlane.xlu1 %7014 }
0x13a4   : > { %v7256_v30 = vsub.f32 %v10989_v2, %v7254_v27  ;;  %v7017_v63 = vmul.f32 0.03125, %v7015_v28  ;;  %v11020_v32 = vsel %vm1336_vm0, %v7257_v26, 0.0 }
0x13a5   : > { %v7013_v7 = vpop.xlane.xlu0 %7012  ;;  %v7261_v33 = vmul.f32 %v11020_v32, %v11020_v32 }
0x13a6   : > { %v7019_v34 = vadd.f32 1e-05, %v7017_v63  ;;  %v7016_v37 = vmul.f32 0.03125, %v7013_v7  ;;  %v11026_v38 = vsel %vm1336_vm0, %v7256_v30, 0.0  ;;  %v7934_v30 = vld [vmem:[%s11168_s1] ss:$0 sm:$0xff]  ;;  %s1326_s1 = scalar_lea.vmem %s10136_s24, %s10151_s0 }
0x13a7   : > { %7264 = vadd.xlane.f32.xlu1 %v7261_v33  ;;  %v7260_v39 = vmul.f32 %v11026_v38, %v11026_v38 }
0x13a8   : > { %9845 = vrsqrt.f32 %v7019_v34  ;;  %v7018_v40 = vadd.f32 1e-05, %v7016_v37  ;;  %v7935_v37 = vld [vmem:[%s11169_s3] ss:$0 sm:$0xff]  ;;  %s11171_s3 = sld [smem:[#allocation29_spill]] }
0x13a9   : > { %7262 = vadd.xlane.f32.xlu0 %v7260_v39 }
0x13aa   : > { %9847 = vrsqrt.f32 %v7018_v40 }
0x13ae   : > { %v7936_v6 = vld [vmem:[%s11171_s3] ss:$0 sm:$0xff]  ;;  %s1332_s3 = scalar_lea.vmem %s10141_s19, %s10151_s0 }
0x13b5   : > { %v9846_v42 = vpop.eup %9845 }
0x13b6   : > { %v7023_v43 = vmul.f32 %v9846_v42, %v10985_v61  ;;  %v7295_v61 = vld [vmem:[%s11164_s16 + $0x18] sm:$0xff]  ;;  %v7932_v42 = vld [vmem:[%s11170_s4] ss:$0 sm:$0xff]  ;;  %s11172_s4 = sld [smem:[#allocation15_spill]] }
0x13b7   : > { %v9848_v0 = vpop.eup %9847 }
0x13b8   : > { %v7022_v9 = vmul.f32 %v9848_v0, %v10993_v3  ;;  %v7032_v41 = vmul.f32 %v7930_v36, %v7023_v43  ;;  %v7294_v3 = vld [vmem:[%s11164_s16 + $0x10] sm:$0xff] }
0x13ba   : > { %v7031_v44 = vmul.f32 %v7930_v36, %v7022_v9  ;;  %v7041_v51 = vadd.f32 %v7931_v45, %v7032_v41 }
0x13bc   : > { %v7040_v47 = vadd.f32 %v7931_v45, %v7031_v44 }
0x13be   : > { %9604 = vmatprep.mubr.f32.mxu0 %v7040_v47 }
0x13bf   : > { %9605 = vmatmul.mubr.f32.vlgmr.msra.gmra.mxu0 %v7041_v51 }
0x13c0   : > { %9643 = vmatpush3.msra.mxu0 %v7307_v4 }
0x13c1   : > { %9644 = vmatprep.subr.mxu0 %v7306_v53 }
0x13c2   : > { %9645 = vmatpush3.msra.mxu0 %v7306_v53 }
0x13c3   : > { %9646 = vmatprep.subr.mxu0 %v7305_v54 }
0x13c4   : > { %9647 = vmatpush3.msra.mxu0 %v7305_v54 }
0x13c5   : > { %9648 = vmatprep.subr.mxu0 %v7304_v55 }
0x13c6   : > { %9649 = vmatpush3.msra.mxu0 %v7304_v55 }
0x13c7   : > { %9650 = vmatprep.subr.mxu0 %v7303_v50 }
0x13c8   : > { %9651 = vmatpush3.msra.mxu0 %v7303_v50  ;;  %v7414_v50 = vld [vmem:[%s10126_s14 + $0x70] sm:$0xff] }
0x13c9   : > { %9652 = vmatprep.subr.mxu0 %v7302_v46 }
0x13ca   : > { %9653 = vmatpush3.msra.mxu0 %v7302_v46  ;;  %v7413_v46 = vld [vmem:[%s10126_s14 + $0x68] sm:$0xff] }
0x13cb   : > { %9654 = vmatprep.subr.mxu0 %v7301_v25 }
0x13cc   : > { %9655 = vmatpush3.msra.mxu0 %v7301_v25  ;;  %v7412_v25 = vld [vmem:[%s10126_s14 + $0x60] sm:$0xff] }
0x13cd   : > { %9656 = vmatprep.subr.mxu0 %v7300_v31 }
0x13ce   : > { %9657 = vmatpush3.msra.mxu0 %v7300_v31  ;;  %v7411_v31 = vld [vmem:[%s10126_s14 + $0x58] sm:$0xff] }
0x13cf   : > { %9658 = vmatprep.subr.mxu0 %v7299_v56 }
0x13d0   : > { %9659 = vmatpush3.msra.mxu0 %v7299_v56  ;;  %v7410_v56 = vld [vmem:[%s10126_s14 + $0x50] sm:$0xff] }
0x13d1   : > { %9660 = vmatprep.subr.mxu0 %v7298_v58 }
0x13d2   : > { %9661 = vmatpush3.msra.mxu0 %v7298_v58  ;;  %v7407_v58 = vld [vmem:[%s10126_s14 + $0x38] sm:$0xff] }
0x13d3   : > { %9662 = vmatprep.subr.mxu0 %v7297_v60 }
0x13d4   : > { %9663 = vmatpush3.msra.mxu0 %v7297_v60  ;;  %v7405_v60 = vld [vmem:[%s10126_s14 + $0x28] sm:$0xff] }
0x13d5   : > { %9664 = vmatprep.subr.mxu0 %v7296_v62 }
0x13d6   : > { %9665 = vmatpush3.msra.mxu0 %v7296_v62  ;;  %v7404_v62 = vld [vmem:[%s10126_s14 + $0x20] sm:$0xff] }
0x13d7   : > { %9666 = vmatprep.subr.mxu0 %v7295_v61 }
0x13d8   : > { %9667 = vmatpush3.msra.mxu0 %v7295_v61  ;;  %v7403_v61 = vld [vmem:[%s10126_s14 + $0x18] sm:$0xff] }
0x13d9   : > { %9668 = vmatprep.subr.mxu0 %v7294_v3 }
0x13da   : > { %9669 = vmatpush3.msra.mxu0 %v7294_v3  ;;  %v7402_v3 = vld [vmem:[%s10126_s14 + $0x10] sm:$0xff] }
0x13db   : > { %9670 = vmatprep.subr.mxu0 %v7293_v49 }
0x13dc   : > { %9671 = vmatpush3.msra.mxu0 %v7293_v49  ;;  %v7401_v49 = vld [vmem:[%s10126_s14 + $0x8] sm:$0xff] }
0x13dd   : > { %9672 = vmatprep.subr.mxu0 %v7292_v5 }
0x13de   : > { %9673 = vmatpush3.msra.mxu0 %v7292_v5  ;;  %v7400_v5 = vld [vmem:[%s10126_s14] sm:$0xff] }
0x1430   : > { %v7265_v19 = vpop.xlane.xlu1 %7264 }
0x1431   : > { %v7267_v4 = vmul.f32 0.03125, %v7265_v19 }
0x1432   : > { %v7263_v20 = vpop.xlane.xlu0 %7262 }
0x1433   : > { %v7269_v23 = vadd.f32 1e-05, %v7267_v4  ;;  %v7266_v24 = vmul.f32 0.03125, %v7263_v20  ;;  %v7933_v4 = vld [vmem:[%s11172_s4] ss:$0 sm:$0xff] }
0x1435   : > { %9849 = vrsqrt.f32 %v7269_v23  ;;  %v7268_v26 = vadd.f32 1e-05, %v7266_v24 }
0x1437   : > { %9851 = vrsqrt.f32 %v7268_v26 }
0x1442   : > { %v9850_v27 = vpop.eup %9849 }
0x1443   : > { %v7273_v28 = vmul.f32 %v9850_v27, %v11020_v32 }
0x1444   : > { %v9852_v63 = vpop.eup %9851 }
0x1445   : > { %v7272_v7 = vmul.f32 %v9852_v63, %v11026_v38  ;;  %v7282_v33 = vmul.f32 %v7934_v30, %v7273_v28 }
0x1447   : > { %v7281_v34 = vmul.f32 %v7934_v30, %v7272_v7  ;;  %v7291_v40 = vadd.f32 %v7935_v37, %v7282_v33  ;;  %v7937_v30 = vld [vmem:[%s10131_s30] ss:$0 sm:$0xff] }
0x1449   : > { %v7290_v39 = vadd.f32 %v7935_v37, %v7281_v34 }
0x144b   : > { %9674 = vmatprep.mubr.f32.mxu0 %v7290_v39 }
0x144c   : > { %9675 = vmatmul.mubr.f32.vlgmr.msra.gmra.mxu0 %v7291_v40 }
0x147f   : > { %v9606_v43 = vpop.f32.mrf.mxu0 }
0x1480   : > { %v7137_v36 = vadd.f32 %v9606_v43, %v7932_v42 }
0x1481   : > { %v7131_v0 = vpop.f32.mrf.mxu0 }
0x1482   : > { %v7143_v9 = vmul.f32 0.70710677, %v7137_v36  ;;  %v7132_v41 = vadd.f32 %v7932_v42, %v7131_v0  ;;  %v7141_v53 = vmul.f32 0.5, %v7137_v36 }
0x1484   : > { %9853 = verf.f32 %v7143_v9  ;;  %v7142_v32 = vmul.f32 0.70710677, %v7132_v41  ;;  %v7140_v47 = vmul.f32 0.5, %v7132_v41 }
0x1486   : > { %9855 = verf.f32 %v7142_v32 }
0x1491   : > { %v9854_v38 = vpop.eup %9853 }
0x1492   : > { %v7147_v45 = vadd.f32 1.0, %v9854_v38 }
0x1493   : > { %v9856_v44 = vpop.eup %9855 }
0x1494   : > { %v7146_v51 = vadd.f32 1.0, %v9856_v44  ;;  %v7149_v55 = vmul.f32 %v7147_v45, %v7141_v53 }
0x1496   : > { %v7148_v54 = vmul.f32 %v7146_v51, %v7140_v47 }
0x1498   : > { %9639 = vmatprep.mubr.f32.mxu1 %v7148_v54 }
0x1499   : > { %9640 = vmatmul.mubr.f32.vlgmr.msra.gmra.mxu1 %v7149_v55 }
0x149a   : > { %9678 = vmatpush3.msra.mxu1 %v7415_v18 }
0x149b   : > { %9679 = vmatprep.subr.mxu1 %v7414_v50 }
0x149c   : > { %9680 = vmatpush3.msra.mxu1 %v7414_v50 }
0x149d   : > { %9681 = vmatprep.subr.mxu1 %v7413_v46 }
0x149e   : > { %9682 = vmatpush3.msra.mxu1 %v7413_v46 }
0x149f   : > { %9683 = vmatprep.subr.mxu1 %v7412_v25 }
0x14a0   : > { %9684 = vmatpush3.msra.mxu1 %v7412_v25 }
0x14a1   : > { %9685 = vmatprep.subr.mxu1 %v7411_v31 }
0x14a2   : > { %9686 = vmatpush3.msra.mxu1 %v7411_v31 }
0x14a3   : > { %9687 = vmatprep.subr.mxu1 %v7410_v56 }
0x14a4   : > { %9688 = vmatpush3.msra.mxu1 %v7410_v56 }
0x14a5   : > { %9689 = vmatprep.subr.mxu1 %v7409_v57 }
0x14a6   : > { %9690 = vmatpush3.msra.mxu1 %v7409_v57 }
0x14a7   : > { %9691 = vmatprep.subr.mxu1 %v7408_v52 }
0x14a8   : > { %9692 = vmatpush3.msra.mxu1 %v7408_v52 }
0x14a9   : > { %9693 = vmatprep.subr.mxu1 %v7407_v58 }
0x14aa   : > { %9694 = vmatpush3.msra.mxu1 %v7407_v58 }
0x14ab   : > { %9695 = vmatprep.subr.mxu1 %v7406_v59 }
0x14ac   : > { %9696 = vmatpush3.msra.mxu1 %v7406_v59 }
0x14ad   : > { %9697 = vmatprep.subr.mxu1 %v7405_v60 }
0x14ae   : > { %9698 = vmatpush3.msra.mxu1 %v7405_v60 }
0x14af   : > { %9699 = vmatprep.subr.mxu1 %v7404_v62 }
0x14b0   : > { %9700 = vmatpush3.msra.mxu1 %v7404_v62 }
0x14b1   : > { %9701 = vmatprep.subr.mxu1 %v7403_v61 }
0x14b2   : > { %9702 = vmatpush3.msra.mxu1 %v7403_v61 }
0x14b3   : > { %9703 = vmatprep.subr.mxu1 %v7402_v3 }
0x14b4   : > { %9704 = vmatpush3.msra.mxu1 %v7402_v3 }
0x14b5   : > { %9705 = vmatprep.subr.mxu1 %v7401_v49 }
0x14b6   : > { %9706 = vmatpush3.msra.mxu1 %v7401_v49 }
0x14b7   : > { %9707 = vmatprep.subr.mxu1 %v7400_v5 }
0x14b8   : > { %9708 = vmatpush3.msra.mxu1 %v7400_v5 }
0x150c   : > { %v9676_v29 = vpop.f32.mrf.mxu0 }
0x150d   : > { %v7387_v8 = vadd.f32 %v9676_v29, %v7936_v6 }
0x150e   : > { %v7381_v10 = vpop.f32.mrf.mxu0 }
0x150f   : > { %v7393_v11 = vmul.f32 0.70710677, %v7387_v8  ;;  %v7382_v13 = vadd.f32 %v7936_v6, %v7381_v10  ;;  %v7391_v17 = vmul.f32 0.5, %v7387_v8 }
0x1511   : > { %9857 = verf.f32 %v7393_v11  ;;  %v7392_v14 = vmul.f32 0.70710677, %v7382_v13  ;;  %v7390_v16 = vmul.f32 0.5, %v7382_v13 }
0x1513   : > { %9859 = verf.f32 %v7392_v14 }
0x151e   : > { %v9858_v15 = vpop.eup %9857 }
0x151f   : > { %v7397_v12 = vadd.f32 1.0, %v9858_v15 }
0x1520   : > { %v9860_v35 = vpop.eup %9859 }
0x1521   : > { %v7396_v48 = vadd.f32 1.0, %v9860_v35  ;;  %v7399_v19 = vmul.f32 %v7397_v12, %v7391_v17 }
0x1523   : > { %v7398_v18 = vmul.f32 %v7396_v48, %v7390_v16 }
0x1525   : > { %9709 = vmatprep.mubr.f32.mxu1 %v7398_v18 }
0x1526   : > { %9710 = vmatmul.mubr.f32.vlgmr.msra.gmra.mxu1 %v7399_v19 }
0x1559   : > { %v9641_v20 = vpop.f32.mrf.mxu1 }
0x155a   : > { %v7245_v23 = vadd.f32 %v9641_v20, %v7933_v4 }
0x155b   : > { %v7239_v24 = vpop.f32.mrf.mxu1 }
0x155c   : > { %v7249_v26 = vadd.f32 %v7245_v23, %v10953_v21  ;;  %v7240_v27 = vadd.f32 %v7933_v4, %v7239_v24 }
0x155e   : > { %7501 = vst [vmem:[%s1326_s1 + $0x8] sm:$0xff] %v7249_v26  ;;  %v7248_v28 = vadd.f32 %v7240_v27, %v10957_v22 }
0x1560   : > { %7500 = vst [vmem:[%s1326_s1] sm:$0xff] %v7248_v28 }
0x15e6   : > { %v9711_v63 = vpop.f32.mrf.mxu1 }
0x15e7   : > { %v7495_v7 = vadd.f32 %v9711_v63, %v7937_v30 }
0x15e8   : > { %v7489_v33 = vpop.f32.mrf.mxu1 }
0x15e9   : > { %v7499_v34 = vadd.f32 %v7495_v7, %v10981_v1  ;;  %v7490_v37 = vadd.f32 %v7937_v30, %v7489_v33 }
0x15eb   : > { %7503 = vst [vmem:[%s1332_s3 + $0x8] sm:$0xff] %v7499_v34  ;;  %v7498_v39 = vadd.f32 %v7490_v37, %v10989_v2 }
0x15ed   : > { %7502 = vst [vmem:[%s1332_s3] sm:$0xff] %v7498_v39 }
0x15ee PF: > { %s98_s22 = sadd.s32 1, %s9871_s22  }
0x15ef   : > { %p95_p4 = scmp.ge.s32.totalorder %s98_s22, 4  }
0x15f1   :  { %97 = sbr.rel (!%p95_p4) target bundleno = 81 (0x51), region = 288 }

// kernel: dual_decoder.2
= control target key start
LH: loop header
LB: loop body
LE: loop exit
PB: predicated region body
PF: predicated region fallthrough
CT: control target
= control target key end

     0   :  { %s9873_s6 = smov 1   ;;  %s9874_s10 = smov 2   ;;  %s11100_s0 = inlined_call_operand.smem [shape: u32[44], index: -1, kind: input, shape index: {}] }
   0x1   :  { %s9926_s5 = sld [smem:[%s11100_s0]]   ;;  %s9875_s14 = smov 3  }
   0x2   :  { %s9931_s9 = sld [smem:[%s11100_s0 + %s9873_s6]]   ;;  %s9876_s18 = smov 4  }
   0x3   :  { %s9936_s13 = sld [smem:[%s11100_s0 + %s9874_s10]]   ;;  %s9877_s22 = smov 5  }
   0x4   :  { %s9941_s17 = sld [smem:[%s11100_s0 + %s9875_s14]]   ;;  %s9878_s26 = smov 6  }
   0x5   :  { %s9946_s21 = sld [smem:[%s11100_s0 + %s9876_s18]]   ;;  %s9879_s30 = smov 7  }
   0x6   :  { %s9951_s25 = sld [smem:[%s11100_s0 + %s9877_s22]]   ;;  %s9880_s4 = smov 8  }
   0x7   :  { %s9956_s29 = sld [smem:[%s11100_s0 + %s9878_s26]]   ;;  %s9881_s10 = smov 9  }
   0x8   :  { %s9961_s3 = sld [smem:[%s11100_s0 + %s9879_s30]]   ;;  %s9882_s15 = smov 10  }
   0x9   :  { %s9966_s8 = sld [smem:[%s11100_s0 + %s9880_s4]]   ;;  %s9883_s20 = smov 11  }
   0xa   :  { %s9971_s14 = sld [smem:[%s11100_s0 + %s9881_s10]]   ;;  %s9884_s26 = smov 12  }
   0xb   :  { %s9976_s19 = sld [smem:[%s11100_s0 + %s9882_s15]]   ;;  %s9885_s1 = smov 13  }
   0xc   :  { %s9981_s24 = sld [smem:[%s11100_s0 + %s9883_s20]]   ;;  %s9886_s7 = smov 14  }
   0xd   :  { %s9986_s30 = sld [smem:[%s11100_s0 + %s9884_s26]]   ;;  %s9887_s15 = smov 15  }
   0xe   :  { %11117 = sst [smem:[#allocation2_spill]] %s9961_s3  ;;  %s9888_s22 = smov 16  }
   0xf   :  { %s9991_s6 = sld [smem:[%s11100_s0 + %s9885_s1]]   ;;  %s9889_s28 = smov 17  }
  0x10   :  { %11118 = sst [smem:[#allocation3_spill]] %s9971_s14 }
  0x11   :  { %11119 = sst [smem:[#allocation4_spill]] %s9976_s19 }
  0x12   :  { %11120 = sst [smem:[#allocation5_spill]] %s9981_s24 }
  0x13   :  { %11121 = sst [smem:[#allocation6_spill]] %s9986_s30 }
  0x14   :  { %s9996_s12 = sld [smem:[%s11100_s0 + %s9886_s7]]   ;;  %s9890_s7 = smov 18  }
  0x15   :  { %11122 = sst [smem:[#allocation7_spill]] %s9991_s6 }
  0x16   :  { %s10001_s20 = sld [smem:[%s11100_s0 + %s9887_s15]]   ;;  %s9891_s15 = smov 19  }
  0x17   :  { %s10006_s27 = sld [smem:[%s11100_s0 + %s9888_s22]]   ;;  %s9892_s22 = smov 20  }
  0x18   :  { %s10011_s4 = sld [smem:[%s11100_s0 + %s9889_s28]]   ;;  %s9893_s28 = smov 21  }
  0x1a   :  { %11123 = sst [smem:[#allocation8_spill]] %s9996_s12 }
  0x1b   :  { %s10016_s12 = sld [smem:[%s11100_s0 + %s9890_s7]]   ;;  %s9894_s7 = smov 22  }
  0x1c   :  { %11124 = sst [smem:[#allocation9_spill]] %s10001_s20 }
  0x1d   :  { %11125 = sst [smem:[#allocation10_spill]] %s10006_s27 }
  0x1e   :  { %11126 = sst [smem:[#allocation11_spill]] %s10011_s4 }
  0x1f   :  { %s10021_s20 = sld [smem:[%s11100_s0 + %s9891_s15]]   ;;  %s9895_s15 = smov 23  }
  0x20   :  { %s10026_s27 = sld [smem:[%s11100_s0 + %s9892_s22]]   ;;  %s9896_s22 = smov 24  }
  0x21   :  { %11127 = sst [smem:[#allocation12_spill]] %s10016_s12 }
  0x22   :  { %s10031_s4 = sld [smem:[%s11100_s0 + %s9893_s28]]   ;;  %s9897_s28 = smov 25  }
  0x23   :  { %s10036_s12 = sld [smem:[%s11100_s0 + %s9894_s7]]   ;;  %s9898_s7 = smov 26  }
  0x24   :  { %s10056_s6 = sld [smem:[%s11100_s0 + %s9898_s7]]   ;;  %s9902_s7 = smov 30  }
  0x25   :  { %11128 = sst [smem:[#allocation13_spill]] %s10021_s20 }
  0x26   :  { %11129 = sst [smem:[#allocation14_spill]] %s10026_s27 }
  0x27   :  { %s10041_s20 = sld [smem:[%s11100_s0 + %s9895_s15]]   ;;  %s9899_s15 = smov 27  }
  0x28   :  { %11130 = sst [smem:[#allocation15_spill]] %s10031_s4 }
  0x29   :  { %s10046_s27 = sld [smem:[%s11100_s0 + %s9896_s22]]   ;;  %s9900_s22 = smov 28  }
  0x2a   :  { %s10051_s4 = sld [smem:[%s11100_s0 + %s9897_s28]]   ;;  %s9901_s28 = smov 29  }
  0x2b   :  { %s10061_s19 = sld [smem:[%s11100_s0 + %s9899_s15]]   ;;  %s9903_s15 = smov 31  }
  0x2c   :  { %s10066_s14 = sld [smem:[%s11100_s0 + %s9900_s22]]   ;;  %s9904_s22 = smov 32  }
  0x2d   :  { %s10071_s30 = sld [smem:[%s11100_s0 + %s9901_s28]]   ;;  %s9905_s28 = smov 33  }
  0x2e   :  { %s10076_s24 = sld [smem:[%s11100_s0 + %s9902_s7]]   ;;  %s9906_s7 = smov 34  }
  0x30   :  { %11131 = sst [smem:[#allocation16_spill]] %s10051_s4 }
  0x31   :  { %11132 = sst [smem:[#allocation17_spill]] %s10061_s19 }
  0x32   :  { %11133 = sst [smem:[#allocation18_spill]] %s10066_s14 }
  0x33   :  { %11134 = sst [smem:[#allocation19_spill]] %s10071_s30 }
  0x34   :  { %11135 = sst [smem:[#allocation20_spill]] %s10076_s24 }
  0x35   :  { %s10081_s19 = sld [smem:[%s11100_s0 + %s9903_s15]]   ;;  %s9907_s15 = smov 35  }
  0x36   :  { %s10086_s14 = sld [smem:[%s11100_s0 + %s9904_s22]]   ;;  %s9908_s22 = smov 36  }
  0x37   :  { %s10091_s30 = sld [smem:[%s11100_s0 + %s9905_s28]]   ;;  %s9909_s28 = smov 37  }
  0x38   :  { %s10096_s24 = sld [smem:[%s11100_s0 + %s9906_s7]]   ;;  %s9910_s7 = smov 38  }
  0x3b   :  { %11136 = sst [smem:[#allocation21_spill]] %s10081_s19 }
  0x3c   :  { %11137 = sst [smem:[#allocation22_spill]] %s10086_s14 }
  0x3d   :  { %11138 = sst [smem:[#allocation23_spill]] %s10091_s30 }
  0x3e   :  { %11139 = sst [smem:[#allocation24_spill]] %s10096_s24 }
  0x3f   :  { %s10101_s19 = sld [smem:[%s11100_s0 + %s9907_s15]]   ;;  %s9911_s15 = smov 39  }
  0x40   :  { %s10106_s14 = sld [smem:[%s11100_s0 + %s9908_s22]]   ;;  %s9912_s22 = smov 40  }
  0x41   :  { %s10111_s30 = sld [smem:[%s11100_s0 + %s9909_s28]]   ;;  %s9913_s28 = smov 41  }
  0x42   :  { %s10116_s24 = sld [smem:[%s11100_s0 + %s9910_s7]]   ;;  %s9914_s7 = smov 42  }
  0x45   :  { %11140 = sst [smem:[#allocation25_spill]] %s10101_s19 }
  0x46   :  { %11141 = sst [smem:[#allocation26_spill]] %s10106_s14 }
  0x47   :  { %11142 = sst [smem:[#allocation27_spill]] %s10111_s30 }
  0x48   :  { %11143 = sst [smem:[#allocation28_spill]] %s10116_s24 }
  0x49   :  { %s10121_s19 = sld [smem:[%s11100_s0 + %s9911_s15]]   ;;  %s9915_s15 = smov 43  }
  0x4a   :  { %s10126_s14 = sld [smem:[%s11100_s0 + %s9912_s22]]   ;;  %s10143_s22 = smov 0  }
  0x4b   :  { %s10131_s30 = sld [smem:[%s11100_s0 + %s9913_s28]]  }
  0x4c   :  { %s10136_s24 = sld [smem:[%s11100_s0 + %s9914_s7]]  }
  0x4f   :  { %11144 = sst [smem:[#allocation29_spill]] %s10121_s19 }
  0x50   :  { %s10141_s19 = sld [smem:[%s11100_s0 + %s9915_s15]]  }
  0x51 LB: > { %s11145_s4 = sld [smem:[#allocation16_spill]]  ;;  %s7649_s23 = sadd.s32 4294967295, %s9871_s22   ;;  %s9871_s22 = sphi %s10143_s22, %s98_s22  }
  0x52   : > { %s11146_s3 = sld [smem:[#allocation2_spill]]  ;;  %p7653_p0 = scmp.ge.s32.totalorder %s9871_s22, 1 }
  0x53   : > { %p1196_p1 = scmp.lt.s32.totalorder %s9871_s22, 3 }
  0x55   : > { %p1197_p2 = pnand %p7653_p0, %p1196_p1 }
  0x56   : > { %s7654_s26 = sshll.u32 (!%p1197_p2), %s7649_s23, 1  ;;  %s11147_s2 = sld [smem:[#allocation17_spill]] (!%p1197_p2) }
  0x57   : > { %1200 = sbr.rel (%p1197_p2) target bundleno = 5614 (0x15ee), region = 188  ;;  %p1311_p3 = scmp.lt.s32.totalorder (!%p1197_p2), %s7654_s26, 3 }
  0x58   : > { %s11148_s7 = sld [smem:[#allocation5_spill]] (!%p1197_p2) }
  0x59   : > { %s11149_s10 = sld [smem:[#allocation18_spill]] (!%p1197_p2) }
  0x5a   : > { %s11150_s11 = sld [smem:[#allocation6_spill]] (!%p1197_p2) }
  0x5b   : > { %s11151_s15 = sld [smem:[#allocation3_spill]] (!%p1197_p2) }
  0x5c   : > { %s11174_s26 = smov (!%p1311_p3, %s7654_s26), 3  ;;  %v1400_v2 = vld [vmem:[%s9946_s21 + $0x78] sm:$0xff]  ;;  %v1399_v4 = vld [vmem:[%s9946_s21 + $0x70] sm:$0xff]  ;;  %v1398_v6 = vld [vmem:[%s9946_s21 + $0x68] sm:$0xff]  ;;  %v1334_v8 = vlaneseq  ;;  %vm9917_vm1 = vmmov 0   ;;  %vm1934_vm2 = vcmask 64512  }
  0x5d   : > { %s10151_s0 = sshll.u32 %s11174_s26, 3  ;;  %v7679_v3 = vld [vmem:[%s9946_s21 + $0xf8] sm:$0xff]  ;;  %8532 = vmatprep.subr.mxu0 %v1400_v2  ;;  %v7678_v5 = vld [vmem:[%s9946_s21 + $0xf0] sm:$0xff]  ;;  %v7677_v7 = vld [vmem:[%s9946_s21 + $0xe8] sm:$0xff]  ;;  %s11152_s16 = sld [smem:[#allocation4_spill]] }
  0x5e   : > { %s10155_s28 = scalar_lea.vmem %s9926_s5, %s10151_s0  ;;  %8567 = vmatprep.subr.mxu1 %v7679_v3  ;;  %8533 = vmatpush3.msra.mxu0 %v1400_v2  ;;  %v10165_v9 = vand.u32 127, %v1334_v8  ;;  %v1397_v20 = vld [vmem:[%s9946_s21 + $0x60] sm:$0xff]  ;;  %v1396_v22 = vld [vmem:[%s9946_s21 + $0x58] sm:$0xff]  ;;  %v1395_v24 = vld [vmem:[%s9946_s21 + $0x50] sm:$0xff]  ;;  %s10330_s1 = scalar_lea.vmem %s9931_s9, %s10151_s0 }
  0x5f   : > { %v1337_v0 = vld [vmem:[%s10155_s28] sm:$0xff]  ;;  %v1338_v1 = vld [vmem:[%s10155_s28 + $0x8] sm:$0xff]  ;;  %8568 = vmatpush3.msra.mxu1 %v7679_v3  ;;  %8534 = vmatprep.subr.mxu0 %v1399_v4  ;;  %v7675_v23 = vld [vmem:[%s9946_s21 + $0xd8] sm:$0xff]  ;;  %s11153_s18 = sld [smem:[#allocation7_spill]] }
  0x60   : > { %1341 = vadd.xlane.f32.xlu0 %v1337_v0  ;;  %8569 = vmatprep.subr.mxu1 %v7678_v5  ;;  %vm1336_vm0 = vcmp.lt.s32.totalorder %v10165_v9, 32  ;;  %v7676_v21 = vld [vmem:[%s9946_s21 + $0xe0] sm:$0xff]  ;;  %v7674_v25 = vld [vmem:[%s9946_s21 + $0xd0] sm:$0xff]  ;;  %v1394_v26 = vld [vmem:[%s9946_s21 + $0x48] sm:$0xff]  ;;  %s11154_s23 = sld [smem:[#allocation8_spill]] }
  0x61   : > { %8535 = vmatpush3.msra.mxu0 %v1399_v4  ;;  %8570 = vmatpush3.msra.mxu1 %v7678_v5  ;;  %v7673_v27 = vld [vmem:[%s9946_s21 + $0xc8] sm:$0xff]  ;;  %v1393_v28 = vld [vmem:[%s9946_s21 + $0x40] sm:$0xff]  ;;  %v1392_v30 = vld [vmem:[%s9946_s21 + $0x38] sm:$0xff]  ;;  %s11155_s26 = sld [smem:[#allocation21_spill]] }
  0x62   : > { %8536 = vmatprep.subr.mxu0 %v1398_v6  ;;  %8571 = vmatprep.subr.mxu1 %v7677_v7  ;;  %v7672_v29 = vld [vmem:[%s9946_s21 + $0xc0] sm:$0xff]  ;;  %v7671_v31 = vld [vmem:[%s9946_s21 + $0xb8] sm:$0xff]  ;;  %v1391_v32 = vld [vmem:[%s9946_s21 + $0x30] sm:$0xff] }
  0x63   : > { %8537 = vmatpush3.msra.mxu0 %v1398_v6  ;;  %8572 = vmatpush3.msra.mxu1 %v7677_v7  ;;  %v7670_v33 = vld [vmem:[%s9946_s21 + $0xb0] sm:$0xff]  ;;  %v1390_v34 = vld [vmem:[%s9946_s21 + $0x28] sm:$0xff]  ;;  %v1389_v36 = vld [vmem:[%s9946_s21 + $0x20] sm:$0xff] }
  0x64   : > { %1343 = vadd.xlane.f32.xlu0 %v1338_v1  ;;  %8538 = vmatprep.subr.mxu0 %v1397_v20  ;;  %v7669_v35 = vld [vmem:[%s9946_s21 + $0xa8] sm:$0xff]  ;;  %v7668_v37 = vld [vmem:[%s9946_s21 + $0xa0] sm:$0xff]  ;;  %v1388_v38 = vld [vmem:[%s9946_s21 + $0x18] sm:$0xff] }
  0x65   : > { %8573 = vmatprep.subr.mxu1 %v7676_v21  ;;  %8539 = vmatpush3.msra.mxu0 %v1397_v20  ;;  %v7667_v39 = vld [vmem:[%s9946_s21 + $0x98] sm:$0xff]  ;;  %v1387_v40 = vld [vmem:[%s9946_s21 + $0x10] sm:$0xff]  ;;  %v1386_v42 = vld [vmem:[%s9946_s21 + $0x8] sm:$0xff] }
  0x66   : > { %8574 = vmatpush3.msra.mxu1 %v7676_v21  ;;  %8540 = vmatprep.subr.mxu0 %v1396_v22  ;;  %v7666_v41 = vld [vmem:[%s9946_s21 + $0x90] sm:$0xff]  ;;  %v7665_v43 = vld [vmem:[%s9946_s21 + $0x88] sm:$0xff]  ;;  %v1385_v44 = vld [vmem:[%s9946_s21] sm:$0xff] }
  0x67   : > { %8575 = vmatprep.subr.mxu1 %v7675_v23  ;;  %8541 = vmatpush3.msra.mxu0 %v1396_v22  ;;  %v7664_v45 = vld [vmem:[%s9946_s21 + $0x80] sm:$0xff]  ;;  %v1583_v46 = vld [vmem:[%s9951_s25 + $0x78] sm:$0xff]  ;;  %v1581_v2 = vld [vmem:[%s9951_s25 + $0x68] sm:$0xff] }
  0x68   : > { %8576 = vmatpush3.msra.mxu1 %v7675_v23  ;;  %8542 = vmatprep.subr.mxu0 %v1395_v24  ;;  %v7695_v47 = vld [vmem:[%s9951_s25 + $0xf8] sm:$0xff]  ;;  %v7662_v55 = vld [vmem:[%s9936_s13] ss:$0 sm:$0xff]  ;;  %v7693_v3 = vld [vmem:[%s9951_s25 + $0xe8] sm:$0xff] }
  0x69   : > { %8577 = vmatprep.subr.mxu1 %v7674_v25  ;;  %8543 = vmatpush3.msra.mxu0 %v1395_v24  ;;  %v7663_v57 = vld [vmem:[%s9941_s17] ss:$0 sm:$0xff]  ;;  %v1579_v6 = vld [vmem:[%s9951_s25 + $0x58] sm:$0xff]  ;;  %v1578_v8 = vld [vmem:[%s9951_s25 + $0x50] sm:$0xff] }
  0x6a   : > { %8578 = vmatpush3.msra.mxu1 %v7674_v25  ;;  %8544 = vmatprep.subr.mxu0 %v1394_v26  ;;  %v1580_v4 = vld [vmem:[%s9951_s25 + $0x60] sm:$0xff]  ;;  %v7691_v7 = vld [vmem:[%s9951_s25 + $0xd8] sm:$0xff]  ;;  %v7685_v20 = vld [vmem:[%s9951_s25 + $0xa8] sm:$0xff] }
  0x6b   : > { %8579 = vmatprep.subr.mxu1 %v7673_v27  ;;  %8545 = vmatpush3.msra.mxu0 %v1394_v26  ;;  %v7692_v5 = vld [vmem:[%s9951_s25 + $0xe0] sm:$0xff]  ;;  %v1571_v23 = vld [vmem:[%s9951_s25 + $0x18] sm:$0xff]  ;;  %v1570_v25 = vld [vmem:[%s9951_s25 + $0x10] sm:$0xff] }
  0x6c   : > { %8580 = vmatpush3.msra.mxu1 %v7673_v27  ;;  %8546 = vmatprep.subr.mxu0 %v1393_v28  ;;  %v1572_v21 = vld [vmem:[%s9951_s25 + $0x20] sm:$0xff]  ;;  %v7683_v24 = vld [vmem:[%s9951_s25 + $0x98] sm:$0xff]  ;;  %v7682_v26 = vld [vmem:[%s9951_s25 + $0x90] sm:$0xff] }
  0x6d   : > { %8581 = vmatprep.subr.mxu1 %v7672_v29  ;;  %8547 = vmatpush3.msra.mxu0 %v1393_v28  ;;  %v7684_v22 = vld [vmem:[%s9951_s25 + $0xa0] sm:$0xff]  ;;  %v1569_v27 = vld [vmem:[%s9951_s25 + $0x8] sm:$0xff] }
  0x6e   : > { %8582 = vmatpush3.msra.mxu1 %v7672_v29  ;;  %8548 = vmatprep.subr.mxu0 %v1392_v30  ;;  %v7681_v28 = vld [vmem:[%s9951_s25 + $0x88] sm:$0xff]  ;;  %v1568_v29 = vld [vmem:[%s9951_s25] sm:$0xff] }
  0x6f   : > { %8583 = vmatprep.subr.mxu1 %v7671_v31  ;;  %8549 = vmatpush3.msra.mxu0 %v1392_v30  ;;  %v7680_v30 = vld [vmem:[%s9951_s25 + $0x80] sm:$0xff] }
  0x70   : > { %8584 = vmatpush3.msra.mxu1 %v7671_v31  ;;  %8550 = vmatprep.subr.mxu0 %v1391_v32  ;;  %v1766_v31 = vld [vmem:[%s9956_s29 + $0x78] sm:$0xff] }
  0x71   : > { %8585 = vmatprep.subr.mxu1 %v7670_v33  ;;  %8551 = vmatpush3.msra.mxu0 %v1391_v32  ;;  %v7711_v32 = vld [vmem:[%s9956_s29 + $0xf8] sm:$0xff] }
  0x72   : > { %8586 = vmatpush3.msra.mxu1 %v7670_v33  ;;  %8552 = vmatprep.subr.mxu0 %v1390_v34  ;;  %v1765_v33 = vld [vmem:[%s9956_s29 + $0x70] sm:$0xff] }
  0x73   : > { %8587 = vmatprep.subr.mxu1 %v7669_v35  ;;  %8553 = vmatpush3.msra.mxu0 %v1390_v34  ;;  %v7710_v34 = vld [vmem:[%s9956_s29 + $0xf0] sm:$0xff] }
  0x74   : > { %8588 = vmatpush3.msra.mxu1 %v7669_v35  ;;  %8554 = vmatprep.subr.mxu0 %v1389_v36  ;;  %v1764_v35 = vld [vmem:[%s9956_s29 + $0x68] sm:$0xff] }
  0x75   : > { %8589 = vmatprep.subr.mxu1 %v7668_v37  ;;  %8555 = vmatpush3.msra.mxu0 %v1389_v36  ;;  %v7709_v36 = vld [vmem:[%s9956_s29 + $0xe8] sm:$0xff] }
  0x76   : > { %8590 = vmatpush3.msra.mxu1 %v7668_v37  ;;  %8556 = vmatprep.subr.mxu0 %v1388_v38  ;;  %v1763_v37 = vld [vmem:[%s9956_s29 + $0x60] sm:$0xff] }
  0x77   : > { %8591 = vmatprep.subr.mxu1 %v7667_v39  ;;  %8557 = vmatpush3.msra.mxu0 %v1388_v38  ;;  %v7708_v38 = vld [vmem:[%s9956_s29 + $0xe0] sm:$0xff] }
  0x78   : > { %8592 = vmatpush3.msra.mxu1 %v7667_v39  ;;  %8558 = vmatprep.subr.mxu0 %v1387_v40  ;;  %v1762_v39 = vld [vmem:[%s9956_s29 + $0x58] sm:$0xff] }
  0x79   : > { %8593 = vmatprep.subr.mxu1 %v7666_v41  ;;  %8559 = vmatpush3.msra.mxu0 %v1387_v40  ;;  %v7707_v40 = vld [vmem:[%s9956_s29 + $0xd8] sm:$0xff] }
  0x7a   : > { %8594 = vmatpush3.msra.mxu1 %v7666_v41  ;;  %8560 = vmatprep.subr.mxu0 %v1386_v42  ;;  %v1761_v41 = vld [vmem:[%s9956_s29 + $0x50] sm:$0xff] }
  0x7b   : > { %8595 = vmatprep.subr.mxu1 %v7665_v43  ;;  %8561 = vmatpush3.msra.mxu0 %v1386_v42  ;;  %v7706_v42 = vld [vmem:[%s9956_s29 + $0xd0] sm:$0xff] }
  0x7c   : > { %8596 = vmatpush3.msra.mxu1 %v7665_v43  ;;  %8562 = vmatprep.subr.mxu0 %v1385_v44  ;;  %v1760_v43 = vld [vmem:[%s9956_s29 + $0x48] sm:$0xff] }
  0x7d   : > { %8597 = vmatprep.subr.mxu1 %v7664_v45  ;;  %8563 = vmatpush3.msra.mxu0 %v1385_v44  ;;  %v7705_v44 = vld [vmem:[%s9956_s29 + $0xc8] sm:$0xff] }
  0x7e   : > { %8598 = vmatpush3.msra.mxu1 %v7664_v45  ;;  %8602 = vmatprep.subr.mxu0 %v1583_v46  ;;  %v1759_v45 = vld [vmem:[%s9956_s29 + $0x40] sm:$0xff] }
  0x7f   : > { %8637 = vmatprep.subr.mxu1 %v7695_v47 }
  0xe9   : > { %v1342_v10 = vpop.xlane.xlu0 %1341 }
  0xea   : > { %v1345_v11 = vmul.f32 0.03125, %v1342_v10  ;;  %v7690_v10 = vld [vmem:[%s9951_s25 + $0xd0] sm:$0xff] }
  0xec   : > { %v1347_v12 = vsub.f32 %v1337_v0, %v1345_v11  ;;  %v1582_v0 = vld [vmem:[%s9951_s25 + $0x70] sm:$0xff]  ;;  %v1577_v11 = vld [vmem:[%s9951_s25 + $0x48] sm:$0xff] }
  0xed   : > { %v1344_v13 = vpop.xlane.xlu0 %1343 }
  0xee   : > { %v1346_v14 = vmul.f32 0.03125, %v1344_v13  ;;  %v10170_v15 = vsel %vm1336_vm0, %v1347_v12, 0.0  ;;  %v7689_v12 = vld [vmem:[%s9951_s25 + $0xc8] sm:$0xff]  ;;  %v1576_v13 = vld [vmem:[%s9951_s25 + $0x40] sm:$0xff] }
  0xef   : > { %v1353_v16 = vmul.f32 %v10170_v15, %v10170_v15 }
  0xf0   : > { %v1348_v17 = vsub.f32 %v1338_v1, %v1346_v14  ;;  %v7694_v1 = vld [vmem:[%s9951_s25 + $0xf0] sm:$0xff]  ;;  %v7688_v14 = vld [vmem:[%s9951_s25 + $0xc0] sm:$0xff] }
  0xf1   : > { %1355 = vadd.xlane.f32.xlu1 %v1353_v16  ;;  %v7687_v16 = vld [vmem:[%s9951_s25 + $0xb8] sm:$0xff] }
  0xf2   : > { %v10176_v18 = vsel %vm1336_vm0, %v1348_v17, 0.0  ;;  %v1574_v17 = vld [vmem:[%s9951_s25 + $0x30] sm:$0xff] }
  0xf3   : > { %v1354_v19 = vmul.f32 %v10176_v18, %v10176_v18 }
  0xf5   : > { %1357 = vadd.xlane.f32.xlu1 %v1354_v19  ;;  %v1573_v19 = vld [vmem:[%s9951_s25 + $0x28] sm:$0xff] }
 0x17a   : > { %v1356_v48 = vpop.xlane.xlu1 %1355 }
 0x17b   : > { %v1359_v49 = vmul.f32 0.03125, %v1356_v48  ;;  %v7703_v48 = vld [vmem:[%s9956_s29 + $0xb8] sm:$0xff] }
 0x17d   : > { %v1361_v50 = vadd.f32 1e-05, %v1359_v49  ;;  %v1757_v49 = vld [vmem:[%s9956_s29 + $0x30] sm:$0xff] }
 0x17e   : > { %v1358_v51 = vpop.xlane.xlu1 %1357 }
 0x17f   : > { %9765 = vrsqrt.f32 %v1361_v50  ;;  %v1360_v52 = vmul.f32 0.03125, %v1358_v51  ;;  %v7702_v50 = vld [vmem:[%s9956_s29 + $0xb0] sm:$0xff]  ;;  %v1756_v51 = vld [vmem:[%s9956_s29 + $0x28] sm:$0xff] }
 0x181   : > { %v1362_v53 = vadd.f32 1e-05, %v1360_v52  ;;  %v7701_v52 = vld [vmem:[%s9956_s29 + $0xa8] sm:$0xff] }
 0x183   : > { %9767 = vrsqrt.f32 %v1362_v53  ;;  %v1755_v53 = vld [vmem:[%s9956_s29 + $0x20] sm:$0xff] }
 0x18c   : > { %v9766_v54 = vpop.eup %9765 }
 0x18d   : > { %v1365_v56 = vmul.f32 %v9766_v54, %v10170_v15  ;;  %v1575_v15 = vld [vmem:[%s9951_s25 + $0x38] sm:$0xff]  ;;  %v7700_v54 = vld [vmem:[%s9956_s29 + $0xa0] sm:$0xff] }
 0x18f   : > { %v1374_v58 = vmul.f32 %v7662_v55, %v1365_v56  ;;  %v7699_v56 = vld [vmem:[%s9956_s29 + $0x98] sm:$0xff] }
 0x190   : > { %v9768_v59 = vpop.eup %9767 }
 0x191   : > { %v1366_v60 = vmul.f32 %v9768_v59, %v10176_v18  ;;  %v10212_v61 = vadd.f32 %v7663_v57, %v1374_v58  ;;  %v7686_v18 = vld [vmem:[%s9951_s25 + $0xb0] sm:$0xff]  ;;  %v1752_v59 = vld [vmem:[%s9956_s29 + $0x8] sm:$0xff] }
 0x192   : > { %v7698_v58 = vld [vmem:[%s9956_s29 + $0x90] sm:$0xff] }
 0x193   : > { %v1375_v62 = vmul.f32 %v7662_v55, %v1366_v60  ;;  %8564 = vmatprep.mubr.f32.mxu0 %v10212_v61  ;;  %8599 = vmatprep.mubr.f32.mxu1 %v10212_v61  ;;  %v1754_v55 = vld [vmem:[%s9956_s29 + $0x18] sm:$0xff]  ;;  %v7697_v60 = vld [vmem:[%s9956_s29 + $0x88] sm:$0xff] }
 0x195   : > { %v10216_v63 = vadd.f32 %v7663_v57, %v1375_v62  ;;  %v1753_v57 = vld [vmem:[%s9956_s29 + $0x10] sm:$0xff]  ;;  %v7696_v62 = vld [vmem:[%s9956_s29 + $0x80] sm:$0xff] }
 0x197   : > { %8565 = vmatmul.mubr.f32.vlgmr.msra.gmra.mxu0 %v10216_v63  ;;  %8600 = vmatmul.mubr.f32.vlgmr.msra.gmra.mxu1 %v10216_v63 }
 0x198   : > { %8603 = vmatpush3.msra.mxu0 %v1583_v46  ;;  %8638 = vmatpush3.msra.mxu1 %v7695_v47  ;;  %v7704_v46 = vld [vmem:[%s9956_s29 + $0xc0] sm:$0xff]  ;;  %v1758_v47 = vld [vmem:[%s9956_s29 + $0x38] sm:$0xff] }
 0x199   : > { %8604 = vmatprep.subr.mxu0 %v1582_v0  ;;  %8634 = vmatprep.mubr.f32.mxu0 %v10212_v61 }
 0x19a   : > { %8639 = vmatprep.subr.mxu1 %v7694_v1  ;;  %8669 = vmatprep.mubr.f32.mxu1 %v10212_v61 }
 0x19b   : > { %8605 = vmatpush3.msra.mxu0 %v1582_v0  ;;  %8640 = vmatpush3.msra.mxu1 %v7694_v1  ;;  %v9916_v0 = vmov 0.0  }
 0x19c   : > { %8606 = vmatprep.subr.mxu0 %v1581_v2  ;;  %8641 = vmatprep.subr.mxu1 %v7693_v3 }
 0x19d   : > { %8607 = vmatpush3.msra.mxu0 %v1581_v2  ;;  %8642 = vmatpush3.msra.mxu1 %v7693_v3 }
 0x19e   : > { %8608 = vmatprep.subr.mxu0 %v1580_v4  ;;  %8643 = vmatprep.subr.mxu1 %v7692_v5 }
 0x19f   : > { %8609 = vmatpush3.msra.mxu0 %v1580_v4  ;;  %8644 = vmatpush3.msra.mxu1 %v7692_v5 }
 0x1a0   : > { %8610 = vmatprep.subr.mxu0 %v1579_v6  ;;  %8645 = vmatprep.subr.mxu1 %v7691_v7 }
 0x1a1   : > { %8611 = vmatpush3.msra.mxu0 %v1579_v6  ;;  %8646 = vmatpush3.msra.mxu1 %v7691_v7 }
 0x1a2   : > { %8612 = vmatprep.subr.mxu0 %v1578_v8  ;;  %8647 = vmatprep.subr.mxu1 %v7690_v10 }
 0x1a3   : > { %8613 = vmatpush3.msra.mxu0 %v1578_v8  ;;  %8648 = vmatpush3.msra.mxu1 %v7690_v10 }
 0x1a4   : > { %8614 = vmatprep.subr.mxu0 %v1577_v11  ;;  %8649 = vmatprep.subr.mxu1 %v7689_v12 }
 0x1a5   : > { %8615 = vmatpush3.msra.mxu0 %v1577_v11  ;;  %8650 = vmatpush3.msra.mxu1 %v7689_v12 }
 0x1a6   : > { %8616 = vmatprep.subr.mxu0 %v1576_v13  ;;  %8651 = vmatprep.subr.mxu1 %v7688_v14 }
 0x1a7   : > { %8617 = vmatpush3.msra.mxu0 %v1576_v13  ;;  %8652 = vmatpush3.msra.mxu1 %v7688_v14 }
 0x1a8   : > { %8618 = vmatprep.subr.mxu0 %v1575_v15  ;;  %8653 = vmatprep.subr.mxu1 %v7687_v16 }
 0x1a9   : > { %8619 = vmatpush3.msra.mxu0 %v1575_v15  ;;  %8654 = vmatpush3.msra.mxu1 %v7687_v16 }
 0x1aa   : > { %8620 = vmatprep.subr.mxu0 %v1574_v17  ;;  %8655 = vmatprep.subr.mxu1 %v7686_v18 }
 0x1ab   : > { %8621 = vmatpush3.msra.mxu0 %v1574_v17  ;;  %8656 = vmatpush3.msra.mxu1 %v7686_v18 }
 0x1ac   : > { %8622 = vmatprep.subr.mxu0 %v1573_v19  ;;  %8657 = vmatprep.subr.mxu1 %v7685_v20 }
 0x1ad   : > { %8623 = vmatpush3.msra.mxu0 %v1573_v19  ;;  %8658 = vmatpush3.msra.mxu1 %v7685_v20 }
 0x1ae   : > { %8624 = vmatprep.subr.mxu0 %v1572_v21  ;;  %8659 = vmatprep.subr.mxu1 %v7684_v22 }
 0x1af   : > { %8625 = vmatpush3.msra.mxu0 %v1572_v21  ;;  %8660 = vmatpush3.msra.mxu1 %v7684_v22 }
 0x1b0   : > { %8626 = vmatprep.subr.mxu0 %v1571_v23  ;;  %8661 = vmatprep.subr.mxu1 %v7683_v24 }
 0x1b1   : > { %8627 = vmatpush3.msra.mxu0 %v1571_v23  ;;  %8662 = vmatpush3.msra.mxu1 %v7683_v24 }
 0x1b2   : > { %8628 = vmatprep.subr.mxu0 %v1570_v25  ;;  %8663 = vmatprep.subr.mxu1 %v7682_v26 }
 0x1b3   : > { %8629 = vmatpush3.msra.mxu0 %v1570_v25  ;;  %8664 = vmatpush3.msra.mxu1 %v7682_v26 }
 0x1b4   : > { %8630 = vmatprep.subr.mxu0 %v1569_v27  ;;  %8665 = vmatprep.subr.mxu1 %v7681_v28 }
 0x1b5   : > { %8631 = vmatpush3.msra.mxu0 %v1569_v27  ;;  %8666 = vmatpush3.msra.mxu1 %v7681_v28 }
 0x1b6   : > { %8632 = vmatprep.subr.mxu0 %v1568_v29  ;;  %8667 = vmatprep.subr.mxu1 %v7680_v30 }
 0x1b7   : > { %8633 = vmatpush3.msra.mxu0 %v1568_v29  ;;  %8668 = vmatpush3.msra.mxu1 %v7680_v30 }
 0x1b8   : > { %8635 = vmatmul.mubr.f32.vlgmr.msra.gmra.mxu0 %v10216_v63  ;;  %8670 = vmatmul.mubr.f32.vlgmr.msra.gmra.mxu1 %v10216_v63 }
 0x1b9   : > { %8672 = vmatprep.subr.mxu0 %v1766_v31  ;;  %8707 = vmatprep.subr.mxu1 %v7711_v32 }
 0x1ba   : > { %8673 = vmatpush3.msra.mxu0 %v1766_v31  ;;  %8704 = vmatprep.mubr.f32.mxu0 %v10212_v61 }
 0x1bb   : > { %8708 = vmatpush3.msra.mxu1 %v7711_v32  ;;  %8739 = vmatprep.mubr.f32.mxu1 %v10212_v61  ;;  %v1751_v61 = vld [vmem:[%s9956_s29] sm:$0xff] }
 0x1bc   : > { %8674 = vmatprep.subr.mxu0 %v1765_v33  ;;  %8709 = vmatprep.subr.mxu1 %v7710_v34 }
 0x1bd   : > { %8675 = vmatpush3.msra.mxu0 %v1765_v33  ;;  %8710 = vmatpush3.msra.mxu1 %v7710_v34 }
 0x1be   : > { %8676 = vmatprep.subr.mxu0 %v1764_v35  ;;  %8711 = vmatprep.subr.mxu1 %v7709_v36 }
 0x1bf   : > { %8677 = vmatpush3.msra.mxu0 %v1764_v35  ;;  %8712 = vmatpush3.msra.mxu1 %v7709_v36 }
 0x1c0   : > { %8678 = vmatprep.subr.mxu0 %v1763_v37  ;;  %8713 = vmatprep.subr.mxu1 %v7708_v38 }
 0x1c1   : > { %8679 = vmatpush3.msra.mxu0 %v1763_v37  ;;  %8714 = vmatpush3.msra.mxu1 %v7708_v38 }
 0x1c2   : > { %8680 = vmatprep.subr.mxu0 %v1762_v39  ;;  %8715 = vmatprep.subr.mxu1 %v7707_v40 }
 0x1c3   : > { %8681 = vmatpush3.msra.mxu0 %v1762_v39  ;;  %8716 = vmatpush3.msra.mxu1 %v7707_v40 }
 0x1c4   : > { %8682 = vmatprep.subr.mxu0 %v1761_v41  ;;  %8717 = vmatprep.subr.mxu1 %v7706_v42 }
 0x1c5   : > { %8683 = vmatpush3.msra.mxu0 %v1761_v41  ;;  %8718 = vmatpush3.msra.mxu1 %v7706_v42 }
 0x1c6   : > { %8684 = vmatprep.subr.mxu0 %v1760_v43  ;;  %8719 = vmatprep.subr.mxu1 %v7705_v44 }
 0x1c7   : > { %8685 = vmatpush3.msra.mxu0 %v1760_v43  ;;  %8720 = vmatpush3.msra.mxu1 %v7705_v44 }
 0x1c8   : > { %8686 = vmatprep.subr.mxu0 %v1759_v45  ;;  %8721 = vmatprep.subr.mxu1 %v7704_v46 }
 0x1c9   : > { %8687 = vmatpush3.msra.mxu0 %v1759_v45  ;;  %8722 = vmatpush3.msra.mxu1 %v7704_v46 }
 0x1ca   : > { %8688 = vmatprep.subr.mxu0 %v1758_v47  ;;  %8723 = vmatprep.subr.mxu1 %v7703_v48 }
 0x1cb   : > { %8689 = vmatpush3.msra.mxu0 %v1758_v47  ;;  %8724 = vmatpush3.msra.mxu1 %v7703_v48 }
 0x1cc   : > { %8690 = vmatprep.subr.mxu0 %v1757_v49  ;;  %8725 = vmatprep.subr.mxu1 %v7702_v50 }
 0x1cd   : > { %8691 = vmatpush3.msra.mxu0 %v1757_v49  ;;  %8726 = vmatpush3.msra.mxu1 %v7702_v50  ;;  %v1340_v49 = vld [vmem:[%s10330_s1 + $0x8] sm:$0xff]  ;;  %v1339_v50 = vld [vmem:[%s10330_s1] sm:$0xff] }
 0x1ce   : > { %8692 = vmatprep.subr.mxu0 %v1756_v51  ;;  %8727 = vmatprep.subr.mxu1 %v7701_v52 }
 0x1cf   : > { %8693 = vmatpush3.msra.mxu0 %v1756_v51  ;;  %8728 = vmatpush3.msra.mxu1 %v7701_v52 }
 0x1d0   : > { %8694 = vmatprep.subr.mxu0 %v1755_v53  ;;  %8729 = vmatprep.subr.mxu1 %v7700_v54 }
 0x1d1   : > { %8695 = vmatpush3.msra.mxu0 %v1755_v53  ;;  %8730 = vmatpush3.msra.mxu1 %v7700_v54 }
 0x1d2   : > { %8696 = vmatprep.subr.mxu0 %v1754_v55  ;;  %8731 = vmatprep.subr.mxu1 %v7699_v56 }
 0x1d3   : > { %8697 = vmatpush3.msra.mxu0 %v1754_v55  ;;  %8732 = vmatpush3.msra.mxu1 %v7699_v56 }
 0x1d4   : > { %8698 = vmatprep.subr.mxu0 %v1753_v57  ;;  %8733 = vmatprep.subr.mxu1 %v7698_v58 }
 0x1d5   : > { %8699 = vmatpush3.msra.mxu0 %v1753_v57  ;;  %8734 = vmatpush3.msra.mxu1 %v7698_v58 }
 0x1d6   : > { %8700 = vmatprep.subr.mxu0 %v1752_v59  ;;  %8735 = vmatprep.subr.mxu1 %v7697_v60 }
 0x1d7   : > { %8701 = vmatpush3.msra.mxu0 %v1752_v59  ;;  %8736 = vmatpush3.msra.mxu1 %v7697_v60 }
 0x1d8   : > { %8702 = vmatprep.subr.mxu0 %v1751_v61  ;;  %8737 = vmatprep.subr.mxu1 %v7696_v62 }
 0x1d9   : > { %8703 = vmatpush3.msra.mxu0 %v1751_v61  ;;  %8738 = vmatpush3.msra.mxu1 %v7696_v62 }
 0x1da   : > { %8705 = vmatmul.mubr.f32.vlgmr.msra.gmra.mxu0 %v10216_v63  ;;  %8740 = vmatmul.mubr.f32.vlgmr.msra.gmra.mxu1 %v10216_v63 }
 0x1db   : > { %8747 = vmatprep.subr.mxu1 %v9916_v0  ;;  %8742 = vmatprep.subr.mxu0 %v9916_v0 }
 0x1dc   : > { %8749 = vmatprep.mubr.msk.f32.mxu1 %vm9917_vm1, %v9916_v0  ;;  %8744 = vmatprep.mubr.msk.f32.mxu0 %vm9917_vm1, %v9916_v0 }
 0x257   : > { %v8566_v1 = vpop.f32.mrf.mxu0  ;;  %v8601_v2 = vpop.f32.mrf.mxu1 }
 0x259   : > { %v1467_v3 = vpop.f32.mrf.mxu0  ;;  %v1559_v4 = vpop.f32.mrf.mxu1 }
 0x278   : > { %v8636_v5 = vpop.f32.mrf.mxu0  ;;  %v8671_v63 = vpop.f32.mrf.mxu1 }
 0x279   : > { %8748 = vmatpush3.xpose.msk.msra.mxu1 %vm1934_vm2, %v8636_v5 }
 0x27a   : > { %v1650_v6 = vpop.f32.mrf.mxu0  ;;  %8757 = vmatprep.subr.mxu1 %v9916_v0  ;;  %v1742_v7 = vpop.f32.mrf.mxu1 }
 0x27b   : > { %8743 = vmatpush3.xpose.msk.msra.mxu0 %vm1934_vm2, %v1650_v6 }
 0x27c   : > { %8750 = vmatmul.mubr.msk.f32.vlgmr.msra.gmra.mxu1 %vm1934_vm2, %v8566_v1  ;;  %8752 = vmatprep.subr.mxu0 %v9916_v0 }
 0x27d   : > { %8758 = vmatpush3.xpose.msk.msra.mxu1 %vm1934_vm2, %v8671_v63  ;;  %8759 = vmatprep.mubr.msk.f32.mxu1 %vm9917_vm1, %v9916_v0 }
 0x27e   : > { %8745 = vmatmul.mubr.msk.f32.vlgmr.msra.gmra.mxu0 %vm1934_vm2, %v1467_v3  ;;  %8767 = vmatprep.subr.mxu1 %v9916_v0 }
 0x27f   : > { %8753 = vmatpush3.xpose.msk.msra.mxu0 %vm1934_vm2, %v1742_v7  ;;  %8754 = vmatprep.mubr.msk.f32.mxu0 %vm9917_vm1, %v9916_v0 }
 0x280   : > { %8760 = vmatmul.mubr.msk.f32.vlgmr.msra.gmra.mxu1 %vm1934_vm2, %v8601_v2  ;;  %8762 = vmatprep.subr.mxu0 %v9916_v0 }
 0x281   : > { %8769 = vmatprep.mubr.msk.f32.mxu1 %vm9917_vm1, %v9916_v0 }
 0x282   : > { %8755 = vmatmul.mubr.msk.f32.vlgmr.msra.gmra.mxu0 %vm1934_vm2, %v1559_v4 }
 0x283   : > { %8764 = vmatprep.mubr.msk.f32.mxu0 %vm9917_vm1, %v9916_v0 }
 0x29a   : > { %v8706_v8 = vpop.f32.mrf.mxu0  ;;  %v10318_v11 = vpop.f32.mrf.mxu1 }
 0x29b   : > { %8768 = vmatpush3.msra.mxu1 %v8706_v8 }
 0x29c   : > { %v1833_v10 = vpop.f32.mrf.mxu0  ;;  %8777 = vmatprep.subr.mxu1 %v9916_v0  ;;  %v10320_v12 = vpop.f32.mrf.mxu1 }
 0x29d   : > { %8763 = vmatpush3.msra.mxu0 %v1833_v10 }
 0x29e   : > { %8772 = vmatprep.subr.mxu0 %v9916_v0 }
 0x33c   : > { %v2083_v13 = vpop.f32.mrf.mxu1 }
 0x33d   : > { %v2240_v14 = vmul.f32 0.17677669, %v2083_v13  ;;  %v2813_v13 = vld [vmem:[%s10046_s27 + $0x78] sm:$0xff] }
 0x33e   : > { %v2007_v15 = vpop.f32.mrf.mxu0  ;;  %v8751_v16 = vpop.f32.mrf.mxu1 }
 0x33f   : > { %v2239_v17 = vmul.f32 0.17677669, %v2007_v15  ;;  %v2246_v18 = vsel %vm1934_vm2, %v2240_v14, -inf  ;;  %v7746_v15 = vld [vmem:[%s10046_s27 + $0xf8] sm:$0xff] }
 0x340   : > { %2247 = vmax.xlane.f32.xlu1 %v2246_v18  ;;  %v8746_v19 = vpop.f32.mrf.mxu0  ;;  %v2235_v20 = vpop.f32.mrf.mxu1 }
 0x341   : > { %v2242_v21 = vmul.f32 0.17677669, %v2235_v20  ;;  %v2243_v22 = vsel %vm1934_vm2, %v2239_v17, -inf  ;;  %v10359_v20 = vld [vmem:[%s10036_s12] ss:$0 sm:$0xff] }
 0x342   : > { %v8761_v23 = vpop.f32.mrf.mxu1  ;;  %2244 = vmax.xlane.f32.xlu0 %v2243_v22  ;;  %v2159_v24 = vpop.f32.mrf.mxu0 }
 0x343   : > { %v2241_v25 = vmul.f32 0.17677669, %v2159_v24  ;;  %v2252_v26 = vsel %vm1934_vm2, %v2242_v21, -inf }
 0x344   : > { %2253 = vmax.xlane.f32.xlu1 %v2252_v26  ;;  %v8756_v27 = vpop.f32.mrf.mxu0 }
 0x345   : > { %v2249_v28 = vsel %vm1934_vm2, %v2241_v25, -inf  ;;  %v10363_v27 = vld [vmem:[%s10041_s20] ss:$0 sm:$0xff] }
 0x346   : > { %2250 = vmax.xlane.f32.xlu0 %v2249_v28  ;;  %v2812_v28 = vld [vmem:[%s10046_s27 + $0x70] sm:$0xff] }
 0x3c9   : > { %v2248_v29 = vpop.xlane.xlu1 %2247 }
 0x3ca   : > { %v2256_v30 = vsub.f32 %v2240_v14, %v2248_v29  ;;  %v2580_v14 = vld [vmem:[%s11146_s3 + $0x8] sm:$0xff] }
 0x3cb   : > { %v2245_v31 = vpop.xlane.xlu0 %2244 }
 0x3cc   : > { %v2261_v32 = vmul.f32 1.442695, %v2256_v30  ;;  %v2255_v33 = vsub.f32 %v2239_v17, %v2245_v31 }
 0x3cd   : > { %v2254_v34 = vpop.xlane.xlu1 %2253 }
 0x3ce   : > { %9769 = vpow2.f32 %v2261_v32  ;;  %v2259_v35 = vmul.f32 1.442695, %v2255_v33  ;;  %v2258_v36 = vsub.f32 %v2242_v21, %v2254_v34  ;;  %v2811_v32 = vld [vmem:[%s10046_s27 + $0x68] sm:$0xff] }
 0x3cf   : > { %v2251_v37 = vpop.xlane.xlu0 %2250 }
 0x3d0   : > { %9771 = vpow2.f32 %v2259_v35  ;;  %v2265_v38 = vmul.f32 1.442695, %v2258_v36  ;;  %v2257_v39 = vsub.f32 %v2241_v25, %v2251_v37  ;;  %v2810_v36 = vld [vmem:[%s10046_s27 + $0x60] sm:$0xff]  ;;  %v7745_v37 = vld [vmem:[%s10046_s27 + $0xf0] sm:$0xff] }
 0x3d2   : > { %9773 = vpow2.f32 %v2265_v38  ;;  %v2263_v40 = vmul.f32 1.442695, %v2257_v39  ;;  %v2809_v39 = vld [vmem:[%s10046_s27 + $0x58] sm:$0xff] }
 0x3d4   : > { %9775 = vpow2.f32 %v2263_v40  ;;  %v7744_v40 = vld [vmem:[%s10046_s27 + $0xe8] sm:$0xff] }
 0x3db   : > { %v9770_v41 = vpop.eup %9769 }
 0x3dc   : > { %v2270_v42 = vsel %vm1934_vm2, %v9770_v41, 0.0 }
 0x3dd   : > { %v9772_v43 = vpop.eup %9771  ;;  %2271 = vadd.xlane.f32.xlu1 %v2270_v42  ;;  %v7743_v42 = vld [vmem:[%s10046_s27 + $0xe0] sm:$0xff] }
 0x3de   : > { %v2267_v44 = vsel %vm1934_vm2, %v9772_v43, 0.0 }
 0x3df   : > { %v9774_v45 = vpop.eup %9773  ;;  %2268 = vadd.xlane.f32.xlu0 %v2267_v44  ;;  %v7742_v44 = vld [vmem:[%s10046_s27 + $0xd8] sm:$0xff] }
 0x3e0   : > { %v2276_v46 = vsel %vm1934_vm2, %v9774_v45, 0.0 }
 0x3e1   : > { %v9776_v47 = vpop.eup %9775  ;;  %2277 = vadd.xlane.f32.xlu1 %v2276_v46  ;;  %v7741_v46 = vld [vmem:[%s10046_s27 + $0xd0] sm:$0xff] }
 0x3e2   : > { %v2273_v48 = vsel %vm1934_vm2, %v9776_v47, 0.0 }
 0x3e3   : > { %2274 = vadd.xlane.f32.xlu0 %v2273_v48  ;;  %v7740_v48 = vld [vmem:[%s10046_s27 + $0xc8] sm:$0xff] }
 0x3e5   : > { %2758 = vadd.xlane.f32.xlu1 %v1340_v49 }
 0x3e7   : > { %2756 = vadd.xlane.f32.xlu0 %v1339_v50 }
 0x466   : > { %v2272_v51 = vpop.xlane.xlu1 %2271 }
 0x467   : > { %9777 = vrcp.f32 %v2272_v51  ;;  %v2803_v51 = vld [vmem:[%s10046_s27 + $0x28] sm:$0xff] }
 0x468   : > { %v2269_v52 = vpop.xlane.xlu0 %2268 }
 0x469   : > { %9779 = vrcp.f32 %v2269_v52  ;;  %v7738_v52 = vld [vmem:[%s10046_s27 + $0xb8] sm:$0xff] }
 0x46a   : > { %v2278_v53 = vpop.xlane.xlu1 %2277 }
 0x46b   : > { %9781 = vrcp.f32 %v2278_v53 }
 0x46c   : > { %v2275_v54 = vpop.xlane.xlu0 %2274 }
 0x46d   : > { %9783 = vrcp.f32 %v2275_v54  ;;  %v2802_v54 = vld [vmem:[%s10046_s27 + $0x20] sm:$0xff] }
 0x46e   : > { %v2759_v55 = vpop.xlane.xlu1 %2758 }
 0x46f   : > { %v2761_v56 = vmul.f32 0.03125, %v2759_v55  ;;  %v7737_v55 = vld [vmem:[%s10046_s27 + $0xb0] sm:$0xff] }
 0x470   : > { %v2757_v57 = vpop.xlane.xlu0 %2756 }
 0x471   : > { %v2763_v58 = vsub.f32 %v1340_v49, %v2761_v56  ;;  %v2760_v59 = vmul.f32 0.03125, %v2757_v57  ;;  %v2804_v49 = vld [vmem:[%s10046_s27 + $0x30] sm:$0xff]  ;;  %v2801_v56 = vld [vmem:[%s10046_s27 + $0x18] sm:$0xff] }
 0x473   : > { %v2762_v60 = vsub.f32 %v1339_v50, %v2760_v59  ;;  %v10338_v61 = vsel %vm1336_vm0, %v2763_v58, 0.0  ;;  %v7739_v50 = vld [vmem:[%s10046_s27 + $0xc0] sm:$0xff]  ;;  %v7736_v58 = vld [vmem:[%s10046_s27 + $0xa8] sm:$0xff]  ;;  %v2800_v59 = vld [vmem:[%s10046_s27 + $0x10] sm:$0xff] }
 0x474   : > { %v9778_v62 = vpop.eup %9777  ;;  %v2767_v1 = vmul.f32 %v10338_v61, %v10338_v61 }
 0x475   : > { %v2284_v2 = vmul.f32 %v9778_v62, %v9770_v41  ;;  %v2764_v3 = vsel %vm1336_vm0, %v2762_v60, 0.0  ;;  %v2808_v41 = vld [vmem:[%s10046_s27 + $0x50] sm:$0xff]  ;;  %v7735_v60 = vld [vmem:[%s10046_s27 + $0xa0] sm:$0xff]  ;;  %v2799_v62 = vld [vmem:[%s10046_s27 + $0x8] sm:$0xff] }
 0x476   : > { %v9780_v4 = vpop.eup %9779  ;;  %2770 = vadd.xlane.f32.xlu1 %v2767_v1  ;;  %v2766_v5 = vmul.f32 %v2764_v3, %v2764_v3 }
 0x477   : > { %8770 = vmatmul.mubr.msk.f32.vlgmr.msra.gmra.mxu1 %vm1934_vm2, %v2284_v2  ;;  %v2283_v63 = vmul.f32 %v9780_v4, %v9772_v43  ;;  %v2807_v43 = vld [vmem:[%s10046_s27 + $0x48] sm:$0xff]  ;;  %v2798_v2 = vld [vmem:[%s10046_s27] sm:$0xff] }
 0x478   : > { %v9782_v6 = vpop.eup %9781  ;;  %8778 = vmatpush3.msra.mxu1 %v10318_v11  ;;  %2768 = vadd.xlane.f32.xlu0 %v2766_v5  ;;  %v2579_v11 = vld [vmem:[%s11146_s3] sm:$0xff]  ;;  %v7732_v5 = vld [vmem:[%s10046_s27 + $0x88] sm:$0xff]  ;;  %s11169_s3 = sld [smem:[#allocation27_spill]] }
 0x479   : > { %8765 = vmatmul.mubr.msk.f32.vlgmr.msra.gmra.mxu0 %vm1934_vm2, %v2283_v63  ;;  %8779 = vmatprep.mubr.msk.f32.mxu1 %vm9917_vm1, %v9916_v0  ;;  %v2286_v7 = vmul.f32 %v9782_v6, %v9774_v45  ;;  %v2806_v45 = vld [vmem:[%s10046_s27 + $0x40] sm:$0xff]  ;;  %v2996_v63 = vld [vmem:[%s11145_s4 + $0x78] sm:$0xff] }
 0x47a   : > { %v9784_v8 = vpop.eup %9783  ;;  %8773 = vmatpush3.msra.mxu0 %v10320_v12  ;;  %8774 = vmatprep.mubr.msk.f32.mxu0 %vm9917_vm1, %v9916_v0  ;;  %v7731_v6 = vld [vmem:[%s10046_s27 + $0x80] sm:$0xff] }
 0x47b   : > { %8780 = vmatmul.mubr.msk.f32.vlgmr.msra.gmra.mxu1 %vm1934_vm2, %v2286_v7  ;;  %v2285_v10 = vmul.f32 %v9784_v8, %v9776_v47  ;;  %8782 = vmatprep.subr.mxu0 %v2579_v11  ;;  %v2805_v47 = vld [vmem:[%s10046_s27 + $0x38] sm:$0xff]  ;;  %v2995_v7 = vld [vmem:[%s11145_s4 + $0x70] sm:$0xff]  ;;  %v2994_v8 = vld [vmem:[%s11145_s4 + $0x68] sm:$0xff] }
 0x47c   : > { %8787 = vmatprep.subr.mxu1 %v2580_v14 }
 0x47d   : > { %8775 = vmatmul.mubr.msk.f32.vlgmr.msra.gmra.mxu0 %vm1934_vm2, %v2285_v10  ;;  %8788 = vmatpush3.msra.mxu1 %v2580_v14  ;;  %v7762_v10 = vld [vmem:[%s11145_s4 + $0xf8] sm:$0xff] }
 0x47e   : > { %8783 = vmatpush3.msra.mxu0 %v2579_v11  ;;  %8827 = vmatprep.subr.mxu1 %v7746_v15  ;;  %v2993_v11 = vld [vmem:[%s11145_s4 + $0x60] sm:$0xff]  ;;  %v2992_v14 = vld [vmem:[%s11145_s4 + $0x58] sm:$0xff] }
 0x47f   : > { %8792 = vmatprep.subr.mxu0 %v2813_v13 }
 0x4ff   : > { %v2771_v21 = vpop.xlane.xlu1 %2770 }
 0x500   : > { %v2773_v24 = vmul.f32 0.03125, %v2771_v21  ;;  %v2988_v21 = vld [vmem:[%s11145_s4 + $0x38] sm:$0xff] }
 0x501   : > { %v2769_v12 = vpop.xlane.xlu0 %2768 }
 0x502   : > { %v2772_v16 = vmul.f32 0.03125, %v2769_v12  ;;  %v2775_v33 = vadd.f32 1e-05, %v2773_v24  ;;  %v2991_v12 = vld [vmem:[%s11145_s4 + $0x50] sm:$0xff]  ;;  %v7755_v24 = vld [vmem:[%s11145_s4 + $0xc0] sm:$0xff] }
 0x504   : > { %v2774_v17 = vadd.f32 1e-05, %v2772_v16  ;;  %v7759_v16 = vld [vmem:[%s11145_s4 + $0xe0] sm:$0xff] }
 0x506   : > { %9785 = vrsqrt.f32 %v2774_v17  ;;  %v2990_v17 = vld [vmem:[%s11145_s4 + $0x48] sm:$0xff] }
 0x507   : > { %9787 = vrsqrt.f32 %v2775_v33  ;;  %v7751_v33 = vld [vmem:[%s11145_s4 + $0xa0] sm:$0xff] }
 0x513   : > { %v9786_v18 = vpop.eup %9785 }
 0x514   : > { %v2778_v19 = vmul.f32 %v9786_v18, %v2764_v3  ;;  %v9788_v53 = vpop.eup %9787  ;;  %v7733_v3 = vld [vmem:[%s10046_s27 + $0x90] sm:$0xff]  ;;  %v7758_v18 = vld [vmem:[%s11145_s4 + $0xd8] sm:$0xff] }
 0x515   : > { %v2779_v57 = vmul.f32 %v9788_v53, %v10338_v61  ;;  %v7734_v61 = vld [vmem:[%s10046_s27 + $0x98] sm:$0xff] }
 0x516   : > { %v2787_v22 = vmul.f32 %v10359_v20, %v2778_v19  ;;  %v2989_v19 = vld [vmem:[%s11145_s4 + $0x40] sm:$0xff]  ;;  %v3171_v53 = vld [vmem:[%s10056_s6 + $0x38] sm:$0xff] }
 0x517   : > { %v2788_v1 = vmul.f32 %v10359_v20, %v2779_v57  ;;  %v7757_v20 = vld [vmem:[%s11145_s4 + $0xd0] sm:$0xff]  ;;  %v3169_v57 = vld [vmem:[%s10056_s6 + $0x28] sm:$0xff] }
 0x518   : > { %v10368_v29 = vadd.f32 %v10363_v27, %v2787_v22  ;;  %v7756_v22 = vld [vmem:[%s11145_s4 + $0xc8] sm:$0xff] }
 0x519   : > { %v10405_v4 = vadd.f32 %v10363_v27, %v2788_v1  ;;  %v2985_v27 = vld [vmem:[%s11145_s4 + $0x20] sm:$0xff]  ;;  %v7768_v1 = vld [vmem:[%s10056_s6 + $0xa8] sm:$0xff] }
 0x537   : > { %v2429_v23 = vpop.f32.mrf.mxu1 }
 0x539   : > { %v2356_v25 = vpop.f32.mrf.mxu0  ;;  %v8771_v26 = vpop.f32.mrf.mxu1 }
 0x53a   : > { %8784 = vmatprep.mubr.msk.f32.mxu0 %vm1934_vm2, %v2356_v25  ;;  %v2986_v25 = vld [vmem:[%s11145_s4 + $0x28] sm:$0xff]  ;;  %v7754_v26 = vld [vmem:[%s11145_s4 + $0xb8] sm:$0xff] }
 0x53b   : > { %v8766_v30 = vpop.f32.mrf.mxu0  ;;  %v2575_v31 = vpop.f32.mrf.mxu1  ;;  %8785 = vmatmul.mubr.msk.f32.vlgmr.msra.gmra.mxu0 %vm1934_vm2, %v2429_v23  ;;  %v2987_v23 = vld [vmem:[%s11145_s4 + $0x30] sm:$0xff] }
 0x53c   : > { %8793 = vmatpush3.msra.mxu0 %v2813_v13  ;;  %8824 = vmatprep.mubr.f32.mxu0 %v10368_v29  ;;  %v7761_v13 = vld [vmem:[%s11145_s4 + $0xf0] sm:$0xff]  ;;  %v2984_v30 = vld [vmem:[%s11145_s4 + $0x18] sm:$0xff] }
 0x53d   : > { %8794 = vmatprep.subr.mxu0 %v2812_v28  ;;  %v2502_v34 = vpop.f32.mrf.mxu0  ;;  %v8781_v35 = vpop.f32.mrf.mxu1 }
 0x53e   : > { %8795 = vmatpush3.msra.mxu0 %v2812_v28  ;;  %8789 = vmatprep.mubr.msk.f32.mxu1 %vm1934_vm2, %v2502_v34  ;;  %v7753_v28 = vld [vmem:[%s11145_s4 + $0xb0] sm:$0xff]  ;;  %v2982_v34 = vld [vmem:[%s11145_s4 + $0x8] sm:$0xff]  ;;  %v7750_v35 = vld [vmem:[%s11145_s4 + $0x98] sm:$0xff] }
 0x53f   : > { %8796 = vmatprep.subr.mxu0 %v2811_v32  ;;  %v8776_v38 = vpop.f32.mrf.mxu0  ;;  %8790 = vmatmul.mubr.msk.f32.vlgmr.msra.gmra.mxu1 %vm1934_vm2, %v2575_v31  ;;  %v7752_v31 = vld [vmem:[%s11145_s4 + $0xa8] sm:$0xff] }
 0x540   : > { %8797 = vmatpush3.msra.mxu0 %v2811_v32  ;;  %8828 = vmatpush3.msra.mxu1 %v7746_v15  ;;  %v7760_v15 = vld [vmem:[%s11145_s4 + $0xe8] sm:$0xff]  ;;  %v2983_v32 = vld [vmem:[%s11145_s4 + $0x10] sm:$0xff] }
 0x541   : > { %8798 = vmatprep.subr.mxu0 %v2810_v36  ;;  %8829 = vmatprep.subr.mxu1 %v7745_v37  ;;  %v7748_v38 = vld [vmem:[%s11145_s4 + $0x88] sm:$0xff] }
 0x542   : > { %8859 = vmatprep.mubr.f32.mxu1 %v10368_v29  ;;  %8799 = vmatpush3.msra.mxu0 %v2810_v36  ;;  %v2981_v36 = vld [vmem:[%s11145_s4] sm:$0xff] }
 0x543   : > { %8830 = vmatpush3.msra.mxu1 %v7745_v37  ;;  %8800 = vmatprep.subr.mxu0 %v2809_v39  ;;  %v7749_v37 = vld [vmem:[%s11145_s4 + $0x90] sm:$0xff] }
 0x544   : > { %8831 = vmatprep.subr.mxu1 %v7744_v40  ;;  %8801 = vmatpush3.msra.mxu0 %v2809_v39  ;;  %v3179_v39 = vld [vmem:[%s10056_s6 + $0x78] sm:$0xff] }
 0x545   : > { %8832 = vmatpush3.msra.mxu1 %v7744_v40  ;;  %8802 = vmatprep.subr.mxu0 %v2808_v41  ;;  %v7747_v40 = vld [vmem:[%s11145_s4 + $0x80] sm:$0xff]  ;;  %s11170_s4 = sld [smem:[#allocation13_spill]] }
 0x546   : > { %8833 = vmatprep.subr.mxu1 %v7743_v42  ;;  %8803 = vmatpush3.msra.mxu0 %v2808_v41  ;;  %v3178_v41 = vld [vmem:[%s10056_s6 + $0x70] sm:$0xff] }
 0x547   : > { %8834 = vmatpush3.msra.mxu1 %v7743_v42  ;;  %8804 = vmatprep.subr.mxu0 %v2807_v43  ;;  %v3177_v42 = vld [vmem:[%s10056_s6 + $0x68] sm:$0xff] }
 0x548   : > { %8835 = vmatprep.subr.mxu1 %v7742_v44  ;;  %8805 = vmatpush3.msra.mxu0 %v2807_v43  ;;  %v7778_v43 = vld [vmem:[%s10056_s6 + $0xf8] sm:$0xff] }
 0x549   : > { %8836 = vmatpush3.msra.mxu1 %v7742_v44  ;;  %8806 = vmatprep.subr.mxu0 %v2806_v45  ;;  %v3176_v44 = vld [vmem:[%s10056_s6 + $0x60] sm:$0xff] }
 0x54a   : > { %8837 = vmatprep.subr.mxu1 %v7741_v46  ;;  %8807 = vmatpush3.msra.mxu0 %v2806_v45  ;;  %v7777_v45 = vld [vmem:[%s10056_s6 + $0xf0] sm:$0xff] }
 0x54b   : > { %8838 = vmatpush3.msra.mxu1 %v7741_v46  ;;  %8808 = vmatprep.subr.mxu0 %v2805_v47  ;;  %v3175_v46 = vld [vmem:[%s10056_s6 + $0x58] sm:$0xff] }
 0x54c   : > { %8839 = vmatprep.subr.mxu1 %v7740_v48  ;;  %8809 = vmatpush3.msra.mxu0 %v2805_v47  ;;  %v7776_v47 = vld [vmem:[%s10056_s6 + $0xe8] sm:$0xff] }
 0x54d   : > { %8840 = vmatpush3.msra.mxu1 %v7740_v48  ;;  %8810 = vmatprep.subr.mxu0 %v2804_v49  ;;  %v3174_v48 = vld [vmem:[%s10056_s6 + $0x50] sm:$0xff] }
 0x54e   : > { %8841 = vmatprep.subr.mxu1 %v7739_v50  ;;  %8811 = vmatpush3.msra.mxu0 %v2804_v49  ;;  %v7775_v49 = vld [vmem:[%s10056_s6 + $0xe0] sm:$0xff] }
 0x54f   : > { %8842 = vmatpush3.msra.mxu1 %v7739_v50  ;;  %8812 = vmatprep.subr.mxu0 %v2803_v51  ;;  %v3173_v50 = vld [vmem:[%s10056_s6 + $0x48] sm:$0xff] }
 0x550   : > { %8843 = vmatprep.subr.mxu1 %v7738_v52  ;;  %8813 = vmatpush3.msra.mxu0 %v2803_v51  ;;  %v7774_v51 = vld [vmem:[%s10056_s6 + $0xd8] sm:$0xff] }
 0x551   : > { %8844 = vmatpush3.msra.mxu1 %v7738_v52  ;;  %8814 = vmatprep.subr.mxu0 %v2802_v54  ;;  %v7773_v52 = vld [vmem:[%s10056_s6 + $0xd0] sm:$0xff] }
 0x552   : > { %8845 = vmatprep.subr.mxu1 %v7737_v55  ;;  %8815 = vmatpush3.msra.mxu0 %v2802_v54  ;;  %v7772_v54 = vld [vmem:[%s10056_s6 + $0xc8] sm:$0xff] }
 0x553   : > { %8846 = vmatpush3.msra.mxu1 %v7737_v55  ;;  %8816 = vmatprep.subr.mxu0 %v2801_v56  ;;  %v3170_v55 = vld [vmem:[%s10056_s6 + $0x30] sm:$0xff] }
 0x554   : > { %8847 = vmatprep.subr.mxu1 %v7736_v58  ;;  %8817 = vmatpush3.msra.mxu0 %v2801_v56  ;;  %v7771_v56 = vld [vmem:[%s10056_s6 + $0xc0] sm:$0xff] }
 0x555   : > { %8848 = vmatpush3.msra.mxu1 %v7736_v58  ;;  %8818 = vmatprep.subr.mxu0 %v2800_v59  ;;  %v7770_v58 = vld [vmem:[%s10056_s6 + $0xb8] sm:$0xff] }
 0x556   : > { %8849 = vmatprep.subr.mxu1 %v7735_v60  ;;  %8819 = vmatpush3.msra.mxu0 %v2800_v59  ;;  %v3168_v59 = vld [vmem:[%s10056_s6 + $0x20] sm:$0xff] }
 0x557   : > { %8850 = vmatpush3.msra.mxu1 %v7735_v60  ;;  %8820 = vmatprep.subr.mxu0 %v2799_v62  ;;  %v7769_v60 = vld [vmem:[%s10056_s6 + $0xb0] sm:$0xff] }
 0x558   : > { %8851 = vmatprep.subr.mxu1 %v7734_v61  ;;  %8821 = vmatpush3.msra.mxu0 %v2799_v62  ;;  %v3167_v62 = vld [vmem:[%s10056_s6 + $0x18] sm:$0xff] }
 0x559   : > { %8852 = vmatpush3.msra.mxu1 %v7734_v61  ;;  %8822 = vmatprep.subr.mxu0 %v2798_v2  ;;  %v3166_v61 = vld [vmem:[%s10056_s6 + $0x10] sm:$0xff] }
 0x55a   : > { %8853 = vmatprep.subr.mxu1 %v7733_v3  ;;  %8823 = vmatpush3.msra.mxu0 %v2798_v2  ;;  %v7767_v2 = vld [vmem:[%s10056_s6 + $0xa0] sm:$0xff] }
 0x55b   : > { %8854 = vmatpush3.msra.mxu1 %v7733_v3  ;;  %8825 = vmatmul.mubr.f32.vlgmr.msra.gmra.mxu0 %v10405_v4  ;;  %v3165_v3 = vld [vmem:[%s10056_s6 + $0x8] sm:$0xff] }
 0x55c   : > { %8855 = vmatprep.subr.mxu1 %v7732_v5  ;;  %8862 = vmatprep.subr.mxu0 %v2996_v63 }
 0x55d   : > { %8856 = vmatpush3.msra.mxu1 %v7732_v5  ;;  %8863 = vmatpush3.msra.mxu0 %v2996_v63  ;;  %v7766_v5 = vld [vmem:[%s10056_s6 + $0x98] sm:$0xff]  ;;  %v3164_v63 = vld [vmem:[%s10056_s6] sm:$0xff] }
 0x55e   : > { %8894 = vmatprep.mubr.f32.mxu0 %v10368_v29  ;;  %8857 = vmatprep.subr.mxu1 %v7731_v6 }
 0x55f   : > { %8864 = vmatprep.subr.mxu0 %v2995_v7  ;;  %8858 = vmatpush3.msra.mxu1 %v7731_v6  ;;  %v7765_v6 = vld [vmem:[%s10056_s6 + $0x90] sm:$0xff] }
 0x560   : > { %8865 = vmatpush3.msra.mxu0 %v2995_v7  ;;  %8860 = vmatmul.mubr.f32.vlgmr.msra.gmra.mxu1 %v10405_v4  ;;  %v7764_v7 = vld [vmem:[%s10056_s6 + $0x88] sm:$0xff] }
 0x561   : > { %8866 = vmatprep.subr.mxu0 %v2994_v8  ;;  %8897 = vmatprep.subr.mxu1 %v7762_v10 }
 0x562   : > { %8867 = vmatpush3.msra.mxu0 %v2994_v8  ;;  %8898 = vmatpush3.msra.mxu1 %v7762_v10  ;;  %v7763_v8 = vld [vmem:[%s10056_s6 + $0x80] sm:$0xff] }
 0x563   : > { %8929 = vmatprep.mubr.f32.mxu1 %v10368_v29  ;;  %8868 = vmatprep.subr.mxu0 %v2993_v11 }
 0x564   : > { %8899 = vmatprep.subr.mxu1 %v7761_v13  ;;  %8869 = vmatpush3.msra.mxu0 %v2993_v11 }
 0x565   : > { %8900 = vmatpush3.msra.mxu1 %v7761_v13  ;;  %8870 = vmatprep.subr.mxu0 %v2992_v14 }
 0x566   : > { %8901 = vmatprep.subr.mxu1 %v7760_v15  ;;  %8871 = vmatpush3.msra.mxu0 %v2992_v14 }
 0x567   : > { %8902 = vmatpush3.msra.mxu1 %v7760_v15  ;;  %8872 = vmatprep.subr.mxu0 %v2991_v12 }
 0x568   : > { %8903 = vmatprep.subr.mxu1 %v7759_v16  ;;  %8873 = vmatpush3.msra.mxu0 %v2991_v12 }
 0x569   : > { %8904 = vmatpush3.msra.mxu1 %v7759_v16  ;;  %8874 = vmatprep.subr.mxu0 %v2990_v17 }
 0x56a   : > { %8905 = vmatprep.subr.mxu1 %v7758_v18  ;;  %8875 = vmatpush3.msra.mxu0 %v2990_v17 }
 0x56b   : > { %8906 = vmatpush3.msra.mxu1 %v7758_v18  ;;  %8876 = vmatprep.subr.mxu0 %v2989_v19 }
 0x56c   : > { %8907 = vmatprep.subr.mxu1 %v7757_v20  ;;  %8877 = vmatpush3.msra.mxu0 %v2989_v19 }
 0x56d   : > { %8908 = vmatpush3.msra.mxu1 %v7757_v20  ;;  %8878 = vmatprep.subr.mxu0 %v2988_v21 }
 0x56e   : > { %8909 = vmatprep.subr.mxu1 %v7756_v22  ;;  %8879 = vmatpush3.msra.mxu0 %v2988_v21 }
 0x56f   : > { %8910 = vmatpush3.msra.mxu1 %v7756_v22  ;;  %8880 = vmatprep.subr.mxu0 %v2987_v23 }
 0x570   : > { %8911 = vmatprep.subr.mxu1 %v7755_v24  ;;  %8881 = vmatpush3.msra.mxu0 %v2987_v23 }
 0x571   : > { %8912 = vmatpush3.msra.mxu1 %v7755_v24  ;;  %8882 = vmatprep.subr.mxu0 %v2986_v25 }
 0x572   : > { %8913 = vmatprep.subr.mxu1 %v7754_v26  ;;  %8883 = vmatpush3.msra.mxu0 %v2986_v25 }
 0x573   : > { %8914 = vmatpush3.msra.mxu1 %v7754_v26  ;;  %8884 = vmatprep.subr.mxu0 %v2985_v27 }
 0x574   : > { %8915 = vmatprep.subr.mxu1 %v7753_v28  ;;  %8885 = vmatpush3.msra.mxu0 %v2985_v27 }
 0x575   : > { %8916 = vmatpush3.msra.mxu1 %v7753_v28  ;;  %8886 = vmatprep.subr.mxu0 %v2984_v30 }
 0x576   : > { %8917 = vmatprep.subr.mxu1 %v7752_v31  ;;  %8887 = vmatpush3.msra.mxu0 %v2984_v30 }
 0x577   : > { %8918 = vmatpush3.msra.mxu1 %v7752_v31  ;;  %8888 = vmatprep.subr.mxu0 %v2983_v32 }
 0x578   : > { %8919 = vmatprep.subr.mxu1 %v7751_v33  ;;  %8889 = vmatpush3.msra.mxu0 %v2983_v32 }
 0x579   : > { %8920 = vmatpush3.msra.mxu1 %v7751_v33  ;;  %8890 = vmatprep.subr.mxu0 %v2982_v34 }
 0x57a   : > { %8921 = vmatprep.subr.mxu1 %v7750_v35  ;;  %8891 = vmatpush3.msra.mxu0 %v2982_v34 }
 0x57b   : > { %8922 = vmatpush3.msra.mxu1 %v7750_v35  ;;  %8892 = vmatprep.subr.mxu0 %v2981_v36 }
 0x57c   : > { %8923 = vmatprep.subr.mxu1 %v7749_v37  ;;  %8893 = vmatpush3.msra.mxu0 %v2981_v36 }
 0x57d   : > { %8924 = vmatpush3.msra.mxu1 %v7749_v37  ;;  %8895 = vmatmul.mubr.f32.vlgmr.msra.gmra.mxu0 %v10405_v4 }
 0x57e   : > { %8925 = vmatprep.subr.mxu1 %v7748_v38  ;;  %8932 = vmatprep.subr.mxu0 %v3179_v39 }
 0x57f   : > { %8926 = vmatpush3.msra.mxu1 %v7748_v38  ;;  %8933 = vmatpush3.msra.mxu0 %v3179_v39 }
 0x580   : > { %8964 = vmatprep.mubr.f32.mxu0 %v10368_v29  ;;  %8927 = vmatprep.subr.mxu1 %v7747_v40 }
 0x581   : > { %8934 = vmatprep.subr.mxu0 %v3178_v41  ;;  %8928 = vmatpush3.msra.mxu1 %v7747_v40 }
 0x582   : > { %8935 = vmatpush3.msra.mxu0 %v3178_v41  ;;  %8930 = vmatmul.mubr.f32.vlgmr.msra.gmra.mxu1 %v10405_v4 }
 0x583   : > { %8936 = vmatprep.subr.mxu0 %v3177_v42  ;;  %8967 = vmatprep.subr.mxu1 %v7778_v43 }
 0x584   : > { %8937 = vmatpush3.msra.mxu0 %v3177_v42  ;;  %8968 = vmatpush3.msra.mxu1 %v7778_v43 }
 0x585   : > { %8999 = vmatprep.mubr.f32.mxu1 %v10368_v29  ;;  %8938 = vmatprep.subr.mxu0 %v3176_v44  ;;  %v3172_v29 = vld [vmem:[%s10056_s6 + $0x40] sm:$0xff] }
 0x586   : > { %8969 = vmatprep.subr.mxu1 %v7777_v45  ;;  %8939 = vmatpush3.msra.mxu0 %v3176_v44 }
 0x587   : > { %8970 = vmatpush3.msra.mxu1 %v7777_v45  ;;  %8940 = vmatprep.subr.mxu0 %v3175_v46 }
 0x588   : > { %8971 = vmatprep.subr.mxu1 %v7776_v47  ;;  %8941 = vmatpush3.msra.mxu0 %v3175_v46 }
 0x589   : > { %8972 = vmatpush3.msra.mxu1 %v7776_v47  ;;  %8942 = vmatprep.subr.mxu0 %v3174_v48 }
 0x58a   : > { %8973 = vmatprep.subr.mxu1 %v7775_v49  ;;  %8943 = vmatpush3.msra.mxu0 %v3174_v48 }
 0x58b   : > { %8974 = vmatpush3.msra.mxu1 %v7775_v49  ;;  %8944 = vmatprep.subr.mxu0 %v3173_v50 }
 0x58c   : > { %8975 = vmatprep.subr.mxu1 %v7774_v51  ;;  %8945 = vmatpush3.msra.mxu0 %v3173_v50 }
 0x58d   : > { %8976 = vmatpush3.msra.mxu1 %v7774_v51  ;;  %8946 = vmatprep.subr.mxu0 %v3172_v29 }
 0x58e   : > { %8977 = vmatprep.subr.mxu1 %v7773_v52  ;;  %8947 = vmatpush3.msra.mxu0 %v3172_v29 }
 0x58f   : > { %8978 = vmatpush3.msra.mxu1 %v7773_v52  ;;  %8948 = vmatprep.subr.mxu0 %v3171_v53 }
 0x590   : > { %8979 = vmatprep.subr.mxu1 %v7772_v54  ;;  %8949 = vmatpush3.msra.mxu0 %v3171_v53 }
 0x591   : > { %8980 = vmatpush3.msra.mxu1 %v7772_v54  ;;  %8950 = vmatprep.subr.mxu0 %v3170_v55 }
 0x592   : > { %8981 = vmatprep.subr.mxu1 %v7771_v56  ;;  %8951 = vmatpush3.msra.mxu0 %v3170_v55 }
 0x593   : > { %8982 = vmatpush3.msra.mxu1 %v7771_v56  ;;  %8952 = vmatprep.subr.mxu0 %v3169_v57 }
 0x594   : > { %8983 = vmatprep.subr.mxu1 %v7770_v58  ;;  %8953 = vmatpush3.msra.mxu0 %v3169_v57 }
 0x595   : > { %8984 = vmatpush3.msra.mxu1 %v7770_v58  ;;  %8954 = vmatprep.subr.mxu0 %v3168_v59  ;;  %v7728_v58 = vld [vmem:[%s9966_s8] ss:$0 sm:$0xff] }
 0x596   : > { %8985 = vmatprep.subr.mxu1 %v7769_v60  ;;  %8955 = vmatpush3.msra.mxu0 %v3168_v59 }
 0x597   : > { %8986 = vmatpush3.msra.mxu1 %v7769_v60  ;;  %8956 = vmatprep.subr.mxu0 %v3167_v62 }
 0x598   : > { %8987 = vmatprep.subr.mxu1 %v7768_v1  ;;  %8957 = vmatpush3.msra.mxu0 %v3167_v62 }
 0x599   : > { %8988 = vmatpush3.msra.mxu1 %v7768_v1  ;;  %8958 = vmatprep.subr.mxu0 %v3166_v61 }
 0x59a   : > { %8989 = vmatprep.subr.mxu1 %v7767_v2  ;;  %8959 = vmatpush3.msra.mxu0 %v3166_v61 }
 0x59b   : > { %8990 = vmatpush3.msra.mxu1 %v7767_v2  ;;  %8960 = vmatprep.subr.mxu0 %v3165_v3 }
 0x59c   : > { %8991 = vmatprep.subr.mxu1 %v7766_v5  ;;  %8961 = vmatpush3.msra.mxu0 %v3165_v3 }
 0x59d   : > { %8992 = vmatpush3.msra.mxu1 %v7766_v5  ;;  %8962 = vmatprep.subr.mxu0 %v3164_v63  ;;  %v9861_v5 = vld [vmem:[%s10155_s28 + $0x8] sm:$0xff] }
 0x59e   : > { %8993 = vmatprep.subr.mxu1 %v7765_v6  ;;  %8963 = vmatpush3.msra.mxu0 %v3164_v63 }
 0x59f   : > { %8994 = vmatpush3.msra.mxu1 %v7765_v6  ;;  %8965 = vmatmul.mubr.f32.vlgmr.msra.gmra.mxu0 %v10405_v4  ;;  %v9862_v6 = vld [vmem:[%s10155_s28] sm:$0xff]  ;;  %s11156_s28 = sld [smem:[#allocation19_spill]] }
 0x5a0   : > { %8995 = vmatprep.subr.mxu1 %v7764_v7  ;;  %9002 = vmatprep.subr.mxu0 %v9916_v0 }
 0x5a1   : > { %8996 = vmatpush3.msra.mxu1 %v7764_v7  ;;  %9004 = vmatprep.mubr.msk.f32.mxu0 %vm9917_vm1, %v9916_v0 }
 0x5a2   : > { %8997 = vmatprep.subr.mxu1 %v7763_v8 }
 0x5a3   : > { %8998 = vmatpush3.msra.mxu1 %v7763_v8 }
 0x5a4   : > { %9000 = vmatmul.mubr.f32.vlgmr.msra.gmra.mxu1 %v10405_v4  ;;  %9007 = vmatprep.subr.mxu1 %v9916_v0 }
 0x5a5   : > { %9009 = vmatprep.mubr.msk.f32.mxu1 %vm9917_vm1, %v9916_v0 }
 0x5fb   : > { %v8786_v10 = vpop.f32.mrf.mxu0 }
 0x5fd   : > { %v2653_v14 = vpop.f32.mrf.mxu0 }
 0x5ff   : > { %v8791_v11 = vpop.f32.mrf.mxu1 }
 0x600   : > { %v10489_v13 = vadd.f32 %v8791_v11, %v8786_v10 }
 0x601   : > { %v2734_v15 = vpop.f32.mrf.mxu1 }
 0x602   : > { %v10491_v12 = vadd.f32 %v2734_v15, %v2653_v14  ;;  %v2753_v62 = vadd.f32 %v7728_v58, %v10489_v13 }
 0x604   : > { %v2752_v2 = vadd.f32 %v7728_v58, %v10491_v12  ;;  %v10531_v63 = vadd.f32 %v9861_v5, %v2753_v62  ;;  %v7811_v58 = vld [vmem:[%s11148_s7 + $0xe8] sm:$0xff]  ;;  %v4249_v62 = vld [vmem:[%s11148_s7 + $0x58] sm:$0xff] }
 0x605   : > { %v7807_v5 = vld [vmem:[%s11148_s7 + $0xc8] sm:$0xff] }
 0x606   : > { %v10535_v7 = vadd.f32 %v9862_v6, %v2752_v2  ;;  %v7808_v2 = vld [vmem:[%s11148_s7 + $0xd0] sm:$0xff]  ;;  %v4246_v6 = vld [vmem:[%s11148_s7 + $0x40] sm:$0xff] }
 0x61b   : > { %v8826_v16 = vpop.f32.mrf.mxu0 }
 0x61d   : > { %v2880_v17 = vpop.f32.mrf.mxu0 }
 0x620   : > { %v8861_v18 = vpop.f32.mrf.mxu1 }
 0x622   : > { %v2972_v20 = vpop.f32.mrf.mxu1 }
 0x63d   : > { %v8896_v19 = vpop.f32.mrf.mxu0 }
 0x63e   : > { %9008 = vmatpush3.xpose.msk.msra.mxu1 %vm1934_vm2, %v8896_v19 }
 0x63f   : > { %v3063_v4 = vpop.f32.mrf.mxu0  ;;  %9017 = vmatprep.subr.mxu1 %v9916_v0 }
 0x640   : > { %9003 = vmatpush3.xpose.msk.msra.mxu0 %vm1934_vm2, %v3063_v4 }
 0x641   : > { %9010 = vmatmul.mubr.msk.f32.vlgmr.msra.gmra.mxu1 %vm1934_vm2, %v8826_v16  ;;  %9012 = vmatprep.subr.mxu0 %v9916_v0 }
 0x642   : > { %v8931_v21 = vpop.f32.mrf.mxu1  ;;  %9019 = vmatprep.mubr.msk.f32.mxu1 %vm9917_vm1, %v9916_v0 }
 0x643   : > { %9018 = vmatpush3.xpose.msk.msra.mxu1 %vm1934_vm2, %v8931_v21  ;;  %9005 = vmatmul.mubr.msk.f32.vlgmr.msra.gmra.mxu0 %vm1934_vm2, %v2880_v17  ;;  %v3992_v21 = vld [vmem:[%s11147_s2 + $0x8] sm:$0xff] }
 0x644   : > { %v3155_v22 = vpop.f32.mrf.mxu1  ;;  %9014 = vmatprep.mubr.msk.f32.mxu0 %vm9917_vm1, %v9916_v0  ;;  %9027 = vmatprep.subr.mxu1 %v9916_v0 }
 0x645   : > { %9013 = vmatpush3.xpose.msk.msra.mxu0 %vm1934_vm2, %v3155_v22 }
 0x646   : > { %9020 = vmatmul.mubr.msk.f32.vlgmr.msra.gmra.mxu1 %vm1934_vm2, %v8861_v18  ;;  %9022 = vmatprep.subr.mxu0 %v9916_v0 }
 0x647   : > { %9029 = vmatprep.mubr.msk.f32.mxu1 %vm9917_vm1, %v9916_v0 }
 0x648   : > { %9015 = vmatmul.mubr.msk.f32.vlgmr.msra.gmra.mxu0 %vm1934_vm2, %v2972_v20  ;;  %v3991_v20 = vld [vmem:[%s11147_s2] sm:$0xff]  ;;  %s11165_s2 = sld [smem:[#allocation10_spill]] }
 0x649   : > { %9024 = vmatprep.mubr.msk.f32.mxu0 %vm9917_vm1, %v9916_v0 }
 0x65f   : > { %v8966_v23 = vpop.f32.mrf.mxu0 }
 0x660   : > { %9028 = vmatpush3.msra.mxu1 %v8966_v23 }
 0x661   : > { %v3246_v24 = vpop.f32.mrf.mxu0  ;;  %9037 = vmatprep.subr.mxu1 %v9916_v0 }
 0x662   : > { %9023 = vmatpush3.msra.mxu0 %v3246_v24 }
 0x663   : > { %9032 = vmatprep.subr.mxu0 %v9916_v0 }
 0x664   : > { %v10515_v25 = vpop.f32.mrf.mxu1 }
 0x666   : > { %v10517_v26 = vpop.f32.mrf.mxu1 }
 0x701   : > { %v3495_v27 = vpop.f32.mrf.mxu1 }
 0x702   : > { %v3652_v28 = vmul.f32 0.17677669, %v3495_v27 }
 0x703   : > { %v3419_v30 = vpop.f32.mrf.mxu0  ;;  %v9011_v31 = vpop.f32.mrf.mxu1 }
 0x704   : > { %v3651_v32 = vmul.f32 0.17677669, %v3419_v30  ;;  %v3658_v33 = vsel %vm1934_vm2, %v3652_v28, -inf  ;;  %v4253_v31 = vld [vmem:[%s11148_s7 + $0x78] sm:$0xff] }
 0x705   : > { %3659 = vmax.xlane.f32.xlu1 %v3658_v33  ;;  %v9006_v34 = vpop.f32.mrf.mxu0 }
 0x706   : > { %v3647_v35 = vpop.f32.mrf.mxu1  ;;  %v3655_v36 = vsel %vm1934_vm2, %v3651_v32, -inf }
 0x707   : > { %v3654_v37 = vmul.f32 0.17677669, %v3647_v35  ;;  %3656 = vmax.xlane.f32.xlu0 %v3655_v36 }
 0x708   : > { %v9021_v38 = vpop.f32.mrf.mxu1  ;;  %v3571_v39 = vpop.f32.mrf.mxu0 }
 0x709   : > { %v3653_v40 = vmul.f32 0.17677669, %v3571_v39  ;;  %v3664_v41 = vsel %vm1934_vm2, %v3654_v37, -inf  ;;  %v7795_v39 = vld [vmem:[%s11149_s10] ss:$0 sm:$0xff]  ;;  %s11158_s10 = sld [smem:[#allocation22_spill]] }
 0x70a   : > { %3665 = vmax.xlane.f32.xlu1 %v3664_v41  ;;  %v9016_v42 = vpop.f32.mrf.mxu0 }
 0x70b   : > { %v3661_v43 = vsel %vm1934_vm2, %v3653_v40, -inf }
 0x70c   : > { %3662 = vmax.xlane.f32.xlu0 %v3661_v43 }
 0x78e   : > { %v3660_v44 = vpop.xlane.xlu1 %3659 }
 0x78f   : > { %v3668_v45 = vsub.f32 %v3652_v28, %v3660_v44 }
 0x790   : > { %v3657_v46 = vpop.xlane.xlu0 %3656 }
 0x791   : > { %v3673_v47 = vmul.f32 1.442695, %v3668_v45  ;;  %v3667_v48 = vsub.f32 %v3651_v32, %v3657_v46  ;;  %v7813_v32 = vld [vmem:[%s11148_s7 + $0xf8] sm:$0xff] }
 0x793   : > { %9789 = vpow2.f32 %v3673_v47  ;;  %v3671_v49 = vmul.f32 1.442695, %v3667_v48  ;;  %v3666_v50 = vpop.xlane.xlu1 %3665  ;;  %v9863_v48 = vld [vmem:[%s10330_s1 + $0x8] sm:$0xff] }
 0x794   : > { %v3670_v51 = vsub.f32 %v3654_v37, %v3666_v50 }
 0x795   : > { %9791 = vpow2.f32 %v3671_v49  ;;  %v3663_v29 = vpop.xlane.xlu0 %3662 }
 0x796   : > { %v3677_v52 = vmul.f32 1.442695, %v3670_v51  ;;  %v3669_v53 = vsub.f32 %v3653_v40, %v3663_v29  ;;  %v9864_v51 = vld [vmem:[%s10330_s1] sm:$0xff]  ;;  %s11157_s1 = sld [smem:[#allocation20_spill]] }
 0x798   : > { %9793 = vpow2.f32 %v3677_v52  ;;  %v3675_v54 = vmul.f32 1.442695, %v3669_v53 }
 0x79a   : > { %9795 = vpow2.f32 %v3675_v54 }
 0x7a0   : > { %v9790_v55 = vpop.eup %9789 }
 0x7a1   : > { %v3682_v56 = vsel %vm1934_vm2, %v9790_v55, 0.0 }
 0x7a2   : > { %v9792_v57 = vpop.eup %9791  ;;  %3683 = vadd.xlane.f32.xlu1 %v3682_v56  ;;  %v7812_v56 = vld [vmem:[%s11148_s7 + $0xf0] sm:$0xff] }
 0x7a3   : > { %v3679_v59 = vsel %vm1934_vm2, %v9792_v57, 0.0 }
 0x7a4   : > { %3680 = vadd.xlane.f32.xlu0 %v3679_v59  ;;  %v4250_v59 = vld [vmem:[%s11148_s7 + $0x60] sm:$0xff] }
 0x7a5   : > { %v9794_v60 = vpop.eup %9793 }
 0x7a6   : > { %v3688_v1 = vsel %vm1934_vm2, %v9794_v60, 0.0 }
 0x7a7   : > { %v9796_v61 = vpop.eup %9795  ;;  %3689 = vadd.xlane.f32.xlu1 %v3688_v1  ;;  %v7809_v1 = vld [vmem:[%s11148_s7 + $0xd8] sm:$0xff] }
 0x7a8   : > { %v3685_v3 = vsel %vm1934_vm2, %v9796_v61, 0.0 }
 0x7a9   : > { %3686 = vadd.xlane.f32.xlu0 %v3685_v3  ;;  %v4247_v3 = vld [vmem:[%s11148_s7 + $0x48] sm:$0xff] }
 0x7ab   : > { %4170 = vadd.xlane.f32.xlu1 %v10531_v63 }
 0x7ad   : > { %4168 = vadd.xlane.f32.xlu0 %v10535_v7 }
 0x82b   : > { %v3684_v8 = vpop.xlane.xlu1 %3683 }
 0x82c   : > { %9797 = vrcp.f32 %v3684_v8  ;;  %v7806_v8 = vld [vmem:[%s11148_s7 + $0xc0] sm:$0xff] }
 0x82d   : > { %v3681_v10 = vpop.xlane.xlu0 %3680 }
 0x82e   : > { %9799 = vrcp.f32 %v3681_v10  ;;  %v4245_v10 = vld [vmem:[%s11148_s7 + $0x38] sm:$0xff] }
 0x830   : > { %v3690_v11 = vpop.xlane.xlu1 %3689 }
 0x831   : > { %9801 = vrcp.f32 %v3690_v11  ;;  %v7805_v11 = vld [vmem:[%s11148_s7 + $0xb8] sm:$0xff] }
 0x832   : > { %v3687_v13 = vpop.xlane.xlu0 %3686 }
 0x833   : > { %9803 = vrcp.f32 %v3687_v13  ;;  %v4244_v13 = vld [vmem:[%s11148_s7 + $0x30] sm:$0xff] }
 0x834   : > { %v4171_v33 = vpop.xlane.xlu1 %4170 }
 0x835   : > { %v4173_v35 = vmul.f32 0.03125, %v4171_v33 }
 0x836   : > { %v4169_v34 = vpop.xlane.xlu0 %4168 }
 0x837   : > { %v4172_v37 = vmul.f32 0.03125, %v4169_v34  ;;  %v4175_v41 = vsub.f32 %v10531_v63, %v4173_v35 }
 0x839   : > { %v9798_v14 = vpop.eup %9797  ;;  %v4174_v46 = vsub.f32 %v10535_v7, %v4172_v37  ;;  %v10564_v50 = vsel %vm1336_vm0, %v4175_v41, 0.0 }
 0x83a   : > { %v3696_v15 = vmul.f32 %v9798_v14, %v9790_v55  ;;  %v4179_v53 = vmul.f32 %v10564_v50, %v10564_v50  ;;  %v4252_v55 = vld [vmem:[%s11148_s7 + $0x70] sm:$0xff] }
 0x83b   : > { %v9800_v12 = vpop.eup %9799  ;;  %v10572_v52 = vsel %vm1336_vm0, %v4174_v46, 0.0  ;;  %v7804_v14 = vld [vmem:[%s11148_s7 + $0xb0] sm:$0xff] }
 0x83c   : > { %9030 = vmatmul.mubr.msk.f32.vlgmr.msra.gmra.mxu1 %vm1934_vm2, %v3696_v15  ;;  %v3695_v16 = vmul.f32 %v9800_v12, %v9792_v57  ;;  %v4178_v54 = vmul.f32 %v10572_v52, %v10572_v52  ;;  %v4251_v57 = vld [vmem:[%s11148_s7 + $0x68] sm:$0xff] }
 0x83d   : > { %9038 = vmatpush3.msra.mxu1 %v10515_v25  ;;  %9039 = vmatprep.mubr.msk.f32.mxu1 %vm9917_vm1, %v9916_v0  ;;  %v4243_v15 = vld [vmem:[%s11148_s7 + $0x28] sm:$0xff] }
 0x83e   : > { %v9802_v17 = vpop.eup %9801  ;;  %9025 = vmatmul.mubr.msk.f32.vlgmr.msra.gmra.mxu0 %vm1934_vm2, %v3695_v16  ;;  %9047 = vmatprep.subr.mxu1 %v3992_v21  ;;  %v7803_v12 = vld [vmem:[%s11148_s7 + $0xa8] sm:$0xff]  ;;  %v4242_v16 = vld [vmem:[%s11148_s7 + $0x20] sm:$0xff] }
 0x83f   : > { %9033 = vmatpush3.msra.mxu0 %v10517_v26  ;;  %v3698_v18 = vmul.f32 %v9802_v17, %v9794_v60  ;;  %9034 = vmatprep.mubr.msk.f32.mxu0 %vm9917_vm1, %v9916_v0  ;;  %v7810_v60 = vld [vmem:[%s11148_s7 + $0xe0] sm:$0xff] }
 0x840   : > { %v9804_v19 = vpop.eup %9803  ;;  %9042 = vmatprep.subr.mxu0 %v3991_v20  ;;  %v7802_v17 = vld [vmem:[%s11148_s7 + $0xa0] sm:$0xff] }
 0x841   : > { %9040 = vmatmul.mubr.msk.f32.vlgmr.msra.gmra.mxu1 %vm1934_vm2, %v3698_v18  ;;  %v3697_v4 = vmul.f32 %v9804_v19, %v9796_v61  ;;  %v4248_v61 = vld [vmem:[%s11148_s7 + $0x50] sm:$0xff]  ;;  %v4241_v18 = vld [vmem:[%s11148_s7 + $0x18] sm:$0xff] }
 0x842   : > { %9048 = vmatpush3.msra.mxu1 %v3992_v21  ;;  %v7801_v19 = vld [vmem:[%s11148_s7 + $0x98] sm:$0xff]  ;;  %v4239_v21 = vld [vmem:[%s11148_s7 + $0x8] sm:$0xff] }
 0x843   : > { %9035 = vmatmul.mubr.msk.f32.vlgmr.msra.gmra.mxu0 %vm1934_vm2, %v3697_v4  ;;  %9087 = vmatprep.subr.mxu1 %v7813_v32  ;;  %v4240_v4 = vld [vmem:[%s11148_s7 + $0x10] sm:$0xff] }
 0x844   : > { %9043 = vmatpush3.msra.mxu0 %v3991_v20  ;;  %v7800_v20 = vld [vmem:[%s11148_s7 + $0x90] sm:$0xff] }
 0x845   : > { %9052 = vmatprep.subr.mxu0 %v4253_v31 }
 0x8fc   : > { %v3841_v22 = vpop.f32.mrf.mxu1 }
 0x8fe   : > { %v3768_v23 = vpop.f32.mrf.mxu0  ;;  %v9031_v24 = vpop.f32.mrf.mxu1 }
 0x8ff   : > { %9044 = vmatprep.mubr.msk.f32.mxu0 %vm1934_vm2, %v3768_v23  ;;  %v4238_v23 = vld [vmem:[%s11148_s7] sm:$0xff] }
 0x900   : > { %v9026_v25 = vpop.f32.mrf.mxu0  ;;  %9045 = vmatmul.mubr.msk.f32.vlgmr.msra.gmra.mxu0 %vm1934_vm2, %v3841_v22  ;;  %v7799_v22 = vld [vmem:[%s11148_s7 + $0x88] sm:$0xff]  ;;  %v7798_v24 = vld [vmem:[%s11148_s7 + $0x80] sm:$0xff] }
 0x901   : > { %v3987_v26 = vpop.f32.mrf.mxu1  ;;  %9053 = vmatpush3.msra.mxu0 %v4253_v31  ;;  %v4436_v25 = vld [vmem:[%s11150_s11 + $0x78] sm:$0xff] }
 0x902   : > { %9054 = vmatprep.subr.mxu0 %v4252_v55 }
 0x903   : > { %v3914_v27 = vpop.f32.mrf.mxu0  ;;  %v9041_v28 = vpop.f32.mrf.mxu1  ;;  %9055 = vmatpush3.msra.mxu0 %v4252_v55 }
 0x904   : > { %9049 = vmatprep.mubr.msk.f32.mxu1 %vm1934_vm2, %v3914_v27  ;;  %9056 = vmatprep.subr.mxu0 %v4251_v57 }
 0x905   : > { %v9036_v30 = vpop.f32.mrf.mxu0  ;;  %9050 = vmatmul.mubr.msk.f32.vlgmr.msra.gmra.mxu1 %vm1934_vm2, %v3987_v26  ;;  %9057 = vmatpush3.msra.mxu0 %v4251_v57  ;;  %v7829_v26 = vld [vmem:[%s11150_s11 + $0xf8] sm:$0xff]  ;;  %v7828_v57 = vld [vmem:[%s11150_s11 + $0xf0] sm:$0xff] }
 0x906   : > { %9088 = vmatpush3.msra.mxu1 %v7813_v32  ;;  %9058 = vmatprep.subr.mxu0 %v4250_v59 }
 0x907   : > { %9089 = vmatprep.subr.mxu1 %v7812_v56  ;;  %9059 = vmatpush3.msra.mxu0 %v4250_v59  ;;  %v4433_v59 = vld [vmem:[%s11150_s11 + $0x60] sm:$0xff] }
 0x908   : > { %9090 = vmatpush3.msra.mxu1 %v7812_v56  ;;  %9060 = vmatprep.subr.mxu0 %v4249_v62  ;;  %v4435_v56 = vld [vmem:[%s11150_s11 + $0x70] sm:$0xff] }
 0x909   : > { %9091 = vmatprep.subr.mxu1 %v7811_v58  ;;  %9061 = vmatpush3.msra.mxu0 %v4249_v62  ;;  %v4432_v62 = vld [vmem:[%s11150_s11 + $0x58] sm:$0xff] }
 0x90a   : > { %9092 = vmatpush3.msra.mxu1 %v7811_v58  ;;  %9062 = vmatprep.subr.mxu0 %v4248_v61  ;;  %v7827_v58 = vld [vmem:[%s11150_s11 + $0xe8] sm:$0xff] }
 0x90b   : > { %9093 = vmatprep.subr.mxu1 %v7810_v60  ;;  %9063 = vmatpush3.msra.mxu0 %v4248_v61  ;;  %v4431_v61 = vld [vmem:[%s11150_s11 + $0x50] sm:$0xff] }
 0x90c   : > { %9094 = vmatpush3.msra.mxu1 %v7810_v60  ;;  %9064 = vmatprep.subr.mxu0 %v4247_v3  ;;  %v7826_v60 = vld [vmem:[%s11150_s11 + $0xe0] sm:$0xff] }
 0x90d   : > { %9095 = vmatprep.subr.mxu1 %v7809_v1  ;;  %9065 = vmatpush3.msra.mxu0 %v4247_v3  ;;  %v4430_v3 = vld [vmem:[%s11150_s11 + $0x48] sm:$0xff] }
 0x90e   : > { %9096 = vmatpush3.msra.mxu1 %v7809_v1  ;;  %9066 = vmatprep.subr.mxu0 %v4246_v6  ;;  %v7825_v1 = vld [vmem:[%s11150_s11 + $0xd8] sm:$0xff] }
 0x90f   : > { %9097 = vmatprep.subr.mxu1 %v7808_v2  ;;  %9067 = vmatpush3.msra.mxu0 %v4246_v6  ;;  %v4429_v6 = vld [vmem:[%s11150_s11 + $0x40] sm:$0xff] }
 0x910   : > { %9098 = vmatpush3.msra.mxu1 %v7808_v2  ;;  %9068 = vmatprep.subr.mxu0 %v4245_v10  ;;  %v7824_v2 = vld [vmem:[%s11150_s11 + $0xd0] sm:$0xff] }
 0x911   : > { %9099 = vmatprep.subr.mxu1 %v7807_v5  ;;  %9069 = vmatpush3.msra.mxu0 %v4245_v10  ;;  %v4428_v10 = vld [vmem:[%s11150_s11 + $0x38] sm:$0xff] }
 0x912   : > { %9100 = vmatpush3.msra.mxu1 %v7807_v5  ;;  %9070 = vmatprep.subr.mxu0 %v4244_v13  ;;  %v7823_v5 = vld [vmem:[%s11150_s11 + $0xc8] sm:$0xff] }
 0x913   : > { %9101 = vmatprep.subr.mxu1 %v7806_v8  ;;  %9071 = vmatpush3.msra.mxu0 %v4244_v13  ;;  %v4427_v13 = vld [vmem:[%s11150_s11 + $0x30] sm:$0xff] }
 0x914   : > { %9102 = vmatpush3.msra.mxu1 %v7806_v8  ;;  %9072 = vmatprep.subr.mxu0 %v4243_v15  ;;  %v7822_v8 = vld [vmem:[%s11150_s11 + $0xc0] sm:$0xff] }
 0x915   : > { %9103 = vmatprep.subr.mxu1 %v7805_v11  ;;  %9073 = vmatpush3.msra.mxu0 %v4243_v15  ;;  %v4426_v15 = vld [vmem:[%s11150_s11 + $0x28] sm:$0xff] }
 0x916   : > { %9104 = vmatpush3.msra.mxu1 %v7805_v11  ;;  %9074 = vmatprep.subr.mxu0 %v4242_v16  ;;  %v7821_v11 = vld [vmem:[%s11150_s11 + $0xb8] sm:$0xff] }
 0x917   : > { %9105 = vmatprep.subr.mxu1 %v7804_v14  ;;  %9075 = vmatpush3.msra.mxu0 %v4242_v16  ;;  %v4425_v16 = vld [vmem:[%s11150_s11 + $0x20] sm:$0xff] }
 0x918   : > { %9106 = vmatpush3.msra.mxu1 %v7804_v14  ;;  %9076 = vmatprep.subr.mxu0 %v4241_v18  ;;  %v7820_v14 = vld [vmem:[%s11150_s11 + $0xb0] sm:$0xff] }
 0x919   : > { %9107 = vmatprep.subr.mxu1 %v7803_v12  ;;  %9077 = vmatpush3.msra.mxu0 %v4241_v18  ;;  %v4424_v18 = vld [vmem:[%s11150_s11 + $0x18] sm:$0xff] }
 0x91a   : > { %9108 = vmatpush3.msra.mxu1 %v7803_v12  ;;  %9078 = vmatprep.subr.mxu0 %v4240_v4  ;;  %v7819_v12 = vld [vmem:[%s11150_s11 + $0xa8] sm:$0xff] }
 0x91b   : > { %9109 = vmatprep.subr.mxu1 %v7802_v17  ;;  %9079 = vmatpush3.msra.mxu0 %v4240_v4  ;;  %v4423_v4 = vld [vmem:[%s11150_s11 + $0x10] sm:$0xff] }
 0x91c   : > { %9110 = vmatpush3.msra.mxu1 %v7802_v17  ;;  %9080 = vmatprep.subr.mxu0 %v4239_v21  ;;  %v7818_v17 = vld [vmem:[%s11150_s11 + $0xa0] sm:$0xff] }
 0x91d   : > { %9111 = vmatprep.subr.mxu1 %v7801_v19  ;;  %9081 = vmatpush3.msra.mxu0 %v4239_v21  ;;  %v4422_v21 = vld [vmem:[%s11150_s11 + $0x8] sm:$0xff] }
 0x91e   : > { %9112 = vmatpush3.msra.mxu1 %v7801_v19  ;;  %9082 = vmatprep.subr.mxu0 %v4238_v23  ;;  %v7817_v19 = vld [vmem:[%s11150_s11 + $0x98] sm:$0xff] }
 0x91f   : > { %9113 = vmatprep.subr.mxu1 %v7800_v20  ;;  %9083 = vmatpush3.msra.mxu0 %v4238_v23  ;;  %v4421_v23 = vld [vmem:[%s11150_s11] sm:$0xff] }
 0x920   : > { %9114 = vmatpush3.msra.mxu1 %v7800_v20  ;;  %9122 = vmatprep.subr.mxu0 %v4436_v25  ;;  %v7816_v20 = vld [vmem:[%s11150_s11 + $0x90] sm:$0xff] }
 0x921   : > { %9115 = vmatprep.subr.mxu1 %v7799_v22 }
 0x922   : > { %9116 = vmatpush3.msra.mxu1 %v7799_v22  ;;  %v7815_v22 = vld [vmem:[%s11150_s11 + $0x88] sm:$0xff] }
 0x923   : > { %9117 = vmatprep.subr.mxu1 %v7798_v24 }
 0x924   : > { %9118 = vmatpush3.msra.mxu1 %v7798_v24  ;;  %v7814_v24 = vld [vmem:[%s11150_s11 + $0x80] sm:$0xff] }
 0x925   : > { %9157 = vmatprep.subr.mxu1 %v7829_v26 }
 0x9c0   : > { %v9046_v36 = vpop.f32.mrf.mxu0 }
 0x9c2   : > { %v4065_v42 = vpop.f32.mrf.mxu0 }
 0x9c5   : > { %v9051_v38 = vpop.f32.mrf.mxu1 }
 0x9c6   : > { %v4156_v40 = vadd.f32 %v9051_v38, %v9046_v36 }
 0x9c7   : > { %v4146_v43 = vpop.f32.mrf.mxu1 }
 0x9c8   : > { %v4165_v44 = vadd.f32 %v7795_v39, %v4156_v40  ;;  %v4155_v45 = vadd.f32 %v4146_v43, %v4065_v42 }
 0x9ca   : > { %v4164_v47 = vadd.f32 %v7795_v39, %v4155_v45  ;;  %v10560_v49 = vadd.f32 %v9863_v48, %v4165_v44  ;;  %v10626_v45 = vld [vmem:[%s11151_s15] ss:$0 sm:$0xff]  ;;  %s11159_s15 = sld [smem:[#allocation23_spill]] }
 0x9cc   : > { %4212 = vadd.xlane.f32.xlu1 %v10560_v49  ;;  %v10568_v29 = vadd.f32 %v9864_v51, %v4164_v47 }
 0x9ce   : > { %4210 = vadd.xlane.f32.xlu0 %v10568_v29 }
 0x9d0   : > { %4182 = vadd.xlane.f32.xlu1 %v4179_v53 }
 0x9d2   : > { %4180 = vadd.xlane.f32.xlu0 %v4178_v54  ;;  %v10639_v54 = vld [vmem:[%s11152_s16] ss:$0 sm:$0xff]  ;;  %s11160_s16 = sld [smem:[#allocation9_spill]] }
 0xa55   : > { %v4213_v27 = vpop.xlane.xlu1 %4212 }
 0xa56   : > { %v4215_v28 = vmul.f32 0.03125, %v4213_v27 }
 0xa57   : > { %v4211_v30 = vpop.xlane.xlu0 %4210 }
 0xa58   : > { %v4217_v31 = vsub.f32 %v10560_v49, %v4215_v28  ;;  %v4214_v32 = vmul.f32 0.03125, %v4211_v30 }
 0xa59   : > { %v4183_v33 = vpop.xlane.xlu1 %4182 }
 0xa5a   : > { %v4216_v34 = vsub.f32 %v10568_v29, %v4214_v32  ;;  %v4185_v35 = vmul.f32 0.03125, %v4183_v33  ;;  %v10615_v36 = vsel %vm1336_vm0, %v4217_v31, 0.0 }
 0xa5b   : > { %v4181_v37 = vpop.xlane.xlu0 %4180  ;;  %v4221_v38 = vmul.f32 %v10615_v36, %v10615_v36 }
 0xa5c   : > { %v4187_v39 = vadd.f32 1e-05, %v4185_v35  ;;  %v4184_v40 = vmul.f32 0.03125, %v4181_v37  ;;  %v10621_v41 = vsel %vm1336_vm0, %v4216_v34, 0.0 }
 0xa5d   : > { %4224 = vadd.xlane.f32.xlu1 %v4221_v38  ;;  %v4220_v42 = vmul.f32 %v10621_v41, %v10621_v41 }
 0xa5e   : > { %9805 = vrsqrt.f32 %v4187_v39  ;;  %v4186_v43 = vadd.f32 1e-05, %v4184_v40 }
 0xa5f   : > { %4222 = vadd.xlane.f32.xlu0 %v4220_v42 }
 0xa60   : > { %9807 = vrsqrt.f32 %v4186_v43 }
 0xa6b   : > { %v9806_v44 = vpop.eup %9805 }
 0xa6c   : > { %v10629_v46 = vmul.f32 %v9806_v44, %v10564_v50  ;;  %v4617_v44 = vld [vmem:[%s11153_s18 + $0x68] sm:$0xff] }
 0xa6d   : > { %v9808_v47 = vpop.eup %9807 }
 0xa6e   : > { %v10632_v48 = vmul.f32 %v9808_v47, %v10572_v52  ;;  %v4200_v51 = vmul.f32 %v10626_v45, %v10629_v46  ;;  %v4434_v52 = vld [vmem:[%s11150_s11 + $0x68] sm:$0xff]  ;;  %v4616_v47 = vld [vmem:[%s11153_s18 + $0x60] sm:$0xff] }
 0xa70   : > { %v4199_v53 = vmul.f32 %v10626_v45, %v10632_v48  ;;  %v4209_v50 = vadd.f32 %v10639_v54, %v4200_v51  ;;  %v7842_v51 = vld [vmem:[%s11153_s18 + $0xe0] sm:$0xff] }
 0xa72   : > { %v4208_v55 = vadd.f32 %v10639_v54, %v4199_v53  ;;  %v4615_v53 = vld [vmem:[%s11153_s18 + $0x58] sm:$0xff] }
 0xa74   : > { %9084 = vmatprep.mubr.f32.mxu0 %v4208_v55  ;;  %9119 = vmatprep.mubr.f32.mxu1 %v4208_v55  ;;  %v4614_v55 = vld [vmem:[%s11153_s18 + $0x50] sm:$0xff] }
 0xa75   : > { %9085 = vmatmul.mubr.f32.vlgmr.msra.gmra.mxu0 %v4209_v50  ;;  %9120 = vmatmul.mubr.f32.vlgmr.msra.gmra.mxu1 %v4209_v50  ;;  %v7840_v50 = vld [vmem:[%s11153_s18 + $0xd0] sm:$0xff] }
 0xa76   : > { %9123 = vmatpush3.msra.mxu0 %v4436_v25  ;;  %9158 = vmatpush3.msra.mxu1 %v7829_v26  ;;  %v4619_v25 = vld [vmem:[%s11153_s18 + $0x78] sm:$0xff] }
 0xa77   : > { %9124 = vmatprep.subr.mxu0 %v4435_v56  ;;  %9159 = vmatprep.subr.mxu1 %v7828_v57  ;;  %v7845_v26 = vld [vmem:[%s11153_s18 + $0xf8] sm:$0xff] }
 0xa78   : > { %9125 = vmatpush3.msra.mxu0 %v4435_v56  ;;  %9160 = vmatpush3.msra.mxu1 %v7828_v57  ;;  %v4613_v56 = vld [vmem:[%s11153_s18 + $0x48] sm:$0xff] }
 0xa79   : > { %9126 = vmatprep.subr.mxu0 %v4434_v52  ;;  %9161 = vmatprep.subr.mxu1 %v7827_v58  ;;  %v7839_v57 = vld [vmem:[%s11153_s18 + $0xc8] sm:$0xff] }
 0xa7a   : > { %9127 = vmatpush3.msra.mxu0 %v4434_v52  ;;  %9162 = vmatpush3.msra.mxu1 %v7827_v58  ;;  %v4612_v52 = vld [vmem:[%s11153_s18 + $0x40] sm:$0xff] }
 0xa7b   : > { %9128 = vmatprep.subr.mxu0 %v4433_v59  ;;  %9163 = vmatprep.subr.mxu1 %v7826_v60  ;;  %v7838_v58 = vld [vmem:[%s11153_s18 + $0xc0] sm:$0xff] }
 0xa7c   : > { %9129 = vmatpush3.msra.mxu0 %v4433_v59  ;;  %9164 = vmatpush3.msra.mxu1 %v7826_v60  ;;  %v4611_v59 = vld [vmem:[%s11153_s18 + $0x38] sm:$0xff] }
 0xa7d   : > { %9130 = vmatprep.subr.mxu0 %v4432_v62  ;;  %9165 = vmatprep.subr.mxu1 %v7825_v1  ;;  %v7837_v60 = vld [vmem:[%s11153_s18 + $0xb8] sm:$0xff] }
 0xa7e   : > { %9131 = vmatpush3.msra.mxu0 %v4432_v62  ;;  %9166 = vmatpush3.msra.mxu1 %v7825_v1  ;;  %v4610_v62 = vld [vmem:[%s11153_s18 + $0x30] sm:$0xff] }
 0xa7f   : > { %9132 = vmatprep.subr.mxu0 %v4431_v61  ;;  %9167 = vmatprep.subr.mxu1 %v7824_v2  ;;  %v7836_v1 = vld [vmem:[%s11153_s18 + $0xb0] sm:$0xff] }
 0xa80   : > { %9133 = vmatpush3.msra.mxu0 %v4431_v61  ;;  %9168 = vmatpush3.msra.mxu1 %v7824_v2  ;;  %v4609_v61 = vld [vmem:[%s11153_s18 + $0x28] sm:$0xff] }
 0xa81   : > { %9134 = vmatprep.subr.mxu0 %v4430_v3  ;;  %9169 = vmatprep.subr.mxu1 %v7823_v5  ;;  %v7835_v2 = vld [vmem:[%s11153_s18 + $0xa8] sm:$0xff] }
 0xa82   : > { %9135 = vmatpush3.msra.mxu0 %v4430_v3  ;;  %9170 = vmatpush3.msra.mxu1 %v7823_v5  ;;  %v4608_v3 = vld [vmem:[%s11153_s18 + $0x20] sm:$0xff] }
 0xa83   : > { %9136 = vmatprep.subr.mxu0 %v4429_v6  ;;  %9171 = vmatprep.subr.mxu1 %v7822_v8  ;;  %v7834_v5 = vld [vmem:[%s11153_s18 + $0xa0] sm:$0xff] }
 0xa84   : > { %9137 = vmatpush3.msra.mxu0 %v4429_v6  ;;  %9172 = vmatpush3.msra.mxu1 %v7822_v8  ;;  %v4607_v6 = vld [vmem:[%s11153_s18 + $0x18] sm:$0xff] }
 0xa85   : > { %9138 = vmatprep.subr.mxu0 %v4428_v10  ;;  %9173 = vmatprep.subr.mxu1 %v7821_v11  ;;  %v7833_v8 = vld [vmem:[%s11153_s18 + $0x98] sm:$0xff] }
 0xa86   : > { %9139 = vmatpush3.msra.mxu0 %v4428_v10  ;;  %9174 = vmatpush3.msra.mxu1 %v7821_v11  ;;  %v4606_v10 = vld [vmem:[%s11153_s18 + $0x10] sm:$0xff] }
 0xa87   : > { %9140 = vmatprep.subr.mxu0 %v4427_v13  ;;  %9175 = vmatprep.subr.mxu1 %v7820_v14  ;;  %v7832_v11 = vld [vmem:[%s11153_s18 + $0x90] sm:$0xff] }
 0xa88   : > { %9141 = vmatpush3.msra.mxu0 %v4427_v13  ;;  %9176 = vmatpush3.msra.mxu1 %v7820_v14  ;;  %v4605_v13 = vld [vmem:[%s11153_s18 + $0x8] sm:$0xff] }
 0xa89   : > { %9142 = vmatprep.subr.mxu0 %v4426_v15  ;;  %9177 = vmatprep.subr.mxu1 %v7819_v12  ;;  %v7831_v14 = vld [vmem:[%s11153_s18 + $0x88] sm:$0xff] }
 0xa8a   : > { %9143 = vmatpush3.msra.mxu0 %v4426_v15  ;;  %9178 = vmatpush3.msra.mxu1 %v7819_v12  ;;  %v4604_v15 = vld [vmem:[%s11153_s18] sm:$0xff] }
 0xa8b   : > { %9144 = vmatprep.subr.mxu0 %v4425_v16  ;;  %9179 = vmatprep.subr.mxu1 %v7818_v17  ;;  %v7830_v12 = vld [vmem:[%s11153_s18 + $0x80] sm:$0xff] }
 0xa8c   : > { %9145 = vmatpush3.msra.mxu0 %v4425_v16  ;;  %9180 = vmatpush3.msra.mxu1 %v7818_v17 }
 0xa8d   : > { %9146 = vmatprep.subr.mxu0 %v4424_v18  ;;  %9181 = vmatprep.subr.mxu1 %v7817_v19 }
 0xa8e   : > { %9147 = vmatpush3.msra.mxu0 %v4424_v18  ;;  %9182 = vmatpush3.msra.mxu1 %v7817_v19 }
 0xa8f   : > { %9148 = vmatprep.subr.mxu0 %v4423_v4  ;;  %9183 = vmatprep.subr.mxu1 %v7816_v20 }
 0xa90   : > { %9149 = vmatpush3.msra.mxu0 %v4423_v4  ;;  %9184 = vmatpush3.msra.mxu1 %v7816_v20 }
 0xa91   : > { %9150 = vmatprep.subr.mxu0 %v4422_v21  ;;  %9185 = vmatprep.subr.mxu1 %v7815_v22 }
 0xa92   : > { %9151 = vmatpush3.msra.mxu0 %v4422_v21  ;;  %9186 = vmatpush3.msra.mxu1 %v7815_v22 }
 0xa93   : > { %9152 = vmatprep.subr.mxu0 %v4421_v23  ;;  %9187 = vmatprep.subr.mxu1 %v7814_v24 }
 0xa94   : > { %9153 = vmatpush3.msra.mxu0 %v4421_v23  ;;  %9188 = vmatpush3.msra.mxu1 %v7814_v24 }
 0xa95   : > { %9192 = vmatprep.subr.mxu0 %v4619_v25  ;;  %9227 = vmatprep.subr.mxu1 %v7845_v26 }
 0xae6   : > { %v4225_v27 = vpop.xlane.xlu1 %4224 }
 0xae7   : > { %v4227_v28 = vmul.f32 0.03125, %v4225_v27 }
 0xae8   : > { %v4223_v30 = vpop.xlane.xlu0 %4222 }
 0xae9   : > { %v4229_v31 = vadd.f32 1e-05, %v4227_v28  ;;  %v4226_v32 = vmul.f32 0.03125, %v4223_v30 }
 0xaeb   : > { %9809 = vrsqrt.f32 %v4229_v31  ;;  %v4228_v33 = vadd.f32 1e-05, %v4226_v32 }
 0xaed   : > { %9811 = vrsqrt.f32 %v4228_v33 }
 0xaf8   : > { %v9810_v34 = vpop.eup %9809 }
 0xaf9   : > { %v10676_v35 = vmul.f32 %v9810_v34, %v10615_v36  ;;  %v4618_v36 = vld [vmem:[%s11153_s18 + $0x70] sm:$0xff] }
 0xafa   : > { %v9812_v37 = vpop.eup %9811 }
 0xafb   : > { %v10679_v38 = vmul.f32 %v9812_v37, %v10621_v41  ;;  %v4235_v39 = vmul.f32 %v10626_v45, %v10676_v35  ;;  %v7844_v41 = vld [vmem:[%s11153_s18 + $0xf0] sm:$0xff] }
 0xafd   : > { %v4234_v40 = vmul.f32 %v10626_v45, %v10679_v38  ;;  %v10687_v43 = vadd.f32 %v10639_v54, %v4235_v39  ;;  %v7843_v45 = vld [vmem:[%s11153_s18 + $0xe8] sm:$0xff] }
 0xaff   : > { %v4236_v42 = vadd.f32 %v10639_v54, %v4234_v40  ;;  %v7841_v54 = vld [vmem:[%s11153_s18 + $0xd8] sm:$0xff] }
 0xb01   : > { %9154 = vmatprep.mubr.f32.mxu0 %v4236_v42  ;;  %9189 = vmatprep.mubr.f32.mxu1 %v4236_v42 }
 0xb02   : > { %9155 = vmatmul.mubr.f32.vlgmr.msra.gmra.mxu0 %v10687_v43  ;;  %9190 = vmatmul.mubr.f32.vlgmr.msra.gmra.mxu1 %v10687_v43 }
 0xb03   : > { %9193 = vmatpush3.msra.mxu0 %v4619_v25  ;;  %9228 = vmatpush3.msra.mxu1 %v7845_v26 }
 0xb04   : > { %9194 = vmatprep.subr.mxu0 %v4618_v36  ;;  %9224 = vmatprep.mubr.f32.mxu0 %v4236_v42 }
 0xb05   : > { %9229 = vmatprep.subr.mxu1 %v7844_v41  ;;  %9259 = vmatprep.mubr.f32.mxu1 %v4236_v42 }
 0xb06   : > { %9195 = vmatpush3.msra.mxu0 %v4618_v36  ;;  %9230 = vmatpush3.msra.mxu1 %v7844_v41 }
 0xb07   : > { %9196 = vmatprep.subr.mxu0 %v4617_v44  ;;  %9231 = vmatprep.subr.mxu1 %v7843_v45 }
 0xb08   : > { %9197 = vmatpush3.msra.mxu0 %v4617_v44  ;;  %9232 = vmatpush3.msra.mxu1 %v7843_v45 }
 0xb09   : > { %9198 = vmatprep.subr.mxu0 %v4616_v47  ;;  %9233 = vmatprep.subr.mxu1 %v7842_v51 }
 0xb0a   : > { %9199 = vmatpush3.msra.mxu0 %v4616_v47  ;;  %9234 = vmatpush3.msra.mxu1 %v7842_v51 }
 0xb0b   : > { %9200 = vmatprep.subr.mxu0 %v4615_v53  ;;  %9235 = vmatprep.subr.mxu1 %v7841_v54 }
 0xb0c   : > { %9201 = vmatpush3.msra.mxu0 %v4615_v53  ;;  %9236 = vmatpush3.msra.mxu1 %v7841_v54 }
 0xb0d   : > { %9202 = vmatprep.subr.mxu0 %v4614_v55  ;;  %9237 = vmatprep.subr.mxu1 %v7840_v50 }
 0xb0e   : > { %9203 = vmatpush3.msra.mxu0 %v4614_v55  ;;  %9238 = vmatpush3.msra.mxu1 %v7840_v50 }
 0xb0f   : > { %9204 = vmatprep.subr.mxu0 %v4613_v56  ;;  %9239 = vmatprep.subr.mxu1 %v7839_v57 }
 0xb10   : > { %9205 = vmatpush3.msra.mxu0 %v4613_v56  ;;  %9240 = vmatpush3.msra.mxu1 %v7839_v57 }
 0xb11   : > { %9206 = vmatprep.subr.mxu0 %v4612_v52  ;;  %9241 = vmatprep.subr.mxu1 %v7838_v58 }
 0xb12   : > { %9207 = vmatpush3.msra.mxu0 %v4612_v52  ;;  %9242 = vmatpush3.msra.mxu1 %v7838_v58 }
 0xb13   : > { %9208 = vmatprep.subr.mxu0 %v4611_v59  ;;  %9243 = vmatprep.subr.mxu1 %v7837_v60 }
 0xb14   : > { %9209 = vmatpush3.msra.mxu0 %v4611_v59  ;;  %9244 = vmatpush3.msra.mxu1 %v7837_v60 }
 0xb15   : > { %9210 = vmatprep.subr.mxu0 %v4610_v62  ;;  %9245 = vmatprep.subr.mxu1 %v7836_v1 }
 0xb16   : > { %9211 = vmatpush3.msra.mxu0 %v4610_v62  ;;  %9246 = vmatpush3.msra.mxu1 %v7836_v1 }
 0xb17   : > { %9212 = vmatprep.subr.mxu0 %v4609_v61  ;;  %9247 = vmatprep.subr.mxu1 %v7835_v2 }
 0xb18   : > { %9213 = vmatpush3.msra.mxu0 %v4609_v61  ;;  %9248 = vmatpush3.msra.mxu1 %v7835_v2 }
 0xb19   : > { %9214 = vmatprep.subr.mxu0 %v4608_v3  ;;  %9249 = vmatprep.subr.mxu1 %v7834_v5 }
 0xb1a   : > { %9215 = vmatpush3.msra.mxu0 %v4608_v3  ;;  %9250 = vmatpush3.msra.mxu1 %v7834_v5 }
 0xb1b   : > { %9216 = vmatprep.subr.mxu0 %v4607_v6  ;;  %9251 = vmatprep.subr.mxu1 %v7833_v8 }
 0xb1c   : > { %9217 = vmatpush3.msra.mxu0 %v4607_v6  ;;  %9252 = vmatpush3.msra.mxu1 %v7833_v8 }
 0xb1d   : > { %9218 = vmatprep.subr.mxu0 %v4606_v10  ;;  %9253 = vmatprep.subr.mxu1 %v7832_v11 }
 0xb1e   : > { %9219 = vmatpush3.msra.mxu0 %v4606_v10  ;;  %9254 = vmatpush3.msra.mxu1 %v7832_v11 }
 0xb1f   : > { %9220 = vmatprep.subr.mxu0 %v4605_v13  ;;  %9255 = vmatprep.subr.mxu1 %v7831_v14 }
 0xb20   : > { %9221 = vmatpush3.msra.mxu0 %v4605_v13  ;;  %9256 = vmatpush3.msra.mxu1 %v7831_v14 }
 0xb21   : > { %9222 = vmatprep.subr.mxu0 %v4604_v15  ;;  %9257 = vmatprep.subr.mxu1 %v7830_v12 }
 0xb22   : > { %9223 = vmatpush3.msra.mxu0 %v4604_v15  ;;  %9258 = vmatpush3.msra.mxu1 %v7830_v12 }
 0xb23   : > { %9225 = vmatmul.mubr.f32.vlgmr.msra.gmra.mxu0 %v10687_v43  ;;  %9260 = vmatmul.mubr.f32.vlgmr.msra.gmra.mxu1 %v10687_v43 }
 0xb24   : > { %9267 = vmatprep.subr.mxu1 %v9916_v0  ;;  %9262 = vmatprep.subr.mxu0 %v9916_v0 }
 0xb25   : > { %9269 = vmatprep.mubr.msk.f32.mxu1 %vm9917_vm1, %v9916_v0  ;;  %9264 = vmatprep.mubr.msk.f32.mxu0 %vm9917_vm1, %v9916_v0 }
 0xb35   : > { %v9086_v16 = vpop.f32.mrf.mxu0  ;;  %v9121_v17 = vpop.f32.mrf.mxu1 }
 0xb37   : > { %v4320_v18 = vpop.f32.mrf.mxu0  ;;  %v4412_v19 = vpop.f32.mrf.mxu1 }
 0xbc2   : > { %v9156_v4 = vpop.f32.mrf.mxu0  ;;  %v9191_v20 = vpop.f32.mrf.mxu1 }
 0xbc3   : > { %9268 = vmatpush3.xpose.msk.msra.mxu1 %vm1934_vm2, %v9156_v4 }
 0xbc4   : > { %v4503_v21 = vpop.f32.mrf.mxu0  ;;  %9277 = vmatprep.subr.mxu1 %v9916_v0  ;;  %v4595_v22 = vpop.f32.mrf.mxu1 }
 0xbc5   : > { %9263 = vmatpush3.xpose.msk.msra.mxu0 %vm1934_vm2, %v4503_v21  ;;  %v5431_v21 = vld [vmem:[%s11154_s23] sm:$0xff] }
 0xbc6   : > { %9270 = vmatmul.mubr.msk.f32.vlgmr.msra.gmra.mxu1 %vm1934_vm2, %v9086_v16  ;;  %9272 = vmatprep.subr.mxu0 %v9916_v0 }
 0xbc7   : > { %9278 = vmatpush3.xpose.msk.msra.mxu1 %vm1934_vm2, %v9191_v20  ;;  %9279 = vmatprep.mubr.msk.f32.mxu1 %vm9917_vm1, %v9916_v0 }
 0xbc8   : > { %9265 = vmatmul.mubr.msk.f32.vlgmr.msra.gmra.mxu0 %vm1934_vm2, %v4320_v18  ;;  %9287 = vmatprep.subr.mxu1 %v9916_v0 }
 0xbc9   : > { %9273 = vmatpush3.xpose.msk.msra.mxu0 %vm1934_vm2, %v4595_v22  ;;  %9274 = vmatprep.mubr.msk.f32.mxu0 %vm9917_vm1, %v9916_v0  ;;  %v5645_v22 = vld [vmem:[%s11155_s26 + $0x78] sm:$0xff] }
 0xbca   : > { %9280 = vmatmul.mubr.msk.f32.vlgmr.msra.gmra.mxu1 %vm1934_vm2, %v9121_v17  ;;  %9282 = vmatprep.subr.mxu0 %v9916_v0 }
 0xbcb   : > { %9289 = vmatprep.mubr.msk.f32.mxu1 %vm9917_vm1, %v9916_v0 }
 0xbcc   : > { %9275 = vmatmul.mubr.msk.f32.vlgmr.msra.gmra.mxu0 %vm1934_vm2, %v4412_v19 }
 0xbcd   : > { %9284 = vmatprep.mubr.msk.f32.mxu0 %vm9917_vm1, %v9916_v0 }
 0xbe3   : > { %v9226_v23 = vpop.f32.mrf.mxu0  ;;  %v10751_v25 = vpop.f32.mrf.mxu1 }
 0xbe4   : > { %9288 = vmatpush3.msra.mxu1 %v9226_v23  ;;  %v5432_v23 = vld [vmem:[%s11154_s23 + $0x8] sm:$0xff] }
 0xbe5   : > { %v4686_v24 = vpop.f32.mrf.mxu0  ;;  %9297 = vmatprep.subr.mxu1 %v9916_v0  ;;  %v10753_v26 = vpop.f32.mrf.mxu1 }
 0xbe6   : > { %9283 = vmatpush3.msra.mxu0 %v4686_v24  ;;  %v7880_v24 = vld [vmem:[%s11155_s26 + $0xf8] sm:$0xff] }
 0xbe7   : > { %9292 = vmatprep.subr.mxu0 %v9916_v0 }
 0xc86   : > { %v4935_v27 = vpop.f32.mrf.mxu1 }
 0xc87   : > { %v5092_v28 = vmul.f32 0.17677669, %v4935_v27 }
 0xc88   : > { %v4859_v30 = vpop.f32.mrf.mxu0  ;;  %v9271_v31 = vpop.f32.mrf.mxu1 }
 0xc89   : > { %v5091_v32 = vmul.f32 0.17677669, %v4859_v30  ;;  %v5098_v33 = vsel %vm1934_vm2, %v5092_v28, -inf  ;;  %v10783_v31 = vld [vmem:[%s11157_s1] ss:$0 sm:$0xff]  ;;  %s11162_s1 = sld [smem:[#allocation12_spill]] }
 0xc8a   : > { %5099 = vmax.xlane.f32.xlu1 %v5098_v33  ;;  %v9266_v34 = vpop.f32.mrf.mxu0  ;;  %v5087_v37 = vpop.f32.mrf.mxu1 }
 0xc8b   : > { %v5094_v39 = vmul.f32 0.17677669, %v5087_v37  ;;  %v5095_v40 = vsel %vm1934_vm2, %v5091_v32, -inf }
 0xc8c   : > { %v9281_v42 = vpop.f32.mrf.mxu1  ;;  %5096 = vmax.xlane.f32.xlu0 %v5095_v40  ;;  %v5011_v43 = vpop.f32.mrf.mxu0 }
 0xc8d   : > { %v5093_v36 = vmul.f32 0.17677669, %v5011_v43  ;;  %v5104_v41 = vsel %vm1934_vm2, %v5094_v39, -inf  ;;  %v5642_v42 = vld [vmem:[%s11155_s26 + $0x60] sm:$0xff]  ;;  %v7879_v43 = vld [vmem:[%s11155_s26 + $0xf0] sm:$0xff] }
 0xc8e   : > { %5105 = vmax.xlane.f32.xlu1 %v5104_v41  ;;  %v9276_v44 = vpop.f32.mrf.mxu0  ;;  %v5641_v41 = vld [vmem:[%s11155_s26 + $0x58] sm:$0xff] }
 0xc8f   : > { %v5101_v45 = vsel %vm1934_vm2, %v5093_v36, -inf  ;;  %v7878_v44 = vld [vmem:[%s11155_s26 + $0xe8] sm:$0xff] }
 0xc90   : > { %5102 = vmax.xlane.f32.xlu0 %v5101_v45  ;;  %v5640_v45 = vld [vmem:[%s11155_s26 + $0x50] sm:$0xff] }
 0xd13   : > { %v5100_v47 = vpop.xlane.xlu1 %5099 }
 0xd14   : > { %v5108_v51 = vsub.f32 %v5092_v28, %v5100_v47  ;;  %v7877_v47 = vld [vmem:[%s11155_s26 + $0xe0] sm:$0xff] }
 0xd15   : > { %v5097_v53 = vpop.xlane.xlu0 %5096 }
 0xd16   : > { %v5113_v54 = vmul.f32 1.442695, %v5108_v51  ;;  %v5107_v55 = vsub.f32 %v5091_v32, %v5097_v53  ;;  %v5644_v32 = vld [vmem:[%s11155_s26 + $0x70] sm:$0xff]  ;;  %v5639_v51 = vld [vmem:[%s11155_s26 + $0x48] sm:$0xff]  ;;  %v7876_v53 = vld [vmem:[%s11155_s26 + $0xd8] sm:$0xff] }
 0xd17   : > { %v5106_v50 = vpop.xlane.xlu1 %5105 }
 0xd18   : > { %9813 = vpow2.f32 %v5113_v54  ;;  %v5111_v56 = vmul.f32 1.442695, %v5107_v55  ;;  %v5110_v57 = vsub.f32 %v5094_v39, %v5106_v50  ;;  %v5638_v54 = vld [vmem:[%s11155_s26 + $0x40] sm:$0xff]  ;;  %v7875_v55 = vld [vmem:[%s11155_s26 + $0xd0] sm:$0xff]  ;;  %v5637_v50 = vld [vmem:[%s11155_s26 + $0x38] sm:$0xff] }
 0xd19   : > { %v5103_v52 = vpop.xlane.xlu0 %5102 }
 0xd1a   : > { %9815 = vpow2.f32 %v5111_v56  ;;  %v5117_v58 = vmul.f32 1.442695, %v5110_v57  ;;  %v5109_v59 = vsub.f32 %v5093_v36, %v5103_v52  ;;  %v7874_v56 = vld [vmem:[%s11155_s26 + $0xc8] sm:$0xff]  ;;  %v5636_v57 = vld [vmem:[%s11155_s26 + $0x30] sm:$0xff]  ;;  %v7873_v52 = vld [vmem:[%s11155_s26 + $0xc0] sm:$0xff] }
 0xd1c   : > { %9817 = vpow2.f32 %v5117_v58  ;;  %v5115_v60 = vmul.f32 1.442695, %v5109_v59  ;;  %v5635_v58 = vld [vmem:[%s11155_s26 + $0x28] sm:$0xff]  ;;  %v7872_v59 = vld [vmem:[%s11155_s26 + $0xb8] sm:$0xff] }
 0xd1e   : > { %9819 = vpow2.f32 %v5115_v60  ;;  %v5634_v60 = vld [vmem:[%s11155_s26 + $0x20] sm:$0xff] }
 0xd25   : > { %v9814_v62 = vpop.eup %9813 }
 0xd26   : > { %v5122_v1 = vsel %vm1934_vm2, %v9814_v62, 0.0 }
 0xd27   : > { %v9816_v61 = vpop.eup %9815  ;;  %5123 = vadd.xlane.f32.xlu1 %v5122_v1  ;;  %v5633_v1 = vld [vmem:[%s11155_s26 + $0x18] sm:$0xff] }
 0xd28   : > { %v5119_v2 = vsel %vm1934_vm2, %v9816_v61, 0.0 }
 0xd29   : > { %v9818_v3 = vpop.eup %9817  ;;  %5120 = vadd.xlane.f32.xlu0 %v5119_v2  ;;  %v5632_v2 = vld [vmem:[%s11155_s26 + $0x10] sm:$0xff] }
 0xd2a   : > { %v5128_v5 = vsel %vm1934_vm2, %v9818_v3, 0.0 }
 0xd2b   : > { %v9820_v6 = vpop.eup %9819  ;;  %5129 = vadd.xlane.f32.xlu1 %v5128_v5  ;;  %v5631_v5 = vld [vmem:[%s11155_s26 + $0x8] sm:$0xff] }
 0xd2c   : > { %v5125_v8 = vsel %vm1934_vm2, %v9820_v6, 0.0 }
 0xd2d   : > { %5126 = vadd.xlane.f32.xlu0 %v5125_v8 }
 0xdb0   : > { %v5124_v10 = vpop.xlane.xlu1 %5123 }
 0xdb1   : > { %9821 = vrcp.f32 %v5124_v10  ;;  %v5630_v10 = vld [vmem:[%s11155_s26] sm:$0xff] }
 0xdb2   : > { %v5121_v11 = vpop.xlane.xlu0 %5120 }
 0xdb3   : > { %9823 = vrcp.f32 %v5121_v11  ;;  %v7867_v11 = vld [vmem:[%s11155_s26 + $0x90] sm:$0xff] }
 0xdb4   : > { %v5130_v13 = vpop.xlane.xlu1 %5129 }
 0xdb5   : > { %9825 = vrcp.f32 %v5130_v13 }
 0xdb6   : > { %v5127_v14 = vpop.xlane.xlu0 %5126 }
 0xdb7   : > { %9827 = vrcp.f32 %v5127_v14 }
 0xdbe   : > { %v9822_v15 = vpop.eup %9821 }
 0xdbf   : > { %v5136_v12 = vmul.f32 %v9822_v15, %v9814_v62  ;;  %v7871_v62 = vld [vmem:[%s11155_s26 + $0xb0] sm:$0xff]  ;;  %v7866_v15 = vld [vmem:[%s11155_s26 + $0x88] sm:$0xff] }
 0xdc0   : > { %v9824_v16 = vpop.eup %9823 }
 0xdc1   : > { %9290 = vmatmul.mubr.msk.f32.vlgmr.msra.gmra.mxu1 %vm1934_vm2, %v5136_v12  ;;  %v5135_v17 = vmul.f32 %v9824_v16, %v9816_v61  ;;  %v7870_v61 = vld [vmem:[%s11155_s26 + $0xa8] sm:$0xff]  ;;  %v7865_v12 = vld [vmem:[%s11155_s26 + $0x80] sm:$0xff] }
 0xdc2   : > { %v9826_v18 = vpop.eup %9825  ;;  %9298 = vmatpush3.msra.mxu1 %v10751_v25  ;;  %9299 = vmatprep.mubr.msk.f32.mxu1 %vm9917_vm1, %v9916_v0  ;;  %v10778_v25 = vld [vmem:[%s11156_s28] ss:$0 sm:$0xff]  ;;  %s11161_s28 = sld [smem:[#allocation24_spill]] }
 0xdc3   : > { %9285 = vmatmul.mubr.msk.f32.vlgmr.msra.gmra.mxu0 %vm1934_vm2, %v5135_v17  ;;  %v5138_v19 = vmul.f32 %v9826_v18, %v9818_v3  ;;  %9307 = vmatprep.subr.mxu1 %v5432_v23  ;;  %v7869_v3 = vld [vmem:[%s11155_s26 + $0xa0] sm:$0xff]  ;;  %v5616_v8 = vmul.f32 %v10778_v25, %v10676_v35  ;;  %v5626_v13 = vmul.f32 %v10778_v25, %v10632_v48  ;;  %v5828_v35 = vld [vmem:[%s11158_s10 + $0x78] sm:$0xff]  ;;  %v5827_v48 = vld [vmem:[%s11158_s10 + $0x70] sm:$0xff] }
 0xdc4   : > { %v9828_v4 = vpop.eup %9827  ;;  %9293 = vmatpush3.msra.mxu0 %v10753_v26  ;;  %9294 = vmatprep.mubr.msk.f32.mxu0 %vm9917_vm1, %v9916_v0  ;;  %v5615_v26 = vmul.f32 %v10778_v25, %v10679_v38  ;;  %v5643_v38 = vld [vmem:[%s11155_s26 + $0x68] sm:$0xff]  ;;  %v7896_v18 = vld [vmem:[%s11158_s10 + $0xf8] sm:$0xff] }
 0xdc5   : > { %9300 = vmatmul.mubr.msk.f32.vlgmr.msra.gmra.mxu1 %vm1934_vm2, %v5138_v19  ;;  %v5137_v20 = vmul.f32 %v9828_v4, %v9820_v6  ;;  %9302 = vmatprep.subr.mxu0 %v5431_v21  ;;  %v7868_v6 = vld [vmem:[%s11155_s26 + $0x98] sm:$0xff]  ;;  %v5625_v14 = vadd.f32 %v10783_v31, %v5616_v8  ;;  %v10827_v16 = vadd.f32 %v10783_v31, %v5626_v13  ;;  %v5826_v17 = vld [vmem:[%s11158_s10 + $0x68] sm:$0xff]  ;;  %v5825_v19 = vld [vmem:[%s11158_s10 + $0x60] sm:$0xff] }
 0xdc6   : > { %9308 = vmatpush3.msra.mxu1 %v5432_v23  ;;  %v5624_v33 = vadd.f32 %v10783_v31, %v5615_v26  ;;  %v7895_v4 = vld [vmem:[%s11158_s10 + $0xf0] sm:$0xff]  ;;  %v7893_v23 = vld [vmem:[%s11158_s10 + $0xe0] sm:$0xff]  ;;  %v7892_v26 = vld [vmem:[%s11158_s10 + $0xd8] sm:$0xff] }
 0xdc7   : > { %9295 = vmatmul.mubr.msk.f32.vlgmr.msra.gmra.mxu0 %vm1934_vm2, %v5137_v20  ;;  %9347 = vmatprep.subr.mxu1 %v7880_v24  ;;  %v5824_v20 = vld [vmem:[%s11158_s10 + $0x58] sm:$0xff]  ;;  %v6002_v8 = vld [vmem:[%s11159_s15 + $0x30] sm:$0xff] }
 0xdc8   : > { %9303 = vmatpush3.msra.mxu0 %v5431_v21  ;;  %v7894_v21 = vld [vmem:[%s11158_s10 + $0xe8] sm:$0xff]  ;;  %v7904_v13 = vld [vmem:[%s11159_s15 + $0xb8] sm:$0xff] }
 0xdc9   : > { %9312 = vmatprep.subr.mxu0 %v5645_v22 }
 0xe81   : > { %v5281_v27 = vpop.f32.mrf.mxu1 }
 0xe83   : > { %v5208_v28 = vpop.f32.mrf.mxu0  ;;  %v9291_v30 = vpop.f32.mrf.mxu1 }
 0xe84   : > { %9304 = vmatprep.mubr.msk.f32.mxu0 %vm1934_vm2, %v5208_v28  ;;  %v7891_v28 = vld [vmem:[%s11158_s10 + $0xd0] sm:$0xff]  ;;  %v5820_v30 = vld [vmem:[%s11158_s10 + $0x38] sm:$0xff] }
 0xe85   : > { %v9286_v34 = vpop.f32.mrf.mxu0  ;;  %v5427_v37 = vpop.f32.mrf.mxu1  ;;  %9305 = vmatmul.mubr.msk.f32.vlgmr.msra.gmra.mxu0 %vm1934_vm2, %v5281_v27  ;;  %v5821_v27 = vld [vmem:[%s11158_s10 + $0x40] sm:$0xff] }
 0xe86   : > { %9313 = vmatpush3.msra.mxu0 %v5645_v22  ;;  %9344 = vmatprep.mubr.f32.mxu0 %v5624_v33  ;;  %v5823_v22 = vld [vmem:[%s11158_s10 + $0x50] sm:$0xff]  ;;  %v7889_v34 = vld [vmem:[%s11158_s10 + $0xc0] sm:$0xff] }
 0xe87   : > { %9314 = vmatprep.subr.mxu0 %v5644_v32  ;;  %v5354_v39 = vpop.f32.mrf.mxu0  ;;  %v9301_v40 = vpop.f32.mrf.mxu1 }
 0xe88   : > { %9315 = vmatpush3.msra.mxu0 %v5644_v32  ;;  %9309 = vmatprep.mubr.msk.f32.mxu1 %vm1934_vm2, %v5354_v39  ;;  %v7890_v32 = vld [vmem:[%s11158_s10 + $0xc8] sm:$0xff]  ;;  %v5817_v39 = vld [vmem:[%s11158_s10 + $0x20] sm:$0xff]  ;;  %v7887_v40 = vld [vmem:[%s11158_s10 + $0xb0] sm:$0xff] }
 0xe89   : > { %9316 = vmatprep.subr.mxu0 %v5643_v38  ;;  %v9296_v36 = vpop.f32.mrf.mxu0  ;;  %9310 = vmatmul.mubr.msk.f32.vlgmr.msra.gmra.mxu1 %vm1934_vm2, %v5427_v37  ;;  %v5818_v37 = vld [vmem:[%s11158_s10 + $0x28] sm:$0xff] }
 0xe8a   : > { %9317 = vmatpush3.msra.mxu0 %v5643_v38  ;;  %9348 = vmatpush3.msra.mxu1 %v7880_v24  ;;  %v5822_v24 = vld [vmem:[%s11158_s10 + $0x48] sm:$0xff]  ;;  %v7888_v38 = vld [vmem:[%s11158_s10 + $0xb8] sm:$0xff]  ;;  %v5815_v36 = vld [vmem:[%s11158_s10 + $0x10] sm:$0xff] }
 0xe8b   : > { %9318 = vmatprep.subr.mxu0 %v5642_v42  ;;  %9349 = vmatprep.subr.mxu1 %v7879_v43 }
 0xe8c   : > { %9379 = vmatprep.mubr.f32.mxu1 %v5624_v33  ;;  %9319 = vmatpush3.msra.mxu0 %v5642_v42  ;;  %v5819_v33 = vld [vmem:[%s11158_s10 + $0x30] sm:$0xff]  ;;  %v5816_v42 = vld [vmem:[%s11158_s10 + $0x18] sm:$0xff] }
 0xe8d   : > { %9350 = vmatpush3.msra.mxu1 %v7879_v43  ;;  %9320 = vmatprep.subr.mxu0 %v5641_v41  ;;  %v7886_v43 = vld [vmem:[%s11158_s10 + $0xa8] sm:$0xff] }
 0xe8e   : > { %9351 = vmatprep.subr.mxu1 %v7878_v44  ;;  %9321 = vmatpush3.msra.mxu0 %v5641_v41  ;;  %v7885_v41 = vld [vmem:[%s11158_s10 + $0xa0] sm:$0xff] }
 0xe8f   : > { %9352 = vmatpush3.msra.mxu1 %v7878_v44  ;;  %9322 = vmatprep.subr.mxu0 %v5640_v45  ;;  %v5814_v44 = vld [vmem:[%s11158_s10 + $0x8] sm:$0xff] }
 0xe90   : > { %9353 = vmatprep.subr.mxu1 %v7877_v47  ;;  %9323 = vmatpush3.msra.mxu0 %v5640_v45  ;;  %v7884_v45 = vld [vmem:[%s11158_s10 + $0x98] sm:$0xff] }
 0xe91   : > { %9354 = vmatpush3.msra.mxu1 %v7877_v47  ;;  %9324 = vmatprep.subr.mxu0 %v5639_v51  ;;  %v5627_v47 = vmul.f32 %v10778_v25, %v10629_v46  ;;  %v7881_v46 = vld [vmem:[%s11158_s10 + $0x80] sm:$0xff]  ;;  %v6010_v25 = vld [vmem:[%s11159_s15 + $0x70] sm:$0xff] }
 0xe92   : > { %9355 = vmatprep.subr.mxu1 %v7876_v53  ;;  %9325 = vmatpush3.msra.mxu0 %v5639_v51  ;;  %v5813_v51 = vld [vmem:[%s11158_s10] sm:$0xff] }
 0xe93   : > { %9356 = vmatpush3.msra.mxu1 %v7876_v53  ;;  %9326 = vmatprep.subr.mxu0 %v5638_v54  ;;  %v7883_v53 = vld [vmem:[%s11158_s10 + $0x90] sm:$0xff] }
 0xe94   : > { %9357 = vmatprep.subr.mxu1 %v7875_v55  ;;  %9327 = vmatpush3.msra.mxu0 %v5638_v54  ;;  %v10863_v54 = vadd.f32 %v10783_v31, %v5627_v47  ;;  %v6009_v31 = vld [vmem:[%s11159_s15 + $0x68] sm:$0xff] }
 0xe95   : > { %9358 = vmatpush3.msra.mxu1 %v7875_v55  ;;  %9328 = vmatprep.subr.mxu0 %v5637_v50  ;;  %v7882_v55 = vld [vmem:[%s11158_s10 + $0x88] sm:$0xff] }
 0xe96   : > { %9359 = vmatprep.subr.mxu1 %v7874_v56  ;;  %9329 = vmatpush3.msra.mxu0 %v5637_v50  ;;  %v6011_v50 = vld [vmem:[%s11159_s15 + $0x78] sm:$0xff] }
 0xe97   : > { %9360 = vmatpush3.msra.mxu1 %v7874_v56  ;;  %9330 = vmatprep.subr.mxu0 %v5636_v57  ;;  %v7912_v56 = vld [vmem:[%s11159_s15 + $0xf8] sm:$0xff] }
 0xe98   : > { %9361 = vmatprep.subr.mxu1 %v7873_v52  ;;  %9331 = vmatpush3.msra.mxu0 %v5636_v57  ;;  %v6008_v57 = vld [vmem:[%s11159_s15 + $0x60] sm:$0xff] }
 0xe99   : > { %9362 = vmatpush3.msra.mxu1 %v7873_v52  ;;  %9332 = vmatprep.subr.mxu0 %v5635_v58  ;;  %v7911_v52 = vld [vmem:[%s11159_s15 + $0xf0] sm:$0xff] }
 0xe9a   : > { %9363 = vmatprep.subr.mxu1 %v7872_v59  ;;  %9333 = vmatpush3.msra.mxu0 %v5635_v58  ;;  %v6007_v58 = vld [vmem:[%s11159_s15 + $0x58] sm:$0xff] }
 0xe9b   : > { %9364 = vmatpush3.msra.mxu1 %v7872_v59  ;;  %9334 = vmatprep.subr.mxu0 %v5634_v60  ;;  %v7910_v59 = vld [vmem:[%s11159_s15 + $0xe8] sm:$0xff] }
 0xe9c   : > { %9365 = vmatprep.subr.mxu1 %v7871_v62  ;;  %9335 = vmatpush3.msra.mxu0 %v5634_v60  ;;  %v6006_v60 = vld [vmem:[%s11159_s15 + $0x50] sm:$0xff] }
 0xe9d   : > { %9366 = vmatpush3.msra.mxu1 %v7871_v62  ;;  %9336 = vmatprep.subr.mxu0 %v5633_v1  ;;  %v7909_v62 = vld [vmem:[%s11159_s15 + $0xe0] sm:$0xff] }
 0xe9e   : > { %9367 = vmatprep.subr.mxu1 %v7870_v61  ;;  %9337 = vmatpush3.msra.mxu0 %v5633_v1  ;;  %v6005_v1 = vld [vmem:[%s11159_s15 + $0x48] sm:$0xff] }
 0xe9f   : > { %9368 = vmatpush3.msra.mxu1 %v7870_v61  ;;  %9338 = vmatprep.subr.mxu0 %v5632_v2  ;;  %v7908_v61 = vld [vmem:[%s11159_s15 + $0xd8] sm:$0xff] }
 0xea0   : > { %9369 = vmatprep.subr.mxu1 %v7869_v3  ;;  %9339 = vmatpush3.msra.mxu0 %v5632_v2  ;;  %v6004_v2 = vld [vmem:[%s11159_s15 + $0x40] sm:$0xff] }
 0xea1   : > { %9370 = vmatpush3.msra.mxu1 %v7869_v3  ;;  %9340 = vmatprep.subr.mxu0 %v5631_v5  ;;  %v7907_v3 = vld [vmem:[%s11159_s15 + $0xd0] sm:$0xff] }
 0xea2   : > { %9371 = vmatprep.subr.mxu1 %v7868_v6  ;;  %9341 = vmatpush3.msra.mxu0 %v5631_v5  ;;  %v6003_v5 = vld [vmem:[%s11159_s15 + $0x38] sm:$0xff] }
 0xea3   : > { %9372 = vmatpush3.msra.mxu1 %v7868_v6  ;;  %9342 = vmatprep.subr.mxu0 %v5630_v10  ;;  %v7906_v6 = vld [vmem:[%s11159_s15 + $0xc8] sm:$0xff] }
 0xea4   : > { %9373 = vmatprep.subr.mxu1 %v7867_v11  ;;  %9343 = vmatpush3.msra.mxu0 %v5630_v10  ;;  %v7905_v10 = vld [vmem:[%s11159_s15 + $0xc0] sm:$0xff] }
 0xea5   : > { %9374 = vmatpush3.msra.mxu1 %v7867_v11  ;;  %9345 = vmatmul.mubr.f32.vlgmr.msra.gmra.mxu0 %v5625_v14  ;;  %v6001_v11 = vld [vmem:[%s11159_s15 + $0x28] sm:$0xff] }
 0xea6   : > { %9375 = vmatprep.subr.mxu1 %v7866_v15  ;;  %9382 = vmatprep.subr.mxu0 %v5828_v35 }
 0xea7   : > { %9376 = vmatpush3.msra.mxu1 %v7866_v15  ;;  %9383 = vmatpush3.msra.mxu0 %v5828_v35  ;;  %v7903_v15 = vld [vmem:[%s11159_s15 + $0xb0] sm:$0xff]  ;;  %v5999_v35 = vld [vmem:[%s11159_s15 + $0x18] sm:$0xff] }
 0xea8   : > { %9414 = vmatprep.mubr.f32.mxu0 %v10827_v16  ;;  %9377 = vmatprep.subr.mxu1 %v7865_v12 }
 0xea9   : > { %9384 = vmatprep.subr.mxu0 %v5827_v48  ;;  %9378 = vmatpush3.msra.mxu1 %v7865_v12  ;;  %v7902_v12 = vld [vmem:[%s11159_s15 + $0xa8] sm:$0xff] }
 0xeaa   : > { %9385 = vmatpush3.msra.mxu0 %v5827_v48  ;;  %9380 = vmatmul.mubr.f32.vlgmr.msra.gmra.mxu1 %v5625_v14  ;;  %v6000_v14 = vld [vmem:[%s11159_s15 + $0x20] sm:$0xff] }
 0xeab   : > { %9386 = vmatprep.subr.mxu0 %v5826_v17  ;;  %9417 = vmatprep.subr.mxu1 %v7896_v18  ;;  %v7901_v48 = vld [vmem:[%s11159_s15 + $0xa0] sm:$0xff] }
 0xeac   : > { %9387 = vmatpush3.msra.mxu0 %v5826_v17  ;;  %9418 = vmatpush3.msra.mxu1 %v7896_v18  ;;  %v5997_v17 = vld [vmem:[%s11159_s15 + $0x8] sm:$0xff]  ;;  %v7900_v18 = vld [vmem:[%s11159_s15 + $0x98] sm:$0xff] }
 0xead   : > { %9449 = vmatprep.mubr.f32.mxu1 %v10827_v16  ;;  %9388 = vmatprep.subr.mxu0 %v5825_v19 }
 0xeae   : > { %9419 = vmatprep.subr.mxu1 %v7895_v4  ;;  %9389 = vmatpush3.msra.mxu0 %v5825_v19  ;;  %v5996_v19 = vld [vmem:[%s11159_s15] sm:$0xff] }
 0xeaf   : > { %9420 = vmatpush3.msra.mxu1 %v7895_v4  ;;  %9390 = vmatprep.subr.mxu0 %v5824_v20  ;;  %v7899_v4 = vld [vmem:[%s11159_s15 + $0x90] sm:$0xff] }
 0xeb0   : > { %9421 = vmatprep.subr.mxu1 %v7894_v21  ;;  %9391 = vmatpush3.msra.mxu0 %v5824_v20  ;;  %v7898_v20 = vld [vmem:[%s11159_s15 + $0x88] sm:$0xff] }
 0xeb1   : > { %9422 = vmatpush3.msra.mxu1 %v7894_v21  ;;  %9392 = vmatprep.subr.mxu0 %v5823_v22  ;;  %v7897_v21 = vld [vmem:[%s11159_s15 + $0x80] sm:$0xff] }
 0xeb2   : > { %9423 = vmatprep.subr.mxu1 %v7893_v23  ;;  %9393 = vmatpush3.msra.mxu0 %v5823_v22 }
 0xeb3   : > { %9424 = vmatpush3.msra.mxu1 %v7893_v23  ;;  %9394 = vmatprep.subr.mxu0 %v5822_v24 }
 0xeb4   : > { %9425 = vmatprep.subr.mxu1 %v7892_v26  ;;  %9395 = vmatpush3.msra.mxu0 %v5822_v24 }
 0xeb5   : > { %9426 = vmatpush3.msra.mxu1 %v7892_v26  ;;  %9396 = vmatprep.subr.mxu0 %v5821_v27 }
 0xeb6   : > { %9427 = vmatprep.subr.mxu1 %v7891_v28  ;;  %9397 = vmatpush3.msra.mxu0 %v5821_v27 }
 0xeb7   : > { %9428 = vmatpush3.msra.mxu1 %v7891_v28  ;;  %9398 = vmatprep.subr.mxu0 %v5820_v30 }
 0xeb8   : > { %9429 = vmatprep.subr.mxu1 %v7890_v32  ;;  %9399 = vmatpush3.msra.mxu0 %v5820_v30 }
 0xeb9   : > { %9430 = vmatpush3.msra.mxu1 %v7890_v32  ;;  %9400 = vmatprep.subr.mxu0 %v5819_v33 }
 0xeba   : > { %9431 = vmatprep.subr.mxu1 %v7889_v34  ;;  %9401 = vmatpush3.msra.mxu0 %v5819_v33 }
 0xebb   : > { %9432 = vmatpush3.msra.mxu1 %v7889_v34  ;;  %9402 = vmatprep.subr.mxu0 %v5818_v37 }
 0xebc   : > { %9433 = vmatprep.subr.mxu1 %v7888_v38  ;;  %9403 = vmatpush3.msra.mxu0 %v5818_v37 }
 0xebd   : > { %9434 = vmatpush3.msra.mxu1 %v7888_v38  ;;  %9404 = vmatprep.subr.mxu0 %v5817_v39 }
 0xebe   : > { %9435 = vmatprep.subr.mxu1 %v7887_v40  ;;  %9405 = vmatpush3.msra.mxu0 %v5817_v39 }
 0xebf   : > { %9436 = vmatpush3.msra.mxu1 %v7887_v40  ;;  %9406 = vmatprep.subr.mxu0 %v5816_v42 }
 0xec0   : > { %9437 = vmatprep.subr.mxu1 %v7886_v43  ;;  %9407 = vmatpush3.msra.mxu0 %v5816_v42 }
 0xec1   : > { %9438 = vmatpush3.msra.mxu1 %v7886_v43  ;;  %9408 = vmatprep.subr.mxu0 %v5815_v36 }
 0xec2   : > { %9439 = vmatprep.subr.mxu1 %v7885_v41  ;;  %9409 = vmatpush3.msra.mxu0 %v5815_v36 }
 0xec3   : > { %9440 = vmatpush3.msra.mxu1 %v7885_v41  ;;  %9410 = vmatprep.subr.mxu0 %v5814_v44 }
 0xec4   : > { %9441 = vmatprep.subr.mxu1 %v7884_v45  ;;  %9411 = vmatpush3.msra.mxu0 %v5814_v44 }
 0xec5   : > { %9442 = vmatpush3.msra.mxu1 %v7884_v45  ;;  %9412 = vmatprep.subr.mxu0 %v5813_v51 }
 0xec6   : > { %9443 = vmatprep.subr.mxu1 %v7883_v53  ;;  %9413 = vmatpush3.msra.mxu0 %v5813_v51 }
 0xec7   : > { %9444 = vmatpush3.msra.mxu1 %v7883_v53  ;;  %9415 = vmatmul.mubr.f32.vlgmr.msra.gmra.mxu0 %v10863_v54 }
 0xec8   : > { %9445 = vmatprep.subr.mxu1 %v7882_v55  ;;  %9452 = vmatprep.subr.mxu0 %v6011_v50 }
 0xec9   : > { %9446 = vmatpush3.msra.mxu1 %v7882_v55  ;;  %9453 = vmatpush3.msra.mxu0 %v6011_v50 }
 0xeca   : > { %9484 = vmatprep.mubr.f32.mxu0 %v10827_v16  ;;  %9447 = vmatprep.subr.mxu1 %v7881_v46 }
 0xecb   : > { %9454 = vmatprep.subr.mxu0 %v6010_v25  ;;  %9448 = vmatpush3.msra.mxu1 %v7881_v46 }
 0xecc   : > { %9455 = vmatpush3.msra.mxu0 %v6010_v25  ;;  %9450 = vmatmul.mubr.f32.vlgmr.msra.gmra.mxu1 %v10863_v54 }
 0xecd   : > { %9456 = vmatprep.subr.mxu0 %v6009_v31  ;;  %9487 = vmatprep.subr.mxu1 %v7912_v56 }
 0xece   : > { %9457 = vmatpush3.msra.mxu0 %v6009_v31  ;;  %9488 = vmatpush3.msra.mxu1 %v7912_v56 }
 0xecf   : > { %9519 = vmatprep.mubr.f32.mxu1 %v10827_v16  ;;  %9458 = vmatprep.subr.mxu0 %v6008_v57  ;;  %v5998_v16 = vld [vmem:[%s11159_s15 + $0x10] sm:$0xff] }
 0xed0   : > { %9489 = vmatprep.subr.mxu1 %v7911_v52  ;;  %9459 = vmatpush3.msra.mxu0 %v6008_v57 }
 0xed1   : > { %9490 = vmatpush3.msra.mxu1 %v7911_v52  ;;  %9460 = vmatprep.subr.mxu0 %v6007_v58 }
 0xed2   : > { %9491 = vmatprep.subr.mxu1 %v7910_v59  ;;  %9461 = vmatpush3.msra.mxu0 %v6007_v58 }
 0xed3   : > { %9492 = vmatpush3.msra.mxu1 %v7910_v59  ;;  %9462 = vmatprep.subr.mxu0 %v6006_v60 }
 0xed4   : > { %9493 = vmatprep.subr.mxu1 %v7909_v62  ;;  %9463 = vmatpush3.msra.mxu0 %v6006_v60 }
 0xed5   : > { %9494 = vmatpush3.msra.mxu1 %v7909_v62  ;;  %9464 = vmatprep.subr.mxu0 %v6005_v1 }
 0xed6   : > { %9495 = vmatprep.subr.mxu1 %v7908_v61  ;;  %9465 = vmatpush3.msra.mxu0 %v6005_v1 }
 0xed7   : > { %9496 = vmatpush3.msra.mxu1 %v7908_v61  ;;  %9466 = vmatprep.subr.mxu0 %v6004_v2 }
 0xed8   : > { %9497 = vmatprep.subr.mxu1 %v7907_v3  ;;  %9467 = vmatpush3.msra.mxu0 %v6004_v2 }
 0xed9   : > { %9498 = vmatpush3.msra.mxu1 %v7907_v3  ;;  %9468 = vmatprep.subr.mxu0 %v6003_v5 }
 0xeda   : > { %9499 = vmatprep.subr.mxu1 %v7906_v6  ;;  %9469 = vmatpush3.msra.mxu0 %v6003_v5 }
 0xedb   : > { %9500 = vmatpush3.msra.mxu1 %v7906_v6  ;;  %9470 = vmatprep.subr.mxu0 %v6002_v8 }
 0xedc   : > { %9501 = vmatprep.subr.mxu1 %v7905_v10  ;;  %9471 = vmatpush3.msra.mxu0 %v6002_v8 }
 0xedd   : > { %9502 = vmatpush3.msra.mxu1 %v7905_v10  ;;  %9472 = vmatprep.subr.mxu0 %v6001_v11 }
 0xede   : > { %9503 = vmatprep.subr.mxu1 %v7904_v13  ;;  %9473 = vmatpush3.msra.mxu0 %v6001_v11 }
 0xedf   : > { %9504 = vmatpush3.msra.mxu1 %v7904_v13  ;;  %9474 = vmatprep.subr.mxu0 %v6000_v14 }
 0xee0   : > { %9505 = vmatprep.subr.mxu1 %v7903_v15  ;;  %9475 = vmatpush3.msra.mxu0 %v6000_v14 }
 0xee1   : > { %9506 = vmatpush3.msra.mxu1 %v7903_v15  ;;  %9476 = vmatprep.subr.mxu0 %v5999_v35 }
 0xee2   : > { %9507 = vmatprep.subr.mxu1 %v7902_v12  ;;  %9477 = vmatpush3.msra.mxu0 %v5999_v35 }
 0xee3   : > { %9508 = vmatpush3.msra.mxu1 %v7902_v12  ;;  %9478 = vmatprep.subr.mxu0 %v5998_v16  ;;  %v7862_v12 = vld [vmem:[%s11160_s16] ss:$0 sm:$0xff]  ;;  %s11163_s16 = sld [smem:[#allocation25_spill]] }
 0xee4   : > { %9509 = vmatprep.subr.mxu1 %v7901_v48  ;;  %9479 = vmatpush3.msra.mxu0 %v5998_v16 }
 0xee5   : > { %9510 = vmatpush3.msra.mxu1 %v7901_v48  ;;  %9480 = vmatprep.subr.mxu0 %v5997_v17 }
 0xee6   : > { %9511 = vmatprep.subr.mxu1 %v7900_v18  ;;  %9481 = vmatpush3.msra.mxu0 %v5997_v17 }
 0xee7   : > { %9512 = vmatpush3.msra.mxu1 %v7900_v18  ;;  %9482 = vmatprep.subr.mxu0 %v5996_v19 }
 0xee8   : > { %9513 = vmatprep.subr.mxu1 %v7899_v4  ;;  %9483 = vmatpush3.msra.mxu0 %v5996_v19 }
 0xee9   : > { %9514 = vmatpush3.msra.mxu1 %v7899_v4  ;;  %9485 = vmatmul.mubr.f32.vlgmr.msra.gmra.mxu0 %v10863_v54 }
 0xeea   : > { %9515 = vmatprep.subr.mxu1 %v7898_v20  ;;  %9522 = vmatprep.subr.mxu0 %v9916_v0 }
 0xeeb   : > { %9516 = vmatpush3.msra.mxu1 %v7898_v20  ;;  %9524 = vmatprep.mubr.msk.f32.mxu0 %vm9917_vm1, %v9916_v0 }
 0xeec   : > { %9517 = vmatprep.subr.mxu1 %v7897_v21 }
 0xeed   : > { %9518 = vmatpush3.msra.mxu1 %v7897_v21 }
 0xeee   : > { %9520 = vmatmul.mubr.f32.vlgmr.msra.gmra.mxu1 %v10863_v54  ;;  %9527 = vmatprep.subr.mxu1 %v9916_v0 }
 0xeef   : > { %9529 = vmatprep.mubr.msk.f32.mxu1 %vm9917_vm1, %v9916_v0 }
 0xf45   : > { %v9306_v22 = vpop.f32.mrf.mxu0 }
 0xf47   : > { %v5505_v26 = vpop.f32.mrf.mxu0 }
 0xf49   : > { %v9311_v23 = vpop.f32.mrf.mxu1 }
 0xf4a   : > { %v10911_v24 = vadd.f32 %v9311_v23, %v9306_v22 }
 0xf4b   : > { %v5586_v27 = vpop.f32.mrf.mxu1 }
 0xf4c   : > { %v10913_v28 = vadd.f32 %v5586_v27, %v5505_v26  ;;  %v5605_v17 = vadd.f32 %v7862_v12, %v10911_v24 }
 0xf4e   : > { %v5604_v4 = vadd.f32 %v7862_v12, %v10913_v28  ;;  %v10953_v21 = vadd.f32 %v5605_v17, %v10531_v63  ;;  %v7047_v12 = vld [vmem:[%s11162_s1 + $0x28] sm:$0xff]  ;;  %v7044_v17 = vld [vmem:[%s11162_s1 + $0x10] sm:$0xff] }
 0xf50   : > { %v10957_v22 = vadd.f32 %v5604_v4, %v10535_v7 }
 0xf65   : > { %v9346_v30 = vpop.f32.mrf.mxu0 }
 0xf67   : > { %v5712_v32 = vpop.f32.mrf.mxu0 }
 0xf6a   : > { %v9381_v33 = vpop.f32.mrf.mxu1 }
 0xf6c   : > { %v5804_v38 = vpop.f32.mrf.mxu1 }
 0xf87   : > { %v9416_v34 = vpop.f32.mrf.mxu0 }
 0xf88   : > { %9528 = vmatpush3.xpose.msk.msra.mxu1 %vm1934_vm2, %v9416_v34 }
 0xf89   : > { %v5895_v37 = vpop.f32.mrf.mxu0  ;;  %9537 = vmatprep.subr.mxu1 %v9916_v0 }
 0xf8a   : > { %9523 = vmatpush3.xpose.msk.msra.mxu0 %vm1934_vm2, %v5895_v37 }
 0xf8b   : > { %9530 = vmatmul.mubr.msk.f32.vlgmr.msra.gmra.mxu1 %vm1934_vm2, %v9346_v30  ;;  %9532 = vmatprep.subr.mxu0 %v9916_v0 }
 0xf8c   : > { %v9451_v39 = vpop.f32.mrf.mxu1  ;;  %9539 = vmatprep.mubr.msk.f32.mxu1 %vm9917_vm1, %v9916_v0 }
 0xf8d   : > { %9538 = vmatpush3.xpose.msk.msra.mxu1 %vm1934_vm2, %v9451_v39  ;;  %9525 = vmatmul.mubr.msk.f32.vlgmr.msra.gmra.mxu0 %vm1934_vm2, %v5712_v32  ;;  %v6824_v39 = vld [vmem:[%s11161_s28 + $0x8] sm:$0xff] }
 0xf8e   : > { %v5987_v40 = vpop.f32.mrf.mxu1  ;;  %9534 = vmatprep.mubr.msk.f32.mxu0 %vm9917_vm1, %v9916_v0  ;;  %9547 = vmatprep.subr.mxu1 %v9916_v0 }
 0xf8f   : > { %9533 = vmatpush3.xpose.msk.msra.mxu0 %vm1934_vm2, %v5987_v40 }
 0xf90   : > { %9540 = vmatmul.mubr.msk.f32.vlgmr.msra.gmra.mxu1 %vm1934_vm2, %v9381_v33  ;;  %9542 = vmatprep.subr.mxu0 %v9916_v0 }
 0xf91   : > { %9549 = vmatprep.mubr.msk.f32.mxu1 %vm9917_vm1, %v9916_v0 }
 0xf92   : > { %9535 = vmatmul.mubr.msk.f32.vlgmr.msra.gmra.mxu0 %vm1934_vm2, %v5804_v38  ;;  %v6823_v38 = vld [vmem:[%s11161_s28] sm:$0xff] }
 0xf93   : > { %9544 = vmatprep.mubr.msk.f32.mxu0 %vm9917_vm1, %v9916_v0 }
 0xfa9   : > { %v9486_v42 = vpop.f32.mrf.mxu0 }
 0xfaa   : > { %9548 = vmatpush3.msra.mxu1 %v9486_v42 }
 0xfab   : > { %v6078_v43 = vpop.f32.mrf.mxu0  ;;  %9557 = vmatprep.subr.mxu1 %v9916_v0 }
 0xfac   : > { %9543 = vmatpush3.msra.mxu0 %v6078_v43 }
 0xfad   : > { %9552 = vmatprep.subr.mxu0 %v9916_v0 }
 0xfae   : > { %v10937_v36 = vpop.f32.mrf.mxu1 }
 0xfb0   : > { %v10939_v41 = vpop.f32.mrf.mxu1 }
0x104b   : > { %v6327_v44 = vpop.f32.mrf.mxu1 }
0x104c   : > { %v6484_v45 = vmul.f32 0.17677669, %v6327_v44 }
0x104d   : > { %v6251_v47 = vpop.f32.mrf.mxu0  ;;  %v9531_v51 = vpop.f32.mrf.mxu1 }
0x104e   : > { %v6483_v53 = vmul.f32 0.17677669, %v6251_v47  ;;  %v6490_v54 = vsel %vm1934_vm2, %v6484_v45, -inf  ;;  %v7057_v47 = vld [vmem:[%s11162_s1 + $0x78] sm:$0xff] }
0x104f   : > { %6491 = vmax.xlane.f32.xlu1 %v6490_v54  ;;  %v9526_v55 = vpop.f32.mrf.mxu0 }
0x1050   : > { %v6479_v50 = vpop.f32.mrf.mxu1  ;;  %v6487_v46 = vsel %vm1934_vm2, %v6483_v53, -inf }
0x1051   : > { %v6486_v25 = vmul.f32 0.17677669, %v6479_v50  ;;  %6488 = vmax.xlane.f32.xlu0 %v6487_v46 }
0x1052   : > { %v9541_v31 = vpop.f32.mrf.mxu1  ;;  %v6403_v56 = vpop.f32.mrf.mxu0 }
0x1053   : > { %v6485_v57 = vmul.f32 0.17677669, %v6403_v56  ;;  %v6496_v52 = vsel %vm1934_vm2, %v6486_v25, -inf }
0x1054   : > { %6497 = vmax.xlane.f32.xlu1 %v6496_v52  ;;  %v9536_v58 = vpop.f32.mrf.mxu0 }
0x1055   : > { %v6493_v59 = vsel %vm1934_vm2, %v6485_v57, -inf }
0x1056   : > { %6494 = vmax.xlane.f32.xlu0 %v6493_v59 }
0x10d8   : > { %v6492_v60 = vpop.xlane.xlu1 %6491 }
0x10d9   : > { %v6500_v62 = vsub.f32 %v6484_v45, %v6492_v60 }
0x10da   : > { %v6489_v1 = vpop.xlane.xlu0 %6488 }
0x10db   : > { %v6505_v61 = vmul.f32 1.442695, %v6500_v62  ;;  %v6499_v2 = vsub.f32 %v6483_v53, %v6489_v1 }
0x10dd   : > { %9829 = vpow2.f32 %v6505_v61  ;;  %v6503_v3 = vmul.f32 1.442695, %v6499_v2  ;;  %v6498_v5 = vpop.xlane.xlu1 %6497 }
0x10de   : > { %v6502_v6 = vsub.f32 %v6486_v25, %v6498_v5  ;;  %v7929_v25 = vld [vmem:[%s11163_s16] ss:$0 sm:$0xff]  ;;  %s11164_s16 = sld [smem:[#allocation28_spill]] }
0x10df   : > { %9831 = vpow2.f32 %v6503_v3  ;;  %v6495_v8 = vpop.xlane.xlu0 %6494 }
0x10e0   : > { %v6509_v10 = vmul.f32 1.442695, %v6502_v6  ;;  %v6501_v11 = vsub.f32 %v6485_v57, %v6495_v8  ;;  %v7056_v6 = vld [vmem:[%s11162_s1 + $0x70] sm:$0xff]  ;;  %v7054_v8 = vld [vmem:[%s11162_s1 + $0x60] sm:$0xff] }
0x10e2   : > { %9833 = vpow2.f32 %v6509_v10  ;;  %v6507_v13 = vmul.f32 1.442695, %v6501_v11  ;;  %v7053_v10 = vld [vmem:[%s11162_s1 + $0x58] sm:$0xff]  ;;  %v7052_v11 = vld [vmem:[%s11162_s1 + $0x50] sm:$0xff] }
0x10e4   : > { %9835 = vpow2.f32 %v6507_v13  ;;  %v7051_v13 = vld [vmem:[%s11162_s1 + $0x48] sm:$0xff]  ;;  %v7307_v4 = vld [vmem:[%s11164_s16 + $0x78] sm:$0xff] }
0x10ea   : > { %v9830_v14 = vpop.eup %9829 }
0x10eb   : > { %v6514_v15 = vsel %vm1934_vm2, %v9830_v14, 0.0 }
0x10ec   : > { %v9832_v35 = vpop.eup %9831  ;;  %6515 = vadd.xlane.f32.xlu1 %v6514_v15  ;;  %v7049_v15 = vld [vmem:[%s11162_s1 + $0x38] sm:$0xff] }
0x10ed   : > { %v6511_v16 = vsel %vm1934_vm2, %v9832_v35, 0.0 }
0x10ee   : > { %6512 = vadd.xlane.f32.xlu0 %v6511_v16  ;;  %v7046_v16 = vld [vmem:[%s11162_s1 + $0x20] sm:$0xff] }
0x10ef   : > { %v9834_v48 = vpop.eup %9833 }
0x10f0   : > { %v6520_v18 = vsel %vm1934_vm2, %v9834_v48, 0.0 }
0x10f1   : > { %v9836_v19 = vpop.eup %9835  ;;  %6521 = vadd.xlane.f32.xlu1 %v6520_v18  ;;  %v7043_v18 = vld [vmem:[%s11162_s1 + $0x8] sm:$0xff] }
0x10f2   : > { %v6517_v20 = vsel %vm1934_vm2, %v9836_v19, 0.0 }
0x10f3   : > { %6518 = vadd.xlane.f32.xlu0 %v6517_v20 }
0x10f5   : > { %7002 = vadd.xlane.f32.xlu1 %v10953_v21 }
0x10f7   : > { %7000 = vadd.xlane.f32.xlu0 %v10957_v22 }
0x1175   : > { %v6516_v23 = vpop.xlane.xlu1 %6515 }
0x1176   : > { %9837 = vrcp.f32 %v6516_v23 }
0x1177   : > { %v6513_v24 = vpop.xlane.xlu0 %6512 }
0x1178   : > { %9839 = vrcp.f32 %v6513_v24 }
0x117a   : > { %v6522_v26 = vpop.xlane.xlu1 %6521 }
0x117b   : > { %9841 = vrcp.f32 %v6522_v26 }
0x117c   : > { %v6519_v27 = vpop.xlane.xlu0 %6518 }
0x117d   : > { %9843 = vrcp.f32 %v6519_v27 }
0x117e   : > { %v7003_v51 = vpop.xlane.xlu1 %7002 }
0x117f   : > { %v7005_v54 = vmul.f32 0.03125, %v7003_v51 }
0x1180   : > { %v7001_v53 = vpop.xlane.xlu0 %7000 }
0x1181   : > { %v7004_v50 = vmul.f32 0.03125, %v7001_v53  ;;  %v7007_v56 = vsub.f32 %v10953_v21, %v7005_v54  ;;  %v7306_v53 = vld [vmem:[%s11164_s16 + $0x70] sm:$0xff]  ;;  %v7305_v54 = vld [vmem:[%s11164_s16 + $0x68] sm:$0xff] }
0x1183   : > { %v9838_v28 = vpop.eup %9837  ;;  %v7006_v60 = vsub.f32 %v10957_v22, %v7004_v50  ;;  %v10985_v61 = vsel %vm1336_vm0, %v7007_v56, 0.0  ;;  %v7303_v50 = vld [vmem:[%s11164_s16 + $0x58] sm:$0xff] }
0x1184   : > { %v6528_v30 = vmul.f32 %v9838_v28, %v9830_v14  ;;  %v7050_v14 = vld [vmem:[%s11162_s1 + $0x40] sm:$0xff]  ;;  %v7299_v56 = vld [vmem:[%s11164_s16 + $0x38] sm:$0xff] }
0x1185   : > { %v9840_v63 = vpop.eup %9839  ;;  %v10993_v3 = vsel %vm1336_vm0, %v7006_v60, 0.0  ;;  %v7297_v60 = vld [vmem:[%s11164_s16 + $0x28] sm:$0xff] }
0x1186   : > { %9550 = vmatmul.mubr.msk.f32.vlgmr.msra.gmra.mxu1 %vm1934_vm2, %v6528_v30  ;;  %v6527_v32 = vmul.f32 %v9840_v63, %v9832_v35  ;;  %v7010_v5 = vmul.f32 %v10993_v3, %v10993_v3  ;;  %v7048_v35 = vld [vmem:[%s11162_s1 + $0x30] sm:$0xff] }
0x1187   : > { %9558 = vmatpush3.msra.mxu1 %v10937_v36  ;;  %9559 = vmatprep.mubr.msk.f32.mxu1 %vm9917_vm1, %v9916_v0 }
0x1188   : > { %v9842_v7 = vpop.eup %9841  ;;  %9545 = vmatmul.mubr.msk.f32.vlgmr.msra.gmra.mxu0 %vm1934_vm2, %v6527_v32  ;;  %9567 = vmatprep.subr.mxu1 %v6824_v39 }
0x1189   : > { %9553 = vmatpush3.msra.mxu0 %v10939_v41  ;;  %v6530_v33 = vmul.f32 %v9842_v7, %v9834_v48  ;;  %9554 = vmatprep.mubr.msk.f32.mxu0 %vm9917_vm1, %v9916_v0  ;;  %v7045_v48 = vld [vmem:[%s11162_s1 + $0x18] sm:$0xff] }
0x118a   : > { %v9844_v34 = vpop.eup %9843  ;;  %9562 = vmatprep.subr.mxu0 %v6823_v38 }
0x118b   : > { %9560 = vmatmul.mubr.msk.f32.vlgmr.msra.gmra.mxu1 %vm1934_vm2, %v6530_v33  ;;  %v6529_v37 = vmul.f32 %v9844_v34, %v9836_v19  ;;  %v7042_v19 = vld [vmem:[%s11162_s1] sm:$0xff] }
0x118c   : > { %9568 = vmatpush3.msra.mxu1 %v6824_v39 }
0x118d   : > { %9555 = vmatmul.mubr.msk.f32.vlgmr.msra.gmra.mxu0 %vm1934_vm2, %v6529_v37 }
0x118e   : > { %9563 = vmatpush3.msra.mxu0 %v6823_v38 }
0x118f   : > { %9572 = vmatprep.subr.mxu0 %v7057_v47 }
0x1246   : > { %v6673_v40 = vpop.f32.mrf.mxu1 }
0x1248   : > { %v6600_v42 = vpop.f32.mrf.mxu0  ;;  %v9551_v43 = vpop.f32.mrf.mxu1 }
0x1249   : > { %9564 = vmatprep.mubr.msk.f32.mxu0 %vm1934_vm2, %v6600_v42 }
0x124a   : > { %v9546_v36 = vpop.f32.mrf.mxu0  ;;  %9565 = vmatmul.mubr.msk.f32.vlgmr.msra.gmra.mxu0 %vm1934_vm2, %v6673_v40 }
0x124b   : > { %v6819_v0 = vpop.f32.mrf.mxu1  ;;  %9573 = vmatpush3.msra.mxu0 %v7057_v47  ;;  %v7930_v36 = vld [vmem:[%s11165_s2] ss:$0 sm:$0xff]  ;;  %s11167_s2 = sld [smem:[#allocation14_spill]] }
0x124c   : > { %9574 = vmatprep.subr.mxu0 %v7056_v6 }
0x124d   : > { %v6746_v41 = vpop.f32.mrf.mxu0  ;;  %v9561_v44 = vpop.f32.mrf.mxu1  ;;  %9575 = vmatpush3.msra.mxu0 %v7056_v6 }
0x124e   : > { %9569 = vmatprep.mubr.msk.f32.mxu1 %vm1934_vm2, %v6746_v41 }
0x124f   : > { %v9556_v45 = vpop.f32.mrf.mxu0  ;;  %9570 = vmatmul.mubr.msk.f32.vlgmr.msra.gmra.mxu1 %vm1934_vm2, %v6819_v0 }
0x1251   : > { %v7162_v6 = vld [vmem:[%s11167_s2 + $0x60] sm:$0xff] }
0x130a   : > { %v9566_v55 = vpop.f32.mrf.mxu0 }
0x130c   : > { %v6897_v57 = vpop.f32.mrf.mxu0 }
0x130f   : > { %v9571_v46 = vpop.f32.mrf.mxu1 }
0x1310   : > { %v6988_v31 = vadd.f32 %v9571_v46, %v9566_v55  ;;  %v7304_v55 = vld [vmem:[%s11164_s16 + $0x60] sm:$0xff]  ;;  %v7302_v46 = vld [vmem:[%s11164_s16 + $0x50] sm:$0xff] }
0x1311   : > { %v6978_v52 = vpop.f32.mrf.mxu1 }
0x1312   : > { %v6997_v58 = vadd.f32 %v7929_v25, %v6988_v31  ;;  %v6987_v59 = vadd.f32 %v6978_v52, %v6897_v57  ;;  %v7300_v31 = vld [vmem:[%s11164_s16 + $0x40] sm:$0xff]  ;;  %v7165_v57 = vld [vmem:[%s11167_s2 + $0x78] sm:$0xff]  ;;  %v7164_v52 = vld [vmem:[%s11167_s2 + $0x70] sm:$0xff] }
0x1313   : > { %9607 = vmatprep.subr.mxu1 %v7165_v57 }
0x1314   : > { %v6996_v62 = vadd.f32 %v7929_v25, %v6987_v59  ;;  %v10981_v1 = vadd.f32 %v6997_v58, %v10560_v49  ;;  %v7011_v49 = vmul.f32 %v10985_v61, %v10985_v61  ;;  %v7301_v25 = vld [vmem:[%s11164_s16 + $0x48] sm:$0xff]  ;;  %v7298_v58 = vld [vmem:[%s11164_s16 + $0x30] sm:$0xff]  ;;  %9608 = vmatpush3.msra.mxu1 %v7165_v57 }
0x1315   : > { %v7163_v59 = vld [vmem:[%s11167_s2 + $0x68] sm:$0xff]  ;;  %9609 = vmatprep.subr.mxu1 %v7164_v52 }
0x1316   : > { %7252 = vadd.xlane.f32.xlu1 %v10981_v1  ;;  %v10989_v2 = vadd.f32 %v6996_v62, %v10568_v29  ;;  %v7055_v29 = vld [vmem:[%s11162_s1 + $0x68] sm:$0xff]  ;;  %s11166_s1 = sld [smem:[#allocation11_spill]]  ;;  %9610 = vmatpush3.msra.mxu1 %v7164_v52  ;;  %v7296_v62 = vld [vmem:[%s11164_s16 + $0x20] sm:$0xff] }
0x1317   : > { %9576 = vmatprep.subr.mxu0 %v7055_v29  ;;  %9611 = vmatprep.subr.mxu1 %v7163_v59  ;;  %v7409_v57 = vld [vmem:[%s10126_s14 + $0x48] sm:$0xff]  ;;  %v7408_v52 = vld [vmem:[%s10126_s14 + $0x40] sm:$0xff] }
0x1318   : > { %7250 = vadd.xlane.f32.xlu0 %v10989_v2  ;;  %9577 = vmatpush3.msra.mxu0 %v7055_v29  ;;  %v7161_v29 = vld [vmem:[%s11167_s2 + $0x58] sm:$0xff] }
0x1319   : > { %9578 = vmatprep.subr.mxu0 %v7054_v8  ;;  %9612 = vmatpush3.msra.mxu1 %v7163_v59  ;;  %v7406_v59 = vld [vmem:[%s10126_s14 + $0x30] sm:$0xff] }
0x131a   : > { %7014 = vadd.xlane.f32.xlu1 %v7011_v49  ;;  %9579 = vmatpush3.msra.mxu0 %v7054_v8  ;;  %v7293_v49 = vld [vmem:[%s11164_s16 + $0x8] sm:$0xff]  ;;  %v7160_v8 = vld [vmem:[%s11167_s2 + $0x50] sm:$0xff] }
0x131b   : > { %9580 = vmatprep.subr.mxu0 %v7053_v10  ;;  %9613 = vmatprep.subr.mxu1 %v7162_v6 }
0x131c   : > { %7012 = vadd.xlane.f32.xlu0 %v7010_v5  ;;  %9581 = vmatpush3.msra.mxu0 %v7053_v10  ;;  %v7931_v45 = vld [vmem:[%s11166_s1] ss:$0 sm:$0xff]  ;;  %v7159_v10 = vld [vmem:[%s11167_s2 + $0x48] sm:$0xff]  ;;  %s11168_s1 = sld [smem:[#allocation26_spill]] }
0x131d   : > { %9582 = vmatprep.subr.mxu0 %v7052_v11  ;;  %v7292_v5 = vld [vmem:[%s11164_s16] sm:$0xff]  ;;  %9614 = vmatpush3.msra.mxu1 %v7162_v6 }
0x131e   : > { %9583 = vmatpush3.msra.mxu0 %v7052_v11  ;;  %9615 = vmatprep.subr.mxu1 %v7161_v29  ;;  %v7158_v11 = vld [vmem:[%s11167_s2 + $0x40] sm:$0xff] }
0x131f   : > { %9584 = vmatprep.subr.mxu0 %v7051_v13  ;;  %9616 = vmatpush3.msra.mxu1 %v7161_v29 }
0x1320   : > { %9585 = vmatpush3.msra.mxu0 %v7051_v13  ;;  %9617 = vmatprep.subr.mxu1 %v7160_v8  ;;  %v7157_v13 = vld [vmem:[%s11167_s2 + $0x38] sm:$0xff] }
0x1321   : > { %9586 = vmatprep.subr.mxu0 %v7050_v14  ;;  %9618 = vmatpush3.msra.mxu1 %v7160_v8 }
0x1322   : > { %9587 = vmatpush3.msra.mxu0 %v7050_v14  ;;  %9619 = vmatprep.subr.mxu1 %v7159_v10  ;;  %v7156_v14 = vld [vmem:[%s11167_s2 + $0x30] sm:$0xff] }
0x1323   : > { %9588 = vmatprep.subr.mxu0 %v7049_v15  ;;  %9620 = vmatpush3.msra.mxu1 %v7159_v10 }
0x1324   : > { %9589 = vmatpush3.msra.mxu0 %v7049_v15  ;;  %9621 = vmatprep.subr.mxu1 %v7158_v11  ;;  %v7155_v15 = vld [vmem:[%s11167_s2 + $0x28] sm:$0xff] }
0x1325   : > { %9590 = vmatprep.subr.mxu0 %v7048_v35  ;;  %9622 = vmatpush3.msra.mxu1 %v7158_v11 }
0x1326   : > { %9591 = vmatpush3.msra.mxu0 %v7048_v35  ;;  %9623 = vmatprep.subr.mxu1 %v7157_v13  ;;  %v7154_v35 = vld [vmem:[%s11167_s2 + $0x20] sm:$0xff] }
0x1327   : > { %9592 = vmatprep.subr.mxu0 %v7047_v12  ;;  %9624 = vmatpush3.msra.mxu1 %v7157_v13 }
0x1328   : > { %9593 = vmatpush3.msra.mxu0 %v7047_v12  ;;  %9625 = vmatprep.subr.mxu1 %v7156_v14  ;;  %v7153_v12 = vld [vmem:[%s11167_s2 + $0x18] sm:$0xff] }
0x1329   : > { %9594 = vmatprep.subr.mxu0 %v7046_v16  ;;  %9626 = vmatpush3.msra.mxu1 %v7156_v14 }
0x132a   : > { %9595 = vmatpush3.msra.mxu0 %v7046_v16  ;;  %9627 = vmatprep.subr.mxu1 %v7155_v15  ;;  %v7152_v16 = vld [vmem:[%s11167_s2 + $0x10] sm:$0xff] }
0x132b   : > { %9596 = vmatprep.subr.mxu0 %v7045_v48  ;;  %9628 = vmatpush3.msra.mxu1 %v7155_v15 }
0x132c   : > { %9597 = vmatpush3.msra.mxu0 %v7045_v48  ;;  %9629 = vmatprep.subr.mxu1 %v7154_v35  ;;  %v7151_v48 = vld [vmem:[%s11167_s2 + $0x8] sm:$0xff] }
0x132d   : > { %9598 = vmatprep.subr.mxu0 %v7044_v17  ;;  %9630 = vmatpush3.msra.mxu1 %v7154_v35 }
0x132e   : > { %9599 = vmatpush3.msra.mxu0 %v7044_v17  ;;  %9631 = vmatprep.subr.mxu1 %v7153_v12  ;;  %v7150_v17 = vld [vmem:[%s11167_s2] sm:$0xff] }
0x132f   : > { %9600 = vmatprep.subr.mxu0 %v7043_v18  ;;  %9632 = vmatpush3.msra.mxu1 %v7153_v12 }
0x1330   : > { %9601 = vmatpush3.msra.mxu0 %v7043_v18  ;;  %9633 = vmatprep.subr.mxu1 %v7152_v16  ;;  %v7415_v18 = vld [vmem:[%s10126_s14 + $0x78] sm:$0xff] }
0x1331   : > { %9602 = vmatprep.subr.mxu0 %v7042_v19  ;;  %9634 = vmatpush3.msra.mxu1 %v7152_v16 }
0x1332   : > { %9603 = vmatpush3.msra.mxu0 %v7042_v19  ;;  %9635 = vmatprep.subr.mxu1 %v7151_v48 }
0x1333   : > { %9642 = vmatprep.subr.mxu0 %v7307_v4  ;;  %9636 = vmatpush3.msra.mxu1 %v7151_v48 }
0x1334   : > { %9637 = vmatprep.subr.mxu1 %v7150_v17 }
0x1335   : > { %9638 = vmatpush3.msra.mxu1 %v7150_v17 }
0x1336   : > { %9677 = vmatprep.subr.mxu1 %v7415_v18 }
0x139f   : > { %v7253_v20 = vpop.xlane.xlu1 %7252 }
0x13a0   : > { %v7255_v23 = vmul.f32 0.03125, %v7253_v20 }
0x13a1   : > { %v7251_v24 = vpop.xlane.xlu0 %7250 }
0x13a2   : > { %v7257_v26 = vsub.f32 %v10981_v1, %v7255_v23  ;;  %v7254_v27 = vmul.f32 0.03125, %v7251_v24 }
0x13a3   : > { %v7015_v28 = vpop.xlane.xlu1 %7014 }
0x13a4   : > { %v7256_v30 = vsub.f32 %v10989_v2, %v7254_v27  ;;  %v7017_v63 = vmul.f32 0.03125, %v7015_v28  ;;  %v11020_v32 = vsel %vm1336_vm0, %v7257_v26, 0.0 }
0x13a5   : > { %v7013_v7 = vpop.xlane.xlu0 %7012  ;;  %v7261_v33 = vmul.f32 %v11020_v32, %v11020_v32 }
0x13a6   : > { %v7019_v34 = vadd.f32 1e-05, %v7017_v63  ;;  %v7016_v37 = vmul.f32 0.03125, %v7013_v7  ;;  %v11026_v38 = vsel %vm1336_vm0, %v7256_v30, 0.0  ;;  %v7934_v30 = vld [vmem:[%s11168_s1] ss:$0 sm:$0xff]  ;;  %s1326_s1 = scalar_lea.vmem %s10136_s24, %s10151_s0 }
0x13a7   : > { %7264 = vadd.xlane.f32.xlu1 %v7261_v33  ;;  %v7260_v39 = vmul.f32 %v11026_v38, %v11026_v38 }
0x13a8   : > { %9845 = vrsqrt.f32 %v7019_v34  ;;  %v7018_v40 = vadd.f32 1e-05, %v7016_v37  ;;  %v7935_v37 = vld [vmem:[%s11169_s3] ss:$0 sm:$0xff]  ;;  %s11171_s3 = sld [smem:[#allocation29_spill]] }
0x13a9   : > { %7262 = vadd.xlane.f32.xlu0 %v7260_v39 }
0x13aa   : > { %9847 = vrsqrt.f32 %v7018_v40 }
0x13ae   : > { %v7936_v6 = vld [vmem:[%s11171_s3] ss:$0 sm:$0xff]  ;;  %s1332_s3 = scalar_lea.vmem %s10141_s19, %s10151_s0 }
0x13b5   : > { %v9846_v42 = vpop.eup %9845 }
0x13b6   : > { %v7023_v43 = vmul.f32 %v9846_v42, %v10985_v61  ;;  %v7295_v61 = vld [vmem:[%s11164_s16 + $0x18] sm:$0xff]  ;;  %v7932_v42 = vld [vmem:[%s11170_s4] ss:$0 sm:$0xff]  ;;  %s11172_s4 = sld [smem:[#allocation15_spill]] }
0x13b7   : > { %v9848_v0 = vpop.eup %9847 }
0x13b8   : > { %v7022_v9 = vmul.f32 %v9848_v0, %v10993_v3  ;;  %v7032_v41 = vmul.f32 %v7930_v36, %v7023_v43  ;;  %v7294_v3 = vld [vmem:[%s11164_s16 + $0x10] sm:$0xff] }
0x13ba   : > { %v7031_v44 = vmul.f32 %v7930_v36, %v7022_v9  ;;  %v7041_v51 = vadd.f32 %v7931_v45, %v7032_v41 }
0x13bc   : > { %v7040_v47 = vadd.f32 %v7931_v45, %v7031_v44 }
0x13be   : > { %9604 = vmatprep.mubr.f32.mxu0 %v7040_v47 }
0x13bf   : > { %9605 = vmatmul.mubr.f32.vlgmr.msra.gmra.mxu0 %v7041_v51 }
0x13c0   : > { %9643 = vmatpush3.msra.mxu0 %v7307_v4 }
0x13c1   : > { %9644 = vmatprep.subr.mxu0 %v7306_v53 }
0x13c2   : > { %9645 = vmatpush3.msra.mxu0 %v7306_v53 }
0x13c3   : > { %9646 = vmatprep.subr.mxu0 %v7305_v54 }
0x13c4   : > { %9647 = vmatpush3.msra.mxu0 %v7305_v54 }
0x13c5   : > { %9648 = vmatprep.subr.mxu0 %v7304_v55 }
0x13c6   : > { %9649 = vmatpush3.msra.mxu0 %v7304_v55 }
0x13c7   : > { %9650 = vmatprep.subr.mxu0 %v7303_v50 }
0x13c8   : > { %9651 = vmatpush3.msra.mxu0 %v7303_v50  ;;  %v7414_v50 = vld [vmem:[%s10126_s14 + $0x70] sm:$0xff] }
0x13c9   : > { %9652 = vmatprep.subr.mxu0 %v7302_v46 }
0x13ca   : > { %9653 = vmatpush3.msra.mxu0 %v7302_v46  ;;  %v7413_v46 = vld [vmem:[%s10126_s14 + $0x68] sm:$0xff] }
0x13cb   : > { %9654 = vmatprep.subr.mxu0 %v7301_v25 }
0x13cc   : > { %9655 = vmatpush3.msra.mxu0 %v7301_v25  ;;  %v7412_v25 = vld [vmem:[%s10126_s14 + $0x60] sm:$0xff] }
0x13cd   : > { %9656 = vmatprep.subr.mxu0 %v7300_v31 }
0x13ce   : > { %9657 = vmatpush3.msra.mxu0 %v7300_v31  ;;  %v7411_v31 = vld [vmem:[%s10126_s14 + $0x58] sm:$0xff] }
0x13cf   : > { %9658 = vmatprep.subr.mxu0 %v7299_v56 }
0x13d0   : > { %9659 = vmatpush3.msra.mxu0 %v7299_v56  ;;  %v7410_v56 = vld [vmem:[%s10126_s14 + $0x50] sm:$0xff] }
0x13d1   : > { %9660 = vmatprep.subr.mxu0 %v7298_v58 }
0x13d2   : > { %9661 = vmatpush3.msra.mxu0 %v7298_v58  ;;  %v7407_v58 = vld [vmem:[%s10126_s14 + $0x38] sm:$0xff] }
0x13d3   : > { %9662 = vmatprep.subr.mxu0 %v7297_v60 }
0x13d4   : > { %9663 = vmatpush3.msra.mxu0 %v7297_v60  ;;  %v7405_v60 = vld [vmem:[%s10126_s14 + $0x28] sm:$0xff] }
0x13d5   : > { %9664 = vmatprep.subr.mxu0 %v7296_v62 }
0x13d6   : > { %9665 = vmatpush3.msra.mxu0 %v7296_v62  ;;  %v7404_v62 = vld [vmem:[%s10126_s14 + $0x20] sm:$0xff] }
0x13d7   : > { %9666 = vmatprep.subr.mxu0 %v7295_v61 }
0x13d8   : > { %9667 = vmatpush3.msra.mxu0 %v7295_v61  ;;  %v7403_v61 = vld [vmem:[%s10126_s14 + $0x18] sm:$0xff] }
0x13d9   : > { %9668 = vmatprep.subr.mxu0 %v7294_v3 }
0x13da   : > { %9669 = vmatpush3.msra.mxu0 %v7294_v3  ;;  %v7402_v3 = vld [vmem:[%s10126_s14 + $0x10] sm:$0xff] }
0x13db   : > { %9670 = vmatprep.subr.mxu0 %v7293_v49 }
0x13dc   : > { %9671 = vmatpush3.msra.mxu0 %v7293_v49  ;;  %v7401_v49 = vld [vmem:[%s10126_s14 + $0x8] sm:$0xff] }
0x13dd   : > { %9672 = vmatprep.subr.mxu0 %v7292_v5 }
0x13de   : > { %9673 = vmatpush3.msra.mxu0 %v7292_v5  ;;  %v7400_v5 = vld [vmem:[%s10126_s14] sm:$0xff] }
0x1430   : > { %v7265_v19 = vpop.xlane.xlu1 %7264 }
0x1431   : > { %v7267_v4 = vmul.f32 0.03125, %v7265_v19 }
0x1432   : > { %v7263_v20 = vpop.xlane.xlu0 %7262 }
0x1433   : > { %v7269_v23 = vadd.f32 1e-05, %v7267_v4  ;;  %v7266_v24 = vmul.f32 0.03125, %v7263_v20  ;;  %v7933_v4 = vld [vmem:[%s11172_s4] ss:$0 sm:$0xff] }
0x1435   : > { %9849 = vrsqrt.f32 %v7269_v23  ;;  %v7268_v26 = vadd.f32 1e-05, %v7266_v24 }
0x1437   : > { %9851 = vrsqrt.f32 %v7268_v26 }
0x1442   : > { %v9850_v27 = vpop.eup %9849 }
0x1443   : > { %v7273_v28 = vmul.f32 %v9850_v27, %v11020_v32 }
0x1444   : > { %v9852_v63 = vpop.eup %9851 }
0x1445   : > { %v7272_v7 = vmul.f32 %v9852_v63, %v11026_v38  ;;  %v7282_v33 = vmul.f32 %v7934_v30, %v7273_v28 }
0x1447   : > { %v7281_v34 = vmul.f32 %v7934_v30, %v7272_v7  ;;  %v7291_v40 = vadd.f32 %v7935_v37, %v7282_v33  ;;  %v7937_v30 = vld [vmem:[%s10131_s30] ss:$0 sm:$0xff] }
0x1449   : > { %v7290_v39 = vadd.f32 %v7935_v37, %v7281_v34 }
0x144b   : > { %9674 = vmatprep.mubr.f32.mxu0 %v7290_v39 }
0x144c   : > { %9675 = vmatmul.mubr.f32.vlgmr.msra.gmra.mxu0 %v7291_v40 }
0x147f   : > { %v9606_v43 = vpop.f32.mrf.mxu0 }
0x1480   : > { %v7137_v36 = vadd.f32 %v9606_v43, %v7932_v42 }
0x1481   : > { %v7131_v0 = vpop.f32.mrf.mxu0 }
0x1482   : > { %v7143_v9 = vmul.f32 0.70710677, %v7137_v36  ;;  %v7132_v41 = vadd.f32 %v7932_v42, %v7131_v0  ;;  %v7141_v53 = vmul.f32 0.5, %v7137_v36 }
0x1484   : > { %9853 = verf.f32 %v7143_v9  ;;  %v7142_v32 = vmul.f32 0.70710677, %v7132_v41  ;;  %v7140_v47 = vmul.f32 0.5, %v7132_v41 }
0x1486   : > { %9855 = verf.f32 %v7142_v32 }
0x1491   : > { %v9854_v38 = vpop.eup %9853 }
0x1492   : > { %v7147_v45 = vadd.f32 1.0, %v9854_v38 }
0x1493   : > { %v9856_v44 = vpop.eup %9855 }
0x1494   : > { %v7146_v51 = vadd.f32 1.0, %v9856_v44  ;;  %v7149_v55 = vmul.f32 %v7147_v45, %v7141_v53 }
0x1496   : > { %v7148_v54 = vmul.f32 %v7146_v51, %v7140_v47 }
0x1498   : > { %9639 = vmatprep.mubr.f32.mxu1 %v7148_v54 }
0x1499   : > { %9640 = vmatmul.mubr.f32.vlgmr.msra.gmra.mxu1 %v7149_v55 }
0x149a   : > { %9678 = vmatpush3.msra.mxu1 %v7415_v18 }
0x149b   : > { %9679 = vmatprep.subr.mxu1 %v7414_v50 }
0x149c   : > { %9680 = vmatpush3.msra.mxu1 %v7414_v50 }
0x149d   : > { %9681 = vmatprep.subr.mxu1 %v7413_v46 }
0x149e   : > { %9682 = vmatpush3.msra.mxu1 %v7413_v46 }
0x149f   : > { %9683 = vmatprep.subr.mxu1 %v7412_v25 }
0x14a0   : > { %9684 = vmatpush3.msra.mxu1 %v7412_v25 }
0x14a1   : > { %9685 = vmatprep.subr.mxu1 %v7411_v31 }
0x14a2   : > { %9686 = vmatpush3.msra.mxu1 %v7411_v31 }
0x14a3   : > { %9687 = vmatprep.subr.mxu1 %v7410_v56 }
0x14a4   : > { %9688 = vmatpush3.msra.mxu1 %v7410_v56 }
0x14a5   : > { %9689 = vmatprep.subr.mxu1 %v7409_v57 }
0x14a6   : > { %9690 = vmatpush3.msra.mxu1 %v7409_v57 }
0x14a7   : > { %9691 = vmatprep.subr.mxu1 %v7408_v52 }
0x14a8   : > { %9692 = vmatpush3.msra.mxu1 %v7408_v52 }
0x14a9   : > { %9693 = vmatprep.subr.mxu1 %v7407_v58 }
0x14aa   : > { %9694 = vmatpush3.msra.mxu1 %v7407_v58 }
0x14ab   : > { %9695 = vmatprep.subr.mxu1 %v7406_v59 }
0x14ac   : > { %9696 = vmatpush3.msra.mxu1 %v7406_v59 }
0x14ad   : > { %9697 = vmatprep.subr.mxu1 %v7405_v60 }
0x14ae   : > { %9698 = vmatpush3.msra.mxu1 %v7405_v60 }
0x14af   : > { %9699 = vmatprep.subr.mxu1 %v7404_v62 }
0x14b0   : > { %9700 = vmatpush3.msra.mxu1 %v7404_v62 }
0x14b1   : > { %9701 = vmatprep.subr.mxu1 %v7403_v61 }
0x14b2   : > { %9702 = vmatpush3.msra.mxu1 %v7403_v61 }
0x14b3   : > { %9703 = vmatprep.subr.mxu1 %v7402_v3 }
0x14b4   : > { %9704 = vmatpush3.msra.mxu1 %v7402_v3 }
0x14b5   : > { %9705 = vmatprep.subr.mxu1 %v7401_v49 }
0x14b6   : > { %9706 = vmatpush3.msra.mxu1 %v7401_v49 }
0x14b7   : > { %9707 = vmatprep.subr.mxu1 %v7400_v5 }
0x14b8   : > { %9708 = vmatpush3.msra.mxu1 %v7400_v5 }
0x150c   : > { %v9676_v29 = vpop.f32.mrf.mxu0 }
0x150d   : > { %v7387_v8 = vadd.f32 %v9676_v29, %v7936_v6 }
0x150e   : > { %v7381_v10 = vpop.f32.mrf.mxu0 }
0x150f   : > { %v7393_v11 = vmul.f32 0.70710677, %v7387_v8  ;;  %v7382_v13 = vadd.f32 %v7936_v6, %v7381_v10  ;;  %v7391_v17 = vmul.f32 0.5, %v7387_v8 }
0x1511   : > { %9857 = verf.f32 %v7393_v11  ;;  %v7392_v14 = vmul.f32 0.70710677, %v7382_v13  ;;  %v7390_v16 = vmul.f32 0.5, %v7382_v13 }
0x1513   : > { %9859 = verf.f32 %v7392_v14 }
0x151e   : > { %v9858_v15 = vpop.eup %9857 }
0x151f   : > { %v7397_v12 = vadd.f32 1.0, %v9858_v15 }
0x1520   : > { %v9860_v35 = vpop.eup %9859 }
0x1521   : > { %v7396_v48 = vadd.f32 1.0, %v9860_v35  ;;  %v7399_v19 = vmul.f32 %v7397_v12, %v7391_v17 }
0x1523   : > { %v7398_v18 = vmul.f32 %v7396_v48, %v7390_v16 }
0x1525   : > { %9709 = vmatprep.mubr.f32.mxu1 %v7398_v18 }
0x1526   : > { %9710 = vmatmul.mubr.f32.vlgmr.msra.gmra.mxu1 %v7399_v19 }
0x1559   : > { %v9641_v20 = vpop.f32.mrf.mxu1 }
0x155a   : > { %v7245_v23 = vadd.f32 %v9641_v20, %v7933_v4 }
0x155b   : > { %v7239_v24 = vpop.f32.mrf.mxu1 }
0x155c   : > { %v7249_v26 = vadd.f32 %v7245_v23, %v10953_v21  ;;  %v7240_v27 = vadd.f32 %v7933_v4, %v7239_v24 }
0x155e   : > { %7501 = vst [vmem:[%s1326_s1 + $0x8] sm:$0xff] %v7249_v26  ;;  %v7248_v28 = vadd.f32 %v7240_v27, %v10957_v22 }
0x1560   : > { %7500 = vst [vmem:[%s1326_s1] sm:$0xff] %v7248_v28 }
0x15e6   : > { %v9711_v63 = vpop.f32.mrf.mxu1 }
0x15e7   : > { %v7495_v7 = vadd.f32 %v9711_v63, %v7937_v30 }
0x15e8   : > { %v7489_v33 = vpop.f32.mrf.mxu1 }
0x15e9   : > { %v7499_v34 = vadd.f32 %v7495_v7, %v10981_v1  ;;  %v7490_v37 = vadd.f32 %v7937_v30, %v7489_v33 }
0x15eb   : > { %7503 = vst [vmem:[%s1332_s3 + $0x8] sm:$0xff] %v7499_v34  ;;  %v7498_v39 = vadd.f32 %v7490_v37, %v10989_v2 }
0x15ed   : > { %7502 = vst [vmem:[%s1332_s3] sm:$0xff] %v7498_v39 }
0x15ee PF: > { %s98_s22 = sadd.s32 1, %s9871_s22  }
0x15ef   : > { %p95_p4 = scmp.ge.s32.totalorder %s98_s22, 4  }
0x15f1   :  { %97 = sbr.rel (!%p95_p4) target bundleno = 81 (0x51), region = 288 }

</bundles_post_ra>
